<compile_context>
chip_gen: v5e
topology: v5e:2x2
jax: 0.10.0
libtpu: 0.0.40
codegen_flags: <defaults>
</compile_context>

<pallas_src>
import functools

import numpy as np
import jax
import jax.numpy as jnp
from jax import lax
from jax.experimental import pallas as pl
from jax.experimental.pallas import tpu as pltpu

KERNEL_SIZE = 5
K_VOL = KERNEL_SIZE ** 3          # 125 kernel offsets
BN_EPS = 1e-5
C_PAD = 128                       # lane-dense output / weight columns
MAX_TILE_M = 512                  # row tile (v7x-safe; v6e/v5e could go larger)
VMEM_LIMIT = 64 * 1024 * 1024


def _round_up(x, m):
    return (x + m - 1) // m * m


def _choose_tiling(n_true):
    """Pick (tile_m, n_pad).  Rows padded to a multiple of 16 (bf16 sublane
    pairing) with at least one zero row past n_true (gather sentinel row)."""
    n_min = _round_up(n_true + 1, 16)
    if n_min <= MAX_TILE_M:
        return n_min, n_min
    return MAX_TILE_M, _round_up(n_min, MAX_TILE_M)


# ----------------------------- Pallas kernels ------------------------------ #
def _conv_stats_kernel(g_ref, w_ref, out_ref, sum_ref, sq_ref):
    """One row tile of the sparse conv + BN statistics accumulation.

      g_ref   : (TILE_M, KC_pad) bf16  gathered neighbor features (zero-padded)
      w_ref   : (KC_pad, 128)    bf16  reshaped weights (VMEM-resident)
      out_ref : (TILE_M, 128)    f32   raw conv output tile
      sum_ref : (1, 128)         f32   running column sum   (resident accumulator)
      sq_ref  : (1, 128)         f32   running column sumsq (resident accumulator)
    """
    @pl.when(pl.program_id(0) == 0)
    def _():
        sum_ref[...] = jnp.zeros_like(sum_ref)
        sq_ref[...] = jnp.zeros_like(sq_ref)

    # Whole K*C_in reduction as ONE MXU matmul per row tile, f32 accumulation.
    x = jnp.dot(g_ref[...], w_ref[...], preferred_element_type=jnp.float32)
    out_ref[...] = x

    # Padded rows / padded columns of g are exactly zero, so they contribute
    # nothing to the batch statistics.
    sum_ref[...] = sum_ref[...] + jnp.sum(x, axis=0, keepdims=True)
    sq_ref[...] = sq_ref[...] + jnp.sum(x * x, axis=0, keepdims=True)


def _bn_relu_kernel(n_ref, x_ref, sum_ref, sq_ref, gamma_ref, beta_ref, o_ref,
                    *, tile_m):
    """BN finalize (exact batch stats over n_true rows) + ReLU, elementwise.

    Rows >= n_true are forced to zero so the padded buffer can be used directly
    as the next layer's gather input (row n_true is the sentinel zero row)."""
    n_true = n_ref[0]
    inv_n = 1.0 / n_true.astype(jnp.float32)
    mean = sum_ref[...] * inv_n
    var = jnp.maximum(sq_ref[...] * inv_n - mean * mean, 0.0)   # biased var
    s = gamma_ref[...] * lax.rsqrt(var + BN_EPS)
    b = beta_ref[...] - mean * s
    y = jnp.maximum(x_ref[...] * s + b, 0.0)

    row = pl.program_id(0) * tile_m + lax.broadcasted_iota(jnp.int32, y.shape, 0)
    o_ref[...] = jnp.where(row < n_true, y, 0.0).astype(o_ref.dtype)


# ------------------------------ Layer wrapper ------------------------------ #
def sparse_conv_bn_relu(x_pad, nmap_pad, w, gamma, beta, n_arr, *, tile_m,
                        out_dtype):
    """x_pad: [N_pad, C_in] bf16 (rows >= n_true are zero, row n_true = sentinel),
    nmap_pad: [N_pad, K] int32, w: [K, C_in, C_out] f32, gamma/beta: [1, C_out],
    n_arr: [1] int32 (= n_true).  Returns [N_pad, 128] `out_dtype`."""
    n_pad, c_in = x_pad.shape
    k = nmap_pad.shape[1]
    c_out = w.shape[-1]
    kc = k * c_in
    kc_pad = _round_up(kc, 128)
    n_tiles = n_pad // tile_m

    # Neighbor gather (XLA) directly in the [N_pad, K*C_in] layout, bf16.
    # TODO(synk): move this gather into the conv kernel (see header).
    g = x_pad[nmap_pad].reshape(n_pad, kc)
    if kc_pad != kc:
        g = jnp.pad(g, ((0, 0), (0, kc_pad - kc)))

    w2 = jnp.pad(w.reshape(kc, c_out).astype(jnp.bfloat16),
                 ((0, kc_pad - kc), (0, C_PAD - c_out)))
    gamma2 = jnp.pad(gamma, ((0, 0), (0, C_PAD - c_out)))        # pad -> 0
    beta2 = jnp.pad(beta, ((0, 0), (0, C_PAD - c_out)))          # pad -> 0

    # Pass 1: row-tiled, pipelined conv matmul + BN sum / sumsq accumulation.
    conv_out, s_sum, s_sq = pl.pallas_call(
        _conv_stats_kernel,
        grid=(n_tiles,),
        in_specs=[
            pl.BlockSpec((tile_m, kc_pad), lambda i: (i, 0)),    # g (streamed)
            pl.BlockSpec((kc_pad, C_PAD), lambda i: (0, 0)),     # w (resident)
        ],
        out_specs=[
            pl.BlockSpec((tile_m, C_PAD), lambda i: (i, 0)),     # conv out
            pl.BlockSpec((1, C_PAD), lambda i: (0, 0)),          # sum
            pl.BlockSpec((1, C_PAD), lambda i: (0, 0)),          # sumsq
        ],
        out_shape=[
            jax.ShapeDtypeStruct((n_pad, C_PAD), jnp.float32),
            jax.ShapeDtypeStruct((1, C_PAD), jnp.float32),
            jax.ShapeDtypeStruct((1, C_PAD), jnp.float32),
        ],
        compiler_params=pltpu.CompilerParams(
            dimension_semantics=("arbitrary",),                  # stats accumulate
            vmem_limit_bytes=VMEM_LIMIT),
        cost_estimate=pl.CostEstimate(
            flops=2 * n_pad * kc_pad * C_PAD,
            transcendentals=0,
            bytes_accessed=n_pad * kc_pad * 2 + kc_pad * C_PAD * 2
            + n_pad * C_PAD * 4),
    )(g, w2)

    # Pass 2: BN finalize (fold into scale/shift) + ReLU + padded-row zeroing.
    act = pl.pallas_call(
        functools.partial(_bn_relu_kernel, tile_m=tile_m),
        grid_spec=pltpu.PrefetchScalarGridSpec(
            num_scalar_prefetch=1,                               # n_true in SMEM
            grid=(n_tiles,),
            in_specs=[
                pl.BlockSpec((tile_m, C_PAD), lambda i, n: (i, 0)),
                pl.BlockSpec((1, C_PAD), lambda i, n: (0, 0)),
                pl.BlockSpec((1, C_PAD), lambda i, n: (0, 0)),
                pl.BlockSpec((1, C_PAD), lambda i, n: (0, 0)),
                pl.BlockSpec((1, C_PAD), lambda i, n: (0, 0)),
            ],
            out_specs=pl.BlockSpec((tile_m, C_PAD), lambda i, n: (i, 0))),
        out_shape=jax.ShapeDtypeStruct((n_pad, C_PAD), out_dtype),
        compiler_params=pltpu.CompilerParams(
            dimension_semantics=("parallel",),
            vmem_limit_bytes=VMEM_LIMIT),
    )(n_arr, conv_out, s_sum, s_sq, gamma2, beta2)
    return act


# ------------------------------ JAX/numpy glue ------------------------------ #
def build_neighbor_map(coords):
    """coords: [N, 3] int (single batch).  Returns nmap [N, K] int32 with
    sentinel N for missing neighbors."""
    N = coords.shape[0]
    r = KERNEL_SIZE // 2
    offs = np.stack(
        np.meshgrid(np.arange(-r, r + 1), np.arange(-r, r + 1),
                    np.arange(-r, r + 1), indexing="ij"),
        axis=-1).reshape(-1, 3)                                   # [K, 3]
    targets = coords[:, None, :] + offs[None, :, :]               # [N, K, 3]
    eq = (targets[:, :, None, :] == coords[None, None, :, :]).all(-1)  # [N,K,N]
    has = eq.any(-1)
    idx = eq.argmax(-1)
    return np.where(has, idx, N).astype(np.int32)                 # [N, K]


def init_params(key):
    """3 layers: conv weights [K, C_in, C_out] (no bias -- ME default),
    BN gamma=1 / beta=0 (nn.BatchNorm default init)."""
    params = []
    c_in = 1
    for c_out in (64, 64, 64):
        key, wk = jax.random.split(key)
        fan_in = K_VOL * c_in
        w = jax.random.normal(wk, (K_VOL, c_in, c_out), jnp.float32) * np.sqrt(
            2.0 / fan_in)
        gamma = jnp.ones((1, c_out), jnp.float32)
        beta = jnp.zeros((1, c_out), jnp.float32)
        params.append((w, gamma, beta))
        c_in = c_out
    return params


@jax.jit
def minknet_forward(feats, nmap_pad, params):
    n_true, c0 = feats.shape
    n_pad = nmap_pad.shape[0]
    tile_m = n_pad if n_pad <= MAX_TILE_M else MAX_TILE_M
    n_arr = jnp.array([n_true], dtype=jnp.int32)

    # Padded bf16 input features; rows >= n_true are zero (sentinel row n_true).
    x = jnp.zeros((n_pad, c0), jnp.bfloat16).at[:n_true].set(
        feats.astype(jnp.bfloat16))

    n_layers = len(params)
    for li, (w, gamma, beta) in enumerate(params):
        last = li == n_layers - 1
        out_dtype = jnp.float32 if last else jnp.bfloat16
        x = sparse_conv_bn_relu(x, nmap_pad, w, gamma, beta, n_arr,
                                tile_m=tile_m, out_dtype=out_dtype)
        if not last:
            # Keep bf16 padded buffer on-device; only trim the zero weight cols.
            x = x[:, :w.shape[-1]]
    return x[:n_true, :params[-1][0].shape[-1]]


# --------------------------------- main ------------------------------------- #
if __name__ == "__main__":
    key = jax.random.PRNGKey(0)
    key, ck, fk = jax.random.split(key, 3)

    # Synthetic sparse point cloud: N=64 unique voxels in a 16^3 grid, 1 feature.
    S, N = 16, 64
    flat = jax.random.choice(ck, S * S * S, (N,), replace=False)
    coords = np.stack(np.unravel_index(np.asarray(flat), (S, S, S)),
                      axis=-1).astype(np.int32)                   # [N, 3]
    feats = jax.random.normal(fk, (N, 1), jnp.float32)            # [N, 1]

    nmap = build_neighbor_map(coords)                             # [N, 125]
    tile_m, n_pad = _choose_tiling(N)
    nmap_pad_np = np.full((n_pad, K_VOL), N, np.int32)            # sentinel rows
    nmap_pad_np[:N] = nmap
    nmap_pad = jnp.asarray(nmap_pad_np)                           # [N_pad, 125]

    params = init_params(key)

    out = minknet_forward(feats, nmap_pad, params)                # [N, 64]
    jax.block_until_ready(out)
    assert out.shape == (N, 64) and out.dtype == jnp.float32
    assert bool(jnp.all(jnp.isfinite(out)))
    print("KERNEL_OK")
</pallas_src>

<mosaic_0001>
module attributes {stable_mosaic.version = 11 : i64} {
  func.func @_conv_stats_kernel(%arg0: i32, %arg1: memref<80x128xbf16, #tpu.memory_space<vmem>>, %arg2: memref<128x128xbf16, #tpu.memory_space<vmem>>, %arg3: memref<80x128xf32, #tpu.memory_space<vmem>>, %arg4: memref<1x128xf32, #tpu.memory_space<vmem>>, %arg5: memref<1x128xf32, #tpu.memory_space<vmem>>) attributes {dimension_semantics = [#tpu.dimension_semantics<arbitrary>], iteration_bounds = array<i64: 1>, scalar_prefetch = 0 : i64, scratch_operands = 0 : i64, tpu.core_type = #tpu.core_type<tc>, window_params = [{transform_indices = @transform_0, window_bounds = array<i64: 80, 128>}, {pipeline_mode = #tpu.pipeline_mode<synchronous>, transform_indices = @transform_1, window_bounds = array<i64: 128, 128>}, {transform_indices = @transform_2, window_bounds = array<i64: 80, 128>}, {pipeline_mode = #tpu.pipeline_mode<synchronous>, transform_indices = @transform_3, window_bounds = array<i64: 1, 128>}, {pipeline_mode = #tpu.pipeline_mode<synchronous>, transform_indices = @transform_4, window_bounds = array<i64: 1, 128>}]} {
    %c0_i32 = arith.constant 0 : i32
    %0 = arith.cmpi eq, %arg0, %c0_i32 : i32
    %1 = arith.extui %0 : i1 to i32
    %c0_i32_0 = arith.constant 0 : i32
    %2 = arith.cmpi ne, %1, %c0_i32_0 : i32
    scf.if %2 {
      %cst_16 = arith.constant 0.000000e+00 : f32
      %18 = vector.broadcast %cst_16 : f32 to vector<1x128xf32>
      %c0_17 = arith.constant 0 : index
      %c0_18 = arith.constant 0 : index
      %19 = vector.load %arg4[%c0_17, %c0_18] : memref<1x128xf32, #tpu.memory_space<vmem>>, vector<1x128xf32>
      tpu.vector_store %arg4[%c0_17, %c0_18], %18 {strides = array<i32>} : memref<1x128xf32, #tpu.memory_space<vmem>>, vector<1x128xf32>,
      %cst_19 = arith.constant 0.000000e+00 : f32
      %20 = vector.broadcast %cst_19 : f32 to vector<1x128xf32>
      %c0_20 = arith.constant 0 : index
      %c0_21 = arith.constant 0 : index
      %21 = vector.load %arg5[%c0_20, %c0_21] : memref<1x128xf32, #tpu.memory_space<vmem>>, vector<1x128xf32>
      tpu.vector_store %arg5[%c0_20, %c0_21], %20 {strides = array<i32>} : memref<1x128xf32, #tpu.memory_space<vmem>>, vector<1x128xf32>,
    } else {
    }
    %c0 = arith.constant 0 : index
    %c0_1 = arith.constant 0 : index
    %3 = vector.load %arg1[%c0, %c0_1] : memref<80x128xbf16, #tpu.memory_space<vmem>>, vector<80x128xbf16>
    %c0_2 = arith.constant 0 : index
    %c0_3 = arith.constant 0 : index
    %4 = vector.load %arg2[%c0_2, %c0_3] : memref<128x128xbf16, #tpu.memory_space<vmem>>, vector<128x128xbf16>
    %cst = arith.constant dense<0.000000e+00> : vector<80x128xf32>
    %5 = tpu.matmul %3, %4, %cst {dimension_numbers = #tpu.dot_dimension_numbers<[1], [0], [0], [1], [0, 0, 1, 1], [], []>} : vector<80x128xbf16>, vector<128x128xbf16>, vector<80x128xf32> -> vector<80x128xf32>
    %c0_4 = arith.constant 0 : index
    %c0_5 = arith.constant 0 : index
    %6 = vector.load %arg3[%c0_4, %c0_5] : memref<80x128xf32, #tpu.memory_space<vmem>>, vector<80x128xf32>
    tpu.vector_store %arg3[%c0_4, %c0_5], %5 {strides = array<i32>} : memref<80x128xf32, #tpu.memory_space<vmem>>, vector<80x128xf32>,
    %c0_6 = arith.constant 0 : index
    %c0_7 = arith.constant 0 : index
    %7 = vector.load %arg4[%c0_6, %c0_7] : memref<1x128xf32, #tpu.memory_space<vmem>>, vector<1x128xf32>
    %cst_8 = arith.constant dense<0.000000e+00> : vector<128xf32>
    %8 = vector.multi_reduction <add>, %5, %cst_8 [0] : vector<80x128xf32> to vector<128xf32>
    %9 = vector.shape_cast %8 : vector<128xf32> to vector<1x128xf32>
    %10 = arith.addf %7, %9 : vector<1x128xf32>
    %c0_9 = arith.constant 0 : index
    %c0_10 = arith.constant 0 : index
    %11 = vector.load %arg4[%c0_9, %c0_10] : memref<1x128xf32, #tpu.memory_space<vmem>>, vector<1x128xf32>
    tpu.vector_store %arg4[%c0_9, %c0_10], %10 {strides = array<i32>} : memref<1x128xf32, #tpu.memory_space<vmem>>, vector<1x128xf32>,
    %c0_11 = arith.constant 0 : index
    %c0_12 = arith.constant 0 : index
    %12 = vector.load %arg5[%c0_11, %c0_12] : memref<1x128xf32, #tpu.memory_space<vmem>>, vector<1x128xf32>
    %13 = arith.mulf %5, %5 : vector<80x128xf32>
    %cst_13 = arith.constant dense<0.000000e+00> : vector<128xf32>
    %14 = vector.multi_reduction <add>, %13, %cst_13 [0] : vector<80x128xf32> to vector<128xf32>
    %15 = vector.shape_cast %14 : vector<128xf32> to vector<1x128xf32>
    %16 = arith.addf %12, %15 : vector<1x128xf32>
    %c0_14 = arith.constant 0 : index
    %c0_15 = arith.constant 0 : index
    %17 = vector.load %arg5[%c0_14, %c0_15] : memref<1x128xf32, #tpu.memory_space<vmem>>, vector<1x128xf32>
    tpu.vector_store %arg5[%c0_14, %c0_15], %16 {strides = array<i32>} : memref<1x128xf32, #tpu.memory_space<vmem>>, vector<1x128xf32>,
    return
  }
  func.func @transform_0(%arg0: i32) -> (i32, i32) {
    %c0_i32 = arith.constant 0 : i32
    %c0_i32_0 = arith.constant 0 : i32
    return %arg0, %c0_i32 : i32, i32
  }
  func.func @transform_1(%arg0: i32) -> (i32, i32) {
    %c0_i32 = arith.constant 0 : i32
    %c0_i32_0 = arith.constant 0 : i32
    %c0_i32_1 = arith.constant 0 : i32
    return %c0_i32, %c0_i32_0 : i32, i32
  }
  func.func @transform_2(%arg0: i32) -> (i32, i32) {
    %c0_i32 = arith.constant 0 : i32
    %c0_i32_0 = arith.constant 0 : i32
    return %arg0, %c0_i32 : i32, i32
  }
  func.func @transform_3(%arg0: i32) -> (i32, i32) {
    %c0_i32 = arith.constant 0 : i32
    %c0_i32_0 = arith.constant 0 : i32
    %c0_i32_1 = arith.constant 0 : i32
    return %c0_i32, %c0_i32_0 : i32, i32
  }
  func.func @transform_4(%arg0: i32) -> (i32, i32) {
    %c0_i32 = arith.constant 0 : i32
    %c0_i32_0 = arith.constant 0 : i32
    %c0_i32_1 = arith.constant 0 : i32
    return %c0_i32, %c0_i32_0 : i32, i32
  }
}

module attributes {stable_mosaic.version = 11 : i64} {
  func.func @_bn_relu_kernel(%arg0: i32, %arg1: memref<1xi32, #tpu.memory_space<smem>>, %arg2: memref<80x128xf32, #tpu.memory_space<vmem>>, %arg3: memref<1x128xf32, #tpu.memory_space<vmem>>, %arg4: memref<1x128xf32, #tpu.memory_space<vmem>>, %arg5: memref<1x128xf32, #tpu.memory_space<vmem>>, %arg6: memref<1x128xf32, #tpu.memory_space<vmem>>, %arg7: memref<80x128xbf16, #tpu.memory_space<vmem>>) attributes {dimension_semantics = [#tpu.dimension_semantics<parallel>], iteration_bounds = array<i64: 1>, scalar_prefetch = 1 : i64, scratch_operands = 0 : i64, tpu.core_type = #tpu.core_type<tc>, window_params = [{transform_indices = @transform_0, window_bounds = array<i64: 80, 128>}, {pipeline_mode = #tpu.pipeline_mode<synchronous>, transform_indices = @transform_1, window_bounds = array<i64: 1, 128>}, {pipeline_mode = #tpu.pipeline_mode<synchronous>, transform_indices = @transform_2, window_bounds = array<i64: 1, 128>}, {pipeline_mode = #tpu.pipeline_mode<synchronous>, transform_indices = @transform_3, window_bounds = array<i64: 1, 128>}, {pipeline_mode = #tpu.pipeline_mode<synchronous>, transform_indices = @transform_4, window_bounds = array<i64: 1, 128>}, {transform_indices = @transform_5, window_bounds = array<i64: 80, 128>}]} {
    %c0 = arith.constant 0 : index
    %0 = memref.load %arg1[%c0] : memref<1xi32, #tpu.memory_space<smem>>
    %1 = arith.sitofp %0 : i32 to f32
    %cst = arith.constant 1.000000e+00 : f32
    %2 = arith.divf %cst, %1 : f32
    %c0_0 = arith.constant 0 : index
    %c0_1 = arith.constant 0 : index
    %3 = vector.load %arg3[%c0_0, %c0_1] : memref<1x128xf32, #tpu.memory_space<vmem>>, vector<1x128xf32>
    %4 = vector.broadcast %2 : f32 to vector<1x128xf32>
    %5 = arith.mulf %3, %4 : vector<1x128xf32>
    %c0_2 = arith.constant 0 : index
    %c0_3 = arith.constant 0 : index
    %6 = vector.load %arg4[%c0_2, %c0_3] : memref<1x128xf32, #tpu.memory_space<vmem>>, vector<1x128xf32>
    %7 = vector.broadcast %2 : f32 to vector<1x128xf32>
    %8 = arith.mulf %6, %7 : vector<1x128xf32>
    %9 = arith.mulf %5, %5 : vector<1x128xf32>
    %10 = arith.subf %8, %9 : vector<1x128xf32>
    %cst_4 = arith.constant 0.000000e+00 : f32
    %11 = vector.broadcast %cst_4 : f32 to vector<1x128xf32>
    %12 = arith.maximumf %10, %11 : vector<1x128xf32>
    %c0_5 = arith.constant 0 : index
    %c0_6 = arith.constant 0 : index
    %13 = vector.load %arg5[%c0_5, %c0_6] : memref<1x128xf32, #tpu.memory_space<vmem>>, vector<1x128xf32>
    %cst_7 = arith.constant 9.99999974E-6 : f32
    %14 = vector.broadcast %cst_7 : f32 to vector<1x128xf32>
    %15 = arith.addf %12, %14 : vector<1x128xf32>
    %16 = math.rsqrt %15 : vector<1x128xf32>
    %17 = arith.mulf %13, %16 : vector<1x128xf32>
    %c0_8 = arith.constant 0 : index
    %c0_9 = arith.constant 0 : index
    %18 = vector.load %arg6[%c0_8, %c0_9] : memref<1x128xf32, #tpu.memory_space<vmem>>, vector<1x128xf32>
    %19 = arith.mulf %5, %17 : vector<1x128xf32>
    %20 = arith.subf %18, %19 : vector<1x128xf32>
    %c0_10 = arith.constant 0 : index
    %c0_11 = arith.constant 0 : index
    %21 = vector.load %arg2[%c0_10, %c0_11] : memref<80x128xf32, #tpu.memory_space<vmem>>, vector<80x128xf32>
    %22 = vector.broadcast %17 : vector<1x128xf32> to vector<80x128xf32>
    %23 = arith.mulf %21, %22 : vector<80x128xf32>
    %24 = vector.broadcast %20 : vector<1x128xf32> to vector<80x128xf32>
    %25 = arith.addf %23, %24 : vector<80x128xf32>
    %cst_12 = arith.constant 0.000000e+00 : f32
    %26 = vector.broadcast %cst_12 : f32 to vector<80x128xf32>
    %27 = arith.maximumf %25, %26 : vector<80x128xf32>
    %c80_i32 = arith.constant 80 : i32
    %28 = arith.muli %arg0, %c80_i32 : i32
    %29 = tpu.iota {dimensions = array<i32: 0>} : vector<80x128xi32>
    %30 = vector.broadcast %28 : i32 to vector<80x128xi32>
    %31 = arith.addi %30, %29 : vector<80x128xi32>
    %32 = vector.broadcast %0 : i32 to vector<80x128xi32>
    %33 = arith.cmpi slt, %31, %32 : vector<80x128xi32>
    %cst_13 = arith.constant 0.000000e+00 : f32
    %34 = vector.broadcast %cst_13 : f32 to vector<80x128xf32>
    %35 = arith.select %33, %27, %34 : vector<80x128xi1>, vector<80x128xf32>
    %36 = arith.truncf %35 : vector<80x128xf32> to vector<80x128xbf16>
    %c0_14 = arith.constant 0 : index
    %c0_15 = arith.constant 0 : index
    %37 = vector.load %arg7[%c0_14, %c0_15] : memref<80x128xbf16, #tpu.memory_space<vmem>>, vector<80x128xbf16>
    tpu.vector_store %arg7[%c0_14, %c0_15], %36 {strides = array<i32>} : memref<80x128xbf16, #tpu.memory_space<vmem>>, vector<80x128xbf16>,
    return
  }
  func.func @transform_0(%arg0: i32, %arg1: memref<1xi32, #tpu.memory_space<smem>>) -> (i32, i32) {
    %c0_i32 = arith.constant 0 : i32
    %c0_i32_0 = arith.constant 0 : i32
    return %arg0, %c0_i32 : i32, i32
  }
  func.func @transform_1(%arg0: i32, %arg1: memref<1xi32, #tpu.memory_space<smem>>) -> (i32, i32) {
    %c0_i32 = arith.constant 0 : i32
    %c0_i32_0 = arith.constant 0 : i32
    %c0_i32_1 = arith.constant 0 : i32
    return %c0_i32, %c0_i32_0 : i32, i32
  }
  func.func @transform_2(%arg0: i32, %arg1: memref<1xi32, #tpu.memory_space<smem>>) -> (i32, i32) {
    %c0_i32 = arith.constant 0 : i32
    %c0_i32_0 = arith.constant 0 : i32
    %c0_i32_1 = arith.constant 0 : i32
    return %c0_i32, %c0_i32_0 : i32, i32
  }
  func.func @transform_3(%arg0: i32, %arg1: memref<1xi32, #tpu.memory_space<smem>>) -> (i32, i32) {
    %c0_i32 = arith.constant 0 : i32
    %c0_i32_0 = arith.constant 0 : i32
    %c0_i32_1 = arith.constant 0 : i32
    return %c0_i32, %c0_i32_0 : i32, i32
  }
  func.func @transform_4(%arg0: i32, %arg1: memref<1xi32, #tpu.memory_space<smem>>) -> (i32, i32) {
    %c0_i32 = arith.constant 0 : i32
    %c0_i32_0 = arith.constant 0 : i32
    %c0_i32_1 = arith.constant 0 : i32
    return %c0_i32, %c0_i32_0 : i32, i32
  }
  func.func @transform_5(%arg0: i32, %arg1: memref<1xi32, #tpu.memory_space<smem>>) -> (i32, i32) {
    %c0_i32 = arith.constant 0 : i32
    %c0_i32_0 = arith.constant 0 : i32
    return %arg0, %c0_i32 : i32, i32
  }
}

module attributes {stable_mosaic.version = 11 : i64} {
  func.func @_conv_stats_kernel(%arg0: i32, %arg1: memref<80x8064xbf16, #tpu.memory_space<vmem>>, %arg2: memref<8064x128xbf16, #tpu.memory_space<vmem>>, %arg3: memref<80x128xf32, #tpu.memory_space<vmem>>, %arg4: memref<1x128xf32, #tpu.memory_space<vmem>>, %arg5: memref<1x128xf32, #tpu.memory_space<vmem>>) attributes {dimension_semantics = [#tpu.dimension_semantics<arbitrary>], iteration_bounds = array<i64: 1>, scalar_prefetch = 0 : i64, scratch_operands = 0 : i64, tpu.core_type = #tpu.core_type<tc>, window_params = [{transform_indices = @transform_0, window_bounds = array<i64: 80, 8064>}, {pipeline_mode = #tpu.pipeline_mode<synchronous>, transform_indices = @transform_1, window_bounds = array<i64: 8064, 128>}, {transform_indices = @transform_2, window_bounds = array<i64: 80, 128>}, {pipeline_mode = #tpu.pipeline_mode<synchronous>, transform_indices = @transform_3, window_bounds = array<i64: 1, 128>}, {pipeline_mode = #tpu.pipeline_mode<synchronous>, transform_indices = @transform_4, window_bounds = array<i64: 1, 128>}]} {
    %c0_i32 = arith.constant 0 : i32
    %0 = arith.cmpi eq, %arg0, %c0_i32 : i32
    %1 = arith.extui %0 : i1 to i32
    %c0_i32_0 = arith.constant 0 : i32
    %2 = arith.cmpi ne, %1, %c0_i32_0 : i32
    scf.if %2 {
      %cst_16 = arith.constant 0.000000e+00 : f32
      %18 = vector.broadcast %cst_16 : f32 to vector<1x128xf32>
      %c0_17 = arith.constant 0 : index
      %c0_18 = arith.constant 0 : index
      %19 = vector.load %arg4[%c0_17, %c0_18] : memref<1x128xf32, #tpu.memory_space<vmem>>, vector<1x128xf32>
      tpu.vector_store %arg4[%c0_17, %c0_18], %18 {strides = array<i32>} : memref<1x128xf32, #tpu.memory_space<vmem>>, vector<1x128xf32>,
      %cst_19 = arith.constant 0.000000e+00 : f32
      %20 = vector.broadcast %cst_19 : f32 to vector<1x128xf32>
      %c0_20 = arith.constant 0 : index
      %c0_21 = arith.constant 0 : index
      %21 = vector.load %arg5[%c0_20, %c0_21] : memref<1x128xf32, #tpu.memory_space<vmem>>, vector<1x128xf32>
      tpu.vector_store %arg5[%c0_20, %c0_21], %20 {strides = array<i32>} : memref<1x128xf32, #tpu.memory_space<vmem>>, vector<1x128xf32>,
    } else {
    }
    %c0 = arith.constant 0 : index
    %c0_1 = arith.constant 0 : index
    %3 = vector.load %arg1[%c0, %c0_1] : memref<80x8064xbf16, #tpu.memory_space<vmem>>, vector<80x8064xbf16>
    %c0_2 = arith.constant 0 : index
    %c0_3 = arith.constant 0 : index
    %4 = vector.load %arg2[%c0_2, %c0_3] : memref<8064x128xbf16, #tpu.memory_space<vmem>>, vector<8064x128xbf16>
    %cst = arith.constant dense<0.000000e+00> : vector<80x128xf32>
    %5 = tpu.matmul %3, %4, %cst {dimension_numbers = #tpu.dot_dimension_numbers<[1], [0], [0], [1], [0, 0, 1, 1], [], []>} : vector<80x8064xbf16>, vector<8064x128xbf16>, vector<80x128xf32> -> vector<80x128xf32>
    %c0_4 = arith.constant 0 : index
    %c0_5 = arith.constant 0 : index
    %6 = vector.load %arg3[%c0_4, %c0_5] : memref<80x128xf32, #tpu.memory_space<vmem>>, vector<80x128xf32>
    tpu.vector_store %arg3[%c0_4, %c0_5], %5 {strides = array<i32>} : memref<80x128xf32, #tpu.memory_space<vmem>>, vector<80x128xf32>,
    %c0_6 = arith.constant 0 : index
    %c0_7 = arith.constant 0 : index
    %7 = vector.load %arg4[%c0_6, %c0_7] : memref<1x128xf32, #tpu.memory_space<vmem>>, vector<1x128xf32>
    %cst_8 = arith.constant dense<0.000000e+00> : vector<128xf32>
    %8 = vector.multi_reduction <add>, %5, %cst_8 [0] : vector<80x128xf32> to vector<128xf32>
    %9 = vector.shape_cast %8 : vector<128xf32> to vector<1x128xf32>
    %10 = arith.addf %7, %9 : vector<1x128xf32>
    %c0_9 = arith.constant 0 : index
    %c0_10 = arith.constant 0 : index
    %11 = vector.load %arg4[%c0_9, %c0_10] : memref<1x128xf32, #tpu.memory_space<vmem>>, vector<1x128xf32>
    tpu.vector_store %arg4[%c0_9, %c0_10], %10 {strides = array<i32>} : memref<1x128xf32, #tpu.memory_space<vmem>>, vector<1x128xf32>,
    %c0_11 = arith.constant 0 : index
    %c0_12 = arith.constant 0 : index
    %12 = vector.load %arg5[%c0_11, %c0_12] : memref<1x128xf32, #tpu.memory_space<vmem>>, vector<1x128xf32>
    %13 = arith.mulf %5, %5 : vector<80x128xf32>
    %cst_13 = arith.constant dense<0.000000e+00> : vector<128xf32>
    %14 = vector.multi_reduction <add>, %13, %cst_13 [0] : vector<80x128xf32> to vector<128xf32>
    %15 = vector.shape_cast %14 : vector<128xf32> to vector<1x128xf32>
    %16 = arith.addf %12, %15 : vector<1x128xf32>
    %c0_14 = arith.constant 0 : index
    %c0_15 = arith.constant 0 : index
    %17 = vector.load %arg5[%c0_14, %c0_15] : memref<1x128xf32, #tpu.memory_space<vmem>>, vector<1x128xf32>
    tpu.vector_store %arg5[%c0_14, %c0_15], %16 {strides = array<i32>} : memref<1x128xf32, #tpu.memory_space<vmem>>, vector<1x128xf32>,
    return
  }
  func.func @transform_0(%arg0: i32) -> (i32, i32) {
    %c0_i32 = arith.constant 0 : i32
    %c0_i32_0 = arith.constant 0 : i32
    return %arg0, %c0_i32 : i32, i32
  }
  func.func @transform_1(%arg0: i32) -> (i32, i32) {
    %c0_i32 = arith.constant 0 : i32
    %c0_i32_0 = arith.constant 0 : i32
    %c0_i32_1 = arith.constant 0 : i32
    return %c0_i32, %c0_i32_0 : i32, i32
  }
  func.func @transform_2(%arg0: i32) -> (i32, i32) {
    %c0_i32 = arith.constant 0 : i32
    %c0_i32_0 = arith.constant 0 : i32
    return %arg0, %c0_i32 : i32, i32
  }
  func.func @transform_3(%arg0: i32) -> (i32, i32) {
    %c0_i32 = arith.constant 0 : i32
    %c0_i32_0 = arith.constant 0 : i32
    %c0_i32_1 = arith.constant 0 : i32
    return %c0_i32, %c0_i32_0 : i32, i32
  }
  func.func @transform_4(%arg0: i32) -> (i32, i32) {
    %c0_i32 = arith.constant 0 : i32
    %c0_i32_0 = arith.constant 0 : i32
    %c0_i32_1 = arith.constant 0 : i32
    return %c0_i32, %c0_i32_0 : i32, i32
  }
}

module attributes {stable_mosaic.version = 11 : i64} {
  func.func @_bn_relu_kernel(%arg0: i32, %arg1: memref<1xi32, #tpu.memory_space<smem>>, %arg2: memref<80x128xf32, #tpu.memory_space<vmem>>, %arg3: memref<1x128xf32, #tpu.memory_space<vmem>>, %arg4: memref<1x128xf32, #tpu.memory_space<vmem>>, %arg5: memref<1x128xf32, #tpu.memory_space<vmem>>, %arg6: memref<1x128xf32, #tpu.memory_space<vmem>>, %arg7: memref<80x128xf32, #tpu.memory_space<vmem>>) attributes {dimension_semantics = [#tpu.dimension_semantics<parallel>], iteration_bounds = array<i64: 1>, scalar_prefetch = 1 : i64, scratch_operands = 0 : i64, tpu.core_type = #tpu.core_type<tc>, window_params = [{transform_indices = @transform_0, window_bounds = array<i64: 80, 128>}, {pipeline_mode = #tpu.pipeline_mode<synchronous>, transform_indices = @transform_1, window_bounds = array<i64: 1, 128>}, {pipeline_mode = #tpu.pipeline_mode<synchronous>, transform_indices = @transform_2, window_bounds = array<i64: 1, 128>}, {pipeline_mode = #tpu.pipeline_mode<synchronous>, transform_indices = @transform_3, window_bounds = array<i64: 1, 128>}, {pipeline_mode = #tpu.pipeline_mode<synchronous>, transform_indices = @transform_4, window_bounds = array<i64: 1, 128>}, {transform_indices = @transform_5, window_bounds = array<i64: 80, 128>}]} {
    %c0 = arith.constant 0 : index
    %0 = memref.load %arg1[%c0] : memref<1xi32, #tpu.memory_space<smem>>
    %1 = arith.sitofp %0 : i32 to f32
    %cst = arith.constant 1.000000e+00 : f32
    %2 = arith.divf %cst, %1 : f32
    %c0_0 = arith.constant 0 : index
    %c0_1 = arith.constant 0 : index
    %3 = vector.load %arg3[%c0_0, %c0_1] : memref<1x128xf32, #tpu.memory_space<vmem>>, vector<1x128xf32>
    %4 = vector.broadcast %2 : f32 to vector<1x128xf32>
    %5 = arith.mulf %3, %4 : vector<1x128xf32>
    %c0_2 = arith.constant 0 : index
    %c0_3 = arith.constant 0 : index
    %6 = vector.load %arg4[%c0_2, %c0_3] : memref<1x128xf32, #tpu.memory_space<vmem>>, vector<1x128xf32>
    %7 = vector.broadcast %2 : f32 to vector<1x128xf32>
    %8 = arith.mulf %6, %7 : vector<1x128xf32>
    %9 = arith.mulf %5, %5 : vector<1x128xf32>
    %10 = arith.subf %8, %9 : vector<1x128xf32>
    %cst_4 = arith.constant 0.000000e+00 : f32
    %11 = vector.broadcast %cst_4 : f32 to vector<1x128xf32>
    %12 = arith.maximumf %10, %11 : vector<1x128xf32>
    %c0_5 = arith.constant 0 : index
    %c0_6 = arith.constant 0 : index
    %13 = vector.load %arg5[%c0_5, %c0_6] : memref<1x128xf32, #tpu.memory_space<vmem>>, vector<1x128xf32>
    %cst_7 = arith.constant 9.99999974E-6 : f32
    %14 = vector.broadcast %cst_7 : f32 to vector<1x128xf32>
    %15 = arith.addf %12, %14 : vector<1x128xf32>
    %16 = math.rsqrt %15 : vector<1x128xf32>
    %17 = arith.mulf %13, %16 : vector<1x128xf32>
    %c0_8 = arith.constant 0 : index
    %c0_9 = arith.constant 0 : index
    %18 = vector.load %arg6[%c0_8, %c0_9] : memref<1x128xf32, #tpu.memory_space<vmem>>, vector<1x128xf32>
    %19 = arith.mulf %5, %17 : vector<1x128xf32>
    %20 = arith.subf %18, %19 : vector<1x128xf32>
    %c0_10 = arith.constant 0 : index
    %c0_11 = arith.constant 0 : index
    %21 = vector.load %arg2[%c0_10, %c0_11] : memref<80x128xf32, #tpu.memory_space<vmem>>, vector<80x128xf32>
    %22 = vector.broadcast %17 : vector<1x128xf32> to vector<80x128xf32>
    %23 = arith.mulf %21, %22 : vector<80x128xf32>
    %24 = vector.broadcast %20 : vector<1x128xf32> to vector<80x128xf32>
    %25 = arith.addf %23, %24 : vector<80x128xf32>
    %cst_12 = arith.constant 0.000000e+00 : f32
    %26 = vector.broadcast %cst_12 : f32 to vector<80x128xf32>
    %27 = arith.maximumf %25, %26 : vector<80x128xf32>
    %c80_i32 = arith.constant 80 : i32
    %28 = arith.muli %arg0, %c80_i32 : i32
    %29 = tpu.iota {dimensions = array<i32: 0>} : vector<80x128xi32>
    %30 = vector.broadcast %28 : i32 to vector<80x128xi32>
    %31 = arith.addi %30, %29 : vector<80x128xi32>
    %32 = vector.broadcast %0 : i32 to vector<80x128xi32>
    %33 = arith.cmpi slt, %31, %32 : vector<80x128xi32>
    %cst_13 = arith.constant 0.000000e+00 : f32
    %34 = vector.broadcast %cst_13 : f32 to vector<80x128xf32>
    %35 = arith.select %33, %27, %34 : vector<80x128xi1>, vector<80x128xf32>
    %c0_14 = arith.constant 0 : index
    %c0_15 = arith.constant 0 : index
    %36 = vector.load %arg7[%c0_14, %c0_15] : memref<80x128xf32, #tpu.memory_space<vmem>>, vector<80x128xf32>
    tpu.vector_store %arg7[%c0_14, %c0_15], %35 {strides = array<i32>} : memref<80x128xf32, #tpu.memory_space<vmem>>, vector<80x128xf32>,
    return
  }
  func.func @transform_0(%arg0: i32, %arg1: memref<1xi32, #tpu.memory_space<smem>>) -> (i32, i32) {
    %c0_i32 = arith.constant 0 : i32
    %c0_i32_0 = arith.constant 0 : i32
    return %arg0, %c0_i32 : i32, i32
  }
  func.func @transform_1(%arg0: i32, %arg1: memref<1xi32, #tpu.memory_space<smem>>) -> (i32, i32) {
    %c0_i32 = arith.constant 0 : i32
    %c0_i32_0 = arith.constant 0 : i32
    %c0_i32_1 = arith.constant 0 : i32
    return %c0_i32, %c0_i32_0 : i32, i32
  }
  func.func @transform_2(%arg0: i32, %arg1: memref<1xi32, #tpu.memory_space<smem>>) -> (i32, i32) {
    %c0_i32 = arith.constant 0 : i32
    %c0_i32_0 = arith.constant 0 : i32
    %c0_i32_1 = arith.constant 0 : i32
    return %c0_i32, %c0_i32_0 : i32, i32
  }
  func.func @transform_3(%arg0: i32, %arg1: memref<1xi32, #tpu.memory_space<smem>>) -> (i32, i32) {
    %c0_i32 = arith.constant 0 : i32
    %c0_i32_0 = arith.constant 0 : i32
    %c0_i32_1 = arith.constant 0 : i32
    return %c0_i32, %c0_i32_0 : i32, i32
  }
  func.func @transform_4(%arg0: i32, %arg1: memref<1xi32, #tpu.memory_space<smem>>) -> (i32, i32) {
    %c0_i32 = arith.constant 0 : i32
    %c0_i32_0 = arith.constant 0 : i32
    %c0_i32_1 = arith.constant 0 : i32
    return %c0_i32, %c0_i32_0 : i32, i32
  }
  func.func @transform_5(%arg0: i32, %arg1: memref<1xi32, #tpu.memory_space<smem>>) -> (i32, i32) {
    %c0_i32 = arith.constant 0 : i32
    %c0_i32_0 = arith.constant 0 : i32
    return %arg0, %c0_i32 : i32, i32
  }
}

</mosaic_0001>

<bundles_post_ra>
// kernel: minknet_forward.6
= control target key start
LH: loop header
LB: loop body
LE: loop exit
PB: predicated region body
PF: predicated region fallthrough
CT: control target
= control target key end

     0   :  { %v316_v13 = vmov 0.0   ;;  %s429_s1 = inlined_call_operand.vmem [shape: bf16[128,128], index: 1, kind: input, shape index: {}]   ;;  %s430_s0 = inlined_call_operand.vmem [shape: bf16[80,128], index: 0, kind: input, shape index: {}]   ;;  %s431_s3 = inlined_call_operand.vmem [shape: f32[1,128], index: 3, kind: output, shape index: {1}]   ;;  %s432_s4 = inlined_call_operand.vmem [shape: f32[1,128], index: 4, kind: output, shape index: {2}]   ;;  %s433_s2 = inlined_call_operand.vmem [shape: f32[80,128], index: 2, kind: output, shape index: {0}]  }
   0x1   :  { %v290_v0 = vld [vmem:[%s429_s1 + $0x38] sm:$0xff]  ;;  %v289_v1 = vld [vmem:[%s429_s1 + $0x30] sm:$0xff]  ;;  %v288_v2 = vld [vmem:[%s429_s1 + $0x28] sm:$0xff]  ;;  %18 = vst [vmem:[%s431_s3] sm:$0x1] %v316_v13 }
   0x2   :  { %124 = vmatpush.bf16.msra.mxu0 %v290_v0  ;;  %292 = vmatpush.bf16.msra.mxu2 %v290_v0  ;;  %v287_v3 = vld [vmem:[%s429_s1 + $0x20] sm:$0xff]  ;;  %v286_v4 = vld [vmem:[%s429_s1 + $0x18] sm:$0xff]  ;;  %v285_v5 = vld [vmem:[%s429_s1 + $0x10] sm:$0xff]  ;;  %19 = vst [vmem:[%s432_s4] sm:$0x1] %v316_v13 }
   0x3   :  { %293 = vmatpush.bf16.msra.mxu3 %v290_v0  ;;  %291 = vmatpush.bf16.msra.mxu1 %v290_v0  ;;  %v284_v6 = vld [vmem:[%s429_s1 + $0x8] sm:$0xff]  ;;  %v283_v7 = vld [vmem:[%s429_s1] sm:$0xff]  ;;  %v280_v9 = vld [vmem:[%s430_s0 + $0x10] sm:$0xff] }
   0x4   :  { %v278_v8 = vld [vmem:[%s430_s0] sm:$0xff]  ;;  %v281_v10 = vld [vmem:[%s430_s0 + $0x18] sm:$0xff]  ;;  %v279_v11 = vld [vmem:[%s430_s0 + $0x8] sm:$0xff] }
   0x5   :  { %v282_v12 = vld [vmem:[%s430_s0 + $0x20] sm:$0xff] }
   0x6   :  { %125 = vmatpush.bf16.msra.mxu0 %v289_v1  ;;  %295 = vmatpush.bf16.msra.mxu2 %v289_v1 }
   0x7   :  { %296 = vmatpush.bf16.msra.mxu3 %v289_v1  ;;  %294 = vmatpush.bf16.msra.mxu1 %v289_v1 }
   0x8   :  { %v168_v61 = vld [vmem:[%s431_s3] sm:$0x1] }
   0x9   :  { %v186_v0 = vld [vmem:[%s432_s4] sm:$0x1] }
   0xa   :  { %126 = vmatpush.bf16.msra.mxu0 %v288_v2  ;;  %298 = vmatpush.bf16.msra.mxu2 %v288_v2 }
   0xb   :  { %299 = vmatpush.bf16.msra.mxu3 %v288_v2  ;;  %297 = vmatpush.bf16.msra.mxu1 %v288_v2 }
   0xe   :  { %127 = vmatpush.bf16.msra.mxu0 %v287_v3  ;;  %301 = vmatpush.bf16.msra.mxu2 %v287_v3 }
   0xf   :  { %302 = vmatpush.bf16.msra.mxu3 %v287_v3  ;;  %300 = vmatpush.bf16.msra.mxu1 %v287_v3 }
  0x12   :  { %128 = vmatpush.bf16.msra.mxu0 %v286_v4  ;;  %304 = vmatpush.bf16.msra.mxu2 %v286_v4 }
  0x13   :  { %305 = vmatpush.bf16.msra.mxu3 %v286_v4  ;;  %303 = vmatpush.bf16.msra.mxu1 %v286_v4 }
  0x16   :  { %129 = vmatpush.bf16.msra.mxu0 %v285_v5  ;;  %307 = vmatpush.bf16.msra.mxu2 %v285_v5 }
  0x17   :  { %308 = vmatpush.bf16.msra.mxu3 %v285_v5  ;;  %306 = vmatpush.bf16.msra.mxu1 %v285_v5 }
  0x1a   :  { %130 = vmatpush.bf16.msra.mxu0 %v284_v6  ;;  %310 = vmatpush.bf16.msra.mxu2 %v284_v6 }
  0x1b   :  { %311 = vmatpush.bf16.msra.mxu3 %v284_v6  ;;  %309 = vmatpush.bf16.msra.mxu1 %v284_v6 }
  0x1e   :  { %131 = vmatpush.bf16.msra.mxu0 %v283_v7  ;;  %313 = vmatpush.bf16.msra.mxu2 %v283_v7 }
  0x1f   :  { %314 = vmatpush.bf16.msra.mxu3 %v283_v7  ;;  %312 = vmatpush.bf16.msra.mxu1 %v283_v7 }
  0x21   :  { %132 = vmatmul.bf16.vlgmr.msra.gmra.mxu0 %v278_v8  ;;  %142 = vmatmul.bf16.vlgmr.msra.gmra.mxu2 %v280_v9 }
  0x22   :  { %147 = vmatmul.bf16.vlgmr.msra.gmra.mxu3 %v281_v10  ;;  %137 = vmatmul.bf16.vlgmr.msra.gmra.mxu1 %v279_v11 }
  0x32   :  { %152 = vmatmul.bf16.gmra.mxu3 %v282_v12 }
  0x9e   :  { %v133_v14 = vpop.f32.mrf.mxu0 }
  0x9f   :  { %158 = vst [vmem:[%s433_s2] sm:$0xff] %v133_v14  ;;  %v138_v15 = vpop.f32.mrf.mxu1  ;;  %v187_v19 = vmul.f32 %v133_v14, %v133_v14 }
  0xa0   :  { %160 = vst [vmem:[%s433_s2 + $0x10] sm:$0xff] %v138_v15  ;;  %v189_v20 = vmul.f32 %v138_v15, %v138_v15 }
  0xa4   :  { %v143_v16 = vpop.f32.mrf.mxu2 }
  0xa5   :  { %162 = vst [vmem:[%s433_s2 + $0x20] sm:$0xff] %v143_v16  ;;  %v148_v17 = vpop.f32.mrf.mxu3  ;;  %v191_v26 = vmul.f32 %v143_v16, %v143_v16 }
  0xa6   :  { %164 = vst [vmem:[%s433_s2 + $0x30] sm:$0xff] %v148_v17  ;;  %v135_v18 = vpop.f32.mrf.mxu0  ;;  %v193_v38 = vmul.f32 %v148_v17, %v148_v17 }
  0xa7   :  { %159 = vst [vmem:[%s433_s2 + $0x8] sm:$0xff] %v135_v18  ;;  %v169_v21 = vadd.f32 %v135_v18, %v133_v14  ;;  %v188_v22 = vmul.f32 %v135_v18, %v135_v18  ;;  %v140_v23 = vpop.f32.mrf.mxu1 }
  0xa8   :  { %161 = vst [vmem:[%s433_s2 + $0x18] sm:$0xff] %v140_v23  ;;  %v190_v28 = vmul.f32 %v140_v23, %v140_v23 }
  0xa9   :  { %v197_v24 = vadd.f32 %v188_v22, %v187_v19  ;;  %v170_v25 = vadd.f32 %v169_v21, %v138_v15 }
  0xab   :  { %v171_v27 = vadd.f32 %v170_v25, %v140_v23  ;;  %v198_v29 = vadd.f32 %v197_v24, %v189_v20 }
  0xac   :  { %v145_v30 = vpop.f32.mrf.mxu2 }
  0xad   :  { %v199_v31 = vadd.f32 %v198_v29, %v190_v28  ;;  %163 = vst [vmem:[%s433_s2 + $0x28] sm:$0xff] %v145_v30  ;;  %v172_v32 = vadd.f32 %v171_v27, %v143_v16  ;;  %v150_v33 = vpop.f32.mrf.mxu3  ;;  %v192_v36 = vmul.f32 %v145_v30, %v145_v30 }
  0xae   :  { %165 = vst [vmem:[%s433_s2 + $0x38] sm:$0xff] %v150_v33  ;;  %v194_v43 = vmul.f32 %v150_v33, %v150_v33 }
  0xaf   :  { %v200_v34 = vadd.f32 %v199_v31, %v191_v26  ;;  %v173_v35 = vadd.f32 %v172_v32, %v145_v30 }
  0xb1   :  { %v201_v37 = vadd.f32 %v200_v34, %v192_v36  ;;  %v174_v39 = vadd.f32 %v173_v35, %v148_v17 }
  0xb3   :  { %v202_v41 = vadd.f32 %v201_v37, %v193_v38  ;;  %v175_v42 = vadd.f32 %v174_v39, %v150_v33 }
  0xb5   :  { %v153_v40 = vpop.f32.mrf.mxu3  ;;  %v203_v44 = vadd.f32 %v202_v41, %v194_v43 }
  0xb6   :  { %166 = vst [vmem:[%s433_s2 + $0x40] sm:$0xff] %v153_v40  ;;  %v195_v45 = vmul.f32 %v153_v40, %v153_v40  ;;  %v176_v46 = vadd.f32 %v175_v42, %v153_v40 }
  0xb8   :  { %v204_v48 = vadd.f32 %v203_v44, %v195_v45 }
  0xbd   :  { %v155_v47 = vpop.f32.mrf.mxu3 }
  0xbe   :  { %167 = vst [vmem:[%s433_s2 + $0x48] sm:$0xff] %v155_v47  ;;  %v177_v49 = vadd.f32 %v176_v46, %v155_v47  ;;  %v196_v50 = vmul.f32 %v155_v47, %v155_v47 }
  0xc0   :  { %v178_v51 = vrot.slane %v177_v49, 4  ;;  %v205_v52 = vadd.f32 %v204_v48, %v196_v50 }
  0xc2   :  { %v179_v53 = vadd.f32 %v178_v51, %v177_v49  ;;  %v206_v54 = vrot.slane %v205_v52, 4 }
  0xc4   :  { %v180_v55 = vrot.slane %v179_v53, 2  ;;  %v207_v56 = vadd.f32 %v206_v54, %v205_v52 }
  0xc6   :  { %v181_v57 = vadd.f32 %v180_v55, %v179_v53  ;;  %v208_v58 = vrot.slane %v207_v56, 2 }
  0xc8   :  { %v182_v59 = vrot.slane %v181_v57, 1  ;;  %v209_v60 = vadd.f32 %v208_v58, %v207_v56 }
  0xca   :  { %v183_v62 = vadd.f32 %v182_v59, %v181_v57  ;;  %v210_v63 = vrot.slane %v209_v60, 1 }
  0xcc   :  { %v184_v1 = vadd.f32 %v183_v62, %v168_v61  ;;  %v211_v2 = vadd.f32 %v210_v63, %v209_v60 }
  0xce   :  { %185 = vst [vmem:[%s431_s3] sm:$0x1] %v184_v1  ;;  %v212_v3 = vadd.f32 %v211_v2, %v186_v0 }
  0xd0   :  { %213 = vst [vmem:[%s432_s4] sm:$0x1] %v212_v3 }

// kernel: minknet_forward.7
= control target key start
LH: loop header
LB: loop body
LE: loop exit
PB: predicated region body
PF: predicated region fallthrough
CT: control target
= control target key end

     0   :  { %v111_v22 = vlaneseq  ;;  %s392_s0 = inlined_call_operand.<no memory space> [shape: s32[1], index: 0, kind: input, shape index: {}]   ;;  %s393_s2 = inlined_call_operand.vmem [shape: f32[1,128], index: 2, kind: input, shape index: {}]   ;;  %s394_s3 = inlined_call_operand.vmem [shape: f32[1,128], index: 3, kind: input, shape index: {}]   ;;  %s395_s4 = inlined_call_operand.vmem [shape: f32[1,128], index: 4, kind: input, shape index: {}]   ;;  %s396_s1 = inlined_call_operand.vmem [shape: f32[80,128], index: 1, kind: input, shape index: {}]   ;;  %s397_s5 = inlined_call_operand.vmem [shape: f32[1,128], index: 5, kind: input, shape index: {}]   ;;  %s398_s6 = inlined_call_operand.vmem [shape: bf16[80,128], index: 6, kind: output, shape index: {}]  }
   0x1   :  { %s23_s23 = scvt.s32.f32 %s392_s0  ;;  %v40_v11 = vld [vmem:[%s393_s2] sm:$0x1]  ;;  %v280_v35 = vstv %s392_s0  ;;  %v65_v44 = vld [vmem:[%s396_s1 + $0x8] sm:$0xff]  ;;  %v66_v45 = vld [vmem:[%s396_s1 + $0x10] sm:$0xff] }
   0x2   :  { %v43_v13 = vld [vmem:[%s394_s3] sm:$0x1]  ;;  %v257_v25 = vshrl.u32 %v111_v22, 7  ;;  %v67_v46 = vld [vmem:[%s396_s1 + $0x18] sm:$0xff]  ;;  %v69_v49 = vld [vmem:[%s396_s1 + $0x28] sm:$0xff] }
   0x3   :  { %v24_v0 = vstv %s23_s23  ;;  %v48_v27 = vld [vmem:[%s395_s4] sm:$0x1]  ;;  %v70_v50 = vld [vmem:[%s396_s1 + $0x30] sm:$0xff]  ;;  %v71_v52 = vld [vmem:[%s396_s1 + $0x38] sm:$0xff] }
   0x4   :  { %209 = vrcp.f32 %v24_v0  ;;  %v36_v3 = vand.u32 2147483648, %v24_v0  ;;  %vm30_vm0 = vweird.f32 %v24_v0  ;;  %v34_v5 = vand.u32 2147483647, %v24_v0  ;;  %v61_v40 = vld [vmem:[%s397_s5] sm:$0x1]  ;;  %v73_v54 = vld [vmem:[%s396_s1 + $0x48] sm:$0xff] }
   0x5   :  { %v263_v29 = vadd.s32 8, %v257_v25  ;;  %v266_v30 = vadd.s32 16, %v257_v25  ;;  %v269_v31 = vadd.s32 24, %v257_v25  ;;  %v272_v33 = vadd.s32 32, %v257_v25  ;;  %v64_v41 = vld [vmem:[%s396_s1] sm:$0xff] }
   0x6   :  { %v37_v7 = vor.u32 1.1754944e-38, %v36_v3  ;;  %vm35_vm3 = vcmp.eq.f32.partialorder %v34_v5, 8.507059e+37  ;;  %v275_v34 = vadd.s32 40, %v257_v25  ;;  %v283_v37 = vadd.s32 48, %v257_v25  ;;  %v68_v48 = vld [vmem:[%s396_s1 + $0x20] sm:$0xff] }
   0x7   :  { %v286_v38 = vadd.s32 56, %v257_v25  ;;  %v289_v39 = vadd.s32 64, %v257_v25  ;;  %v298_v42 = vadd.s32 72, %v257_v25  ;;  %vm134_vm7 = vcmp.lt.s32.totalorder %v257_v25, %v280_v35  ;;  %v72_v53 = vld [vmem:[%s396_s1 + $0x40] sm:$0xff] }
   0x8   :  { %vm135_vm8 = vcmp.lt.s32.totalorder %v263_v29, %v280_v35  ;;  %vm136_vm9 = vcmp.lt.s32.totalorder %v266_v30, %v280_v35  ;;  %vm137_vm10 = vcmp.lt.s32.totalorder %v269_v31, %v280_v35  ;;  %vm138_vm11 = vcmp.lt.s32.totalorder %v272_v33, %v280_v35 }
   0x9   :  { %vm139_vm12 = vcmp.lt.s32.totalorder %v275_v34, %v280_v35  ;;  %vm140_vm13 = vcmp.lt.s32.totalorder %v283_v37, %v280_v35  ;;  %vm141_vm14 = vcmp.lt.s32.totalorder %v286_v38, %v280_v35  ;;  %vm142_vm15 = vcmp.lt.s32.totalorder %v289_v39, %v280_v35 }
   0xa   :  { %v210_v1 = vpop.eup %209 }
   0xb   :  { %v26_v2 = vmul.f32 %v210_v1, %v24_v0  ;;  %vm31_vm1 = vweird.f32 %v210_v1 }
   0xc   :  { %vm32_vm2 = vmor %vm30_vm0, %vm31_vm1  ;;  %vm143_vm0 = vcmp.lt.s32.totalorder %v298_v42, %v280_v35 }
   0xd   :  { %v27_v4 = vsub.f32 1.0, %v26_v2 }
   0xf   :  { %v28_v6 = vmul.f32 %v210_v1, %v27_v4 }
  0x11   :  { %v29_v8 = vadd.f32 %v210_v1, %v28_v6 }
  0x13   :  { %v33_v9 = vsel %vm32_vm2, %v210_v1, %v29_v8 }
  0x14   :  { %v38_v10 = vsel %vm35_vm3, %v37_v7, %v33_v9 }
  0x15   :  { %207 = vpush %v38_v10 }
  0x46   :  { %s208_s26 = spop %207 }
  0x47   :  { %v41_v12 = vstv %s208_s26 }
  0x48   :  { %v42_v14 = vmul.f32 %v41_v12, %v40_v11  ;;  %v44_v15 = vmul.f32 %v43_v13, %v41_v12 }
  0x4a   :  { %v45_v16 = vmul.f32 %v42_v14, %v42_v14 }
  0x4c   :  { %v46_v17 = vsub.f32 %v44_v15, %v45_v16 }
  0x4e   :  { %v47_v18 = vmax.f32 %v46_v17, 0.0 }
  0x50   :  { %v49_v19 = vadd.f32 1e-05, %v47_v18 }
  0x52   :  { %211 = vrsqrt.f32 %v49_v19  ;;  %vm56_vm5 = vweird.f32 %v49_v19 }
  0x58   :  { %v212_v20 = vpop.eup %211 }
  0x59   :  { %v51_v21 = vmul.f32 %v212_v20, %v49_v19  ;;  %vm57_vm4 = vweird.f32 %v212_v20 }
  0x5a   :  { %vm58_vm6 = vmor %vm56_vm5, %vm57_vm4 }
  0x5b   :  { %v52_v23 = vmul.f32 %v212_v20, %v51_v21 }
  0x5d   :  { %v53_v24 = vmul.f32 0.5, %v52_v23 }
  0x5f   :  { %v54_v26 = vsub.f32 1.5, %v53_v24 }
  0x61   :  { %v55_v28 = vmul.f32 %v212_v20, %v54_v26 }
  0x63   :  { %v59_v32 = vsel %vm58_vm6, %v212_v20, %v55_v28 }
  0x64   :  { %v60_v36 = vmul.f32 %v59_v32, %v48_v27 }
  0x66   :  { %v62_v43 = vmul.f32 %v60_v36, %v42_v14  ;;  %v75_v47 = vperm.slane %v60_v36, 0 }
  0x68   :  { %v63_v51 = vsub.f32 %v61_v40, %v62_v43  ;;  %v77_v55 = vmul.f32 %v75_v47, %v64_v41  ;;  %v78_v56 = vmul.f32 %v75_v47, %v65_v44  ;;  %v79_v57 = vmul.f32 %v75_v47, %v66_v45 }
  0x69   :  { %v80_v58 = vmul.f32 %v75_v47, %v67_v46  ;;  %v81_v59 = vmul.f32 %v75_v47, %v68_v48  ;;  %v82_v60 = vmul.f32 %v75_v47, %v69_v49  ;;  %v83_v62 = vmul.f32 %v75_v47, %v70_v50 }
  0x6a   :  { %v88_v61 = vperm.slane %v63_v51, 0  ;;  %v84_v63 = vmul.f32 %v75_v47, %v71_v52  ;;  %v85_v0 = vmul.f32 %v75_v47, %v72_v53  ;;  %v86_v1 = vmul.f32 %v75_v47, %v73_v54 }
  0x6c   :  { %v90_v2 = vadd.f32 %v88_v61, %v77_v55  ;;  %v91_v3 = vadd.f32 %v88_v61, %v78_v56  ;;  %v92_v4 = vadd.f32 %v88_v61, %v79_v57  ;;  %v93_v5 = vadd.f32 %v88_v61, %v80_v58 }
  0x6d   :  { %v94_v6 = vadd.f32 %v88_v61, %v81_v59  ;;  %v95_v7 = vadd.f32 %v88_v61, %v82_v60  ;;  %v96_v8 = vadd.f32 %v88_v61, %v83_v62  ;;  %v97_v9 = vadd.f32 %v88_v61, %v84_v63 }
  0x6e   :  { %v98_v10 = vadd.f32 %v88_v61, %v85_v0  ;;  %v99_v11 = vadd.f32 %v88_v61, %v86_v1  ;;  %v100_v12 = vmax.f32 %v90_v2, 0.0  ;;  %v101_v13 = vmax.f32 %v91_v3, 0.0 }
  0x6f   :  { %v102_v14 = vmax.f32 %v92_v4, 0.0  ;;  %v103_v15 = vmax.f32 %v93_v5, 0.0  ;;  %v104_v16 = vmax.f32 %v94_v6, 0.0  ;;  %v105_v17 = vmax.f32 %v95_v7, 0.0 }
  0x70   :  { %v106_v18 = vmax.f32 %v96_v8, 0.0  ;;  %v107_v19 = vmax.f32 %v97_v9, 0.0  ;;  %v108_v20 = vmax.f32 %v98_v10, 0.0  ;;  %v109_v21 = vmax.f32 %v99_v11, 0.0 }
  0x71   :  { %v144_v22 = vsel %vm134_vm7, %v100_v12, 0.0  ;;  %v145_v23 = vsel %vm135_vm8, %v101_v13, 0.0  ;;  %v146_v24 = vsel %vm136_vm9, %v102_v14, 0.0  ;;  %v147_v26 = vsel %vm137_vm10, %v103_v15, 0.0 }
  0x72   :  { %v148_v27 = vsel %vm138_vm11, %v104_v16, 0.0  ;;  %v149_v25 = vsel %vm139_vm12, %v105_v17, 0.0  ;;  %v150_v28 = vsel %vm140_vm13, %v106_v18, 0.0  ;;  %v151_v29 = vsel %vm141_vm14, %v107_v19, 0.0 }
  0x73   :  { %v152_v30 = vsel %vm142_vm15, %v108_v20, 0.0  ;;  %v153_v31 = vsel %vm143_vm0, %v109_v21, 0.0  ;;  %v181_v32 = vpack.c.bf16 %v145_v23, %v144_v22  ;;  %v186_v33 = vpack.c.bf16 %v147_v26, %v146_v24 }
  0x74   :  { %v191_v34 = vpack.c.bf16 %v149_v25, %v148_v27  ;;  %v196_v36 = vpack.c.bf16 %v151_v29, %v150_v28  ;;  %v201_v37 = vpack.c.bf16 %v153_v31, %v152_v30 }
  0x75   :  { %182 = vst [vmem:[%s398_s6] sm:$0xff] %v181_v32  }
  0x76   :  { %203 = vst [vmem:[%s398_s6 + $0x8] sm:$0xff] %v186_v33  }
  0x77   :  { %204 = vst [vmem:[%s398_s6 + $0x10] sm:$0xff] %v191_v34  }
  0x78   :  { %205 = vst [vmem:[%s398_s6 + $0x18] sm:$0xff] %v196_v36  }
  0x79   :  { %206 = vst [vmem:[%s398_s6 + $0x20] sm:$0xff] %v201_v37  }

// kernel: minknet_forward.11
= control target key start
LH: loop header
LB: loop body
LE: loop exit
PB: predicated region body
PF: predicated region fallthrough
CT: control target
= control target key end

     0   :  { %v111_v24 = vlaneseq  ;;  %s323_s0 = inlined_call_operand.<no memory space> [shape: s32[1], index: 0, kind: input, shape index: {}]   ;;  %s324_s2 = inlined_call_operand.vmem [shape: f32[1,128], index: 2, kind: input, shape index: {}]   ;;  %s325_s3 = inlined_call_operand.vmem [shape: f32[1,128], index: 3, kind: input, shape index: {}]   ;;  %s326_s4 = inlined_call_operand.vmem [shape: f32[1,128], index: 4, kind: input, shape index: {}]   ;;  %s327_s5 = inlined_call_operand.vmem [shape: f32[1,128], index: 5, kind: input, shape index: {}]   ;;  %s328_s1 = inlined_call_operand.vmem [shape: f32[80,128], index: 1, kind: input, shape index: {}]   ;;  %s329_s6 = inlined_call_operand.vmem [shape: f32[80,128], index: 6, kind: output, shape index: {}]  }
   0x1   :  { %s23_s23 = scvt.s32.f32 %s323_s0  ;;  %v40_v11 = vld [vmem:[%s324_s2] sm:$0x1]  ;;  %v232_v35 = vstv %s323_s0  ;;  %v65_v38 = vld [vmem:[%s328_s1 + $0x8] sm:$0xff]  ;;  %v66_v39 = vld [vmem:[%s328_s1 + $0x10] sm:$0xff] }
   0x2   :  { %v43_v13 = vld [vmem:[%s325_s3] sm:$0x1]  ;;  %v221_v28 = vshrl.u32 %v111_v24, 7  ;;  %v67_v41 = vld [vmem:[%s328_s1 + $0x18] sm:$0xff]  ;;  %v69_v48 = vld [vmem:[%s328_s1 + $0x28] sm:$0xff] }
   0x3   :  { %v24_v0 = vstv %s23_s23  ;;  %v48_v26 = vld [vmem:[%s326_s4] sm:$0x1]  ;;  %v70_v49 = vld [vmem:[%s328_s1 + $0x30] sm:$0xff]  ;;  %v71_v50 = vld [vmem:[%s328_s1 + $0x38] sm:$0xff] }
   0x4   :  { %170 = vrcp.f32 %v24_v0  ;;  %v36_v3 = vand.u32 2147483648, %v24_v0  ;;  %vm30_vm0 = vweird.f32 %v24_v0  ;;  %v34_v5 = vand.u32 2147483647, %v24_v0  ;;  %v61_v31 = vld [vmem:[%s327_s5] sm:$0x1]  ;;  %v73_v59 = vld [vmem:[%s328_s1 + $0x48] sm:$0xff] }
   0x5   :  { %v113_v32 = vadd.s32 8, %v221_v28  ;;  %v114_v33 = vadd.s32 16, %v221_v28  ;;  %v115_v34 = vadd.s32 24, %v221_v28  ;;  %v64_v37 = vld [vmem:[%s328_s1] sm:$0xff]  ;;  %v116_v43 = vadd.s32 32, %v221_v28 }
   0x6   :  { %v37_v7 = vor.u32 1.1754944e-38, %v36_v3  ;;  %vm35_vm3 = vcmp.eq.f32.partialorder %v34_v5, 8.507059e+37  ;;  %v68_v42 = vld [vmem:[%s328_s1 + $0x20] sm:$0xff]  ;;  %v117_v44 = vadd.s32 40, %v221_v28  ;;  %v118_v45 = vadd.s32 48, %v221_v28 }
   0x7   :  { %v253_v46 = vadd.s32 56, %v221_v28  ;;  %v120_v51 = vadd.s32 64, %v221_v28  ;;  %v121_v52 = vadd.s32 72, %v221_v28  ;;  %vm134_vm7 = vcmp.lt.s32.totalorder %v221_v28, %v232_v35  ;;  %v72_v54 = vld [vmem:[%s328_s1 + $0x40] sm:$0xff] }
   0x8   :  { %vm135_vm8 = vcmp.lt.s32.totalorder %v113_v32, %v232_v35  ;;  %vm136_vm9 = vcmp.lt.s32.totalorder %v114_v33, %v232_v35  ;;  %vm137_vm10 = vcmp.lt.s32.totalorder %v115_v34, %v232_v35  ;;  %vm138_vm11 = vcmp.lt.s32.totalorder %v116_v43, %v232_v35 }
   0x9   :  { %vm139_vm12 = vcmp.lt.s32.totalorder %v117_v44, %v232_v35  ;;  %vm140_vm13 = vcmp.lt.s32.totalorder %v118_v45, %v232_v35  ;;  %vm141_vm14 = vcmp.lt.s32.totalorder %v253_v46, %v232_v35  ;;  %vm142_vm15 = vcmp.lt.s32.totalorder %v120_v51, %v232_v35 }
   0xa   :  { %v171_v1 = vpop.eup %170 }
   0xb   :  { %v26_v2 = vmul.f32 %v171_v1, %v24_v0  ;;  %vm31_vm1 = vweird.f32 %v171_v1 }
   0xc   :  { %vm32_vm2 = vmor %vm30_vm0, %vm31_vm1  ;;  %vm143_vm0 = vcmp.lt.s32.totalorder %v121_v52, %v232_v35 }
   0xd   :  { %v27_v4 = vsub.f32 1.0, %v26_v2 }
   0xf   :  { %v28_v6 = vmul.f32 %v171_v1, %v27_v4 }
  0x11   :  { %v29_v8 = vadd.f32 %v171_v1, %v28_v6 }
  0x13   :  { %v33_v9 = vsel %vm32_vm2, %v171_v1, %v29_v8 }
  0x14   :  { %v38_v10 = vsel %vm35_vm3, %v37_v7, %v33_v9 }
  0x15   :  { %168 = vpush %v38_v10 }
  0x46   :  { %s169_s26 = spop %168 }
  0x47   :  { %v41_v12 = vstv %s169_s26 }
  0x48   :  { %v42_v14 = vmul.f32 %v41_v12, %v40_v11  ;;  %v44_v15 = vmul.f32 %v43_v13, %v41_v12 }
  0x4a   :  { %v45_v16 = vmul.f32 %v42_v14, %v42_v14 }
  0x4c   :  { %v46_v17 = vsub.f32 %v44_v15, %v45_v16 }
  0x4e   :  { %v47_v18 = vmax.f32 %v46_v17, 0.0 }
  0x50   :  { %v49_v19 = vadd.f32 1e-05, %v47_v18 }
  0x52   :  { %172 = vrsqrt.f32 %v49_v19  ;;  %vm56_vm5 = vweird.f32 %v49_v19 }
  0x58   :  { %v173_v20 = vpop.eup %172 }
  0x59   :  { %v51_v21 = vmul.f32 %v173_v20, %v49_v19  ;;  %vm57_vm4 = vweird.f32 %v173_v20 }
  0x5a   :  { %vm58_vm6 = vmor %vm56_vm5, %vm57_vm4 }
  0x5b   :  { %v52_v22 = vmul.f32 %v173_v20, %v51_v21 }
  0x5d   :  { %v53_v23 = vmul.f32 0.5, %v52_v22 }
  0x5f   :  { %v54_v25 = vsub.f32 1.5, %v53_v23 }
  0x61   :  { %v55_v27 = vmul.f32 %v173_v20, %v54_v25 }
  0x63   :  { %v59_v29 = vsel %vm58_vm6, %v173_v20, %v55_v27 }
  0x64   :  { %v60_v30 = vmul.f32 %v59_v29, %v48_v26 }
  0x66   :  { %v62_v36 = vmul.f32 %v60_v30, %v42_v14  ;;  %v75_v40 = vperm.slane %v60_v30, 0 }
  0x68   :  { %v63_v47 = vsub.f32 %v61_v31, %v62_v36  ;;  %v77_v53 = vmul.f32 %v75_v40, %v64_v37  ;;  %v78_v55 = vmul.f32 %v75_v40, %v65_v38  ;;  %v79_v56 = vmul.f32 %v75_v40, %v66_v39 }
  0x69   :  { %v80_v57 = vmul.f32 %v75_v40, %v67_v41  ;;  %v81_v60 = vmul.f32 %v75_v40, %v68_v42  ;;  %v82_v61 = vmul.f32 %v75_v40, %v69_v48  ;;  %v83_v62 = vmul.f32 %v75_v40, %v70_v49 }
  0x6a   :  { %v88_v58 = vperm.slane %v63_v47, 0  ;;  %v84_v63 = vmul.f32 %v75_v40, %v71_v50  ;;  %v85_v4 = vmul.f32 %v75_v40, %v72_v54  ;;  %v86_v8 = vmul.f32 %v75_v40, %v73_v59 }
  0x6c   :  { %v90_v0 = vadd.f32 %v88_v58, %v77_v53  ;;  %v91_v1 = vadd.f32 %v88_v58, %v78_v55  ;;  %v92_v2 = vadd.f32 %v88_v58, %v79_v56  ;;  %v93_v3 = vadd.f32 %v88_v58, %v80_v57 }
  0x6d   :  { %v94_v5 = vadd.f32 %v88_v58, %v81_v60  ;;  %v95_v6 = vadd.f32 %v88_v58, %v82_v61  ;;  %v96_v7 = vadd.f32 %v88_v58, %v83_v62  ;;  %v97_v9 = vadd.f32 %v88_v58, %v84_v63 }
  0x6e   :  { %v100_v10 = vmax.f32 %v90_v0, 0.0  ;;  %v101_v11 = vmax.f32 %v91_v1, 0.0  ;;  %v98_v12 = vadd.f32 %v88_v58, %v85_v4  ;;  %v102_v13 = vmax.f32 %v92_v2, 0.0 }
  0x6f   :  { %v103_v14 = vmax.f32 %v93_v3, 0.0  ;;  %v104_v15 = vmax.f32 %v94_v5, 0.0  ;;  %v99_v16 = vadd.f32 %v88_v58, %v86_v8  ;;  %v105_v17 = vmax.f32 %v95_v6, 0.0 }
  0x70   :  { %v106_v18 = vmax.f32 %v96_v7, 0.0  ;;  %v144_v19 = vsel %vm134_vm7, %v100_v10, 0.0  ;;  %v145_v20 = vsel %vm135_vm8, %v101_v11, 0.0  ;;  %v146_v21 = vsel %vm136_vm9, %v102_v13, 0.0 }
  0x71   :  { %v107_v22 = vmax.f32 %v97_v9, 0.0  ;;  %v147_v23 = vsel %vm137_vm10, %v103_v14, 0.0  ;;  %154 = vst [vmem:[%s329_s6] sm:$0xff] %v144_v19  ;;  %v108_v24 = vmax.f32 %v98_v12, 0.0  ;;  %v148_v25 = vsel %vm138_vm11, %v104_v15, 0.0 }
  0x72   :  { %155 = vst [vmem:[%s329_s6 + $0x8] sm:$0xff] %v145_v20  ;;  %v109_v26 = vmax.f32 %v99_v16, 0.0  ;;  %v149_v27 = vsel %vm139_vm12, %v105_v17, 0.0  ;;  %v150_v28 = vsel %vm140_vm13, %v106_v18, 0.0 }
  0x73   :  { %156 = vst [vmem:[%s329_s6 + $0x10] sm:$0xff] %v146_v21  ;;  %v151_v29 = vsel %vm141_vm14, %v107_v22, 0.0  ;;  %v152_v30 = vsel %vm142_vm15, %v108_v24, 0.0 }
  0x74   :  { %157 = vst [vmem:[%s329_s6 + $0x18] sm:$0xff] %v147_v23  ;;  %v153_v31 = vsel %vm143_vm0, %v109_v26, 0.0 }
  0x75   :  { %158 = vst [vmem:[%s329_s6 + $0x20] sm:$0xff] %v148_v25 }
  0x76   :  { %159 = vst [vmem:[%s329_s6 + $0x28] sm:$0xff] %v149_v27 }
  0x77   :  { %160 = vst [vmem:[%s329_s6 + $0x30] sm:$0xff] %v150_v28 }
  0x78   :  { %161 = vst [vmem:[%s329_s6 + $0x38] sm:$0xff] %v151_v29 }
  0x79   :  { %162 = vst [vmem:[%s329_s6 + $0x40] sm:$0xff] %v152_v30 }
  0x7a   :  { %163 = vst [vmem:[%s329_s6 + $0x48] sm:$0xff] %v153_v31 }

// kernel: minknet_forward.8
= control target key start
LH: loop header
LB: loop body
LE: loop exit
PB: predicated region body
PF: predicated region fallthrough
CT: control target
= control target key end

     0   :  { %s16845_s1 = inlined_call_operand.vmem [shape: bf16[8064,128], index: 1, kind: input, shape index: {}]   ;;  %s16846_s0 = inlined_call_operand.vmem [shape: bf16[80,8064], index: 0, kind: input, shape index: {}]   ;;  %s16847_s2 = inlined_call_operand.vmem [shape: f32[80,128], index: 2, kind: output, shape index: {0}]   ;;  %s16848_s3 = inlined_call_operand.vmem [shape: f32[1,128], index: 3, kind: output, shape index: {1}]   ;;  %s16849_s4 = inlined_call_operand.vmem [shape: f32[1,128], index: 4, kind: output, shape index: {2}]  }
   0x1   :  { %v11760_v0 = vld [vmem:[%s16845_s1 + $0x38] sm:$0xff]  ;;  %v11759_v3 = vld [vmem:[%s16845_s1 + $0x30] sm:$0xff]  ;;  %v11758_v6 = vld [vmem:[%s16845_s1 + $0x28] sm:$0xff] }
   0x2   :  { %v11768_v1 = vld [vmem:[%s16845_s1 + $0x78] sm:$0xff]  ;;  %5952 = vmatpush.bf16.msra.mxu0 %v11760_v0  ;;  %12257 = vmatpush.bf16.msra.mxu3 %v11760_v0  ;;  %v11767_v4 = vld [vmem:[%s16845_s1 + $0x70] sm:$0xff]  ;;  %v11766_v7 = vld [vmem:[%s16845_s1 + $0x68] sm:$0xff] }
   0x3   :  { %v11776_v2 = vld [vmem:[%s16845_s1 + $0xb8] sm:$0xff]  ;;  %5986 = vmatpush.bf16.msra.mxu1 %v11768_v1  ;;  %v11775_v5 = vld [vmem:[%s16845_s1 + $0xb0] sm:$0xff]  ;;  %v11774_v8 = vld [vmem:[%s16845_s1 + $0xa8] sm:$0xff] }
   0x4   :  { %6020 = vmatpush.bf16.msra.mxu2 %v11776_v2  ;;  %v11757_v9 = vld [vmem:[%s16845_s1 + $0x20] sm:$0xff]  ;;  %v11756_v12 = vld [vmem:[%s16845_s1 + $0x18] sm:$0xff]  ;;  %v11755_v15 = vld [vmem:[%s16845_s1 + $0x10] sm:$0xff] }
   0x5   :  { %v11765_v10 = vld [vmem:[%s16845_s1 + $0x60] sm:$0xff]  ;;  %v11764_v13 = vld [vmem:[%s16845_s1 + $0x58] sm:$0xff]  ;;  %v11763_v16 = vld [vmem:[%s16845_s1 + $0x50] sm:$0xff] }
   0x6   :  { %5953 = vmatpush.bf16.msra.mxu0 %v11759_v3  ;;  %12258 = vmatpush.bf16.msra.mxu3 %v11759_v3  ;;  %v11773_v11 = vld [vmem:[%s16845_s1 + $0xa0] sm:$0xff]  ;;  %v11772_v14 = vld [vmem:[%s16845_s1 + $0x98] sm:$0xff]  ;;  %v11771_v17 = vld [vmem:[%s16845_s1 + $0x90] sm:$0xff] }
   0x7   :  { %5987 = vmatpush.bf16.msra.mxu1 %v11767_v4  ;;  %v11754_v18 = vld [vmem:[%s16845_s1 + $0x8] sm:$0xff]  ;;  %v11753_v21 = vld [vmem:[%s16845_s1] sm:$0xff]  ;;  %v11469_v25 = vld [vmem:[%s16846_s0 + $0xf8] sm:$0xf0] }
   0x8   :  { %6021 = vmatpush.bf16.msra.mxu2 %v11775_v5  ;;  %v11762_v19 = vld [vmem:[%s16845_s1 + $0x48] sm:$0xff]  ;;  %v11761_v22 = vld [vmem:[%s16845_s1 + $0x40] sm:$0xff]  ;;  %v8668_v26 = vld [vmem:[%s16846_s0 + $0x3f0] sm:$0xf] }
   0x9   :  { %v11770_v20 = vld [vmem:[%s16845_s1 + $0x88] sm:$0xff]  ;;  %v11769_v23 = vld [vmem:[%s16845_s1 + $0x80] sm:$0xff]  ;;  %v11808_v32 = vld [vmem:[%s16845_s1 + $0x1b8] sm:$0xff] }
   0xa   :  { %5954 = vmatpush.bf16.msra.mxu0 %v11758_v6  ;;  %12259 = vmatpush.bf16.msra.mxu3 %v11758_v6  ;;  %v8164_v24 = vld [vmem:[%s16846_s0] sm:$0xf]  ;;  %v11595_v27 = vld [vmem:[%s16846_s0 + $0x4e8] sm:$0xf0]  ;;  %v11438_v28 = vld [vmem:[%s16846_s0 + $0x4] sm:$0xf] }
   0xb   :  { %5988 = vmatpush.bf16.msra.mxu1 %v11766_v7  ;;  %v8166_v29 = vld [vmem:[%s16846_s0 + $0xfc] sm:$0xf0]  ;;  %v8172_v30 = vld [vmem:[%s16846_s0 + $0x8] sm:$0xf]  ;;  %v11470_v31 = vld [vmem:[%s16846_s0 + $0x100] sm:$0xf0]  ;;  %v8165_v34 = vor.u32 %v11469_v25, %v8164_v24  ;;  %v8669_v35 = vor.u32 %v11595_v27, %v8668_v26 }
   0xc   :  { %6022 = vmatpush.bf16.msra.mxu2 %v11774_v8  ;;  %v11792_v33 = vld [vmem:[%s16845_s1 + $0x138] sm:$0xff]  ;;  %v8169_v36 = vor.u32 %v11438_v28, %v8166_v29  ;;  %v8173_v37 = vor.u32 %v11470_v31, %v8172_v30  ;;  %v11791_v40 = vld [vmem:[%s16845_s1 + $0x130] sm:$0xff]  ;;  %v11790_v44 = vld [vmem:[%s16845_s1 + $0x128] sm:$0xff] }
   0xd   :  { %v11784_v38 = vld [vmem:[%s16845_s1 + $0xf8] sm:$0xff]  ;;  %v11807_v41 = vld [vmem:[%s16845_s1 + $0x1b0] sm:$0xff]  ;;  %v11806_v45 = vld [vmem:[%s16845_s1 + $0x1a8] sm:$0xff] }
   0xe   :  { %5955 = vmatpush.bf16.msra.mxu0 %v11757_v9  ;;  %12260 = vmatpush.bf16.msra.mxu3 %v11757_v9  ;;  %v11800_v39 = vld [vmem:[%s16845_s1 + $0x178] sm:$0xff]  ;;  %v11783_v42 = vld [vmem:[%s16845_s1 + $0xf0] sm:$0xff]  ;;  %v11782_v46 = vld [vmem:[%s16845_s1 + $0xe8] sm:$0xff] }
   0xf   :  { %5989 = vmatpush.bf16.msra.mxu1 %v11765_v10  ;;  %v11799_v43 = vld [vmem:[%s16845_s1 + $0x170] sm:$0xff]  ;;  %v11798_v47 = vld [vmem:[%s16845_s1 + $0x168] sm:$0xff]  ;;  %v11789_v48 = vld [vmem:[%s16845_s1 + $0x120] sm:$0xff] }
  0x10   :  { %6023 = vmatpush.bf16.msra.mxu2 %v11773_v11  ;;  %v11805_v49 = vld [vmem:[%s16845_s1 + $0x1a0] sm:$0xff]  ;;  %v8416_v50 = vld [vmem:[%s16846_s0 + $0x1f8] sm:$0xf]  ;;  %v11532_v51 = vld [vmem:[%s16846_s0 + $0x2f0] sm:$0xf0] }
  0x11   :  { %v8920_v52 = vld [vmem:[%s16846_s0 + $0x5e8] sm:$0xf]  ;;  %v11658_v53 = vld [vmem:[%s16846_s0 + $0x6e0] sm:$0xf0]  ;;  %v11501_v54 = vld [vmem:[%s16846_s0 + $0x1fc] sm:$0xf]  ;;  %v8417_v61 = vor.u32 %v11532_v51, %v8416_v50 }
  0x12   :  { %5956 = vmatpush.bf16.msra.mxu0 %v11756_v12  ;;  %12261 = vmatpush.bf16.msra.mxu3 %v11756_v12  ;;  %v8418_v55 = vld [vmem:[%s16846_s0 + $0x2f4] sm:$0xf0]  ;;  %v8424_v56 = vld [vmem:[%s16846_s0 + $0x200] sm:$0xf]  ;;  %v11533_v57 = vld [vmem:[%s16846_s0 + $0x2f8] sm:$0xf0]  ;;  %v8921_v62 = vor.u32 %v11658_v53, %v8920_v52 }
  0x13   :  { %5990 = vmatpush.bf16.msra.mxu1 %v11764_v13  ;;  %v11781_v58 = vld [vmem:[%s16845_s1 + $0xe0] sm:$0xff]  ;;  %v11788_v59 = vld [vmem:[%s16845_s1 + $0x118] sm:$0xff]  ;;  %v8421_v63 = vor.u32 %v11501_v54, %v8418_v55  ;;  %v8425_v0 = vor.u32 %v11533_v57, %v8424_v56  ;;  %v11787_v2 = vld [vmem:[%s16845_s1 + $0x110] sm:$0xff] }
  0x14   :  { %6024 = vmatpush.bf16.msra.mxu2 %v11772_v14  ;;  %v11804_v60 = vld [vmem:[%s16845_s1 + $0x198] sm:$0xff]  ;;  %v11797_v3 = vld [vmem:[%s16845_s1 + $0x160] sm:$0xff]  ;;  %v11803_v4 = vld [vmem:[%s16845_s1 + $0x190] sm:$0xff] }
  0x15   :  { %v11780_v1 = vld [vmem:[%s16845_s1 + $0xd8] sm:$0xff]  ;;  %v11779_v5 = vld [vmem:[%s16845_s1 + $0xd0] sm:$0xff]  ;;  %v11786_v6 = vld [vmem:[%s16845_s1 + $0x108] sm:$0xff] }
  0x16   :  { %5957 = vmatpush.bf16.msra.mxu0 %v11755_v15  ;;  %12262 = vmatpush.bf16.msra.mxu3 %v11755_v15  ;;  %v11796_v7 = vld [vmem:[%s16845_s1 + $0x158] sm:$0xff]  ;;  %v11802_v8 = vld [vmem:[%s16845_s1 + $0x188] sm:$0xff]  ;;  %v11785_v10 = vld [vmem:[%s16845_s1 + $0x100] sm:$0xff] }
  0x17   :  { %5991 = vmatpush.bf16.msra.mxu1 %v11763_v16  ;;  %v11778_v9 = vld [vmem:[%s16845_s1 + $0xc8] sm:$0xff]  ;;  %v9172_v11 = vld [vmem:[%s16846_s0 + $0x7e0] sm:$0xf]  ;;  %v11721_v12 = vld [vmem:[%s16846_s0 + $0x8d8] sm:$0xf0] }
  0x18   :  { %6025 = vmatpush.bf16.msra.mxu2 %v11771_v17  ;;  %v11564_v13 = vld [vmem:[%s16846_s0 + $0x3f4] sm:$0xf]  ;;  %v11824_v14 = vld [vmem:[%s16845_s1 + $0x238] sm:$0xff]  ;;  %v8670_v15 = vld [vmem:[%s16846_s0 + $0x4ec] sm:$0xf0] }
  0x19   :  { %v8180_v16 = vld [vmem:[%s16846_s0 + $0x10] sm:$0xf]  ;;  %v11471_v17 = vld [vmem:[%s16846_s0 + $0x108] sm:$0xf0]  ;;  %v11801_v27 = vld [vmem:[%s16845_s1 + $0x180] sm:$0xff] }
  0x1a   :  { %5958 = vmatpush.bf16.msra.mxu0 %v11754_v18  ;;  %12263 = vmatpush.bf16.msra.mxu3 %v11754_v18  ;;  %v8676_v18 = vld [vmem:[%s16846_s0 + $0x3f8] sm:$0xf]  ;;  %v11823_v25 = vld [vmem:[%s16845_s1 + $0x230] sm:$0xff]  ;;  %v11822_v28 = vld [vmem:[%s16845_s1 + $0x228] sm:$0xff] }
  0x1b   :  { %5992 = vmatpush.bf16.msra.mxu1 %v11762_v19  ;;  %v11596_v19 = vld [vmem:[%s16846_s0 + $0x4f0] sm:$0xf0]  ;;  %v11816_v29 = vld [vmem:[%s16845_s1 + $0x1f8] sm:$0xff]  ;;  %v11794_v30 = vld [vmem:[%s16845_s1 + $0x148] sm:$0xff] }
  0x1c   :  { %6026 = vmatpush.bf16.msra.mxu2 %v11770_v20  ;;  %v11777_v20 = vld [vmem:[%s16845_s1 + $0xc0] sm:$0xff]  ;;  %v8677_v24 = vor.u32 %v11596_v19, %v8676_v18  ;;  %v11795_v26 = vld [vmem:[%s16845_s1 + $0x150] sm:$0xff]  ;;  %v11597_v54 = vld [vmem:[%s16846_s0 + $0x4f8] sm:$0xf0] }
  0x1d   :  { %v11793_v31 = vld [vmem:[%s16845_s1 + $0x140] sm:$0xff]  ;;  %v9180_v56 = vld [vmem:[%s16846_s0 + $0x7e8] sm:$0xf]  ;;  %v11812_v18 = vld [vmem:[%s16845_s1 + $0x1d8] sm:$0xff] }
  0x1e   :  { %5959 = vmatpush.bf16.msra.mxu0 %v11753_v21  ;;  %12264 = vmatpush.bf16.msra.mxu3 %v11753_v21  ;;  %v9173_v21 = vor.u32 %v11721_v12, %v9172_v11  ;;  %v11690_v50 = vld [vmem:[%s16846_s0 + $0x7e4] sm:$0xf]  ;;  %v8426_v52 = vld [vmem:[%s16846_s0 + $0x2fc] sm:$0xf0]  ;;  %v8182_v11 = vld [vmem:[%s16846_s0 + $0x10c] sm:$0xf0] }
  0x1f   :  { %5993 = vmatpush.bf16.msra.mxu1 %v11761_v22  ;;  %v8181_v22 = vor.u32 %v11471_v17, %v8180_v16  ;;  %v11502_v51 = vld [vmem:[%s16846_s0 + $0x204] sm:$0xf]  ;;  %v8684_v53 = vld [vmem:[%s16846_s0 + $0x400] sm:$0xf]  ;;  %v8188_v12 = vld [vmem:[%s16846_s0 + $0x18] sm:$0xf] }
  0x20   :  { %6027 = vmatpush.bf16.msra.mxu2 %v11769_v23  ;;  %v8673_v23 = vor.u32 %v11564_v13, %v8670_v15  ;;  %v9174_v55 = vld [vmem:[%s16846_s0 + $0x8dc] sm:$0xf0]  ;;  %v11722_v57 = vld [vmem:[%s16846_s0 + $0x8e0] sm:$0xf0]  ;;  %v11472_v13 = vld [vmem:[%s16846_s0 + $0x110] sm:$0xf0] }
  0x21   :  { %5960 = vmatmul.bf16.vlgmr.msra.gmra.mxu0 %v8165_v34  ;;  %5970 = vmatmul.bf16.vlgmr.msra.gmra.mxu3 %v8669_v35  ;;  %v8174_v34 = vld [vmem:[%s16846_s0 + $0x104] sm:$0xf0]  ;;  %v8189_v17 = vor.u32 %v11472_v13, %v8188_v12  ;;  %v11853_v12 = vld [vmem:[%s16845_s1 + $0x320] sm:$0xff] }
  0x22   :  { %6088 = vmatpush.bf16.msrb.mxu0 %v11792_v33  ;;  %5994 = vmatmul.bf16.vlgmr.msra.gmra.mxu1 %v8169_v36  ;;  %v11439_v33 = vld [vmem:[%s16846_s0 + $0xc] sm:$0xf]  ;;  %v8432_v35 = vld [vmem:[%s16846_s0 + $0x208] sm:$0xf]  ;;  %v11534_v36 = vld [vmem:[%s16846_s0 + $0x300] sm:$0xf0] }
  0x23   :  { %6028 = vmatmul.bf16.vlgmr.msra.gmra.mxu2 %v8173_v37  ;;  %6054 = vmatpush.bf16.msrb.mxu3 %v11784_v38  ;;  %v8922_v37 = vld [vmem:[%s16846_s0 + $0x6e4] sm:$0xf0]  ;;  %v8928_v38 = vld [vmem:[%s16846_s0 + $0x5f0] sm:$0xf] }
  0x24   :  { %6156 = vmatpush.bf16.msrb.mxu2 %v11808_v32  ;;  %6122 = vmatpush.bf16.msrb.mxu1 %v11800_v39  ;;  %v11627_v32 = vld [vmem:[%s16846_s0 + $0x5ec] sm:$0xf] }
  0x25   :  { %v11659_v39 = vld [vmem:[%s16846_s0 + $0x6e8] sm:$0xf0] }
  0x26   :  { %6089 = vmatpush.bf16.msrb.mxu0 %v11791_v40  ;;  %v8177_v40 = vor.u32 %v11439_v33, %v8174_v34  ;;  %v11830_v19 = vld [vmem:[%s16845_s1 + $0x268] sm:$0xff]  ;;  %v11809_v33 = vld [vmem:[%s16845_s1 + $0x1c0] sm:$0xff] }
  0x27   :  { %6055 = vmatpush.bf16.msrb.mxu3 %v11783_v42  ;;  %v8925_v42 = vor.u32 %v11627_v32, %v8922_v37  ;;  %v11835_v37 = vld [vmem:[%s16845_s1 + $0x290] sm:$0xff] }
  0x28   :  { %6157 = vmatpush.bf16.msrb.mxu2 %v11807_v41  ;;  %6123 = vmatpush.bf16.msrb.mxu1 %v11799_v43  ;;  %v8433_v41 = vor.u32 %v11534_v36, %v8432_v35  ;;  %v8929_v43 = vor.u32 %v11659_v39, %v8928_v38  ;;  %v11829_v36 = vld [vmem:[%s16845_s1 + $0x260] sm:$0xff]  ;;  %v11856_v38 = vld [vmem:[%s16845_s1 + $0x338] sm:$0xff]  ;;  %v11691_v39 = vld [vmem:[%s16846_s0 + $0x7ec] sm:$0xf] }
  0x2a   :  { %6090 = vmatpush.bf16.msrb.mxu0 %v11790_v44  ;;  %v11840_v44 = vld [vmem:[%s16845_s1 + $0x2b8] sm:$0xff] }
  0x2b   :  { %6056 = vmatpush.bf16.msrb.mxu3 %v11782_v46  ;;  %v11815_v46 = vld [vmem:[%s16845_s1 + $0x1f0] sm:$0xff] }
  0x2c   :  { %6158 = vmatpush.bf16.msrb.mxu2 %v11806_v45  ;;  %6124 = vmatpush.bf16.msrb.mxu1 %v11798_v47  ;;  %v11821_v45 = vld [vmem:[%s16845_s1 + $0x220] sm:$0xff]  ;;  %v11839_v47 = vld [vmem:[%s16845_s1 + $0x2b0] sm:$0xff] }
  0x2e   :  { %6091 = vmatpush.bf16.msrb.mxu0 %v11789_v48  ;;  %v11820_v48 = vld [vmem:[%s16845_s1 + $0x218] sm:$0xff] }
  0x2f   :  { %6057 = vmatpush.bf16.msrb.mxu3 %v11781_v58  ;;  %v8429_v58 = vor.u32 %v11502_v51, %v8426_v52  ;;  %v11828_v51 = vld [vmem:[%s16845_s1 + $0x258] sm:$0xff]  ;;  %v11834_v52 = vld [vmem:[%s16845_s1 + $0x288] sm:$0xff] }
  0x30   :  { %6159 = vmatpush.bf16.msrb.mxu2 %v11805_v49  ;;  %6125 = vmatpush.bf16.msrb.mxu1 %v11797_v3  ;;  %v11814_v49 = vld [vmem:[%s16845_s1 + $0x1e8] sm:$0xff]  ;;  %v11837_v3 = vld [vmem:[%s16845_s1 + $0x2a0] sm:$0xff] }
  0x31   :  { %5965 = vmatmul.bf16.gmra.mxu0 %v8417_v61  ;;  %5975 = vmatmul.bf16.gmra.mxu3 %v8921_v62  ;;  %v9181_v61 = vor.u32 %v11722_v57, %v9180_v56  ;;  %v11832_v62 = vld [vmem:[%s16845_s1 + $0x278] sm:$0xff]  ;;  %v11854_v56 = vld [vmem:[%s16845_s1 + $0x328] sm:$0xff] }
  0x32   :  { %6092 = vmatpush.bf16.msrb.mxu0 %v11788_v59  ;;  %5999 = vmatmul.bf16.gmra.mxu1 %v8421_v63  ;;  %v8685_v59 = vor.u32 %v11597_v54, %v8684_v53  ;;  %v11838_v63 = vld [vmem:[%s16845_s1 + $0x2a8] sm:$0xff]  ;;  %v11855_v53 = vld [vmem:[%s16845_s1 + $0x330] sm:$0xff] }
  0x33   :  { %6033 = vmatmul.bf16.gmra.mxu2 %v8425_v0  ;;  %6058 = vmatpush.bf16.msrb.mxu3 %v11780_v1  ;;  %v11819_v0 = vld [vmem:[%s16845_s1 + $0x210] sm:$0xff]  ;;  %v11813_v1 = vld [vmem:[%s16845_s1 + $0x1e0] sm:$0xff]  ;;  %v11826_v57 = vld [vmem:[%s16845_s1 + $0x248] sm:$0xff] }
  0x34   :  { %6160 = vmatpush.bf16.msrb.mxu2 %v11804_v60  ;;  %6126 = vmatpush.bf16.msrb.mxu1 %v11796_v7  ;;  %v9177_v60 = vor.u32 %v11690_v50, %v9174_v55  ;;  %v11817_v7 = vld [vmem:[%s16845_s1 + $0x200] sm:$0xff]  ;;  %v11827_v54 = vld [vmem:[%s16845_s1 + $0x250] sm:$0xff] }
  0x35   :  { %v11833_v55 = vld [vmem:[%s16845_s1 + $0x280] sm:$0xff] }
  0x36   :  { %6093 = vmatpush.bf16.msrb.mxu0 %v11787_v2  ;;  %v11831_v2 = vld [vmem:[%s16845_s1 + $0x270] sm:$0xff] }
  0x37   :  { %6059 = vmatpush.bf16.msrb.mxu3 %v11779_v5  ;;  %v11565_v5 = vld [vmem:[%s16846_s0 + $0x3fc] sm:$0xf] }
  0x38   :  { %6161 = vmatpush.bf16.msrb.mxu2 %v11803_v4  ;;  %6127 = vmatpush.bf16.msrb.mxu1 %v11795_v26  ;;  %v11818_v4 = vld [vmem:[%s16845_s1 + $0x208] sm:$0xff] }
  0x39   :  { %v11723_v26 = vld [vmem:[%s16846_s0 + $0x8e8] sm:$0xf0] }
  0x3a   :  { %6094 = vmatpush.bf16.msrb.mxu0 %v11786_v6  ;;  %v8678_v6 = vld [vmem:[%s16846_s0 + $0x4f4] sm:$0xf0] }
  0x3b   :  { %6060 = vmatpush.bf16.msrb.mxu3 %v11778_v9  ;;  %v11660_v9 = vld [vmem:[%s16846_s0 + $0x6f0] sm:$0xf0] }
  0x3c   :  { %6162 = vmatpush.bf16.msrb.mxu2 %v11802_v8  ;;  %6128 = vmatpush.bf16.msrb.mxu1 %v11794_v30  ;;  %v8936_v8 = vld [vmem:[%s16846_s0 + $0x5f8] sm:$0xf]  ;;  %v11535_v30 = vld [vmem:[%s16846_s0 + $0x308] sm:$0xf0] }
  0x3d   :  { %v8937_v15 = vor.u32 %v11660_v9, %v8936_v8 }
  0x3e   :  { %6095 = vmatpush.bf16.msrb.mxu0 %v11785_v10  ;;  %v11440_v10 = vld [vmem:[%s16846_s0 + $0x14] sm:$0xf] }
  0x3f   :  { %6061 = vmatpush.bf16.msrb.mxu3 %v11777_v20  ;;  %v8185_v16 = vor.u32 %v11440_v10, %v8182_v11  ;;  %v11836_v20 = vld [vmem:[%s16845_s1 + $0x298] sm:$0xff] }
  0x40   :  { %6163 = vmatpush.bf16.msrb.mxu2 %v11801_v27  ;;  %6129 = vmatpush.bf16.msrb.mxu1 %v11793_v31  ;;  %v11503_v27 = vld [vmem:[%s16846_s0 + $0x20c] sm:$0xf]  ;;  %v11872_v11 = vld [vmem:[%s16845_s1 + $0x3b8] sm:$0xff] }
  0x41   :  { %5980 = vmatmul.bf16.gmra.mxu3 %v9173_v21  ;;  %6096 = vmatmul.bf16.vlgmr.msrb.gmra.mxu0 %v8181_v22  ;;  %v11811_v21 = vld [vmem:[%s16845_s1 + $0x1d0] sm:$0xff]  ;;  %v11810_v22 = vld [vmem:[%s16845_s1 + $0x1c8] sm:$0xff] }
  0x42   :  { %6224 = vmatpush.bf16.msra.mxu0 %v11824_v14  ;;  %6004 = vmatmul.bf16.gmra.mxu1 %v8673_v23  ;;  %v8681_v14 = vor.u32 %v11565_v5, %v8678_v6  ;;  %v11628_v23 = vld [vmem:[%s16846_s0 + $0x5f4] sm:$0xf]  ;;  %v11825_v5 = vld [vmem:[%s16845_s1 + $0x240] sm:$0xff] }
  0x43   :  { %6038 = vmatmul.bf16.gmra.mxu2 %v8677_v24  ;;  %6190 = vmatpush.bf16.msra.mxu3 %v11816_v29  ;;  %v8930_v24 = vld [vmem:[%s16846_s0 + $0x6ec] sm:$0xf0] }
  0x44   :  { %6292 = vmatpush.bf16.msra.mxu2 %v11840_v44  ;;  %6258 = vmatpush.bf16.msra.mxu1 %v11832_v62  ;;  %v8440_v29 = vld [vmem:[%s16846_s0 + $0x210] sm:$0xf]  ;;  %v8933_v31 = vor.u32 %v11628_v23, %v8930_v24  ;;  %v8686_v44 = vld [vmem:[%s16846_s0 + $0x4fc] sm:$0xf0]  ;;  %v8448_v62 = vld [vmem:[%s16846_s0 + $0x218] sm:$0xf] }
  0x45   :  { %v8441_v35 = vor.u32 %v11535_v30, %v8440_v29  ;;  %v8442_v23 = vld [vmem:[%s16846_s0 + $0x30c] sm:$0xf0] }
  0x46   :  { %6225 = vmatpush.bf16.msra.mxu0 %v11823_v25  ;;  %v9188_v25 = vld [vmem:[%s16846_s0 + $0x7f0] sm:$0xf] }
  0x47   :  { %6191 = vmatpush.bf16.msra.mxu3 %v11815_v46  ;;  %v9189_v32 = vor.u32 %v11723_v26, %v9188_v25  ;;  %v11598_v46 = vld [vmem:[%s16846_s0 + $0x500] sm:$0xf0]  ;;  %v8700_v24 = vld [vmem:[%s16846_s0 + $0x410] sm:$0xf]  ;;  %v11599_v25 = vld [vmem:[%s16846_s0 + $0x508] sm:$0xf0] }
  0x48   :  { %6293 = vmatpush.bf16.msra.mxu2 %v11839_v47  ;;  %6259 = vmatpush.bf16.msra.mxu1 %v11831_v2  ;;  %v11661_v2 = vld [vmem:[%s16846_s0 + $0x6f8] sm:$0xf0]  ;;  %v9190_v26 = vld [vmem:[%s16846_s0 + $0x8ec] sm:$0xf0] }
  0x4a   :  { %6226 = vmatpush.bf16.msra.mxu0 %v11822_v28  ;;  %v8434_v28 = vld [vmem:[%s16846_s0 + $0x304] sm:$0xf0] }
  0x4b   :  { %6192 = vmatpush.bf16.msra.mxu3 %v11814_v49  ;;  %v8437_v34 = vor.u32 %v11503_v27, %v8434_v28  ;;  %v9196_v27 = vld [vmem:[%s16846_s0 + $0x7f8] sm:$0xf]  ;;  %v11724_v28 = vld [vmem:[%s16846_s0 + $0x8f0] sm:$0xf0] }
  0x4c   :  { %6294 = vmatpush.bf16.msra.mxu2 %v11838_v63  ;;  %6260 = vmatpush.bf16.msra.mxu1 %v11830_v19  ;;  %v11536_v63 = vld [vmem:[%s16846_s0 + $0x310] sm:$0xf0] }
  0x4e   :  { %6227 = vmatpush.bf16.msra.mxu0 %v11821_v45  ;;  %v8692_v45 = vld [vmem:[%s16846_s0 + $0x408] sm:$0xf] }
  0x4f   :  { %6193 = vmatpush.bf16.msra.mxu3 %v11813_v1  ;;  %v8693_v50 = vor.u32 %v11598_v46, %v8692_v45  ;;  %v8944_v1 = vld [vmem:[%s16846_s0 + $0x600] sm:$0xf] }
  0x50   :  { %6295 = vmatpush.bf16.msra.mxu2 %v11837_v3  ;;  %6261 = vmatpush.bf16.msra.mxu1 %v11829_v36  ;;  %v8945_v8 = vor.u32 %v11661_v2, %v8944_v1  ;;  %v9197_v36 = vor.u32 %v11724_v28, %v9196_v27  ;;  %v8456_v27 = vld [vmem:[%s16846_s0 + $0x220] sm:$0xf]  ;;  %v11537_v28 = vld [vmem:[%s16846_s0 + $0x318] sm:$0xf0] }
  0x51   :  { %6062 = vmatmul.bf16.vlgmr.msrb.gmra.mxu3 %v8177_v40  ;;  %6101 = vmatmul.bf16.gmra.mxu0 %v8433_v41  ;;  %v9182_v40 = vld [vmem:[%s16846_s0 + $0x8e4] sm:$0xf0]  ;;  %v11566_v41 = vld [vmem:[%s16846_s0 + $0x404] sm:$0xf] }
  0x52   :  { %6009 = vmatmul.bf16.gmra.mxu1 %v8925_v42  ;;  %6228 = vmatpush.bf16.msra.mxu0 %v11820_v48  ;;  %v8196_v42 = vld [vmem:[%s16846_s0 + $0x20] sm:$0xf]  ;;  %v9185_v47 = vor.u32 %v11691_v39, %v9182_v40  ;;  %v8689_v49 = vor.u32 %v11566_v41, %v8686_v44  ;;  %v11846_v40 = vld [vmem:[%s16845_s1 + $0x2e8] sm:$0xff] }
  0x53   :  { %6043 = vmatmul.bf16.gmra.mxu2 %v8929_v43  ;;  %6194 = vmatpush.bf16.msra.mxu3 %v11812_v18  ;;  %v11473_v43 = vld [vmem:[%s16846_s0 + $0x118] sm:$0xf0] }
  0x54   :  { %6296 = vmatpush.bf16.msra.mxu2 %v11836_v20  ;;  %v8197_v48 = vor.u32 %v11473_v43, %v8196_v42  ;;  %6262 = vmatpush.bf16.msra.mxu1 %v11828_v51  ;;  %v11871_v20 = vld [vmem:[%s16845_s1 + $0x3b0] sm:$0xff]  ;;  %v11850_v51 = vld [vmem:[%s16845_s1 + $0x308] sm:$0xff] }
  0x55   :  { %v11851_v43 = vld [vmem:[%s16845_s1 + $0x310] sm:$0xff] }
  0x56   :  { %6229 = vmatpush.bf16.msra.mxu0 %v11819_v0  ;;  %v8938_v0 = vld [vmem:[%s16846_s0 + $0x6f4] sm:$0xf0] }
  0x57   :  { %6195 = vmatpush.bf16.msra.mxu3 %v11811_v21  ;;  %v11692_v21 = vld [vmem:[%s16846_s0 + $0x7f4] sm:$0xf] }
  0x58   :  { %6297 = vmatpush.bf16.msra.mxu2 %v11835_v37  ;;  %6263 = vmatpush.bf16.msra.mxu1 %v11827_v54  ;;  %v11852_v37 = vld [vmem:[%s16845_s1 + $0x318] sm:$0xff]  ;;  %v8952_v54 = vld [vmem:[%s16846_s0 + $0x608] sm:$0xf] }
  0x5a   :  { %6230 = vmatpush.bf16.msra.mxu0 %v11818_v4  ;;  %v8449_v4 = vor.u32 %v11536_v63, %v8448_v62 }
  0x5b   :  { %6196 = vmatpush.bf16.msra.mxu3 %v11810_v22  ;;  %v11504_v22 = vld [vmem:[%s16846_s0 + $0x214] sm:$0xf] }
  0x5c   :  { %6298 = vmatpush.bf16.msra.mxu2 %v11834_v52  ;;  %6264 = vmatpush.bf16.msra.mxu1 %v11826_v57  ;;  %v11567_v52 = vld [vmem:[%s16846_s0 + $0x40c] sm:$0xf]  ;;  %v8198_v57 = vld [vmem:[%s16846_s0 + $0x11c] sm:$0xf0] }
  0x5e   :  { %6231 = vmatpush.bf16.msra.mxu0 %v11817_v7 }
  0x5f   :  { %6197 = vmatpush.bf16.msra.mxu3 %v11809_v33 }
  0x60   :  { %6299 = vmatpush.bf16.msra.mxu2 %v11833_v55  ;;  %6265 = vmatpush.bf16.msra.mxu1 %v11825_v5  ;;  %v11662_v55 = vld [vmem:[%s16846_s0 + $0x700] sm:$0xf0] }
  0x61   :  { %6067 = vmatmul.bf16.gmra.mxu3 %v8429_v58  ;;  %6106 = vmatmul.bf16.gmra.mxu0 %v8685_v59  ;;  %v11629_v58 = vld [vmem:[%s16846_s0 + $0x5fc] sm:$0xf]  ;;  %v8953_v63 = vor.u32 %v11662_v55, %v8952_v54  ;;  %v11568_v54 = vld [vmem:[%s16846_s0 + $0x414] sm:$0xf]  ;;  %v8212_v55 = vld [vmem:[%s16846_s0 + $0x30] sm:$0xf] }
  0x62   :  { %6014 = vmatmul.bf16.gmra.mxu1 %v9177_v60  ;;  %6360 = vmatpush.bf16.msrb.mxu0 %v11856_v38  ;;  %v11441_v59 = vld [vmem:[%s16846_s0 + $0x1c] sm:$0xf]  ;;  %v8941_v7 = vor.u32 %v11629_v58, %v8938_v0  ;;  %v8204_v58 = vld [vmem:[%s16846_s0 + $0x28] sm:$0xf]  ;;  %v11849_v0 = vld [vmem:[%s16845_s1 + $0x300] sm:$0xff] }
  0x63   :  { %6048 = vmatmul.bf16.gmra.mxu2 %v9181_v61  ;;  %v11848_v60 = vld [vmem:[%s16845_s1 + $0x2f8] sm:$0xff] }
  0x64   :  { %v8190_v61 = vld [vmem:[%s16846_s0 + $0x114] sm:$0xf0]  ;;  %6326 = vmatpush.bf16.msrb.mxu3 %v11848_v60 }
  0x65   :  { %v8193_v3 = vor.u32 %v11441_v59, %v8190_v61  ;;  %v11474_v59 = vld [vmem:[%s16846_s0 + $0x120] sm:$0xf0] }
  0x66   :  { %6361 = vmatpush.bf16.msrb.mxu0 %v11855_v53  ;;  %v8694_v53 = vld [vmem:[%s16846_s0 + $0x504] sm:$0xf0] }
  0x67   :  { %v8697_v62 = vor.u32 %v11567_v52, %v8694_v53  ;;  %v11693_v53 = vld [vmem:[%s16846_s0 + $0x7fc] sm:$0xf] }
  0x6a   :  { %6362 = vmatpush.bf16.msrb.mxu0 %v11854_v56  ;;  %v11442_v56 = vld [vmem:[%s16846_s0 + $0x24] sm:$0xf] }
  0x6e   :  { %6363 = vmatpush.bf16.msrb.mxu0 %v11853_v12  ;;  %v11843_v12 = vld [vmem:[%s16845_s1 + $0x2d0] sm:$0xff] }
  0x71   :  { %6072 = vmatmul.bf16.gmra.mxu3 %v8681_v14  ;;  %6111 = vmatmul.bf16.gmra.mxu0 %v8937_v15 }
  0x72   :  { %6130 = vmatmul.bf16.vlgmr.msrb.gmra.mxu1 %v8185_v16  ;;  %6364 = vmatpush.bf16.msrb.mxu0 %v11852_v37 }
  0x73   :  { %6164 = vmatmul.bf16.vlgmr.msrb.gmra.mxu2 %v8189_v17  ;;  %v11847_v17 = vld [vmem:[%s16845_s1 + $0x2f0] sm:$0xff] }
  0x74   :  { %6428 = vmatpush.bf16.msrb.mxu2 %v11872_v11  ;;  %6327 = vmatpush.bf16.msrb.mxu3 %v11847_v17 }
  0x76   :  { %6365 = vmatpush.bf16.msrb.mxu0 %v11851_v43  ;;  %v11867_v43 = vld [vmem:[%s16845_s1 + $0x390] sm:$0xff] }
  0x78   :  { %6429 = vmatpush.bf16.msrb.mxu2 %v11871_v20  ;;  %6328 = vmatpush.bf16.msrb.mxu3 %v11846_v40  ;;  %v11842_v20 = vld [vmem:[%s16845_s1 + $0x2c8] sm:$0xff] }
  0x7a   :  { %6366 = vmatpush.bf16.msrb.mxu0 %v11850_v51  ;;  %v11888_v51 = vld [vmem:[%s16845_s1 + $0x438] sm:$0xff] }
  0x7e   :  { %6367 = vmatpush.bf16.msrb.mxu0 %v11849_v0 }
  0x81   :  { %6077 = vmatmul.bf16.gmra.mxu3 %v8933_v31  ;;  %6116 = vmatmul.bf16.gmra.mxu0 %v9189_v32  ;;  %v8445_v31 = vor.u32 %v11504_v22, %v8442_v23  ;;  %v8701_v32 = vor.u32 %v11599_v25, %v8700_v24  ;;  %v8946_v22 = vld [vmem:[%s16846_s0 + $0x6fc] sm:$0xf0]  ;;  %v11725_v24 = vld [vmem:[%s16846_s0 + $0x8f8] sm:$0xf0] }
  0x82   :  { %6135 = vmatmul.bf16.gmra.mxu1 %v8437_v34  ;;  %v9204_v23 = vld [vmem:[%s16846_s0 + $0x800] sm:$0xf]  ;;  %v11505_v25 = vld [vmem:[%s16846_s0 + $0x21c] sm:$0xf] }
  0x83   :  { %6169 = vmatmul.bf16.gmra.mxu2 %v8441_v35  ;;  %v9193_v35 = vor.u32 %v11692_v21, %v9190_v26  ;;  %v11630_v21 = vld [vmem:[%s16846_s0 + $0x604] sm:$0xf]  ;;  %v8450_v26 = vld [vmem:[%s16846_s0 + $0x314] sm:$0xf0] }
  0x84   :  { %v8453_v37 = vor.u32 %v11505_v25, %v8450_v26  ;;  %v11443_v25 = vld [vmem:[%s16846_s0 + $0x2c] sm:$0xf]  ;;  %v11880_v26 = vld [vmem:[%s16845_s1 + $0x3f8] sm:$0xff] }
  0x91   :  { %6082 = vmatmul.bf16.gmra.mxu3 %v9185_v47  ;;  %6232 = vmatmul.bf16.vlgmr.msra.gmra.mxu0 %v8197_v48  ;;  %v11864_v47 = vld [vmem:[%s16845_s1 + $0x378] sm:$0xff]  ;;  %v11870_v48 = vld [vmem:[%s16845_s1 + $0x3a8] sm:$0xff] }
  0x92   :  { %6140 = vmatmul.bf16.gmra.mxu1 %v8689_v49  ;;  %6430 = vmatpush.bf16.msrb.mxu2 %v11870_v48 }
  0x93   :  { %6174 = vmatmul.bf16.gmra.mxu2 %v8693_v50  ;;  %v11845_v50 = vld [vmem:[%s16845_s1 + $0x2e0] sm:$0xff]  ;;  %6394 = vmatpush.bf16.msrb.mxu1 %v11864_v47 }
  0x94   :  { %6329 = vmatpush.bf16.msrb.mxu3 %v11845_v50  ;;  %6496 = vmatpush.bf16.msra.mxu0 %v11888_v51 }
  0x9e   :  { %v5961_v6 = vpop.f32.mrf.mxu0 }
  0x9f   :  { %v5995_v9 = vpop.f32.mrf.mxu1 }
  0xa0   :  { %v5996_v10 = vadd.f32 %v5995_v9, %v5961_v6  ;;  %v11844_v9 = vld [vmem:[%s16845_s1 + $0x2d8] sm:$0xff] }
  0xa1   :  { %6198 = vmatmul.bf16.vlgmr.msra.gmra.mxu3 %v8193_v3  ;;  %6237 = vmatmul.bf16.gmra.mxu0 %v8449_v4  ;;  %v8201_v3 = vor.u32 %v11442_v56, %v8198_v57  ;;  %v8205_v4 = vor.u32 %v11474_v59, %v8204_v58  ;;  %v11475_v56 = vld [vmem:[%s16846_s0 + $0x128] sm:$0xf0]  ;;  %v8702_v57 = vld [vmem:[%s16846_s0 + $0x50c] sm:$0xf0]  ;;  %v8708_v58 = vld [vmem:[%s16846_s0 + $0x418] sm:$0xf] }
  0xa2   :  { %6145 = vmatmul.bf16.gmra.mxu1 %v8941_v7  ;;  %v11863_v7 = vld [vmem:[%s16845_s1 + $0x370] sm:$0xff]  ;;  %6330 = vmatpush.bf16.msrb.mxu3 %v11844_v9  ;;  %v8213_v0 = vor.u32 %v11475_v56, %v8212_v55 }
  0xa3   :  { %6179 = vmatmul.bf16.gmra.mxu2 %v8945_v8  ;;  %v11869_v8 = vld [vmem:[%s16845_s1 + $0x3a0] sm:$0xff]  ;;  %6395 = vmatpush.bf16.msrb.mxu1 %v11863_v7  ;;  %v11600_v59 = vld [vmem:[%s16846_s0 + $0x510] sm:$0xf0] }
  0xa4   :  { %v12798_v13 = vpop.f32.mrf.mxu3  ;;  %6431 = vmatpush.bf16.msrb.mxu2 %v11869_v8  ;;  %v11860_v8 = vld [vmem:[%s16845_s1 + $0x358] sm:$0xff] }
  0xa6   :  { %v6029_v14 = vpop.f32.mrf.mxu2  ;;  %v5963_v16 = vpop.f32.mrf.mxu0  ;;  %6331 = vmatpush.bf16.msrb.mxu3 %v11843_v12 }
  0xa7   :  { %v12800_v15 = vadd.f32 %v6029_v14, %v5996_v10  ;;  %v5997_v18 = vpop.f32.mrf.mxu1 }
  0xa8   :  { %v5998_v19 = vadd.f32 %v5997_v18, %v5963_v16  ;;  %v11862_v18 = vld [vmem:[%s16845_s1 + $0x368] sm:$0xff] }
  0xa9   :  { %6396 = vmatpush.bf16.msrb.mxu1 %v11862_v18 }
  0xaa   :  { %6332 = vmatpush.bf16.msrb.mxu3 %v11842_v20 }
  0xac   :  { %v12832_v29 = vpop.f32.mrf.mxu3 }
  0xae   :  { %v6031_v30 = vpop.f32.mrf.mxu2  ;;  %v5966_v34 = vpop.f32.mrf.mxu0 }
  0xaf   :  { %v12834_v33 = vadd.f32 %v6031_v30, %v5998_v19  ;;  %v6000_v38 = vpop.f32.mrf.mxu1  ;;  %v11868_v19 = vld [vmem:[%s16845_s1 + $0x398] sm:$0xff] }
  0xb0   :  { %v6001_v39 = vadd.f32 %v6000_v38, %v5966_v34  ;;  %6432 = vmatpush.bf16.msrb.mxu2 %v11868_v19  ;;  %v11841_v34 = vld [vmem:[%s16845_s1 + $0x2c0] sm:$0xff]  ;;  %v8457_v38 = vor.u32 %v11537_v28, %v8456_v27  ;;  %v8206_v27 = vld [vmem:[%s16846_s0 + $0x124] sm:$0xf0] }
  0xb1   :  { %6203 = vmatmul.bf16.gmra.mxu3 %v8445_v31  ;;  %6242 = vmatmul.bf16.gmra.mxu0 %v8701_v32  ;;  %v8949_v31 = vor.u32 %v11630_v21, %v8946_v22  ;;  %v9205_v32 = vor.u32 %v11725_v24, %v9204_v23  ;;  %v11865_v22 = vld [vmem:[%s16845_s1 + $0x380] sm:$0xff]  ;;  %v11858_v23 = vld [vmem:[%s16845_s1 + $0x348] sm:$0xff] }
  0xb2   :  { %6150 = vmatmul.bf16.gmra.mxu1 %v9193_v35  ;;  %6333 = vmatpush.bf16.msrb.mxu3 %v11841_v34  ;;  %v11631_v24 = vld [vmem:[%s16846_s0 + $0x60c] sm:$0xf]  ;;  %v8464_v28 = vld [vmem:[%s16846_s0 + $0x228] sm:$0xf] }
  0xb3   :  { %6184 = vmatmul.bf16.gmra.mxu2 %v9197_v36 }
  0xb4   :  { %v12842_v41 = vpop.f32.mrf.mxu3  ;;  %6433 = vmatpush.bf16.msrb.mxu2 %v11867_v43 }
  0xb6   :  { %v6034_v42 = vpop.f32.mrf.mxu2  ;;  %v5968_v45 = vpop.f32.mrf.mxu0  ;;  %6462 = vmatpush.bf16.msra.mxu3 %v11880_v26 }
  0xb7   :  { %v12847_v44 = vadd.f32 %v6034_v42, %v6001_v39  ;;  %v6002_v46 = vpop.f32.mrf.mxu1  ;;  %v11861_v42 = vld [vmem:[%s16845_s1 + $0x360] sm:$0xff] }
  0xb8   :  { %v6003_v49 = vadd.f32 %v6002_v46, %v5968_v45  ;;  %6397 = vmatpush.bf16.msrb.mxu1 %v11861_v42 }
  0xbc   :  { %v12885_v60 = vpop.f32.mrf.mxu3  ;;  %6398 = vmatpush.bf16.msrb.mxu1 %v11860_v8 }
  0xbe   :  { %v6036_v61 = vpop.f32.mrf.mxu2  ;;  %v12892_v2 = vpop.f32.mrf.mxu0 }
  0xbf   :  { %v12890_v1 = vadd.f32 %v6036_v61, %v6003_v49  ;;  %v6005_v5 = vpop.f32.mrf.mxu1 }
  0xc0   :  { %v6006_v6 = vadd.f32 %v6005_v5, %v12798_v13  ;;  %v8709_v5 = vor.u32 %v11600_v59, %v8708_v58  ;;  %v11903_v59 = vld [vmem:[%s16845_s1 + $0x4b0] sm:$0xff] }
  0xc1   :  { %6208 = vmatmul.bf16.gmra.mxu3 %v8697_v62  ;;  %6247 = vmatmul.bf16.gmra.mxu0 %v8953_v63 }
  0xc2   :  { %6266 = vmatmul.bf16.vlgmr.msra.gmra.mxu1 %v8201_v3 }
  0xc3   :  { %6300 = vmatmul.bf16.vlgmr.msra.gmra.mxu2 %v8205_v4  ;;  %v8705_v4 = vor.u32 %v11568_v54, %v8702_v57  ;;  %v11879_v57 = vld [vmem:[%s16845_s1 + $0x3f0] sm:$0xff] }
  0xc4   :  { %v12904_v10 = vpop.f32.mrf.mxu3  ;;  %6463 = vmatpush.bf16.msra.mxu3 %v11879_v57  ;;  %v11895_v57 = vld [vmem:[%s16845_s1 + $0x470] sm:$0xff] }
  0xc6   :  { %v6039_v11 = vpop.f32.mrf.mxu2  ;;  %v12911_v14 = vpop.f32.mrf.mxu0 }
  0xc7   :  { %v12909_v13 = vadd.f32 %v6039_v11, %v6006_v6  ;;  %v6007_v16 = vpop.f32.mrf.mxu1  ;;  %v11887_v11 = vld [vmem:[%s16845_s1 + $0x430] sm:$0xff] }
  0xc8   :  { %v6008_v17 = vadd.f32 %v6007_v16, %v12832_v29  ;;  %6497 = vmatpush.bf16.msra.mxu0 %v11887_v11 }
  0xcc   :  { %v12947_v29 = vpop.f32.mrf.mxu3 }
  0xce   :  { %v6041_v30 = vpop.f32.mrf.mxu2  ;;  %v6102_v36 = vpop.f32.mrf.mxu0 }
  0xcf   :  { %v12952_v35 = vadd.f32 %v6041_v30, %v6008_v17  ;;  %v6010_v39 = vpop.f32.mrf.mxu1  ;;  %v11859_v17 = vld [vmem:[%s16845_s1 + $0x350] sm:$0xff]  ;;  %v8954_v30 = vld [vmem:[%s16846_s0 + $0x704] sm:$0xf0] }
  0xd0   :  { %v6011_v40 = vadd.f32 %v6010_v39, %v12842_v41  ;;  %6399 = vmatpush.bf16.msrb.mxu1 %v11859_v17 }
  0xd1   :  { %6213 = vmatmul.bf16.gmra.mxu3 %v8949_v31  ;;  %6252 = vmatmul.bf16.gmra.mxu0 %v9205_v32  ;;  %v8960_v31 = vld [vmem:[%s16846_s0 + $0x610] sm:$0xf]  ;;  %v11663_v32 = vld [vmem:[%s16846_s0 + $0x708] sm:$0xf0] }
  0xd2   :  { %6271 = vmatmul.bf16.gmra.mxu1 %v8453_v37 }
  0xd3   :  { %6305 = vmatmul.bf16.gmra.mxu2 %v8457_v38  ;;  %v8209_v38 = vor.u32 %v11443_v25, %v8206_v27  ;;  %v11896_v27 = vld [vmem:[%s16845_s1 + $0x478] sm:$0xff] }
  0xd4   :  { %v6063_v45 = vpop.f32.mrf.mxu3  ;;  %6400 = vmatpush.bf16.msrb.mxu1 %v11858_v23  ;;  %v11883_v23 = vld [vmem:[%s16845_s1 + $0x410] sm:$0xff] }
  0xd5   :  { %v6064_v47 = vadd.f32 %v6063_v45, %v12800_v15  ;;  %v9198_v15 = vld [vmem:[%s16846_s0 + $0x8f4] sm:$0xf0]  ;;  %v8957_v45 = vor.u32 %v11631_v24, %v8954_v30  ;;  %v11882_v30 = vld [vmem:[%s16845_s1 + $0x408] sm:$0xff] }
  0xd6   :  { %v6044_v46 = vpop.f32.mrf.mxu2  ;;  %v12964_v48 = vpop.f32.mrf.mxu0  ;;  %v9201_v63 = vor.u32 %v11693_v53, %v9198_v15 }
  0xd7   :  { %v12962_v41 = vadd.f32 %v6044_v46, %v6011_v40  ;;  %v12967_v49 = vadd.f32 %v12892_v2, %v6064_v47  ;;  %v6012_v50 = vpop.f32.mrf.mxu1  ;;  %v11857_v40 = vld [vmem:[%s16845_s1 + $0x340] sm:$0xff]  ;;  %v8961_v46 = vor.u32 %v11663_v32, %v8960_v31  ;;  %v11569_v31 = vld [vmem:[%s16846_s0 + $0x41c] sm:$0xf]  ;;  %v8710_v32 = vld [vmem:[%s16846_s0 + $0x514] sm:$0xf0] }
  0xd8   :  { %v6013_v52 = vadd.f32 %v6012_v50, %v12885_v60  ;;  %6401 = vmatpush.bf16.msrb.mxu1 %v11857_v40  ;;  %v11476_v40 = vld [vmem:[%s16846_s0 + $0x130] sm:$0xf0] }
  0xdc   :  { %v6065_v60 = vpop.f32.mrf.mxu3  ;;  %6530 = vmatpush.bf16.msra.mxu1 %v11896_v27 }
  0xdd   :  { %v6066_v62 = vadd.f32 %v6065_v60, %v12834_v33  ;;  %v11866_v33 = vld [vmem:[%s16845_s1 + $0x388] sm:$0xff]  ;;  %v11506_v60 = vld [vmem:[%s16846_s0 + $0x224] sm:$0xf] }
  0xde   :  { %v6046_v61 = vpop.f32.mrf.mxu2  ;;  %v13000_v3 = vpop.f32.mrf.mxu0  ;;  %6434 = vmatpush.bf16.msrb.mxu2 %v11866_v33 }
  0xdf   :  { %v12998_v2 = vadd.f32 %v6046_v61, %v6013_v52  ;;  %v13003_v6 = vadd.f32 %v12911_v14, %v6066_v62  ;;  %v6015_v7 = vpop.f32.mrf.mxu1  ;;  %v11885_v52 = vld [vmem:[%s16845_s1 + $0x420] sm:$0xff] }
  0xe0   :  { %v6016_v9 = vadd.f32 %v6015_v7, %v12904_v10  ;;  %v8458_v61 = vld [vmem:[%s16846_s0 + $0x31c] sm:$0xf0]  ;;  %6531 = vmatpush.bf16.msra.mxu1 %v11895_v57 }
  0xe1   :  { %6218 = vmatmul.bf16.gmra.mxu3 %v9201_v63  ;;  %6368 = vmatmul.bf16.vlgmr.msrb.gmra.mxu0 %v8213_v0  ;;  %v8716_v62 = vld [vmem:[%s16846_s0 + $0x420] sm:$0xf]  ;;  %v11601_v63 = vld [vmem:[%s16846_s0 + $0x518] sm:$0xf0]  ;;  %v8461_v8 = vor.u32 %v11506_v60, %v8458_v61  ;;  %v11875_v60 = vld [vmem:[%s16845_s1 + $0x3d0] sm:$0xff] }
  0xe2   :  { %6276 = vmatmul.bf16.gmra.mxu1 %v8705_v4  ;;  %6435 = vmatpush.bf16.msrb.mxu2 %v11865_v22  ;;  %v9206_v0 = vld [vmem:[%s16846_s0 + $0x8fc] sm:$0xf0]  ;;  %v11726_v4 = vld [vmem:[%s16846_s0 + $0x900] sm:$0xf0]  ;;  %v8717_v33 = vor.u32 %v11601_v63, %v8716_v62 }
  0xe3   :  { %6310 = vmatmul.bf16.gmra.mxu2 %v8709_v5 }
  0xe4   :  { %v6068_v12 = vpop.f32.mrf.mxu3 }
  0xe5   :  { %v6069_v16 = vadd.f32 %v6068_v12, %v12847_v44  ;;  %v11886_v44 = vld [vmem:[%s16845_s1 + $0x428] sm:$0xff] }
  0xe6   :  { %v6049_v14 = vpop.f32.mrf.mxu2  ;;  %v13021_v18 = vpop.f32.mrf.mxu0  ;;  %6498 = vmatpush.bf16.msra.mxu0 %v11886_v44 }
  0xe7   :  { %v13019_v10 = vadd.f32 %v6049_v14, %v6016_v9  ;;  %v13023_v19 = vadd.f32 %v6102_v36, %v6069_v16  ;;  %v6017_v20 = vpop.f32.mrf.mxu1 }
  0xe8   :  { %v6018_v21 = vadd.f32 %v6017_v20, %v12947_v29  ;;  %v11538_v29 = vld [vmem:[%s16846_s0 + $0x320] sm:$0xf0]  ;;  %v11884_v20 = vld [vmem:[%s16845_s1 + $0x418] sm:$0xff] }
  0xe9   :  { %v8465_v39 = vor.u32 %v11538_v29, %v8464_v28  ;;  %v11877_v29 = vld [vmem:[%s16845_s1 + $0x3e0] sm:$0xff] }
  0xea   :  { %6499 = vmatpush.bf16.msra.mxu0 %v11885_v52 }
  0xec   :  { %v6070_v34 = vpop.f32.mrf.mxu3 }
  0xed   :  { %v6071_v37 = vadd.f32 %v6070_v34, %v12890_v1  ;;  %v11904_v1 = vld [vmem:[%s16845_s1 + $0x4b8] sm:$0xff] }
  0xee   :  { %v6051_v36 = vpop.f32.mrf.mxu2  ;;  %v6112_v43 = vpop.f32.mrf.mxu0  ;;  %6564 = vmatpush.bf16.msra.mxu2 %v11904_v1  ;;  %6500 = vmatpush.bf16.msra.mxu0 %v11884_v20  ;;  %v8968_v34 = vld [vmem:[%s16846_s0 + $0x618] sm:$0xf] }
  0xef   :  { %v13066_v42 = vadd.f32 %v6051_v36, %v6018_v21  ;;  %v13069_v47 = vadd.f32 %v12964_v48, %v6071_v37  ;;  %v6131_v50 = vpop.f32.mrf.mxu1  ;;  %v11664_v36 = vld [vmem:[%s16846_s0 + $0x710] sm:$0xf0] }
  0xf0   :  { %v6132_v51 = vadd.f32 %v6131_v50, %v12967_v49  ;;  %v11444_v37 = vld [vmem:[%s16846_s0 + $0x34] sm:$0xf]  ;;  %v8969_v50 = vor.u32 %v11664_v36, %v8968_v34 }
  0xf1   :  { %6334 = vmatmul.bf16.vlgmr.msrb.gmra.mxu3 %v8209_v38  ;;  %6373 = vmatmul.bf16.gmra.mxu0 %v8465_v39  ;;  %v8214_v38 = vld [vmem:[%s16846_s0 + $0x12c] sm:$0xf0]  ;;  %v8220_v39 = vld [vmem:[%s16846_s0 + $0x38] sm:$0xf] }
  0xf2   :  { %6281 = vmatmul.bf16.gmra.mxu1 %v8957_v45  ;;  %6565 = vmatpush.bf16.msra.mxu2 %v11903_v59 }
  0xf3   :  { %6315 = vmatmul.bf16.gmra.mxu2 %v8961_v46  ;;  %6501 = vmatpush.bf16.msra.mxu0 %v11883_v23 }
  0xf4   :  { %v6073_v53 = vpop.f32.mrf.mxu3 }
  0xf5   :  { %v6074_v48 = vadd.f32 %v6073_v53, %v12909_v13  ;;  %v11694_v13 = vld [vmem:[%s16846_s0 + $0x804] sm:$0xf]  ;;  %v8217_v53 = vor.u32 %v11444_v37, %v8214_v38  ;;  %v11920_v38 = vld [vmem:[%s16845_s1 + $0x538] sm:$0xff] }
  0xf6   :  { %v6165_v15 = vpop.f32.mrf.mxu2  ;;  %v13081_v49 = vpop.f32.mrf.mxu0  ;;  %v9209_v12 = vor.u32 %v11694_v13, %v9206_v0 }
  0xf7   :  { %v13079_v54 = vadd.f32 %v6165_v15, %v6132_v51  ;;  %v13084_v55 = vadd.f32 %v13000_v3, %v6074_v48  ;;  %v6133_v56 = vpop.f32.mrf.mxu1  ;;  %v9212_v3 = vld [vmem:[%s16846_s0 + $0x808] sm:$0xf]  ;;  %6502 = vmatpush.bf16.msra.mxu0 %v11882_v30  ;;  %v11881_v51 = vld [vmem:[%s16845_s1 + $0x400] sm:$0xff]  ;;  %v8221_v48 = vor.u32 %v11476_v40, %v8220_v39  ;;  %v11899_v30 = vld [vmem:[%s16845_s1 + $0x490] sm:$0xff] }
  0xf8   :  { %v6134_v58 = vadd.f32 %v6133_v56, %v13003_v6  ;;  %v9213_v14 = vor.u32 %v11726_v4, %v9212_v3  ;;  %v11900_v4 = vld [vmem:[%s16845_s1 + $0x498] sm:$0xff]  ;;  %v11695_v40 = vld [vmem:[%s16846_s0 + $0x80c] sm:$0xf] }
  0xfb   :  { %6503 = vmatpush.bf16.msra.mxu0 %v11881_v51  ;;  %v11602_v51 = vld [vmem:[%s16846_s0 + $0x520] sm:$0xf0] }
  0xfc   :  { %v6075_v5 = vpop.f32.mrf.mxu3 }
  0xfd   :  { %v6076_v6 = vadd.f32 %v6075_v5, %v12952_v35  ;;  %v11878_v35 = vld [vmem:[%s16845_s1 + $0x3e8] sm:$0xff] }
  0xfe   :  { %v6167_v7 = vpop.f32.mrf.mxu2  ;;  %v13120_v11 = vpop.f32.mrf.mxu0  ;;  %6464 = vmatpush.bf16.msra.mxu3 %v11878_v35  ;;  %v11874_v5 = vld [vmem:[%s16845_s1 + $0x3c8] sm:$0xff] }
  0xff   :  { %v13118_v9 = vadd.f32 %v6167_v7, %v6134_v58  ;;  %v13123_v16 = vadd.f32 %v13021_v18, %v6076_v6  ;;  %v6136_v17 = vpop.f32.mrf.mxu1  ;;  %v11901_v58 = vld [vmem:[%s16845_s1 + $0x4a0] sm:$0xff]  ;;  %v11632_v6 = vld [vmem:[%s16846_s0 + $0x614] sm:$0xf]  ;;  %v8962_v7 = vld [vmem:[%s16846_s0 + $0x70c] sm:$0xf0]  ;;  %6632 = vmatpush.bf16.msrb.mxu0 %v11920_v38 }
 0x100   :  { %v6137_v21 = vadd.f32 %v6136_v17, %v13023_v19  ;;  %v8965_v35 = vor.u32 %v11632_v6, %v8962_v7 }
 0x101   :  { %6339 = vmatmul.bf16.gmra.mxu3 %v8461_v8  ;;  %6378 = vmatmul.bf16.gmra.mxu0 %v8717_v33  ;;  %v9220_v8 = vld [vmem:[%s16846_s0 + $0x810] sm:$0xf]  ;;  %v11727_v33 = vld [vmem:[%s16846_s0 + $0x908] sm:$0xf0] }
 0x102   :  { %6286 = vmatmul.bf16.gmra.mxu1 %v9209_v12  ;;  %6465 = vmatpush.bf16.msra.mxu3 %v11877_v29  ;;  %v8466_v12 = vld [vmem:[%s16846_s0 + $0x324] sm:$0xf0] }
 0x103   :  { %6320 = vmatmul.bf16.gmra.mxu2 %v9213_v14  ;;  %v8472_v14 = vld [vmem:[%s16846_s0 + $0x230] sm:$0xf] }
 0x104   :  { %v6078_v22 = vpop.f32.mrf.mxu3 }
 0x105   :  { %v6079_v18 = vadd.f32 %v6078_v22, %v12962_v41  ;;  %v11902_v41 = vld [vmem:[%s16845_s1 + $0x4a8] sm:$0xff]  ;;  %v9221_v22 = vor.u32 %v11727_v33, %v9220_v8  ;;  %v11897_v33 = vld [vmem:[%s16845_s1 + $0x480] sm:$0xff] }
 0x106   :  { %v6170_v44 = vpop.f32.mrf.mxu2  ;;  %v13138_v19 = vpop.f32.mrf.mxu0  ;;  %6566 = vmatpush.bf16.msra.mxu2 %v11902_v41 }
 0x107   :  { %v13136_v24 = vadd.f32 %v6170_v44, %v6137_v21  ;;  %v13140_v25 = vadd.f32 %v6112_v43, %v6079_v18  ;;  %v6138_v26 = vpop.f32.mrf.mxu1  ;;  %v11873_v18 = vld [vmem:[%s16845_s1 + $0x3c0] sm:$0xff] }
 0x108   :  { %v6139_v28 = vadd.f32 %v6138_v26, %v13069_v47  ;;  %v8713_v47 = vor.u32 %v11569_v31, %v8710_v32 }
 0x10a   :  { %6567 = vmatpush.bf16.msra.mxu2 %v11901_v58 }
 0x10c   :  { %v6080_v43 = vpop.f32.mrf.mxu3 }
 0x10d   :  { %v6081_v45 = vadd.f32 %v6080_v43, %v12998_v2  ;;  %v11570_v43 = vld [vmem:[%s16846_s0 + $0x424] sm:$0xf] }
 0x10e   :  { %v6172_v46 = vpop.f32.mrf.mxu2  ;;  %v13185_v52 = vpop.f32.mrf.mxu0  ;;  %6568 = vmatpush.bf16.msra.mxu2 %v11900_v4  ;;  %v11891_v4 = vld [vmem:[%s16845_s1 + $0x450] sm:$0xff] }
 0x10f   :  { %v13183_v1 = vadd.f32 %v6172_v46, %v6139_v28  ;;  %v13188_v15 = vadd.f32 %v13081_v49, %v6081_v45  ;;  %v6141_v56 = vpop.f32.mrf.mxu1  ;;  %v11876_v49 = vld [vmem:[%s16845_s1 + $0x3d8] sm:$0xff]  ;;  %v8228_v45 = vld [vmem:[%s16846_s0 + $0x40] sm:$0xf] }
 0x110   :  { %v6142_v2 = vadd.f32 %v6141_v56, %v13084_v55  ;;  %6466 = vmatpush.bf16.msra.mxu3 %v11876_v49  ;;  %v11477_v46 = vld [vmem:[%s16846_s0 + $0x138] sm:$0xf0] }
 0x111   :  { %6344 = vmatmul.bf16.gmra.mxu3 %v8713_v47  ;;  %6383 = vmatmul.bf16.gmra.mxu0 %v8969_v50  ;;  %v8718_v47 = vld [vmem:[%s16846_s0 + $0x51c] sm:$0xf0]  ;;  %v8724_v50 = vld [vmem:[%s16846_s0 + $0x428] sm:$0xf]  ;;  %v8229_v56 = vor.u32 %v11477_v46, %v8228_v45 }
 0x112   :  { %6402 = vmatmul.bf16.vlgmr.msrb.gmra.mxu1 %v8217_v53  ;;  %6569 = vmatpush.bf16.msra.mxu2 %v11899_v30  ;;  %v8721_v58 = vor.u32 %v11570_v43, %v8718_v47  ;;  %v8725_v49 = vor.u32 %v11602_v51, %v8724_v50  ;;  %v11911_v47 = vld [vmem:[%s16845_s1 + $0x4f0] sm:$0xff] }
 0x113   :  { %6436 = vmatmul.bf16.vlgmr.msrb.gmra.mxu2 %v8221_v48  ;;  %v11935_v51 = vld [vmem:[%s16845_s1 + $0x5b0] sm:$0xff] }
 0x114   :  { %v6083_v59 = vpop.f32.mrf.mxu3  ;;  %6467 = vmatpush.bf16.msra.mxu3 %v11875_v60 }
 0x115   :  { %v6084_v55 = vadd.f32 %v6083_v59, %v13019_v10  ;;  %v11894_v10 = vld [vmem:[%s16845_s1 + $0x468] sm:$0xff] }
 0x116   :  { %v6175_v13 = vpop.f32.mrf.mxu2  ;;  %v13206_v62 = vpop.f32.mrf.mxu0  ;;  %6532 = vmatpush.bf16.msra.mxu1 %v11894_v10 }
 0x117   :  { %v13204_v61 = vadd.f32 %v6175_v13, %v6142_v2  ;;  %v13209_v63 = vadd.f32 %v13120_v11, %v6084_v55  ;;  %v6143_v0 = vpop.f32.mrf.mxu1  ;;  %v11507_v11 = vld [vmem:[%s16846_s0 + $0x22c] sm:$0xf]  ;;  %v11892_v13 = vld [vmem:[%s16845_s1 + $0x458] sm:$0xff] }
 0x118   :  { %v6144_v3 = vadd.f32 %v6143_v0, %v13123_v16  ;;  %v11539_v16 = vld [vmem:[%s16846_s0 + $0x328] sm:$0xf0]  ;;  %6468 = vmatpush.bf16.msra.mxu3 %v11874_v5  ;;  %v8469_v26 = vor.u32 %v11507_v11, %v8466_v12  ;;  %v11919_v0 = vld [vmem:[%s16845_s1 + $0x530] sm:$0xff]  ;;  %v11633_v12 = vld [vmem:[%s16846_s0 + $0x61c] sm:$0xf] }
 0x119   :  { %v8473_v27 = vor.u32 %v11539_v16, %v8472_v14  ;;  %6633 = vmatpush.bf16.msrb.mxu0 %v11919_v0  ;;  %v11890_v11 = vld [vmem:[%s16845_s1 + $0x448] sm:$0xff]  ;;  %v11445_v14 = vld [vmem:[%s16846_s0 + $0x3c] sm:$0xf] }
 0x11a   :  { %v11912_v16 = vld [vmem:[%s16845_s1 + $0x4f8] sm:$0xff] }
 0x11c   :  { %v6085_v17 = vpop.f32.mrf.mxu3  ;;  %6469 = vmatpush.bf16.msra.mxu3 %v11873_v18  ;;  %v11665_v18 = vld [vmem:[%s16846_s0 + $0x718] sm:$0xf0] }
 0x11d   :  { %v6086_v20 = vadd.f32 %v6085_v17, %v13066_v42  ;;  %v11893_v42 = vld [vmem:[%s16845_s1 + $0x460] sm:$0xff]  ;;  %v8222_v17 = vld [vmem:[%s16846_s0 + $0x134] sm:$0xf0] }
 0x11e   :  { %v6177_v21 = vpop.f32.mrf.mxu2  ;;  %v6238_v23 = vpop.f32.mrf.mxu0  ;;  %6533 = vmatpush.bf16.msra.mxu1 %v11893_v42 }
 0x11f   :  { %v13249_v44 = vadd.f32 %v6177_v21, %v6144_v3  ;;  %v6120_v41 = vadd.f32 %v13138_v19, %v6086_v20  ;;  %v6146_v28 = vpop.f32.mrf.mxu1  ;;  %v8480_v20 = vld [vmem:[%s16846_s0 + $0x238] sm:$0xf]  ;;  %v11540_v21 = vld [vmem:[%s16846_s0 + $0x330] sm:$0xf0] }
 0x120   :  { %v6147_v29 = vadd.f32 %v6146_v28, %v13140_v25  ;;  %6598 = vmatpush.bf16.msrb.mxu3 %v11912_v16  ;;  %v8481_v28 = vor.u32 %v11540_v21, %v8480_v20  ;;  %v11909_v21 = vld [vmem:[%s16845_s1 + $0x4e0] sm:$0xff] }
 0x121   :  { %6349 = vmatmul.bf16.gmra.mxu3 %v8965_v35  ;;  %6388 = vmatmul.bf16.gmra.mxu0 %v9221_v22  ;;  %v8970_v35 = vld [vmem:[%s16846_s0 + $0x714] sm:$0xf0]  ;;  %v8976_v22 = vld [vmem:[%s16846_s0 + $0x620] sm:$0xf] }
 0x122   :  { %6407 = vmatmul.bf16.gmra.mxu1 %v8469_v26 }
 0x123   :  { %6441 = vmatmul.bf16.gmra.mxu2 %v8473_v27  ;;  %6534 = vmatpush.bf16.msra.mxu1 %v11892_v13 }
 0x124   :  { %v6199_v31 = vpop.f32.mrf.mxu3  ;;  %6599 = vmatpush.bf16.msrb.mxu3 %v11911_v47  ;;  %v11927_v47 = vld [vmem:[%s16845_s1 + $0x570] sm:$0xff] }
 0x125   :  { %v6200_v32 = vadd.f32 %v6199_v31, %v13079_v54  ;;  %v9214_v54 = vld [vmem:[%s16846_s0 + $0x904] sm:$0xf0]  ;;  %v8973_v31 = vor.u32 %v11633_v12, %v8970_v35 }
 0x126   :  { %v6180_v19 = vpop.f32.mrf.mxu2  ;;  %v13262_v34 = vpop.f32.mrf.mxu0  ;;  %v11914_v35 = vld [vmem:[%s16845_s1 + $0x508] sm:$0xff] }
 0x127   :  { %v13260_v25 = vadd.f32 %v6180_v19, %v6147_v29  ;;  %v13265_v36 = vadd.f32 %v13185_v52, %v6200_v32  ;;  %v6148_v37 = vpop.f32.mrf.mxu1  ;;  %6535 = vmatpush.bf16.msra.mxu1 %v11891_v4  ;;  %v11889_v29 = vld [vmem:[%s16845_s1 + $0x440] sm:$0xff]  ;;  %v8977_v19 = vor.u32 %v11665_v18, %v8976_v22  ;;  %v11571_v22 = vld [vmem:[%s16846_s0 + $0x42c] sm:$0xf]  ;;  %v8726_v18 = vld [vmem:[%s16846_s0 + $0x524] sm:$0xf0] }
 0x128   :  { %v6149_v39 = vadd.f32 %v6148_v37, %v13188_v15  ;;  %v9217_v15 = vor.u32 %v11695_v40, %v9214_v54 }
 0x12b   :  { %6536 = vmatpush.bf16.msra.mxu1 %v11890_v11  ;;  %v11915_v11 = vld [vmem:[%s16845_s1 + $0x510] sm:$0xff] }
 0x12c   :  { %v6201_v52 = vpop.f32.mrf.mxu3 }
 0x12d   :  { %v6202_v48 = vadd.f32 %v6201_v52, %v13118_v9  ;;  %v11898_v9 = vld [vmem:[%s16845_s1 + $0x488] sm:$0xff]  ;;  %v11508_v52 = vld [vmem:[%s16846_s0 + $0x234] sm:$0xf] }
 0x12e   :  { %v6182_v53 = vpop.f32.mrf.mxu2  ;;  %v13298_v57 = vpop.f32.mrf.mxu0  ;;  %6570 = vmatpush.bf16.msra.mxu2 %v11898_v9 }
 0x12f   :  { %v13296_v2 = vadd.f32 %v6182_v53, %v6149_v39  ;;  %v13301_v59 = vadd.f32 %v13206_v62, %v6202_v48  ;;  %v6151_v55 = vpop.f32.mrf.mxu1  ;;  %6537 = vmatpush.bf16.msra.mxu1 %v11889_v29  ;;  %v11917_v39 = vld [vmem:[%s16845_s1 + $0x520] sm:$0xff]  ;;  %v8474_v53 = vld [vmem:[%s16846_s0 + $0x32c] sm:$0xf0] }
 0x130   :  { %v6152_v60 = vadd.f32 %v6151_v55, %v13209_v63  ;;  %v8732_v48 = vld [vmem:[%s16846_s0 + $0x430] sm:$0xf]  ;;  %v8477_v13 = vor.u32 %v11508_v52, %v8474_v53  ;;  %v11478_v29 = vld [vmem:[%s16846_s0 + $0x140] sm:$0xf0] }
 0x131   :  { %6354 = vmatmul.bf16.gmra.mxu3 %v9217_v15  ;;  %6504 = vmatmul.bf16.vlgmr.msra.gmra.mxu0 %v8229_v56  ;;  %v11603_v15 = vld [vmem:[%s16846_s0 + $0x528] sm:$0xf0]  ;;  %v9222_v56 = vld [vmem:[%s16846_s0 + $0x90c] sm:$0xf0] }
 0x132   :  { %6412 = vmatmul.bf16.gmra.mxu1 %v8721_v58  ;;  %6571 = vmatpush.bf16.msra.mxu2 %v11897_v33  ;;  %v11728_v58 = vld [vmem:[%s16846_s0 + $0x910] sm:$0xf0]  ;;  %v8733_v9 = vor.u32 %v11603_v15, %v8732_v48 }
 0x133   :  { %6446 = vmatmul.bf16.gmra.mxu2 %v8725_v49  ;;  %v11907_v52 = vld [vmem:[%s16845_s1 + $0x4d0] sm:$0xff] }
 0x134   :  { %v6204_v62 = vpop.f32.mrf.mxu3 }
 0x135   :  { %v6205_v10 = vadd.f32 %v6204_v62, %v13136_v24  ;;  %v11918_v24 = vld [vmem:[%s16845_s1 + $0x528] sm:$0xff] }
 0x136   :  { %v6185_v3 = vpop.f32.mrf.mxu2  ;;  %v13319_v5 = vpop.f32.mrf.mxu0  ;;  %6634 = vmatpush.bf16.msrb.mxu0 %v11918_v24 }
 0x137   :  { %v13317_v63 = vadd.f32 %v6185_v3, %v6152_v60  ;;  %v13321_v6 = vadd.f32 %v6238_v23, %v6205_v10  ;;  %v6153_v7 = vpop.f32.mrf.mxu1 }
 0x138   :  { %v6154_v8 = vadd.f32 %v6153_v7, %v6120_v41  ;;  %v8225_v41 = vor.u32 %v11445_v14, %v8222_v17  ;;  %v11916_v7 = vld [vmem:[%s16845_s1 + $0x518] sm:$0xff] }
 0x139   :  { %v11928_v17 = vld [vmem:[%s16845_s1 + $0x578] sm:$0xff] }
 0x13a   :  { %6635 = vmatpush.bf16.msrb.mxu0 %v11917_v39  ;;  %6666 = vmatpush.bf16.msrb.mxu1 %v11928_v17 }
 0x13c   :  { %v6206_v23 = vpop.f32.mrf.mxu3 }
 0x13d   :  { %v6207_v27 = vadd.f32 %v6206_v23, %v13183_v1  ;;  %v11936_v1 = vld [vmem:[%s16845_s1 + $0x5b8] sm:$0xff]  ;;  %v8984_v23 = vld [vmem:[%s16846_s0 + $0x628] sm:$0xf] }
 0x13e   :  { %v6187_v26 = vpop.f32.mrf.mxu2  ;;  %v6248_v30 = vpop.f32.mrf.mxu0  ;;  %6700 = vmatpush.bf16.msrb.mxu2 %v11936_v1  ;;  %6636 = vmatpush.bf16.msrb.mxu0 %v11916_v7 }
 0x13f   :  { %v13363_v42 = vadd.f32 %v6187_v26, %v6154_v8  ;;  %v13366_v32 = vadd.f32 %v13262_v34, %v6207_v27  ;;  %v6267_v37 = vpop.f32.mrf.mxu1  ;;  %v11666_v26 = vld [vmem:[%s16846_s0 + $0x720] sm:$0xf0]  ;;  %6667 = vmatpush.bf16.msrb.mxu1 %v11927_v47 }
 0x140   :  { %v6268_v38 = vadd.f32 %v6267_v37, %v13265_v36  ;;  %v11446_v27 = vld [vmem:[%s16846_s0 + $0x44] sm:$0xf]  ;;  %v8985_v37 = vor.u32 %v11666_v26, %v8984_v23 }
 0x141   :  { %6470 = vmatmul.bf16.vlgmr.msra.gmra.mxu3 %v8225_v41  ;;  %6509 = vmatmul.bf16.gmra.mxu0 %v8481_v28  ;;  %v8230_v41 = vld [vmem:[%s16846_s0 + $0x13c] sm:$0xf0]  ;;  %v8236_v28 = vld [vmem:[%s16846_s0 + $0x48] sm:$0xf] }
 0x142   :  { %6417 = vmatmul.bf16.gmra.mxu1 %v8973_v31  ;;  %6701 = vmatpush.bf16.msrb.mxu2 %v11935_v51 }
 0x143   :  { %6451 = vmatmul.bf16.gmra.mxu2 %v8977_v19  ;;  %6637 = vmatpush.bf16.msrb.mxu0 %v11915_v11 }
 0x144   :  { %v6209_v40 = vpop.f32.mrf.mxu3 }
 0x145   :  { %v6210_v34 = vadd.f32 %v6209_v40, %v13204_v61  ;;  %v11696_v61 = vld [vmem:[%s16846_s0 + $0x814] sm:$0xf]  ;;  %v8233_v40 = vor.u32 %v11446_v27, %v8230_v41  ;;  %v11952_v41 = vld [vmem:[%s16845_s1 + $0x638] sm:$0xff] }
 0x146   :  { %v6301_v54 = vpop.f32.mrf.mxu2  ;;  %v13378_v36 = vpop.f32.mrf.mxu0  ;;  %v9225_v62 = vor.u32 %v11696_v61, %v9222_v56 }
 0x147   :  { %v13376_v43 = vadd.f32 %v6301_v54, %v6268_v38  ;;  %v13381_v45 = vadd.f32 %v13298_v57, %v6210_v34  ;;  %v6269_v46 = vpop.f32.mrf.mxu1  ;;  %v9228_v57 = vld [vmem:[%s16846_s0 + $0x818] sm:$0xf]  ;;  %6638 = vmatpush.bf16.msrb.mxu0 %v11914_v35  ;;  %v11913_v38 = vld [vmem:[%s16845_s1 + $0x500] sm:$0xff]  ;;  %v8237_v34 = vor.u32 %v11478_v29, %v8236_v28  ;;  %v11931_v35 = vld [vmem:[%s16845_s1 + $0x590] sm:$0xff] }
 0x148   :  { %v6270_v50 = vadd.f32 %v6269_v46, %v13301_v59  ;;  %v9229_v3 = vor.u32 %v11728_v58, %v9228_v57  ;;  %v11932_v58 = vld [vmem:[%s16845_s1 + $0x598] sm:$0xff] }
 0x149   :  { %v11697_v29 = vld [vmem:[%s16846_s0 + $0x81c] sm:$0xf] }
 0x14b   :  { %6639 = vmatpush.bf16.msrb.mxu0 %v11913_v38  ;;  %v11604_v38 = vld [vmem:[%s16846_s0 + $0x530] sm:$0xf0] }
 0x14c   :  { %v6211_v49 = vpop.f32.mrf.mxu3 }
 0x14d   :  { %v6212_v59 = vadd.f32 %v6211_v49, %v13249_v44  ;;  %v11910_v44 = vld [vmem:[%s16845_s1 + $0x4e8] sm:$0xff] }
 0x14e   :  { %v6303_v55 = vpop.f32.mrf.mxu2  ;;  %v13417_v0 = vpop.f32.mrf.mxu0  ;;  %6600 = vmatpush.bf16.msrb.mxu3 %v11910_v44  ;;  %v11906_v49 = vld [vmem:[%s16845_s1 + $0x4c8] sm:$0xff] }
 0x14f   :  { %v13415_v60 = vadd.f32 %v6303_v55, %v6270_v50  ;;  %v13420_v10 = vadd.f32 %v13319_v5, %v6212_v59  ;;  %v6272_v4 = vpop.f32.mrf.mxu1  ;;  %v11933_v50 = vld [vmem:[%s16845_s1 + $0x5a0] sm:$0xff]  ;;  %6768 = vmatpush.bf16.msra.mxu0 %v11952_v41 }
 0x150   :  { %v6273_v8 = vadd.f32 %v6272_v4, %v13321_v6  ;;  %v11634_v59 = vld [vmem:[%s16846_s0 + $0x624] sm:$0xf]  ;;  %v8978_v55 = vld [vmem:[%s16846_s0 + $0x71c] sm:$0xf0] }
 0x151   :  { %6475 = vmatmul.bf16.gmra.mxu3 %v8477_v13  ;;  %6514 = vmatmul.bf16.gmra.mxu0 %v8733_v9  ;;  %v9236_v13 = vld [vmem:[%s16846_s0 + $0x820] sm:$0xf]  ;;  %v11729_v9 = vld [vmem:[%s16846_s0 + $0x918] sm:$0xf0]  ;;  %v8981_v44 = vor.u32 %v11634_v59, %v8978_v55 }
 0x152   :  { %6422 = vmatmul.bf16.gmra.mxu1 %v9225_v62  ;;  %6601 = vmatpush.bf16.msrb.mxu3 %v11909_v21  ;;  %v8482_v62 = vld [vmem:[%s16846_s0 + $0x334] sm:$0xf0] }
 0x153   :  { %6456 = vmatmul.bf16.gmra.mxu2 %v9229_v3  ;;  %v8488_v3 = vld [vmem:[%s16846_s0 + $0x240] sm:$0xf] }
 0x154   :  { %v6214_v33 = vpop.f32.mrf.mxu3 }
 0x155   :  { %v6215_v5 = vadd.f32 %v6214_v33, %v13260_v25  ;;  %v11934_v25 = vld [vmem:[%s16845_s1 + $0x5a8] sm:$0xff]  ;;  %v9237_v33 = vor.u32 %v11729_v9, %v9236_v13  ;;  %v11929_v9 = vld [vmem:[%s16845_s1 + $0x580] sm:$0xff] }
 0x156   :  { %v6306_v24 = vpop.f32.mrf.mxu2  ;;  %v13435_v6 = vpop.f32.mrf.mxu0  ;;  %6702 = vmatpush.bf16.msrb.mxu2 %v11934_v25 }
 0x157   :  { %v13433_v12 = vadd.f32 %v6306_v24, %v6273_v8  ;;  %v13437_v14 = vadd.f32 %v6248_v30, %v6215_v5  ;;  %v6274_v16 = vpop.f32.mrf.mxu1  ;;  %v11905_v5 = vld [vmem:[%s16845_s1 + $0x4c0] sm:$0xff] }
 0x158   :  { %v6275_v20 = vadd.f32 %v6274_v16, %v13366_v32  ;;  %v8729_v32 = vor.u32 %v11571_v22, %v8726_v18 }
 0x15a   :  { %6703 = vmatpush.bf16.msrb.mxu2 %v11933_v50 }
 0x15c   :  { %v6216_v30 = vpop.f32.mrf.mxu3 }
 0x15d   :  { %v6217_v31 = vadd.f32 %v6216_v30, %v13296_v2  ;;  %v11572_v30 = vld [vmem:[%s16846_s0 + $0x434] sm:$0xf] }
 0x15e   :  { %v6308_v19 = vpop.f32.mrf.mxu2  ;;  %v13482_v39 = vpop.f32.mrf.mxu0  ;;  %6704 = vmatpush.bf16.msrb.mxu2 %v11932_v58  ;;  %v11923_v58 = vld [vmem:[%s16845_s1 + $0x550] sm:$0xff] }
 0x15f   :  { %v13480_v1 = vadd.f32 %v6308_v19, %v6275_v20  ;;  %v13485_v54 = vadd.f32 %v13378_v36, %v6217_v31  ;;  %v6277_v46 = vpop.f32.mrf.mxu1  ;;  %v11908_v36 = vld [vmem:[%s16845_s1 + $0x4d8] sm:$0xff]  ;;  %v8244_v31 = vld [vmem:[%s16846_s0 + $0x50] sm:$0xf]  ;;  %v11479_v19 = vld [vmem:[%s16846_s0 + $0x148] sm:$0xf0] }
 0x160   :  { %v6278_v2 = vadd.f32 %v6277_v46, %v13381_v45  ;;  %6602 = vmatpush.bf16.msrb.mxu3 %v11908_v36  ;;  %v8245_v46 = vor.u32 %v11479_v19, %v8244_v31 }
 0x161   :  { %6480 = vmatmul.bf16.gmra.mxu3 %v8729_v32  ;;  %6519 = vmatmul.bf16.gmra.mxu0 %v8985_v37  ;;  %v8734_v32 = vld [vmem:[%s16846_s0 + $0x52c] sm:$0xf0]  ;;  %v8740_v37 = vld [vmem:[%s16846_s0 + $0x438] sm:$0xf] }
 0x162   :  { %6538 = vmatmul.bf16.vlgmr.msra.gmra.mxu1 %v8233_v40  ;;  %6705 = vmatpush.bf16.msrb.mxu2 %v11931_v35  ;;  %v8737_v50 = vor.u32 %v11572_v30, %v8734_v32  ;;  %v8741_v36 = vor.u32 %v11604_v38, %v8740_v37  ;;  %v11943_v32 = vld [vmem:[%s16845_s1 + $0x5f0] sm:$0xff] }
 0x163   :  { %6572 = vmatmul.bf16.vlgmr.msra.gmra.mxu2 %v8237_v34  ;;  %v11967_v38 = vld [vmem:[%s16845_s1 + $0x6b0] sm:$0xff] }
 0x164   :  { %v6219_v51 = vpop.f32.mrf.mxu3  ;;  %6603 = vmatpush.bf16.msrb.mxu3 %v11907_v52 }
 0x165   :  { %v6220_v45 = vadd.f32 %v6219_v51, %v13317_v63  ;;  %v11926_v63 = vld [vmem:[%s16845_s1 + $0x568] sm:$0xff] }
 0x166   :  { %v6311_v61 = vpop.f32.mrf.mxu2  ;;  %v13503_v48 = vpop.f32.mrf.mxu0  ;;  %6668 = vmatpush.bf16.msrb.mxu1 %v11926_v63 }
 0x167   :  { %v13501_v53 = vadd.f32 %v6311_v61, %v6278_v2  ;;  %v13506_v15 = vadd.f32 %v13417_v0, %v6220_v45  ;;  %v6279_v56 = vpop.f32.mrf.mxu1  ;;  %v11509_v0 = vld [vmem:[%s16846_s0 + $0x23c] sm:$0xf] }
 0x168   :  { %v6280_v57 = vadd.f32 %v6279_v56, %v13420_v10  ;;  %v11541_v10 = vld [vmem:[%s16846_s0 + $0x338] sm:$0xf0]  ;;  %6604 = vmatpush.bf16.msrb.mxu3 %v11906_v49  ;;  %v8485_v16 = vor.u32 %v11509_v0, %v8482_v62  ;;  %v11951_v56 = vld [vmem:[%s16845_s1 + $0x630] sm:$0xff]  ;;  %v11922_v0 = vld [vmem:[%s16845_s1 + $0x548] sm:$0xff] }
 0x169   :  { %v8489_v17 = vor.u32 %v11541_v10, %v8488_v3  ;;  %v11924_v61 = vld [vmem:[%s16845_s1 + $0x558] sm:$0xff]  ;;  %6769 = vmatpush.bf16.msra.mxu0 %v11951_v56  ;;  %v11635_v62 = vld [vmem:[%s16846_s0 + $0x62c] sm:$0xf] }
 0x16a   :  { %v11447_v3 = vld [vmem:[%s16846_s0 + $0x4c] sm:$0xf]  ;;  %v11944_v10 = vld [vmem:[%s16845_s1 + $0x5f8] sm:$0xff] }
 0x16c   :  { %v6221_v4 = vpop.f32.mrf.mxu3  ;;  %6605 = vmatpush.bf16.msrb.mxu3 %v11905_v5  ;;  %v11667_v5 = vld [vmem:[%s16846_s0 + $0x728] sm:$0xf0] }
 0x16d   :  { %v6222_v7 = vadd.f32 %v6221_v4, %v13363_v42  ;;  %v11925_v42 = vld [vmem:[%s16845_s1 + $0x560] sm:$0xff]  ;;  %v8238_v4 = vld [vmem:[%s16846_s0 + $0x144] sm:$0xf0] }
 0x16e   :  { %v6313_v8 = vpop.f32.mrf.mxu2  ;;  %v6374_v11 = vpop.f32.mrf.mxu0  ;;  %6669 = vmatpush.bf16.msrb.mxu1 %v11925_v42 }
 0x16f   :  { %v13546_v24 = vadd.f32 %v6313_v8, %v6280_v57  ;;  %v6256_v25 = vadd.f32 %v13435_v6, %v6222_v7  ;;  %v6282_v20 = vpop.f32.mrf.mxu1  ;;  %v8496_v7 = vld [vmem:[%s16846_s0 + $0x248] sm:$0xf]  ;;  %v11542_v8 = vld [vmem:[%s16846_s0 + $0x340] sm:$0xf0] }
 0x170   :  { %v6283_v21 = vadd.f32 %v6282_v20, %v13437_v14  ;;  %6734 = vmatpush.bf16.msra.mxu3 %v11944_v10  ;;  %v8497_v20 = vor.u32 %v11542_v8, %v8496_v7  ;;  %v11941_v8 = vld [vmem:[%s16845_s1 + $0x5e0] sm:$0xff] }
 0x171   :  { %6485 = vmatmul.bf16.gmra.mxu3 %v8981_v44  ;;  %6524 = vmatmul.bf16.gmra.mxu0 %v9237_v33  ;;  %v8986_v44 = vld [vmem:[%s16846_s0 + $0x724] sm:$0xf0]  ;;  %v8992_v33 = vld [vmem:[%s16846_s0 + $0x630] sm:$0xf] }
 0x172   :  { %6543 = vmatmul.bf16.gmra.mxu1 %v8485_v16 }
 0x173   :  { %6577 = vmatmul.bf16.gmra.mxu2 %v8489_v17  ;;  %6670 = vmatpush.bf16.msrb.mxu1 %v11924_v61 }
 0x174   :  { %v6335_v22 = vpop.f32.mrf.mxu3  ;;  %6735 = vmatpush.bf16.msra.mxu3 %v11943_v32  ;;  %v11959_v32 = vld [vmem:[%s16845_s1 + $0x670] sm:$0xff] }
 0x175   :  { %v6336_v18 = vadd.f32 %v6335_v22, %v13376_v43  ;;  %v9230_v43 = vld [vmem:[%s16846_s0 + $0x914] sm:$0xf0]  ;;  %v8989_v22 = vor.u32 %v11635_v62, %v8986_v44  ;;  %v11946_v44 = vld [vmem:[%s16845_s1 + $0x608] sm:$0xff] }
 0x176   :  { %v6316_v6 = vpop.f32.mrf.mxu2  ;;  %v13559_v23 = vpop.f32.mrf.mxu0 }
 0x177   :  { %v13557_v14 = vadd.f32 %v6316_v6, %v6283_v21  ;;  %v13562_v26 = vadd.f32 %v13482_v39, %v6336_v18  ;;  %v6284_v27 = vpop.f32.mrf.mxu1  ;;  %6671 = vmatpush.bf16.msrb.mxu1 %v11923_v58  ;;  %v11921_v21 = vld [vmem:[%s16845_s1 + $0x540] sm:$0xff]  ;;  %v8993_v6 = vor.u32 %v11667_v5, %v8992_v33  ;;  %v11573_v33 = vld [vmem:[%s16846_s0 + $0x43c] sm:$0xf]  ;;  %v8742_v5 = vld [vmem:[%s16846_s0 + $0x534] sm:$0xf0] }
 0x178   :  { %v6285_v28 = vadd.f32 %v6284_v27, %v13485_v54  ;;  %v9233_v54 = vor.u32 %v11697_v29, %v9230_v43 }
 0x17b   :  { %6672 = vmatpush.bf16.msrb.mxu1 %v11922_v0  ;;  %v11947_v0 = vld [vmem:[%s16845_s1 + $0x610] sm:$0xff] }
 0x17c   :  { %v6337_v39 = vpop.f32.mrf.mxu3 }
 0x17d   :  { %v6338_v34 = vadd.f32 %v6337_v39, %v13415_v60  ;;  %v11930_v60 = vld [vmem:[%s16845_s1 + $0x588] sm:$0xff]  ;;  %v11510_v39 = vld [vmem:[%s16846_s0 + $0x244] sm:$0xf] }
 0x17e   :  { %v6318_v40 = vpop.f32.mrf.mxu2  ;;  %v13595_v47 = vpop.f32.mrf.mxu0  ;;  %6706 = vmatpush.bf16.msrb.mxu2 %v11930_v60 }
 0x17f   :  { %v13593_v2 = vadd.f32 %v6318_v40, %v6285_v28  ;;  %v13598_v51 = vadd.f32 %v13503_v48, %v6338_v34  ;;  %v6287_v45 = vpop.f32.mrf.mxu1  ;;  %6673 = vmatpush.bf16.msrb.mxu1 %v11921_v21  ;;  %v11949_v28 = vld [vmem:[%s16845_s1 + $0x620] sm:$0xff]  ;;  %v11480_v21 = vld [vmem:[%s16846_s0 + $0x150] sm:$0xf0] }
 0x180   :  { %v6288_v52 = vadd.f32 %v6287_v45, %v13506_v15  ;;  %v8490_v40 = vld [vmem:[%s16846_s0 + $0x33c] sm:$0xf0] }
 0x181   :  { %6490 = vmatmul.bf16.gmra.mxu3 %v9233_v54  ;;  %6640 = vmatmul.bf16.vlgmr.msrb.gmra.mxu0 %v8245_v46  ;;  %v8748_v34 = vld [vmem:[%s16846_s0 + $0x440] sm:$0xf]  ;;  %v11605_v54 = vld [vmem:[%s16846_s0 + $0x538] sm:$0xf0]  ;;  %v8493_v61 = vor.u32 %v11510_v39, %v8490_v40  ;;  %v11939_v39 = vld [vmem:[%s16845_s1 + $0x5d0] sm:$0xff] }
 0x182   :  { %6548 = vmatmul.bf16.gmra.mxu1 %v8737_v50  ;;  %6707 = vmatpush.bf16.msrb.mxu2 %v11929_v9  ;;  %v9238_v46 = vld [vmem:[%s16846_s0 + $0x91c] sm:$0xf0]  ;;  %v11730_v50 = vld [vmem:[%s16846_s0 + $0x920] sm:$0xf0]  ;;  %v8749_v60 = vor.u32 %v11605_v54, %v8748_v34 }
 0x183   :  { %6582 = vmatmul.bf16.gmra.mxu2 %v8741_v36 }
 0x184   :  { %v6340_v48 = vpop.f32.mrf.mxu3 }
 0x185   :  { %v6341_v63 = vadd.f32 %v6340_v48, %v13433_v12  ;;  %v11950_v12 = vld [vmem:[%s16845_s1 + $0x628] sm:$0xff] }
 0x186   :  { %v6321_v57 = vpop.f32.mrf.mxu2  ;;  %v13616_v49 = vpop.f32.mrf.mxu0  ;;  %6770 = vmatpush.bf16.msra.mxu0 %v11950_v12 }
 0x187   :  { %v13614_v15 = vadd.f32 %v6321_v57, %v6288_v52  ;;  %v13618_v59 = vadd.f32 %v6374_v11, %v6341_v63  ;;  %v6289_v55 = vpop.f32.mrf.mxu1 }
 0x188   :  { %v6290_v13 = vadd.f32 %v6289_v55, %v6256_v25  ;;  %v8241_v25 = vor.u32 %v11447_v3, %v8238_v4  ;;  %v11948_v55 = vld [vmem:[%s16845_s1 + $0x618] sm:$0xff] }
 0x189   :  { %v11960_v4 = vld [vmem:[%s16845_s1 + $0x678] sm:$0xff] }
 0x18a   :  { %6771 = vmatpush.bf16.msra.mxu0 %v11949_v28  ;;  %6802 = vmatpush.bf16.msra.mxu1 %v11960_v4 }
 0x18c   :  { %v6342_v11 = vpop.f32.mrf.mxu3 }
 0x18d   :  { %v6343_v17 = vadd.f32 %v6342_v11, %v13480_v1  ;;  %v11968_v1 = vld [vmem:[%s16845_s1 + $0x6b8] sm:$0xff] }
 0x18e   :  { %v6323_v16 = vpop.f32.mrf.mxu2  ;;  %v6384_v35 = vpop.f32.mrf.mxu0  ;;  %6836 = vmatpush.bf16.msra.mxu2 %v11968_v1  ;;  %6772 = vmatpush.bf16.msra.mxu0 %v11948_v55  ;;  %v9000_v11 = vld [vmem:[%s16846_s0 + $0x638] sm:$0xf] }
 0x18f   :  { %v13660_v42 = vadd.f32 %v6323_v16, %v6290_v13  ;;  %v13663_v18 = vadd.f32 %v13559_v23, %v6343_v17  ;;  %v6403_v27 = vpop.f32.mrf.mxu1  ;;  %v11668_v16 = vld [vmem:[%s16846_s0 + $0x730] sm:$0xf0]  ;;  %6803 = vmatpush.bf16.msra.mxu1 %v11959_v32 }
 0x190   :  { %v6404_v41 = vadd.f32 %v6403_v27, %v13562_v26  ;;  %v11448_v17 = vld [vmem:[%s16846_s0 + $0x54] sm:$0xf]  ;;  %v9001_v27 = vor.u32 %v11668_v16, %v9000_v11 }
 0x191   :  { %6606 = vmatmul.bf16.vlgmr.msrb.gmra.mxu3 %v8241_v25  ;;  %6645 = vmatmul.bf16.gmra.mxu0 %v8497_v20  ;;  %v8246_v25 = vld [vmem:[%s16846_s0 + $0x14c] sm:$0xf0]  ;;  %v8252_v20 = vld [vmem:[%s16846_s0 + $0x58] sm:$0xf] }
 0x192   :  { %6553 = vmatmul.bf16.gmra.mxu1 %v8989_v22  ;;  %6837 = vmatpush.bf16.msra.mxu2 %v11967_v38 }
 0x193   :  { %6587 = vmatmul.bf16.gmra.mxu2 %v8993_v6  ;;  %6773 = vmatpush.bf16.msra.mxu0 %v11947_v0 }
 0x194   :  { %v6345_v29 = vpop.f32.mrf.mxu3 }
 0x195   :  { %v6346_v23 = vadd.f32 %v6345_v29, %v13501_v53  ;;  %v11698_v53 = vld [vmem:[%s16846_s0 + $0x824] sm:$0xf]  ;;  %v8249_v29 = vor.u32 %v11448_v17, %v8246_v25  ;;  %v11984_v25 = vld [vmem:[%s16845_s1 + $0x738] sm:$0xff] }
 0x196   :  { %v6437_v43 = vpop.f32.mrf.mxu2  ;;  %v13675_v26 = vpop.f32.mrf.mxu0  ;;  %v9241_v48 = vor.u32 %v11698_v53, %v9238_v46 }
 0x197   :  { %v13673_v30 = vadd.f32 %v6437_v43, %v6404_v41  ;;  %v13678_v31 = vadd.f32 %v13595_v47, %v6346_v23  ;;  %v6405_v19 = vpop.f32.mrf.mxu1  ;;  %v9244_v47 = vld [vmem:[%s16846_s0 + $0x828] sm:$0xf]  ;;  %6774 = vmatpush.bf16.msra.mxu0 %v11946_v44  ;;  %v11945_v41 = vld [vmem:[%s16845_s1 + $0x600] sm:$0xff]  ;;  %v8253_v23 = vor.u32 %v11480_v21, %v8252_v20  ;;  %v11963_v44 = vld [vmem:[%s16845_s1 + $0x690] sm:$0xff] }
 0x198   :  { %v6406_v37 = vadd.f32 %v6405_v19, %v13598_v51  ;;  %v9245_v57 = vor.u32 %v11730_v50, %v9244_v47  ;;  %v11964_v50 = vld [vmem:[%s16845_s1 + $0x698] sm:$0xff]  ;;  %v11699_v21 = vld [vmem:[%s16846_s0 + $0x82c] sm:$0xf] }
 0x19b   :  { %6775 = vmatpush.bf16.msra.mxu0 %v11945_v41  ;;  %v11606_v41 = vld [vmem:[%s16846_s0 + $0x540] sm:$0xf0] }
 0x19c   :  { %v6347_v36 = vpop.f32.mrf.mxu3 }
 0x19d   :  { %v6348_v51 = vadd.f32 %v6347_v36, %v13546_v24  ;;  %v11942_v24 = vld [vmem:[%s16845_s1 + $0x5e8] sm:$0xff] }
 0x19e   :  { %v6439_v45 = vpop.f32.mrf.mxu2  ;;  %v13714_v56 = vpop.f32.mrf.mxu0  ;;  %6736 = vmatpush.bf16.msra.mxu3 %v11942_v24  ;;  %v11938_v36 = vld [vmem:[%s16845_s1 + $0x5c8] sm:$0xff] }
 0x19f   :  { %v13712_v52 = vadd.f32 %v6439_v45, %v6406_v37  ;;  %v13717_v63 = vadd.f32 %v13616_v49, %v6348_v51  ;;  %v6408_v58 = vpop.f32.mrf.mxu1  ;;  %v11965_v37 = vld [vmem:[%s16845_s1 + $0x6a0] sm:$0xff]  ;;  %v11636_v51 = vld [vmem:[%s16846_s0 + $0x634] sm:$0xf]  ;;  %v8994_v45 = vld [vmem:[%s16846_s0 + $0x72c] sm:$0xf0]  ;;  %6904 = vmatpush.bf16.msrb.mxu0 %v11984_v25 }
 0x1a0   :  { %v6409_v13 = vadd.f32 %v6408_v58, %v13618_v59  ;;  %v8997_v24 = vor.u32 %v11636_v51, %v8994_v45 }
 0x1a1   :  { %6611 = vmatmul.bf16.gmra.mxu3 %v8493_v61  ;;  %6650 = vmatmul.bf16.gmra.mxu0 %v8749_v60  ;;  %v9252_v61 = vld [vmem:[%s16846_s0 + $0x830] sm:$0xf]  ;;  %v11731_v60 = vld [vmem:[%s16846_s0 + $0x928] sm:$0xf0] }
 0x1a2   :  { %6558 = vmatmul.bf16.gmra.mxu1 %v9241_v48  ;;  %6737 = vmatpush.bf16.msra.mxu3 %v11941_v8  ;;  %v8498_v48 = vld [vmem:[%s16846_s0 + $0x344] sm:$0xf0] }
 0x1a3   :  { %6592 = vmatmul.bf16.gmra.mxu2 %v9245_v57  ;;  %v8504_v57 = vld [vmem:[%s16846_s0 + $0x250] sm:$0xf] }
 0x1a4   :  { %v6350_v9 = vpop.f32.mrf.mxu3 }
 0x1a5   :  { %v6351_v49 = vadd.f32 %v6350_v9, %v13557_v14  ;;  %v11966_v14 = vld [vmem:[%s16845_s1 + $0x6a8] sm:$0xff]  ;;  %v9253_v9 = vor.u32 %v11731_v60, %v9252_v61  ;;  %v11961_v60 = vld [vmem:[%s16845_s1 + $0x680] sm:$0xff] }
 0x1a6   :  { %v6442_v12 = vpop.f32.mrf.mxu2  ;;  %v13732_v59 = vpop.f32.mrf.mxu0  ;;  %6838 = vmatpush.bf16.msra.mxu2 %v11966_v14 }
 0x1a7   :  { %v13730_v62 = vadd.f32 %v6442_v12, %v6409_v13  ;;  %v13734_v3 = vadd.f32 %v6384_v35, %v6351_v49  ;;  %v6410_v10 = vpop.f32.mrf.mxu1  ;;  %v11937_v49 = vld [vmem:[%s16845_s1 + $0x5c0] sm:$0xff] }
 0x1a8   :  { %v6411_v7 = vadd.f32 %v6410_v10, %v13663_v18  ;;  %v8745_v18 = vor.u32 %v11573_v33, %v8742_v5 }
 0x1aa   :  { %6839 = vmatpush.bf16.msra.mxu2 %v11965_v37 }
 0x1ac   :  { %v6352_v35 = vpop.f32.mrf.mxu3 }
 0x1ad   :  { %v6353_v22 = vadd.f32 %v6352_v35, %v13593_v2  ;;  %v11574_v35 = vld [vmem:[%s16846_s0 + $0x444] sm:$0xf] }
 0x1ae   :  { %v6444_v6 = vpop.f32.mrf.mxu2  ;;  %v13779_v28 = vpop.f32.mrf.mxu0  ;;  %6840 = vmatpush.bf16.msra.mxu2 %v11964_v50  ;;  %v11955_v50 = vld [vmem:[%s16845_s1 + $0x650] sm:$0xff] }
 0x1af   :  { %v13777_v1 = vadd.f32 %v6444_v6, %v6411_v7  ;;  %v13782_v43 = vadd.f32 %v13675_v26, %v6353_v22  ;;  %v6413_v19 = vpop.f32.mrf.mxu1  ;;  %v11940_v26 = vld [vmem:[%s16845_s1 + $0x5d8] sm:$0xff]  ;;  %v8260_v22 = vld [vmem:[%s16846_s0 + $0x60] sm:$0xf] }
 0x1b0   :  { %v6414_v2 = vadd.f32 %v6413_v19, %v13678_v31  ;;  %6738 = vmatpush.bf16.msra.mxu3 %v11940_v26  ;;  %v11481_v6 = vld [vmem:[%s16846_s0 + $0x158] sm:$0xf0] }
 0x1b1   :  { %6616 = vmatmul.bf16.gmra.mxu3 %v8745_v18  ;;  %6655 = vmatmul.bf16.gmra.mxu0 %v9001_v27  ;;  %v8750_v18 = vld [vmem:[%s16846_s0 + $0x53c] sm:$0xf0]  ;;  %v8756_v27 = vld [vmem:[%s16846_s0 + $0x448] sm:$0xf]  ;;  %v8261_v19 = vor.u32 %v11481_v6, %v8260_v22 }
 0x1b2   :  { %6674 = vmatmul.bf16.vlgmr.msrb.gmra.mxu1 %v8249_v29  ;;  %6841 = vmatpush.bf16.msra.mxu2 %v11963_v44  ;;  %v8753_v37 = vor.u32 %v11574_v35, %v8750_v18  ;;  %v8757_v26 = vor.u32 %v11606_v41, %v8756_v27  ;;  %v11975_v18 = vld [vmem:[%s16845_s1 + $0x6f0] sm:$0xff] }
 0x1b3   :  { %6708 = vmatmul.bf16.vlgmr.msrb.gmra.mxu2 %v8253_v23  ;;  %v11999_v41 = vld [vmem:[%s16845_s1 + $0x7b0] sm:$0xff] }
 0x1b4   :  { %v6355_v38 = vpop.f32.mrf.mxu3  ;;  %6739 = vmatpush.bf16.msra.mxu3 %v11939_v39 }
 0x1b5   :  { %v6356_v31 = vadd.f32 %v6355_v38, %v13614_v15  ;;  %v11958_v15 = vld [vmem:[%s16845_s1 + $0x668] sm:$0xff] }
 0x1b6   :  { %v6447_v53 = vpop.f32.mrf.mxu2  ;;  %v13800_v34 = vpop.f32.mrf.mxu0  ;;  %6804 = vmatpush.bf16.msra.mxu1 %v11958_v15 }
 0x1b7   :  { %v13798_v40 = vadd.f32 %v6447_v53, %v6414_v2  ;;  %v13803_v54 = vadd.f32 %v13714_v56, %v6356_v31  ;;  %v6415_v46 = vpop.f32.mrf.mxu1  ;;  %v11511_v56 = vld [vmem:[%s16846_s0 + $0x24c] sm:$0xf]  ;;  %v11956_v53 = vld [vmem:[%s16845_s1 + $0x658] sm:$0xff] }
 0x1b8   :  { %v6416_v47 = vadd.f32 %v6415_v46, %v13717_v63  ;;  %v11543_v63 = vld [vmem:[%s16846_s0 + $0x348] sm:$0xf0]  ;;  %6740 = vmatpush.bf16.msra.mxu3 %v11938_v36  ;;  %v8501_v10 = vor.u32 %v11511_v56, %v8498_v48  ;;  %v11983_v46 = vld [vmem:[%s16845_s1 + $0x730] sm:$0xff]  ;;  %v11637_v48 = vld [vmem:[%s16846_s0 + $0x63c] sm:$0xf] }
 0x1b9   :  { %v8505_v4 = vor.u32 %v11543_v63, %v8504_v57  ;;  %6905 = vmatpush.bf16.msrb.mxu0 %v11983_v46  ;;  %v11954_v56 = vld [vmem:[%s16845_s1 + $0x648] sm:$0xff]  ;;  %v11449_v57 = vld [vmem:[%s16846_s0 + $0x5c] sm:$0xf] }
 0x1ba   :  { %v11976_v63 = vld [vmem:[%s16845_s1 + $0x6f8] sm:$0xff] }
 0x1bc   :  { %v6357_v58 = vpop.f32.mrf.mxu3  ;;  %6741 = vmatpush.bf16.msra.mxu3 %v11937_v49  ;;  %v11669_v49 = vld [vmem:[%s16846_s0 + $0x738] sm:$0xf0] }
 0x1bd   :  { %v6358_v55 = vadd.f32 %v6357_v58, %v13660_v42  ;;  %v11957_v42 = vld [vmem:[%s16845_s1 + $0x660] sm:$0xff]  ;;  %v8254_v58 = vld [vmem:[%s16846_s0 + $0x154] sm:$0xf0] }
 0x1be   :  { %v6449_v13 = vpop.f32.mrf.mxu2  ;;  %v6510_v0 = vpop.f32.mrf.mxu0  ;;  %6805 = vmatpush.bf16.msra.mxu1 %v11957_v42 }
 0x1bf   :  { %v13843_v12 = vadd.f32 %v6449_v13, %v6416_v47  ;;  %v6392_v14 = vadd.f32 %v13732_v59, %v6358_v55  ;;  %v6418_v7 = vpop.f32.mrf.mxu1  ;;  %v8512_v55 = vld [vmem:[%s16846_s0 + $0x258] sm:$0xf]  ;;  %v11544_v13 = vld [vmem:[%s16846_s0 + $0x350] sm:$0xf0] }
 0x1c0   :  { %v6419_v8 = vadd.f32 %v6418_v7, %v13734_v3  ;;  %6870 = vmatpush.bf16.msrb.mxu3 %v11976_v63  ;;  %v8513_v7 = vor.u32 %v11544_v13, %v8512_v55  ;;  %v11973_v13 = vld [vmem:[%s16845_s1 + $0x6e0] sm:$0xff] }
 0x1c1   :  { %6621 = vmatmul.bf16.gmra.mxu3 %v8997_v24  ;;  %6660 = vmatmul.bf16.gmra.mxu0 %v9253_v9  ;;  %v9002_v24 = vld [vmem:[%s16846_s0 + $0x734] sm:$0xf0]  ;;  %v9008_v9 = vld [vmem:[%s16846_s0 + $0x640] sm:$0xf] }
 0x1c2   :  { %6679 = vmatmul.bf16.gmra.mxu1 %v8501_v10 }
 0x1c3   :  { %6713 = vmatmul.bf16.gmra.mxu2 %v8505_v4  ;;  %6806 = vmatpush.bf16.msra.mxu1 %v11956_v53 }
 0x1c4   :  { %v6471_v33 = vpop.f32.mrf.mxu3  ;;  %6871 = vmatpush.bf16.msrb.mxu3 %v11975_v18  ;;  %v11991_v18 = vld [vmem:[%s16845_s1 + $0x770] sm:$0xff] }
 0x1c5   :  { %v6472_v5 = vadd.f32 %v6471_v33, %v13673_v30  ;;  %v9246_v30 = vld [vmem:[%s16846_s0 + $0x924] sm:$0xf0]  ;;  %v9005_v33 = vor.u32 %v11637_v48, %v9002_v24 }
 0x1c6   :  { %v6452_v59 = vpop.f32.mrf.mxu2  ;;  %v13856_v11 = vpop.f32.mrf.mxu0  ;;  %v11978_v24 = vld [vmem:[%s16845_s1 + $0x708] sm:$0xff] }
 0x1c7   :  { %v13854_v3 = vadd.f32 %v6452_v59, %v6419_v8  ;;  %v13859_v16 = vadd.f32 %v13779_v28, %v6472_v5  ;;  %v6420_v17 = vpop.f32.mrf.mxu1  ;;  %6807 = vmatpush.bf16.msra.mxu1 %v11955_v50  ;;  %v11953_v8 = vld [vmem:[%s16845_s1 + $0x640] sm:$0xff]  ;;  %v9009_v59 = vor.u32 %v11669_v49, %v9008_v9  ;;  %v11575_v9 = vld [vmem:[%s16846_s0 + $0x44c] sm:$0xf]  ;;  %v8758_v49 = vld [vmem:[%s16846_s0 + $0x544] sm:$0xf0] }
 0x1c8   :  { %v6421_v20 = vadd.f32 %v6420_v17, %v13782_v43  ;;  %v9249_v43 = vor.u32 %v11699_v21, %v9246_v30 }
 0x1cb   :  { %6808 = vmatpush.bf16.msra.mxu1 %v11954_v56  ;;  %v11979_v56 = vld [vmem:[%s16845_s1 + $0x710] sm:$0xff] }
 0x1cc   :  { %v6473_v28 = vpop.f32.mrf.mxu3 }
 0x1cd   :  { %v6474_v23 = vadd.f32 %v6473_v28, %v13712_v52  ;;  %v11962_v52 = vld [vmem:[%s16845_s1 + $0x688] sm:$0xff]  ;;  %v11512_v28 = vld [vmem:[%s16846_s0 + $0x254] sm:$0xf] }
 0x1ce   :  { %v6454_v29 = vpop.f32.mrf.mxu2  ;;  %v13892_v32 = vpop.f32.mrf.mxu0  ;;  %6842 = vmatpush.bf16.msra.mxu2 %v11962_v52 }
 0x1cf   :  { %v13890_v2 = vadd.f32 %v6454_v29, %v6421_v20  ;;  %v13895_v38 = vadd.f32 %v13800_v34, %v6474_v23  ;;  %v6423_v31 = vpop.f32.mrf.mxu1  ;;  %6809 = vmatpush.bf16.msra.mxu1 %v11953_v8  ;;  %v11981_v20 = vld [vmem:[%s16845_s1 + $0x720] sm:$0xff]  ;;  %v8506_v29 = vld [vmem:[%s16846_s0 + $0x34c] sm:$0xf0] }
 0x1d0   :  { %v6424_v39 = vadd.f32 %v6423_v31, %v13803_v54  ;;  %v8764_v23 = vld [vmem:[%s16846_s0 + $0x450] sm:$0xf]  ;;  %v8509_v53 = vor.u32 %v11512_v28, %v8506_v29  ;;  %v11482_v8 = vld [vmem:[%s16846_s0 + $0x160] sm:$0xf0] }
 0x1d1   :  { %6626 = vmatmul.bf16.gmra.mxu3 %v9249_v43  ;;  %6776 = vmatmul.bf16.vlgmr.msra.gmra.mxu0 %v8261_v19  ;;  %v11607_v43 = vld [vmem:[%s16846_s0 + $0x548] sm:$0xf0]  ;;  %v9254_v19 = vld [vmem:[%s16846_s0 + $0x92c] sm:$0xf0] }
 0x1d2   :  { %6684 = vmatmul.bf16.gmra.mxu1 %v8753_v37  ;;  %6843 = vmatpush.bf16.msra.mxu2 %v11961_v60  ;;  %v11732_v37 = vld [vmem:[%s16846_s0 + $0x930] sm:$0xf0]  ;;  %v8765_v52 = vor.u32 %v11607_v43, %v8764_v23 }
 0x1d3   :  { %6718 = vmatmul.bf16.gmra.mxu2 %v8757_v26  ;;  %v11971_v28 = vld [vmem:[%s16845_s1 + $0x6d0] sm:$0xff] }
 0x1d4   :  { %v6476_v34 = vpop.f32.mrf.mxu3 }
 0x1d5   :  { %v6477_v15 = vadd.f32 %v6476_v34, %v13730_v62  ;;  %v11982_v62 = vld [vmem:[%s16845_s1 + $0x728] sm:$0xff] }
 0x1d6   :  { %v6457_v47 = vpop.f32.mrf.mxu2  ;;  %v13913_v36 = vpop.f32.mrf.mxu0  ;;  %6906 = vmatpush.bf16.msrb.mxu0 %v11982_v62 }
 0x1d7   :  { %v13911_v54 = vadd.f32 %v6457_v47, %v6424_v39  ;;  %v13915_v51 = vadd.f32 %v6510_v0, %v6477_v15  ;;  %v6425_v45 = vpop.f32.mrf.mxu1 }
 0x1d8   :  { %v6426_v61 = vadd.f32 %v6425_v45, %v6392_v14  ;;  %v8257_v14 = vor.u32 %v11449_v57, %v8254_v58  ;;  %v11980_v45 = vld [vmem:[%s16845_s1 + $0x718] sm:$0xff] }
 0x1d9   :  { %v11992_v58 = vld [vmem:[%s16845_s1 + $0x778] sm:$0xff] }
 0x1da   :  { %6907 = vmatpush.bf16.msrb.mxu0 %v11981_v20  ;;  %6938 = vmatpush.bf16.msrb.mxu1 %v11992_v58 }
 0x1dc   :  { %v6478_v0 = vpop.f32.mrf.mxu3 }
 0x1dd   :  { %v6479_v4 = vadd.f32 %v6478_v0, %v13777_v1  ;;  %v12000_v1 = vld [vmem:[%s16845_s1 + $0x7b8] sm:$0xff]  ;;  %v9016_v0 = vld [vmem:[%s16846_s0 + $0x648] sm:$0xf] }
 0x1de   :  { %v6459_v10 = vpop.f32.mrf.mxu2  ;;  %v6520_v44 = vpop.f32.mrf.mxu0  ;;  %6972 = vmatpush.bf16.msrb.mxu2 %v12000_v1  ;;  %6908 = vmatpush.bf16.msrb.mxu0 %v11980_v45 }
 0x1df   :  { %v13957_v42 = vadd.f32 %v6459_v10, %v6426_v61  ;;  %v13960_v5 = vadd.f32 %v13856_v11, %v6479_v4  ;;  %v6539_v17 = vpop.f32.mrf.mxu1  ;;  %v11670_v10 = vld [vmem:[%s16846_s0 + $0x740] sm:$0xf0]  ;;  %6939 = vmatpush.bf16.msrb.mxu1 %v11991_v18 }
 0x1e0   :  { %v6540_v25 = vadd.f32 %v6539_v17, %v13859_v16  ;;  %v11450_v4 = vld [vmem:[%s16846_s0 + $0x64] sm:$0xf]  ;;  %v9017_v17 = vor.u32 %v11670_v10, %v9016_v0 }
 0x1e1   :  { %6742 = vmatmul.bf16.vlgmr.msra.gmra.mxu3 %v8257_v14  ;;  %6781 = vmatmul.bf16.gmra.mxu0 %v8513_v7  ;;  %v8262_v14 = vld [vmem:[%s16846_s0 + $0x15c] sm:$0xf0]  ;;  %v8268_v7 = vld [vmem:[%s16846_s0 + $0x68] sm:$0xf] }
 0x1e2   :  { %6689 = vmatmul.bf16.gmra.mxu1 %v9005_v33  ;;  %6973 = vmatpush.bf16.msrb.mxu2 %v11999_v41 }
 0x1e3   :  { %6723 = vmatmul.bf16.gmra.mxu2 %v9009_v59  ;;  %6909 = vmatpush.bf16.msrb.mxu0 %v11979_v56 }
 0x1e4   :  { %v6481_v21 = vpop.f32.mrf.mxu3 }
 0x1e5   :  { %v6482_v11 = vadd.f32 %v6481_v21, %v13798_v40  ;;  %v11700_v40 = vld [vmem:[%s16846_s0 + $0x834] sm:$0xf]  ;;  %v8265_v21 = vor.u32 %v11450_v4, %v8262_v14  ;;  %v12016_v14 = vld [vmem:[%s16845_s1 + $0x838] sm:$0xff] }
 0x1e6   :  { %v6573_v30 = vpop.f32.mrf.mxu2  ;;  %v13972_v16 = vpop.f32.mrf.mxu0  ;;  %v9257_v34 = vor.u32 %v11700_v40, %v9254_v19 }
 0x1e7   :  { %v13970_v35 = vadd.f32 %v6573_v30, %v6540_v25  ;;  %v13975_v22 = vadd.f32 %v13892_v32, %v6482_v11  ;;  %v6541_v6 = vpop.f32.mrf.mxu1  ;;  %v9260_v32 = vld [vmem:[%s16846_s0 + $0x838] sm:$0xf]  ;;  %6910 = vmatpush.bf16.msrb.mxu0 %v11978_v24  ;;  %v11977_v25 = vld [vmem:[%s16845_s1 + $0x700] sm:$0xff]  ;;  %v8269_v11 = vor.u32 %v11482_v8, %v8268_v7  ;;  %v11995_v24 = vld [vmem:[%s16845_s1 + $0x790] sm:$0xff] }
 0x1e8   :  { %v6542_v27 = vadd.f32 %v6541_v6, %v13895_v38  ;;  %v9261_v47 = vor.u32 %v11732_v37, %v9260_v32  ;;  %v11996_v37 = vld [vmem:[%s16845_s1 + $0x798] sm:$0xff] }
 0x1e9   :  { %v11701_v8 = vld [vmem:[%s16846_s0 + $0x83c] sm:$0xf] }
 0x1eb   :  { %6911 = vmatpush.bf16.msrb.mxu0 %v11977_v25  ;;  %v11608_v25 = vld [vmem:[%s16846_s0 + $0x550] sm:$0xf0] }
 0x1ec   :  { %v6483_v26 = vpop.f32.mrf.mxu3 }
 0x1ed   :  { %v6484_v38 = vadd.f32 %v6483_v26, %v13843_v12  ;;  %v11974_v12 = vld [vmem:[%s16845_s1 + $0x6e8] sm:$0xff] }
 0x1ee   :  { %v6575_v31 = vpop.f32.mrf.mxu2  ;;  %v14011_v46 = vpop.f32.mrf.mxu0  ;;  %6872 = vmatpush.bf16.msrb.mxu3 %v11974_v12  ;;  %v11970_v26 = vld [vmem:[%s16845_s1 + $0x6c8] sm:$0xff] }
 0x1ef   :  { %v14009_v39 = vadd.f32 %v6575_v31, %v6542_v27  ;;  %v14014_v15 = vadd.f32 %v13913_v36, %v6484_v38  ;;  %v6544_v50 = vpop.f32.mrf.mxu1  ;;  %v11997_v27 = vld [vmem:[%s16845_s1 + $0x7a0] sm:$0xff]  ;;  %7040 = vmatpush.bf16.msra.mxu0 %v12016_v14 }
 0x1f0   :  { %v6545_v61 = vadd.f32 %v6544_v50, %v13915_v51  ;;  %v11638_v38 = vld [vmem:[%s16846_s0 + $0x644] sm:$0xf]  ;;  %v9010_v31 = vld [vmem:[%s16846_s0 + $0x73c] sm:$0xf0] }
 0x1f1   :  { %6747 = vmatmul.bf16.gmra.mxu3 %v8509_v53  ;;  %6786 = vmatmul.bf16.gmra.mxu0 %v8765_v52  ;;  %v9268_v53 = vld [vmem:[%s16846_s0 + $0x840] sm:$0xf]  ;;  %v11733_v52 = vld [vmem:[%s16846_s0 + $0x938] sm:$0xf0]  ;;  %v9013_v12 = vor.u32 %v11638_v38, %v9010_v31 }
 0x1f2   :  { %6694 = vmatmul.bf16.gmra.mxu1 %v9257_v34  ;;  %6873 = vmatpush.bf16.msrb.mxu3 %v11973_v13  ;;  %v8514_v34 = vld [vmem:[%s16846_s0 + $0x354] sm:$0xf0] }
 0x1f3   :  { %6728 = vmatmul.bf16.gmra.mxu2 %v9261_v47  ;;  %v8520_v47 = vld [vmem:[%s16846_s0 + $0x260] sm:$0xf] }
 0x1f4   :  { %v6486_v60 = vpop.f32.mrf.mxu3 }
 0x1f5   :  { %v6487_v36 = vadd.f32 %v6486_v60, %v13854_v3  ;;  %v11998_v3 = vld [vmem:[%s16845_s1 + $0x7a8] sm:$0xff]  ;;  %v9269_v60 = vor.u32 %v11733_v52, %v9268_v53  ;;  %v11993_v52 = vld [vmem:[%s16845_s1 + $0x780] sm:$0xff] }
 0x1f6   :  { %v6578_v62 = vpop.f32.mrf.mxu2  ;;  %v14029_v51 = vpop.f32.mrf.mxu0  ;;  %6974 = vmatpush.bf16.msrb.mxu2 %v11998_v3 }
 0x1f7   :  { %v14027_v48 = vadd.f32 %v6578_v62, %v6545_v61  ;;  %v14031_v57 = vadd.f32 %v6520_v44, %v6487_v36  ;;  %v6546_v63 = vpop.f32.mrf.mxu1  ;;  %v11969_v36 = vld [vmem:[%s16845_s1 + $0x6c0] sm:$0xff] }
 0x1f8   :  { %v6547_v55 = vadd.f32 %v6546_v63, %v13960_v5  ;;  %v8761_v5 = vor.u32 %v11575_v9, %v8758_v49 }
 0x1fa   :  { %6975 = vmatpush.bf16.msrb.mxu2 %v11997_v27 }
 0x1fc   :  { %v6488_v44 = vpop.f32.mrf.mxu3 }
 0x1fd   :  { %v6489_v33 = vadd.f32 %v6488_v44, %v13890_v2  ;;  %v11576_v44 = vld [vmem:[%s16846_s0 + $0x454] sm:$0xf] }
 0x1fe   :  { %v6580_v59 = vpop.f32.mrf.mxu2  ;;  %v14076_v20 = vpop.f32.mrf.mxu0  ;;  %6976 = vmatpush.bf16.msrb.mxu2 %v11996_v37  ;;  %v11987_v37 = vld [vmem:[%s16845_s1 + $0x750] sm:$0xff] }
 0x1ff   :  { %v14074_v1 = vadd.f32 %v6580_v59, %v6547_v55  ;;  %v14079_v30 = vadd.f32 %v13972_v16, %v6489_v33  ;;  %v6549_v6 = vpop.f32.mrf.mxu1  ;;  %v11972_v16 = vld [vmem:[%s16845_s1 + $0x6d8] sm:$0xff]  ;;  %v8276_v33 = vld [vmem:[%s16846_s0 + $0x70] sm:$0xf]  ;;  %v11483_v59 = vld [vmem:[%s16846_s0 + $0x168] sm:$0xf0] }
 0x200   :  { %v6550_v2 = vadd.f32 %v6549_v6, %v13975_v22  ;;  %6874 = vmatpush.bf16.msrb.mxu3 %v11972_v16  ;;  %v8277_v6 = vor.u32 %v11483_v59, %v8276_v33 }
 0x201   :  { %6752 = vmatmul.bf16.gmra.mxu3 %v8761_v5  ;;  %6791 = vmatmul.bf16.gmra.mxu0 %v9017_v17  ;;  %v8766_v5 = vld [vmem:[%s16846_s0 + $0x54c] sm:$0xf0]  ;;  %v8772_v17 = vld [vmem:[%s16846_s0 + $0x458] sm:$0xf] }
 0x202   :  { %6810 = vmatmul.bf16.vlgmr.msra.gmra.mxu1 %v8265_v21  ;;  %6977 = vmatpush.bf16.msrb.mxu2 %v11995_v24  ;;  %v8769_v27 = vor.u32 %v11576_v44, %v8766_v5  ;;  %v8773_v16 = vor.u32 %v11608_v25, %v8772_v17  ;;  %v12007_v5 = vld [vmem:[%s16845_s1 + $0x7f0] sm:$0xff] }
 0x203   :  { %6844 = vmatmul.bf16.vlgmr.msra.gmra.mxu2 %v8269_v11  ;;  %v12031_v25 = vld [vmem:[%s16845_s1 + $0x8b0] sm:$0xff] }
 0x204   :  { %v6491_v41 = vpop.f32.mrf.mxu3  ;;  %6875 = vmatpush.bf16.msrb.mxu3 %v11971_v28 }
 0x205   :  { %v6492_v22 = vadd.f32 %v6491_v41, %v13911_v54  ;;  %v11990_v54 = vld [vmem:[%s16845_s1 + $0x768] sm:$0xff] }
 0x206   :  { %v6583_v40 = vpop.f32.mrf.mxu2  ;;  %v14097_v23 = vpop.f32.mrf.mxu0  ;;  %6940 = vmatpush.bf16.msrb.mxu1 %v11990_v54 }
 0x207   :  { %v14095_v29 = vadd.f32 %v6583_v40, %v6550_v2  ;;  %v14100_v43 = vadd.f32 %v14011_v46, %v6492_v22  ;;  %v6551_v19 = vpop.f32.mrf.mxu1  ;;  %v11513_v46 = vld [vmem:[%s16846_s0 + $0x25c] sm:$0xf] }
 0x208   :  { %v6552_v32 = vadd.f32 %v6551_v19, %v14014_v15  ;;  %v11545_v15 = vld [vmem:[%s16846_s0 + $0x358] sm:$0xf0]  ;;  %6876 = vmatpush.bf16.msrb.mxu3 %v11970_v26  ;;  %v8517_v63 = vor.u32 %v11513_v46, %v8514_v34  ;;  %v12015_v19 = vld [vmem:[%s16845_s1 + $0x830] sm:$0xff]  ;;  %v11986_v46 = vld [vmem:[%s16845_s1 + $0x748] sm:$0xff] }
 0x209   :  { %v8521_v58 = vor.u32 %v11545_v15, %v8520_v47  ;;  %v11988_v40 = vld [vmem:[%s16845_s1 + $0x758] sm:$0xff]  ;;  %7041 = vmatpush.bf16.msra.mxu0 %v12015_v19  ;;  %v11639_v34 = vld [vmem:[%s16846_s0 + $0x64c] sm:$0xf] }
 0x20a   :  { %v11451_v47 = vld [vmem:[%s16846_s0 + $0x6c] sm:$0xf]  ;;  %v12008_v15 = vld [vmem:[%s16845_s1 + $0x7f8] sm:$0xff] }
 0x20c   :  { %v6493_v50 = vpop.f32.mrf.mxu3  ;;  %6877 = vmatpush.bf16.msrb.mxu3 %v11969_v36  ;;  %v11671_v36 = vld [vmem:[%s16846_s0 + $0x748] sm:$0xf0] }
 0x20d   :  { %v6494_v45 = vadd.f32 %v6493_v50, %v13957_v42  ;;  %v11989_v42 = vld [vmem:[%s16845_s1 + $0x760] sm:$0xff]  ;;  %v8270_v50 = vld [vmem:[%s16846_s0 + $0x164] sm:$0xf0] }
 0x20e   :  { %v6585_v61 = vpop.f32.mrf.mxu2  ;;  %v6646_v56 = vpop.f32.mrf.mxu0  ;;  %6941 = vmatpush.bf16.msrb.mxu1 %v11989_v42 }
 0x20f   :  { %v14140_v62 = vadd.f32 %v6585_v61, %v6552_v32  ;;  %v6528_v3 = vadd.f32 %v14029_v51, %v6494_v45  ;;  %v6554_v55 = vpop.f32.mrf.mxu1  ;;  %v8528_v45 = vld [vmem:[%s16846_s0 + $0x268] sm:$0xf]  ;;  %v11546_v61 = vld [vmem:[%s16846_s0 + $0x360] sm:$0xf0] }
 0x210   :  { %v6555_v13 = vadd.f32 %v6554_v55, %v14031_v57  ;;  %7006 = vmatpush.bf16.msra.mxu3 %v12008_v15  ;;  %v8529_v55 = vor.u32 %v11546_v61, %v8528_v45  ;;  %v12030_v15 = vld [vmem:[%s16845_s1 + $0x8a8] sm:$0xff]  ;;  %v12005_v61 = vld [vmem:[%s16845_s1 + $0x7e0] sm:$0xff] }
 0x211   :  { %6757 = vmatmul.bf16.gmra.mxu3 %v9013_v12  ;;  %6796 = vmatmul.bf16.gmra.mxu0 %v9269_v60  ;;  %v9018_v12 = vld [vmem:[%s16846_s0 + $0x744] sm:$0xf0]  ;;  %v9024_v60 = vld [vmem:[%s16846_s0 + $0x650] sm:$0xf] }
 0x212   :  { %6815 = vmatmul.bf16.gmra.mxu1 %v8517_v63 }
 0x213   :  { %6849 = vmatmul.bf16.gmra.mxu2 %v8521_v58  ;;  %6942 = vmatpush.bf16.msrb.mxu1 %v11988_v40 }
 0x214   :  { %v6607_v9 = vpop.f32.mrf.mxu3  ;;  %7007 = vmatpush.bf16.msra.mxu3 %v12007_v5  ;;  %v12023_v5 = vld [vmem:[%s16845_s1 + $0x870] sm:$0xff] }
 0x215   :  { %v6608_v49 = vadd.f32 %v6607_v9, %v13970_v35  ;;  %v9262_v35 = vld [vmem:[%s16846_s0 + $0x934] sm:$0xf0]  ;;  %v9021_v9 = vor.u32 %v11639_v34, %v9018_v12  ;;  %v12010_v12 = vld [vmem:[%s16845_s1 + $0x808] sm:$0xff] }
 0x216   :  { %v6588_v51 = vpop.f32.mrf.mxu2  ;;  %v14153_v0 = vpop.f32.mrf.mxu0 }
 0x217   :  { %v14151_v57 = vadd.f32 %v6588_v51, %v6555_v13  ;;  %v14156_v10 = vadd.f32 %v14076_v20, %v6608_v49  ;;  %v6556_v4 = vpop.f32.mrf.mxu1  ;;  %6943 = vmatpush.bf16.msrb.mxu1 %v11987_v37  ;;  %v11985_v13 = vld [vmem:[%s16845_s1 + $0x740] sm:$0xff]  ;;  %v9025_v51 = vor.u32 %v11671_v36, %v9024_v60  ;;  %v11577_v60 = vld [vmem:[%s16846_s0 + $0x45c] sm:$0xf]  ;;  %v8774_v36 = vld [vmem:[%s16846_s0 + $0x554] sm:$0xf0] }
 0x218   :  { %v6557_v7 = vadd.f32 %v6556_v4, %v14079_v30  ;;  %v9265_v30 = vor.u32 %v11701_v8, %v9262_v35 }
 0x21b   :  { %6944 = vmatpush.bf16.msrb.mxu1 %v11986_v46  ;;  %v12011_v46 = vld [vmem:[%s16845_s1 + $0x810] sm:$0xff] }
 0x21c   :  { %v6609_v20 = vpop.f32.mrf.mxu3 }
 0x21d   :  { %v6610_v11 = vadd.f32 %v6609_v20, %v14009_v39  ;;  %v11994_v39 = vld [vmem:[%s16845_s1 + $0x788] sm:$0xff]  ;;  %v11514_v20 = vld [vmem:[%s16846_s0 + $0x264] sm:$0xf] }
 0x21e   :  { %v6590_v21 = vpop.f32.mrf.mxu2  ;;  %v14189_v18 = vpop.f32.mrf.mxu0  ;;  %6978 = vmatpush.bf16.msrb.mxu2 %v11994_v39 }
 0x21f   :  { %v14187_v2 = vadd.f32 %v6590_v21, %v6557_v7  ;;  %v14192_v41 = vadd.f32 %v14097_v23, %v6610_v11  ;;  %v6559_v22 = vpop.f32.mrf.mxu1  ;;  %6945 = vmatpush.bf16.msrb.mxu1 %v11985_v13  ;;  %v12013_v7 = vld [vmem:[%s16845_s1 + $0x820] sm:$0xff]  ;;  %v11484_v13 = vld [vmem:[%s16846_s0 + $0x170] sm:$0xf0] }
 0x220   :  { %v6560_v28 = vadd.f32 %v6559_v22, %v14100_v43  ;;  %v8522_v21 = vld [vmem:[%s16846_s0 + $0x35c] sm:$0xf0] }
 0x221   :  { %6762 = vmatmul.bf16.gmra.mxu3 %v9265_v30  ;;  %6912 = vmatmul.bf16.vlgmr.msrb.gmra.mxu0 %v8277_v6  ;;  %v8780_v11 = vld [vmem:[%s16846_s0 + $0x460] sm:$0xf]  ;;  %v11609_v30 = vld [vmem:[%s16846_s0 + $0x558] sm:$0xf0]  ;;  %v8525_v40 = vor.u32 %v11514_v20, %v8522_v21  ;;  %v12003_v20 = vld [vmem:[%s16845_s1 + $0x7d0] sm:$0xff] }
 0x222   :  { %6820 = vmatmul.bf16.gmra.mxu1 %v8769_v27  ;;  %6979 = vmatpush.bf16.msrb.mxu2 %v11993_v52  ;;  %v9270_v6 = vld [vmem:[%s16846_s0 + $0x93c] sm:$0xf0]  ;;  %v11734_v27 = vld [vmem:[%s16846_s0 + $0x940] sm:$0xf0]  ;;  %v8781_v39 = vor.u32 %v11609_v30, %v8780_v11 }
 0x223   :  { %6854 = vmatmul.bf16.gmra.mxu2 %v8773_v16 }
 0x224   :  { %v6612_v23 = vpop.f32.mrf.mxu3 }
 0x225   :  { %v6613_v54 = vadd.f32 %v6612_v23, %v14027_v48  ;;  %v12014_v48 = vld [vmem:[%s16845_s1 + $0x828] sm:$0xff] }
 0x226   :  { %v6593_v32 = vpop.f32.mrf.mxu2  ;;  %v14210_v26 = vpop.f32.mrf.mxu0  ;;  %7042 = vmatpush.bf16.msra.mxu0 %v12014_v48 }
 0x227   :  { %v14208_v43 = vadd.f32 %v6593_v32, %v6560_v28  ;;  %v14212_v38 = vadd.f32 %v6646_v56, %v6613_v54  ;;  %v6561_v31 = vpop.f32.mrf.mxu1 }
 0x228   :  { %v6562_v53 = vadd.f32 %v6561_v31, %v6528_v3  ;;  %v8273_v3 = vor.u32 %v11451_v47, %v8270_v50  ;;  %v12012_v31 = vld [vmem:[%s16845_s1 + $0x818] sm:$0xff] }
 0x229   :  { %v12024_v47 = vld [vmem:[%s16845_s1 + $0x878] sm:$0xff] }
 0x22a   :  { %7043 = vmatpush.bf16.msra.mxu0 %v12013_v7  ;;  %7074 = vmatpush.bf16.msra.mxu1 %v12024_v47 }
 0x22c   :  { %v6614_v56 = vpop.f32.mrf.mxu3 }
 0x22d   :  { %v6615_v58 = vadd.f32 %v6614_v56, %v14074_v1  ;;  %v12032_v1 = vld [vmem:[%s16845_s1 + $0x8b8] sm:$0xff] }
 0x22e   :  { %v6595_v63 = vpop.f32.mrf.mxu2  ;;  %v14256_v24 = vpop.f32.mrf.mxu0  ;;  %7108 = vmatpush.bf16.msra.mxu2 %v12032_v1  ;;  %7044 = vmatpush.bf16.msra.mxu0 %v12012_v31  ;;  %v9032_v56 = vld [vmem:[%s16846_s0 + $0x658] sm:$0xf] }
 0x22f   :  { %v14254_v42 = vadd.f32 %v6595_v63, %v6562_v53  ;;  %v14259_v49 = vadd.f32 %v14153_v0, %v6615_v58  ;;  %v6675_v4 = vpop.f32.mrf.mxu1  ;;  %v11672_v63 = vld [vmem:[%s16846_s0 + $0x750] sm:$0xf0]  ;;  %7075 = vmatpush.bf16.msra.mxu1 %v12023_v5 }
 0x230   :  { %v6676_v14 = vadd.f32 %v6675_v4, %v14156_v10  ;;  %v11452_v58 = vld [vmem:[%s16846_s0 + $0x74] sm:$0xf]  ;;  %v9033_v4 = vor.u32 %v11672_v63, %v9032_v56  ;;  %v12048_v63 = vld [vmem:[%s16845_s1 + $0x938] sm:$0xff] }
 0x231   :  { %6878 = vmatmul.bf16.vlgmr.msrb.gmra.mxu3 %v8273_v3  ;;  %6917 = vmatmul.bf16.gmra.mxu0 %v8529_v55  ;;  %v8278_v3 = vld [vmem:[%s16846_s0 + $0x16c] sm:$0xf0]  ;;  %v8284_v55 = vld [vmem:[%s16846_s0 + $0x78] sm:$0xf] }
 0x232   :  { %6825 = vmatmul.bf16.gmra.mxu1 %v9021_v9  ;;  %7109 = vmatpush.bf16.msra.mxu2 %v12031_v25 }
 0x233   :  { %6859 = vmatmul.bf16.gmra.mxu2 %v9025_v51  ;;  %7045 = vmatpush.bf16.msra.mxu0 %v12011_v46 }
 0x234   :  { %v6617_v8 = vpop.f32.mrf.mxu3 }
 0x235   :  { %v6618_v0 = vadd.f32 %v6617_v8, %v14095_v29  ;;  %v11702_v29 = vld [vmem:[%s16846_s0 + $0x844] sm:$0xf]  ;;  %v8281_v8 = vor.u32 %v11452_v58, %v8278_v3 }
 0x236   :  { %v6709_v35 = vpop.f32.mrf.mxu2  ;;  %v14271_v10 = vpop.f32.mrf.mxu0  ;;  %v9273_v23 = vor.u32 %v11702_v29, %v9270_v6  ;;  %7110 = vmatpush.bf16.msra.mxu2 %v12030_v15 }
 0x237   :  { %v14269_v44 = vadd.f32 %v6709_v35, %v6676_v14  ;;  %v14274_v33 = vadd.f32 %v14189_v18, %v6618_v0  ;;  %v6677_v59 = vpop.f32.mrf.mxu1  ;;  %v9276_v18 = vld [vmem:[%s16846_s0 + $0x848] sm:$0xf]  ;;  %7046 = vmatpush.bf16.msra.mxu0 %v12010_v12  ;;  %v12009_v14 = vld [vmem:[%s16845_s1 + $0x800] sm:$0xff]  ;;  %v8285_v0 = vor.u32 %v11484_v13, %v8284_v55  ;;  %v12027_v12 = vld [vmem:[%s16845_s1 + $0x890] sm:$0xff] }
 0x238   :  { %v6678_v17 = vadd.f32 %v6677_v59, %v14192_v41  ;;  %v9277_v32 = vor.u32 %v11734_v27, %v9276_v18  ;;  %v12028_v27 = vld [vmem:[%s16845_s1 + $0x898] sm:$0xff]  ;;  %v11703_v13 = vld [vmem:[%s16846_s0 + $0x84c] sm:$0xf] }
 0x23b   :  { %7047 = vmatpush.bf16.msra.mxu0 %v12009_v14  ;;  %v11610_v14 = vld [vmem:[%s16846_s0 + $0x560] sm:$0xf0] }
 0x23c   :  { %v6619_v16 = vpop.f32.mrf.mxu3 }
 0x23d   :  { %v6620_v41 = vadd.f32 %v6619_v16, %v14140_v62  ;;  %v12006_v62 = vld [vmem:[%s16845_s1 + $0x7e8] sm:$0xff] }
 0x23e   :  { %v6711_v22 = vpop.f32.mrf.mxu2  ;;  %v14310_v19 = vpop.f32.mrf.mxu0  ;;  %7008 = vmatpush.bf16.msra.mxu3 %v12006_v62  ;;  %v12002_v16 = vld [vmem:[%s16845_s1 + $0x7c8] sm:$0xff] }
 0x23f   :  { %v14308_v28 = vadd.f32 %v6711_v22, %v6678_v17  ;;  %v14313_v54 = vadd.f32 %v14210_v26, %v6620_v41  ;;  %v6680_v37 = vpop.f32.mrf.mxu1  ;;  %v12029_v17 = vld [vmem:[%s16845_s1 + $0x8a0] sm:$0xff]  ;;  %v11640_v41 = vld [vmem:[%s16846_s0 + $0x654] sm:$0xf]  ;;  %v9026_v22 = vld [vmem:[%s16846_s0 + $0x74c] sm:$0xf0]  ;;  %7176 = vmatpush.bf16.msrb.mxu0 %v12048_v63 }
 0x240   :  { %v6681_v53 = vadd.f32 %v6680_v37, %v14212_v38  ;;  %7111 = vmatpush.bf16.msra.mxu2 %v12029_v17  ;;  %v9029_v62 = vor.u32 %v11640_v41, %v9026_v22 }
 0x241   :  { %6883 = vmatmul.bf16.gmra.mxu3 %v8525_v40  ;;  %6922 = vmatmul.bf16.gmra.mxu0 %v8781_v39  ;;  %v9284_v40 = vld [vmem:[%s16846_s0 + $0x850] sm:$0xf]  ;;  %v11735_v39 = vld [vmem:[%s16846_s0 + $0x948] sm:$0xf0] }
 0x242   :  { %6830 = vmatmul.bf16.gmra.mxu1 %v9273_v23  ;;  %7009 = vmatpush.bf16.msra.mxu3 %v12005_v61  ;;  %v8530_v23 = vld [vmem:[%s16846_s0 + $0x364] sm:$0xf0] }
 0x243   :  { %6864 = vmatmul.bf16.gmra.mxu2 %v9277_v32  ;;  %v8536_v32 = vld [vmem:[%s16846_s0 + $0x270] sm:$0xf] }
 0x244   :  { %v6622_v52 = vpop.f32.mrf.mxu3  ;;  %7112 = vmatpush.bf16.msra.mxu2 %v12028_v27 }
 0x245   :  { %v6623_v26 = vadd.f32 %v6622_v52, %v14151_v57  ;;  %v9285_v52 = vor.u32 %v11735_v39, %v9284_v40  ;;  %v12025_v39 = vld [vmem:[%s16845_s1 + $0x880] sm:$0xff] }
 0x246   :  { %v6714_v48 = vpop.f32.mrf.mxu2  ;;  %v14328_v38 = vpop.f32.mrf.mxu0 }
 0x247   :  { %v14326_v34 = vadd.f32 %v6714_v48, %v6681_v53  ;;  %v14337_v50 = vadd.f32 %v14256_v24, %v6623_v26  ;;  %v6682_v57 = vpop.f32.mrf.mxu1  ;;  %v12001_v26 = vld [vmem:[%s16845_s1 + $0x7c0] sm:$0xff] }
 0x248   :  { %v6683_v45 = vadd.f32 %v6682_v57, %v14259_v49  ;;  %v8777_v49 = vor.u32 %v11577_v60, %v8774_v36  ;;  %7113 = vmatpush.bf16.msra.mxu2 %v12027_v12 }
 0x24c   :  { %v6624_v24 = vpop.f32.mrf.mxu3 }
 0x24d   :  { %v6625_v9 = vadd.f32 %v6624_v24, %v14187_v2  ;;  %v11578_v24 = vld [vmem:[%s16846_s0 + $0x464] sm:$0xf] }
 0x24e   :  { %v6716_v51 = vpop.f32.mrf.mxu2  ;;  %v14376_v7 = vpop.f32.mrf.mxu0 }
 0x24f   :  { %v14374_v1 = vadd.f32 %v6716_v51, %v6683_v45  ;;  %v14379_v35 = vadd.f32 %v14271_v10, %v6625_v9  ;;  %v6685_v59 = vpop.f32.mrf.mxu1  ;;  %v12004_v10 = vld [vmem:[%s16845_s1 + $0x7d8] sm:$0xff]  ;;  %v8292_v9 = vld [vmem:[%s16846_s0 + $0x80] sm:$0xf] }
 0x250   :  { %v6686_v2 = vadd.f32 %v6685_v59, %v14274_v33  ;;  %7010 = vmatpush.bf16.msra.mxu3 %v12004_v10  ;;  %v11485_v51 = vld [vmem:[%s16846_s0 + $0x178] sm:$0xf0] }
 0x251   :  { %6888 = vmatmul.bf16.gmra.mxu3 %v8777_v49  ;;  %6927 = vmatmul.bf16.gmra.mxu0 %v9033_v4  ;;  %v8782_v49 = vld [vmem:[%s16846_s0 + $0x55c] sm:$0xf0]  ;;  %v8788_v4 = vld [vmem:[%s16846_s0 + $0x468] sm:$0xf]  ;;  %v8293_v59 = vor.u32 %v11485_v51, %v8292_v9  ;;  %v12039_v9 = vld [vmem:[%s16845_s1 + $0x8f0] sm:$0xff] }
 0x252   :  { %6946 = vmatmul.bf16.vlgmr.msrb.gmra.mxu1 %v8281_v8  ;;  %v8785_v17 = vor.u32 %v11578_v24, %v8782_v49  ;;  %v8789_v10 = vor.u32 %v11610_v14, %v8788_v4  ;;  %v11704_v14 = vld [vmem:[%s16846_s0 + $0x854] sm:$0xf] }
 0x253   :  { %6980 = vmatmul.bf16.vlgmr.msrb.gmra.mxu2 %v8285_v0 }
 0x254   :  { %v6627_v25 = vpop.f32.mrf.mxu3  ;;  %7011 = vmatpush.bf16.msra.mxu3 %v12003_v20 }
 0x255   :  { %v6628_v33 = vadd.f32 %v6627_v25, %v14208_v43  ;;  %v12022_v43 = vld [vmem:[%s16845_s1 + $0x868] sm:$0xff]  ;;  %v12020_v25 = vld [vmem:[%s16845_s1 + $0x858] sm:$0xff] }
 0x256   :  { %v6719_v29 = vpop.f32.mrf.mxu2  ;;  %v14397_v11 = vpop.f32.mrf.mxu0  ;;  %7076 = vmatpush.bf16.msra.mxu1 %v12022_v43 }
 0x257   :  { %v14395_v21 = vadd.f32 %v6719_v29, %v6686_v2  ;;  %v14400_v30 = vadd.f32 %v14310_v19, %v6628_v33  ;;  %v6687_v6 = vpop.f32.mrf.mxu1  ;;  %v11515_v19 = vld [vmem:[%s16846_s0 + $0x26c] sm:$0xf] }
 0x258   :  { %v6688_v18 = vadd.f32 %v6687_v6, %v14313_v54  ;;  %v11547_v54 = vld [vmem:[%s16846_s0 + $0x368] sm:$0xf0]  ;;  %7012 = vmatpush.bf16.msra.mxu3 %v12002_v16  ;;  %v8533_v47 = vor.u32 %v11515_v19, %v8530_v23  ;;  %v12047_v6 = vld [vmem:[%s16845_s1 + $0x930] sm:$0xff]  ;;  %v11641_v23 = vld [vmem:[%s16846_s0 + $0x65c] sm:$0xf] }
 0x259   :  { %v8537_v15 = vor.u32 %v11547_v54, %v8536_v32  ;;  %v12026_v33 = vld [vmem:[%s16845_s1 + $0x888] sm:$0xff]  ;;  %7177 = vmatpush.bf16.msrb.mxu0 %v12047_v6  ;;  %v11453_v32 = vld [vmem:[%s16846_s0 + $0x7c] sm:$0xf] }
 0x25a   :  { %7114 = vmatpush.bf16.msra.mxu2 %v12026_v33  ;;  %v12018_v19 = vld [vmem:[%s16845_s1 + $0x848] sm:$0xff]  ;;  %v12040_v54 = vld [vmem:[%s16845_s1 + $0x8f8] sm:$0xff] }
 0x25c   :  { %v6629_v37 = vpop.f32.mrf.mxu3  ;;  %7013 = vmatpush.bf16.msra.mxu3 %v12001_v26  ;;  %v11673_v26 = vld [vmem:[%s16846_s0 + $0x758] sm:$0xf0] }
 0x25d   :  { %v6630_v31 = vadd.f32 %v6629_v37, %v14254_v42  ;;  %v12021_v42 = vld [vmem:[%s16845_s1 + $0x860] sm:$0xff]  ;;  %v8286_v37 = vld [vmem:[%s16846_s0 + $0x174] sm:$0xf0] }
 0x25e   :  { %v6721_v53 = vpop.f32.mrf.mxu2  ;;  %v6782_v46 = vpop.f32.mrf.mxu0  ;;  %7077 = vmatpush.bf16.msra.mxu1 %v12021_v42  ;;  %7115 = vmatpush.bf16.msra.mxu2 %v12025_v39 }
 0x25f   :  { %v14440_v48 = vadd.f32 %v6721_v53, %v6688_v18  ;;  %v6664_v57 = vadd.f32 %v14328_v38, %v6630_v31  ;;  %v6690_v45 = vpop.f32.mrf.mxu1  ;;  %v8544_v31 = vld [vmem:[%s16846_s0 + $0x278] sm:$0xf]  ;;  %v11548_v53 = vld [vmem:[%s16846_s0 + $0x370] sm:$0xf0] }
 0x260   :  { %v6691_v61 = vadd.f32 %v6690_v45, %v14337_v50  ;;  %7142 = vmatpush.bf16.msrb.mxu3 %v12040_v54  ;;  %v8545_v45 = vor.u32 %v11548_v53, %v8544_v31  ;;  %v12062_v54 = vld [vmem:[%s16845_s1 + $0x9a8] sm:$0xff]  ;;  %v12037_v53 = vld [vmem:[%s16845_s1 + $0x8e0] sm:$0xff] }
 0x261   :  { %6893 = vmatmul.bf16.gmra.mxu3 %v9029_v62  ;;  %6932 = vmatmul.bf16.gmra.mxu0 %v9285_v52  ;;  %v9034_v62 = vld [vmem:[%s16846_s0 + $0x754] sm:$0xf0]  ;;  %v9040_v52 = vld [vmem:[%s16846_s0 + $0x660] sm:$0xf] }
 0x262   :  { %6951 = vmatmul.bf16.gmra.mxu1 %v8533_v47 }
 0x263   :  { %6985 = vmatmul.bf16.gmra.mxu2 %v8537_v15  ;;  %7078 = vmatpush.bf16.msra.mxu1 %v12020_v25 }
 0x264   :  { %v6743_v60 = vpop.f32.mrf.mxu3  ;;  %7143 = vmatpush.bf16.msrb.mxu3 %v12039_v9 }
 0x265   :  { %v6744_v36 = vadd.f32 %v6743_v60, %v14269_v44  ;;  %v9278_v44 = vld [vmem:[%s16846_s0 + $0x944] sm:$0xf0]  ;;  %v9037_v60 = vor.u32 %v11641_v23, %v9034_v62 }
 0x266   :  { %v6724_v38 = vpop.f32.mrf.mxu2  ;;  %v14453_v56 = vpop.f32.mrf.mxu0  ;;  %v12042_v62 = vld [vmem:[%s16845_s1 + $0x908] sm:$0xff] }
 0x267   :  { %v14451_v50 = vadd.f32 %v6724_v38, %v6691_v61  ;;  %v6692_v58 = vpop.f32.mrf.mxu1  ;;  %v14459_v3 = vadd.f32 %v14376_v7, %v6744_v36  ;;  %v12017_v61 = vld [vmem:[%s16845_s1 + $0x840] sm:$0xff]  ;;  %v9041_v38 = vor.u32 %v11673_v26, %v9040_v52  ;;  %v11579_v52 = vld [vmem:[%s16846_s0 + $0x46c] sm:$0xf]  ;;  %v8790_v26 = vld [vmem:[%s16846_s0 + $0x564] sm:$0xf0] }
 0x268   :  { %v6693_v55 = vadd.f32 %v6692_v58, %v14379_v35  ;;  %v9281_v35 = vor.u32 %v11703_v13, %v9278_v44 }
 0x26c   :  { %v6745_v7 = vpop.f32.mrf.mxu3 }
 0x26d   :  { %v6746_v0 = vadd.f32 %v6745_v7, %v14308_v28  ;;  %v11516_v7 = vld [vmem:[%s16846_s0 + $0x274] sm:$0xf] }
 0x26e   :  { %v6726_v8 = vpop.f32.mrf.mxu2  ;;  %v14489_v5 = vpop.f32.mrf.mxu0 }
 0x26f   :  { %v14487_v2 = vadd.f32 %v6726_v8, %v6693_v55  ;;  %v6695_v29 = vpop.f32.mrf.mxu1  ;;  %v14498_v20 = vadd.f32 %v14397_v11, %v6746_v0  ;;  %v12019_v11 = vld [vmem:[%s16845_s1 + $0x850] sm:$0xff]  ;;  %v12045_v55 = vld [vmem:[%s16845_s1 + $0x920] sm:$0xff] }
 0x270   :  { %v6696_v28 = vadd.f32 %v6695_v29, %v14400_v30  ;;  %7079 = vmatpush.bf16.msra.mxu1 %v12019_v11  ;;  %v8538_v8 = vld [vmem:[%s16846_s0 + $0x36c] sm:$0xf0] }
 0x271   :  { %6898 = vmatmul.bf16.gmra.mxu3 %v9281_v35  ;;  %7048 = vmatmul.bf16.vlgmr.msra.gmra.mxu0 %v8293_v59  ;;  %v8796_v0 = vld [vmem:[%s16846_s0 + $0x470] sm:$0xf]  ;;  %v11611_v35 = vld [vmem:[%s16846_s0 + $0x568] sm:$0xf0]  ;;  %v8541_v29 = vor.u32 %v11516_v7, %v8538_v8 }
 0x272   :  { %6956 = vmatmul.bf16.gmra.mxu1 %v8785_v17  ;;  %v9286_v59 = vld [vmem:[%s16846_s0 + $0x94c] sm:$0xf0]  ;;  %v11736_v17 = vld [vmem:[%s16846_s0 + $0x950] sm:$0xf0] }
 0x273   :  { %6990 = vmatmul.bf16.gmra.mxu2 %v8789_v10  ;;  %v12035_v7 = vld [vmem:[%s16845_s1 + $0x8d0] sm:$0xff] }
 0x274   :  { %v6748_v18 = vpop.f32.mrf.mxu3  ;;  %7080 = vmatpush.bf16.msra.mxu1 %v12018_v19 }
 0x275   :  { %v6749_v27 = vadd.f32 %v6748_v18, %v14326_v34  ;;  %v12046_v34 = vld [vmem:[%s16845_s1 + $0x928] sm:$0xff]  ;;  %v9289_v18 = vor.u32 %v11704_v14, %v9286_v59 }
 0x276   :  { %v6729_v43 = vpop.f32.mrf.mxu2  ;;  %v14510_v16 = vpop.f32.mrf.mxu0  ;;  %7178 = vmatpush.bf16.msrb.mxu0 %v12046_v34 }
 0x277   :  { %v14508_v30 = vadd.f32 %v6729_v43, %v6696_v28  ;;  %v6697_v41 = vpop.f32.mrf.mxu1  ;;  %v14512_v22 = vadd.f32 %v6782_v46, %v6749_v27  ;;  %v12044_v27 = vld [vmem:[%s16845_s1 + $0x918] sm:$0xff] }
 0x278   :  { %v6698_v40 = vadd.f32 %v6697_v41, %v6664_v57  ;;  %v8289_v57 = vor.u32 %v11453_v32, %v8286_v37  ;;  %7081 = vmatpush.bf16.msra.mxu1 %v12017_v61  ;;  %v12056_v32 = vld [vmem:[%s16845_s1 + $0x978] sm:$0xff]  ;;  %v11486_v61 = vld [vmem:[%s16846_s0 + $0x180] sm:$0xf0] }
 0x27a   :  { %7179 = vmatpush.bf16.msrb.mxu0 %v12045_v55 }
 0x27c   :  { %v6750_v46 = vpop.f32.mrf.mxu3  ;;  %7210 = vmatpush.bf16.msrb.mxu1 %v12056_v32 }
 0x27d   :  { %v6751_v15 = vadd.f32 %v6750_v46, %v14374_v1  ;;  %v12064_v1 = vld [vmem:[%s16845_s1 + $0x9b8] sm:$0xff]  ;;  %v9048_v46 = vld [vmem:[%s16846_s0 + $0x668] sm:$0xf] }
 0x27e   :  { %v6731_v47 = vpop.f32.mrf.mxu2  ;;  %v14556_v12 = vpop.f32.mrf.mxu0  ;;  %7244 = vmatpush.bf16.msrb.mxu2 %v12064_v1  ;;  %7180 = vmatpush.bf16.msrb.mxu0 %v12044_v27  ;;  %v11549_v27 = vld [vmem:[%s16846_s0 + $0x378] sm:$0xf0] }
 0x27f   :  { %v14554_v42 = vadd.f32 %v6731_v47, %v6698_v40  ;;  %v6811_v36 = vpop.f32.mrf.mxu1  ;;  %v6785_v63 = vadd.f32 %v14453_v56, %v6751_v15  ;;  %v11674_v47 = vld [vmem:[%s16846_s0 + $0x760] sm:$0xf0] }
 0x280   :  { %v6812_v58 = vadd.f32 %v6811_v36, %v14459_v3  ;;  %v11454_v15 = vld [vmem:[%s16846_s0 + $0x84] sm:$0xf]  ;;  %v8793_v36 = vor.u32 %v11579_v52, %v8790_v26 }
 0x281   :  { %7014 = vmatmul.bf16.vlgmr.msra.gmra.mxu3 %v8289_v57  ;;  %7053 = vmatmul.bf16.gmra.mxu0 %v8545_v45  ;;  %v8294_v57 = vld [vmem:[%s16846_s0 + $0x17c] sm:$0xf0]  ;;  %v8300_v45 = vld [vmem:[%s16846_s0 + $0x88] sm:$0xf] }
 0x282   :  { %6961 = vmatmul.bf16.gmra.mxu1 %v9037_v60 }
 0x283   :  { %6995 = vmatmul.bf16.gmra.mxu2 %v9041_v38 }
 0x284   :  { %v6753_v13 = vpop.f32.mrf.mxu3 }
 0x285   :  { %v6754_v56 = vadd.f32 %v6753_v13, %v14395_v21  ;;  %v12063_v21 = vld [vmem:[%s16845_s1 + $0x9b0] sm:$0xff]  ;;  %v8297_v13 = vor.u32 %v11454_v15, %v8294_v57 }
 0x286   :  { %v6845_v44 = vpop.f32.mrf.mxu2  ;;  %v14569_v3 = vpop.f32.mrf.mxu0  ;;  %7245 = vmatpush.bf16.msrb.mxu2 %v12063_v21 }
 0x287   :  { %v14567_v24 = vadd.f32 %v6845_v44, %v6812_v58  ;;  %v6813_v51 = vpop.f32.mrf.mxu1  ;;  %v14575_v49 = vadd.f32 %v14489_v5, %v6754_v56  ;;  %v9292_v5 = vld [vmem:[%s16846_s0 + $0x858] sm:$0xf]  ;;  %v12041_v58 = vld [vmem:[%s16845_s1 + $0x900] sm:$0xff]  ;;  %v8301_v56 = vor.u32 %v11486_v61, %v8300_v45  ;;  %v11705_v61 = vld [vmem:[%s16846_s0 + $0x85c] sm:$0xf] }
 0x288   :  { %v6814_v4 = vadd.f32 %v6813_v51, %v14498_v20  ;;  %v8797_v20 = vor.u32 %v11611_v35, %v8796_v0  ;;  %v9293_v43 = vor.u32 %v11736_v17, %v9292_v5  ;;  %v12055_v51 = vld [vmem:[%s16845_s1 + $0x970] sm:$0xff]  ;;  %v12060_v17 = vld [vmem:[%s16845_s1 + $0x998] sm:$0xff] }
 0x289   :  { %7211 = vmatpush.bf16.msrb.mxu1 %v12055_v51 }
 0x28a   :  { %7246 = vmatpush.bf16.msrb.mxu2 %v12062_v54 }
 0x28c   :  { %v6755_v10 = vpop.f32.mrf.mxu3 }
 0x28d   :  { %v6756_v25 = vadd.f32 %v6755_v10, %v14440_v48  ;;  %v12038_v48 = vld [vmem:[%s16845_s1 + $0x8e8] sm:$0xff] }
 0x28e   :  { %v6847_v33 = vpop.f32.mrf.mxu2  ;;  %v14608_v6 = vpop.f32.mrf.mxu0  ;;  %7144 = vmatpush.bf16.msrb.mxu3 %v12038_v48  ;;  %v12034_v10 = vld [vmem:[%s16845_s1 + $0x8c8] sm:$0xff] }
 0x28f   :  { %v14606_v28 = vadd.f32 %v6847_v33, %v6814_v4  ;;  %v6816_v11 = vpop.f32.mrf.mxu1  ;;  %v14614_v41 = vadd.f32 %v14510_v16, %v6756_v25  ;;  %v12043_v16 = vld [vmem:[%s16845_s1 + $0x910] sm:$0xff]  ;;  %v12061_v4 = vld [vmem:[%s16845_s1 + $0x9a0] sm:$0xff] }
 0x290   :  { %v6817_v40 = vadd.f32 %v6816_v11, %v14512_v22  ;;  %7181 = vmatpush.bf16.msrb.mxu0 %v12043_v16  ;;  %7247 = vmatpush.bf16.msrb.mxu2 %v12061_v4  ;;  %v11642_v25 = vld [vmem:[%s16846_s0 + $0x664] sm:$0xf]  ;;  %v9042_v33 = vld [vmem:[%s16846_s0 + $0x75c] sm:$0xf0] }
 0x291   :  { %7019 = vmatmul.bf16.gmra.mxu3 %v8541_v29  ;;  %7058 = vmatmul.bf16.gmra.mxu0 %v8797_v20  ;;  %v9300_v29 = vld [vmem:[%s16846_s0 + $0x860] sm:$0xf]  ;;  %v11737_v20 = vld [vmem:[%s16846_s0 + $0x958] sm:$0xf0]  ;;  %v9045_v48 = vor.u32 %v11642_v25, %v9042_v33 }
 0x292   :  { %6966 = vmatmul.bf16.gmra.mxu1 %v9289_v18  ;;  %7145 = vmatpush.bf16.msrb.mxu3 %v12037_v53  ;;  %v8546_v18 = vld [vmem:[%s16846_s0 + $0x374] sm:$0xf0] }
 0x293   :  { %7000 = vmatmul.bf16.gmra.mxu2 %v9293_v43  ;;  %v8552_v43 = vld [vmem:[%s16846_s0 + $0x280] sm:$0xf] }
 0x294   :  { %v6758_v39 = vpop.f32.mrf.mxu3  ;;  %7182 = vmatpush.bf16.msrb.mxu0 %v12042_v62  ;;  %7248 = vmatpush.bf16.msrb.mxu2 %v12060_v17  ;;  %v8553_v54 = vor.u32 %v11549_v27, %v8552_v43  ;;  %v12059_v62 = vld [vmem:[%s16845_s1 + $0x990] sm:$0xff]  ;;  %v11455_v43 = vld [vmem:[%s16846_s0 + $0x8c] sm:$0xf]  ;;  %v12072_v27 = vld [vmem:[%s16845_s1 + $0x9f8] sm:$0xff] }
 0x295   :  { %v6759_v34 = vadd.f32 %v6758_v39, %v14451_v50  ;;  %v9301_v39 = vor.u32 %v11737_v20, %v9300_v29  ;;  %v12057_v20 = vld [vmem:[%s16845_s1 + $0x980] sm:$0xff] }
 0x296   :  { %v6850_v19 = vpop.f32.mrf.mxu2  ;;  %v14626_v22 = vpop.f32.mrf.mxu0 }
 0x297   :  { %v14624_v23 = vadd.f32 %v6850_v19, %v6817_v40  ;;  %v6818_v37 = vpop.f32.mrf.mxu1  ;;  %v14635_v50 = vadd.f32 %v14556_v12, %v6759_v34  ;;  %v12033_v34 = vld [vmem:[%s16845_s1 + $0x8c0] sm:$0xff] }
 0x298   :  { %v6819_v31 = vadd.f32 %v6818_v37, %v6785_v63  ;;  %v9049_v63 = vor.u32 %v11674_v47, %v9048_v46  ;;  %7183 = vmatpush.bf16.msrb.mxu0 %v12041_v58  ;;  %7249 = vmatpush.bf16.msrb.mxu2 %v12059_v62  ;;  %v12080_v47 = vld [vmem:[%s16845_s1 + $0xa38] sm:$0xff]  ;;  %v11612_v58 = vld [vmem:[%s16846_s0 + $0x570] sm:$0xf0] }
 0x29c   :  { %v6760_v12 = vpop.f32.mrf.mxu3  ;;  %7312 = vmatpush.bf16.msra.mxu0 %v12080_v47 }
 0x29d   :  { %v6761_v60 = vadd.f32 %v6760_v12, %v14487_v2  ;;  %v11580_v12 = vld [vmem:[%s16846_s0 + $0x474] sm:$0xf] }
 0x29e   :  { %v6852_v38 = vpop.f32.mrf.mxu2  ;;  %v14673_v55 = vpop.f32.mrf.mxu0 }
 0x29f   :  { %v14671_v1 = vadd.f32 %v6852_v38, %v6819_v31  ;;  %v6821_v44 = vpop.f32.mrf.mxu1  ;;  %v14676_v9 = vadd.f32 %v14569_v3, %v6761_v60  ;;  %v12036_v3 = vld [vmem:[%s16845_s1 + $0x8d8] sm:$0xff]  ;;  %v8308_v60 = vld [vmem:[%s16846_s0 + $0x90] sm:$0xf]  ;;  %v11487_v38 = vld [vmem:[%s16846_s0 + $0x188] sm:$0xf0] }
 0x2a0   :  { %v6822_v2 = vadd.f32 %v6821_v44, %v14575_v49  ;;  %7146 = vmatpush.bf16.msrb.mxu3 %v12036_v3 }
 0x2a1   :  { %7024 = vmatmul.bf16.gmra.mxu3 %v8793_v36  ;;  %7063 = vmatmul.bf16.gmra.mxu0 %v9049_v63  ;;  %v8798_v36 = vld [vmem:[%s16846_s0 + $0x56c] sm:$0xf0]  ;;  %v8804_v63 = vld [vmem:[%s16846_s0 + $0x478] sm:$0xf] }
 0x2a2   :  { %7082 = vmatmul.bf16.vlgmr.msra.gmra.mxu1 %v8297_v13  ;;  %v8801_v4 = vor.u32 %v11580_v12, %v8798_v36  ;;  %v8805_v3 = vor.u32 %v11612_v58, %v8804_v63  ;;  %v11706_v58 = vld [vmem:[%s16846_s0 + $0x864] sm:$0xf] }
 0x2a3   :  { %7116 = vmatmul.bf16.vlgmr.msra.gmra.mxu2 %v8301_v56 }
 0x2a4   :  { %v6763_v21 = vpop.f32.mrf.mxu3  ;;  %7147 = vmatpush.bf16.msrb.mxu3 %v12035_v7 }
 0x2a5   :  { %v6764_v49 = vadd.f32 %v6763_v21, %v14508_v30  ;;  %v12054_v30 = vld [vmem:[%s16845_s1 + $0x968] sm:$0xff]  ;;  %v12052_v21 = vld [vmem:[%s16845_s1 + $0x958] sm:$0xff] }
 0x2a6   :  { %v6855_v14 = vpop.f32.mrf.mxu2  ;;  %v14694_v0 = vpop.f32.mrf.mxu0  ;;  %7212 = vmatpush.bf16.msrb.mxu1 %v12054_v30 }
 0x2a7   :  { %v14692_v8 = vadd.f32 %v6855_v14, %v6822_v2  ;;  %v6823_v35 = vpop.f32.mrf.mxu1  ;;  %v14697_v59 = vadd.f32 %v14608_v6, %v6764_v49  ;;  %v11517_v6 = vld [vmem:[%s16846_s0 + $0x27c] sm:$0xf]  ;;  %v12058_v49 = vld [vmem:[%s16845_s1 + $0x988] sm:$0xff] }
 0x2a8   :  { %v6824_v5 = vadd.f32 %v6823_v35, %v14614_v41  ;;  %7148 = vmatpush.bf16.msrb.mxu3 %v12034_v10  ;;  %v8549_v32 = vor.u32 %v11517_v6, %v8546_v18  ;;  %7250 = vmatpush.bf16.msrb.mxu2 %v12058_v49  ;;  %v12079_v35 = vld [vmem:[%s16845_s1 + $0xa30] sm:$0xff]  ;;  %v12050_v6 = vld [vmem:[%s16845_s1 + $0x948] sm:$0xff] }
 0x2a9   :  { %7313 = vmatpush.bf16.msra.mxu0 %v12079_v35  ;;  %v11643_v18 = vld [vmem:[%s16846_s0 + $0x66c] sm:$0xf] }
 0x2ac   :  { %v6765_v11 = vpop.f32.mrf.mxu3  ;;  %7149 = vmatpush.bf16.msrb.mxu3 %v12033_v34  ;;  %7251 = vmatpush.bf16.msrb.mxu2 %v12057_v20  ;;  %v11675_v34 = vld [vmem:[%s16846_s0 + $0x768] sm:$0xf0] }
 0x2ad   :  { %v6766_v41 = vadd.f32 %v6765_v11, %v14554_v42  ;;  %v12053_v42 = vld [vmem:[%s16845_s1 + $0x960] sm:$0xff]  ;;  %v8302_v11 = vld [vmem:[%s16846_s0 + $0x184] sm:$0xf0] }
 0x2ae   :  { %v6857_v40 = vpop.f32.mrf.mxu2  ;;  %v6918_v16 = vpop.f32.mrf.mxu0  ;;  %7213 = vmatpush.bf16.msrb.mxu1 %v12053_v42 }
 0x2af   :  { %v14737_v19 = vadd.f32 %v6857_v40, %v6824_v5  ;;  %v6826_v37 = vpop.f32.mrf.mxu1  ;;  %v6800_v31 = vadd.f32 %v14626_v22, %v6766_v41  ;;  %v8560_v41 = vld [vmem:[%s16846_s0 + $0x288] sm:$0xf]  ;;  %v11550_v40 = vld [vmem:[%s16846_s0 + $0x380] sm:$0xf0] }
 0x2b0   :  { %v6827_v53 = vadd.f32 %v6826_v37, %v14635_v50  ;;  %7278 = vmatpush.bf16.msra.mxu3 %v12072_v27  ;;  %v8305_v37 = vor.u32 %v11455_v43, %v8302_v11  ;;  %v12088_v43 = vld [vmem:[%s16845_s1 + $0xa78] sm:$0xff]  ;;  %v12094_v27 = vld [vmem:[%s16845_s1 + $0xaa8] sm:$0xff] }
 0x2b1   :  { %7029 = vmatmul.bf16.gmra.mxu3 %v9045_v48  ;;  %7068 = vmatmul.bf16.gmra.mxu0 %v9301_v39  ;;  %v9050_v48 = vld [vmem:[%s16846_s0 + $0x764] sm:$0xf0]  ;;  %v9056_v39 = vld [vmem:[%s16846_s0 + $0x670] sm:$0xf] }
 0x2b2   :  { %7087 = vmatmul.bf16.gmra.mxu1 %v8549_v32 }
 0x2b3   :  { %7121 = vmatmul.bf16.gmra.mxu2 %v8553_v54  ;;  %7214 = vmatpush.bf16.msrb.mxu1 %v12052_v21 }
 0x2b4   :  { %v6879_v52 = vpop.f32.mrf.mxu3 }
 0x2b5   :  { %v6880_v22 = vadd.f32 %v6879_v52, %v14567_v24  ;;  %v9294_v24 = vld [vmem:[%s16846_s0 + $0x954] sm:$0xf0]  ;;  %v9053_v52 = vor.u32 %v11643_v18, %v9050_v48  ;;  %v12074_v48 = vld [vmem:[%s16845_s1 + $0xa08] sm:$0xff] }
 0x2b6   :  { %v6860_v26 = vpop.f32.mrf.mxu2  ;;  %v14750_v46 = vpop.f32.mrf.mxu0  ;;  %v9297_v44 = vor.u32 %v11705_v61, %v9294_v24 }
 0x2b7   :  { %v14748_v50 = vadd.f32 %v6860_v26, %v6827_v53  ;;  %v6828_v15 = vpop.f32.mrf.mxu1  ;;  %v14756_v57 = vadd.f32 %v14673_v55, %v6880_v22  ;;  %v12049_v53 = vld [vmem:[%s16845_s1 + $0x940] sm:$0xff]  ;;  %v9057_v26 = vor.u32 %v11675_v34, %v9056_v39  ;;  %v11581_v39 = vld [vmem:[%s16846_s0 + $0x47c] sm:$0xf]  ;;  %v8806_v34 = vld [vmem:[%s16846_s0 + $0x574] sm:$0xf0] }
 0x2b8   :  { %v6829_v45 = vadd.f32 %v6828_v15, %v14676_v9  ;;  %v8309_v9 = vor.u32 %v11487_v38, %v8308_v60  ;;  %v12071_v60 = vld [vmem:[%s16845_s1 + $0x9f0] sm:$0xff] }
 0x2b9   :  { %7279 = vmatpush.bf16.msra.mxu3 %v12071_v60 }
 0x2bc   :  { %v6881_v55 = vpop.f32.mrf.mxu3 }
 0x2bd   :  { %v6882_v56 = vadd.f32 %v6881_v55, %v14606_v28  ;;  %v11518_v55 = vld [vmem:[%s16846_s0 + $0x284] sm:$0xf] }
 0x2be   :  { %v6862_v13 = vpop.f32.mrf.mxu2  ;;  %v14786_v51 = vpop.f32.mrf.mxu0 }
 0x2bf   :  { %v14784_v2 = vadd.f32 %v6862_v13, %v6829_v45  ;;  %v6831_v14 = vpop.f32.mrf.mxu1  ;;  %v14795_v7 = vadd.f32 %v14694_v0, %v6882_v56  ;;  %v12051_v0 = vld [vmem:[%s16845_s1 + $0x950] sm:$0xff]  ;;  %v12077_v45 = vld [vmem:[%s16845_s1 + $0xa20] sm:$0xff] }
 0x2c0   :  { %v6832_v28 = vadd.f32 %v6831_v14, %v14697_v59  ;;  %7215 = vmatpush.bf16.msrb.mxu1 %v12051_v0  ;;  %v8554_v13 = vld [vmem:[%s16846_s0 + $0x37c] sm:$0xf0] }
 0x2c1   :  { %7034 = vmatmul.bf16.gmra.mxu3 %v9297_v44  ;;  %7184 = vmatmul.bf16.vlgmr.msrb.gmra.mxu0 %v8309_v9  ;;  %v8812_v56 = vld [vmem:[%s16846_s0 + $0x480] sm:$0xf]  ;;  %v11613_v44 = vld [vmem:[%s16846_s0 + $0x578] sm:$0xf0]  ;;  %v8557_v14 = vor.u32 %v11518_v55, %v8554_v13  ;;  %v12067_v55 = vld [vmem:[%s16845_s1 + $0x9d0] sm:$0xff] }
 0x2c2   :  { %7092 = vmatmul.bf16.gmra.mxu1 %v8801_v4  ;;  %v9302_v9 = vld [vmem:[%s16846_s0 + $0x95c] sm:$0xf0]  ;;  %v11738_v4 = vld [vmem:[%s16846_s0 + $0x960] sm:$0xf0] }
 0x2c3   :  { %7126 = vmatmul.bf16.gmra.mxu2 %v8805_v3 }
 0x2c4   :  { %v6884_v5 = vpop.f32.mrf.mxu3  ;;  %7216 = vmatpush.bf16.msrb.mxu1 %v12050_v6 }
 0x2c5   :  { %v6885_v17 = vadd.f32 %v6884_v5, %v14624_v23  ;;  %v12078_v23 = vld [vmem:[%s16845_s1 + $0xa28] sm:$0xff]  ;;  %v9305_v5 = vor.u32 %v11706_v58, %v9302_v9 }
 0x2c6   :  { %v6865_v30 = vpop.f32.mrf.mxu2  ;;  %v14807_v10 = vpop.f32.mrf.mxu0  ;;  %7314 = vmatpush.bf16.msra.mxu0 %v12078_v23 }
 0x2c7   :  { %v14805_v59 = vadd.f32 %v6865_v30, %v6832_v28  ;;  %v6833_v25 = vpop.f32.mrf.mxu1  ;;  %v14809_v33 = vadd.f32 %v6918_v16, %v6885_v17  ;;  %v12076_v17 = vld [vmem:[%s16845_s1 + $0xa18] sm:$0xff] }
 0x2c8   :  { %v6834_v29 = vadd.f32 %v6833_v25, %v6800_v31  ;;  %v8561_v31 = vor.u32 %v11550_v40, %v8560_v41  ;;  %7217 = vmatpush.bf16.msrb.mxu1 %v12049_v53  ;;  %v12069_v40 = vld [vmem:[%s16845_s1 + $0x9e0] sm:$0xff]  ;;  %v11488_v53 = vld [vmem:[%s16846_s0 + $0x190] sm:$0xf0] }
 0x2ca   :  { %7315 = vmatpush.bf16.msra.mxu0 %v12077_v45 }
 0x2cc   :  { %v6886_v16 = vpop.f32.mrf.mxu3  ;;  %7346 = vmatpush.bf16.msra.mxu1 %v12088_v43 }
 0x2cd   :  { %v6887_v54 = vadd.f32 %v6886_v16, %v14671_v1  ;;  %v12096_v1 = vld [vmem:[%s16845_s1 + $0xab8] sm:$0xff] }
 0x2ce   :  { %v6867_v32 = vpop.f32.mrf.mxu2  ;;  %v14853_v62 = vpop.f32.mrf.mxu0  ;;  %7380 = vmatpush.bf16.msra.mxu2 %v12096_v1  ;;  %7316 = vmatpush.bf16.msra.mxu0 %v12076_v17  ;;  %v9064_v16 = vld [vmem:[%s16846_s0 + $0x678] sm:$0xf]  ;;  %v11551_v17 = vld [vmem:[%s16846_s0 + $0x388] sm:$0xf0] }
 0x2cf   :  { %v14851_v42 = vadd.f32 %v6867_v32, %v6834_v29  ;;  %v6947_v22 = vpop.f32.mrf.mxu1  ;;  %v6921_v47 = vadd.f32 %v14750_v46, %v6887_v54  ;;  %v11676_v32 = vld [vmem:[%s16846_s0 + $0x770] sm:$0xf0] }
 0x2d0   :  { %v6948_v15 = vadd.f32 %v6947_v22, %v14756_v57  ;;  %v11456_v54 = vld [vmem:[%s16846_s0 + $0x94] sm:$0xf]  ;;  %v8809_v22 = vor.u32 %v11581_v39, %v8806_v34 }
 0x2d1   :  { %7150 = vmatmul.bf16.vlgmr.msrb.gmra.mxu3 %v8305_v37  ;;  %7189 = vmatmul.bf16.gmra.mxu0 %v8561_v31  ;;  %v8310_v37 = vld [vmem:[%s16846_s0 + $0x18c] sm:$0xf0]  ;;  %v8316_v31 = vld [vmem:[%s16846_s0 + $0x98] sm:$0xf] }
 0x2d2   :  { %7097 = vmatmul.bf16.gmra.mxu1 %v9053_v52 }
 0x2d3   :  { %7131 = vmatmul.bf16.gmra.mxu2 %v9057_v26 }
 0x2d4   :  { %v6889_v61 = vpop.f32.mrf.mxu3 }
 0x2d5   :  { %v6890_v46 = vadd.f32 %v6889_v61, %v14692_v8  ;;  %v12095_v8 = vld [vmem:[%s16845_s1 + $0xab0] sm:$0xff]  ;;  %v8313_v61 = vor.u32 %v11456_v54, %v8310_v37 }
 0x2d6   :  { %v6981_v24 = vpop.f32.mrf.mxu2  ;;  %v14866_v57 = vpop.f32.mrf.mxu0  ;;  %7381 = vmatpush.bf16.msra.mxu2 %v12095_v8 }
 0x2d7   :  { %v14864_v12 = vadd.f32 %v6981_v24, %v6948_v15  ;;  %v6949_v38 = vpop.f32.mrf.mxu1  ;;  %v14872_v36 = vadd.f32 %v14786_v51, %v6890_v46  ;;  %v9308_v51 = vld [vmem:[%s16846_s0 + $0x868] sm:$0xf]  ;;  %v12073_v15 = vld [vmem:[%s16845_s1 + $0xa00] sm:$0xff]  ;;  %v8317_v46 = vor.u32 %v11488_v53, %v8316_v31  ;;  %v11707_v53 = vld [vmem:[%s16846_s0 + $0x86c] sm:$0xf] }
 0x2d8   :  { %v6950_v63 = vadd.f32 %v6949_v38, %v14795_v7  ;;  %v8813_v7 = vor.u32 %v11613_v44, %v8812_v56  ;;  %v9309_v30 = vor.u32 %v11738_v4, %v9308_v51  ;;  %v12087_v38 = vld [vmem:[%s16845_s1 + $0xa70] sm:$0xff]  ;;  %v12092_v4 = vld [vmem:[%s16845_s1 + $0xa98] sm:$0xff] }
 0x2d9   :  { %7347 = vmatpush.bf16.msra.mxu1 %v12087_v38 }
 0x2da   :  { %7382 = vmatpush.bf16.msra.mxu2 %v12094_v27 }
 0x2dc   :  { %v6891_v3 = vpop.f32.mrf.mxu3 }
 0x2dd   :  { %v6892_v21 = vadd.f32 %v6891_v3, %v14737_v19  ;;  %v12070_v19 = vld [vmem:[%s16845_s1 + $0x9e8] sm:$0xff] }
 0x2de   :  { %v6983_v49 = vpop.f32.mrf.mxu2  ;;  %v14905_v35 = vpop.f32.mrf.mxu0  ;;  %7280 = vmatpush.bf16.msra.mxu3 %v12070_v19  ;;  %v12066_v3 = vld [vmem:[%s16845_s1 + $0x9c8] sm:$0xff] }
 0x2df   :  { %v14903_v28 = vadd.f32 %v6983_v49, %v6950_v63  ;;  %v6952_v0 = vpop.f32.mrf.mxu1  ;;  %v14911_v25 = vadd.f32 %v14807_v10, %v6892_v21  ;;  %v12075_v10 = vld [vmem:[%s16845_s1 + $0xa10] sm:$0xff]  ;;  %v12093_v63 = vld [vmem:[%s16845_s1 + $0xaa0] sm:$0xff] }
 0x2e0   :  { %v6953_v29 = vadd.f32 %v6952_v0, %v14809_v33  ;;  %7317 = vmatpush.bf16.msra.mxu0 %v12075_v10  ;;  %7383 = vmatpush.bf16.msra.mxu2 %v12093_v63  ;;  %v11644_v21 = vld [vmem:[%s16846_s0 + $0x674] sm:$0xf]  ;;  %v9058_v49 = vld [vmem:[%s16846_s0 + $0x76c] sm:$0xf0] }
 0x2e1   :  { %7155 = vmatmul.bf16.gmra.mxu3 %v8557_v14  ;;  %7194 = vmatmul.bf16.gmra.mxu0 %v8813_v7  ;;  %v9316_v14 = vld [vmem:[%s16846_s0 + $0x870] sm:$0xf]  ;;  %v11739_v7 = vld [vmem:[%s16846_s0 + $0x968] sm:$0xf0]  ;;  %v9061_v19 = vor.u32 %v11644_v21, %v9058_v49 }
 0x2e2   :  { %7102 = vmatmul.bf16.gmra.mxu1 %v9305_v5  ;;  %7281 = vmatpush.bf16.msra.mxu3 %v12069_v40  ;;  %v8562_v5 = vld [vmem:[%s16846_s0 + $0x384] sm:$0xf0] }
 0x2e3   :  { %7136 = vmatmul.bf16.gmra.mxu2 %v9309_v30  ;;  %v8568_v30 = vld [vmem:[%s16846_s0 + $0x290] sm:$0xf] }
 0x2e4   :  { %v6894_v20 = vpop.f32.mrf.mxu3  ;;  %7318 = vmatpush.bf16.msra.mxu0 %v12074_v48  ;;  %7384 = vmatpush.bf16.msra.mxu2 %v12092_v4  ;;  %v8569_v27 = vor.u32 %v11551_v17, %v8568_v30  ;;  %v12091_v48 = vld [vmem:[%s16845_s1 + $0xa90] sm:$0xff]  ;;  %v11457_v30 = vld [vmem:[%s16846_s0 + $0x9c] sm:$0xf] }
 0x2e5   :  { %v6895_v23 = vadd.f32 %v6894_v20, %v14748_v50  ;;  %v9317_v20 = vor.u32 %v11739_v7, %v9316_v14  ;;  %v12089_v7 = vld [vmem:[%s16845_s1 + $0xa80] sm:$0xff]  ;;  %v12104_v17 = vld [vmem:[%s16845_s1 + $0xaf8] sm:$0xff] }
 0x2e6   :  { %v6986_v6 = vpop.f32.mrf.mxu2  ;;  %v14923_v33 = vpop.f32.mrf.mxu0 }
 0x2e7   :  { %v14921_v18 = vadd.f32 %v6986_v6, %v6953_v29  ;;  %v6954_v11 = vpop.f32.mrf.mxu1  ;;  %v14932_v50 = vadd.f32 %v14853_v62, %v6895_v23  ;;  %v12065_v23 = vld [vmem:[%s16845_s1 + $0x9c0] sm:$0xff] }
 0x2e8   :  { %v6955_v41 = vadd.f32 %v6954_v11, %v6921_v47  ;;  %v9065_v47 = vor.u32 %v11676_v32, %v9064_v16  ;;  %7319 = vmatpush.bf16.msra.mxu0 %v12073_v15  ;;  %7385 = vmatpush.bf16.msra.mxu2 %v12091_v48  ;;  %v12112_v32 = vld [vmem:[%s16845_s1 + $0xb38] sm:$0xff]  ;;  %v11614_v15 = vld [vmem:[%s16846_s0 + $0x580] sm:$0xf0] }
 0x2ec   :  { %v6896_v62 = vpop.f32.mrf.mxu3  ;;  %7448 = vmatpush.bf16.msrb.mxu0 %v12112_v32 }
 0x2ed   :  { %v6897_v52 = vadd.f32 %v6896_v62, %v14784_v2  ;;  %v11582_v62 = vld [vmem:[%s16846_s0 + $0x484] sm:$0xf] }
 0x2ee   :  { %v6988_v26 = vpop.f32.mrf.mxu2  ;;  %v14970_v45 = vpop.f32.mrf.mxu0 }
 0x2ef   :  { %v14968_v1 = vadd.f32 %v6988_v26, %v6955_v41  ;;  %v6957_v24 = vpop.f32.mrf.mxu1  ;;  %v14973_v60 = vadd.f32 %v14866_v57, %v6897_v52  ;;  %v12068_v57 = vld [vmem:[%s16845_s1 + $0x9d8] sm:$0xff]  ;;  %v8324_v52 = vld [vmem:[%s16846_s0 + $0xa0] sm:$0xf] }
 0x2f0   :  { %v6958_v2 = vadd.f32 %v6957_v24, %v14872_v36  ;;  %7282 = vmatpush.bf16.msra.mxu3 %v12068_v57  ;;  %v11489_v26 = vld [vmem:[%s16846_s0 + $0x198] sm:$0xf0] }
 0x2f1   :  { %7160 = vmatmul.bf16.gmra.mxu3 %v8809_v22  ;;  %7199 = vmatmul.bf16.gmra.mxu0 %v9065_v47  ;;  %v8814_v22 = vld [vmem:[%s16846_s0 + $0x57c] sm:$0xf0]  ;;  %v8820_v47 = vld [vmem:[%s16846_s0 + $0x488] sm:$0xf] }
 0x2f2   :  { %7218 = vmatmul.bf16.vlgmr.msrb.gmra.mxu1 %v8313_v61  ;;  %v8817_v63 = vor.u32 %v11582_v62, %v8814_v22  ;;  %v8821_v57 = vor.u32 %v11614_v15, %v8820_v47  ;;  %v11708_v15 = vld [vmem:[%s16846_s0 + $0x874] sm:$0xf] }
 0x2f3   :  { %7252 = vmatmul.bf16.vlgmr.msrb.gmra.mxu2 %v8317_v46 }
 0x2f4   :  { %v6899_v8 = vpop.f32.mrf.mxu3  ;;  %7283 = vmatpush.bf16.msra.mxu3 %v12067_v55 }
 0x2f5   :  { %v6900_v36 = vadd.f32 %v6899_v8, %v14805_v59  ;;  %v12086_v59 = vld [vmem:[%s16845_s1 + $0xa68] sm:$0xff]  ;;  %v12084_v8 = vld [vmem:[%s16845_s1 + $0xa58] sm:$0xff] }
 0x2f6   :  { %v6991_v58 = vpop.f32.mrf.mxu2  ;;  %v14991_v56 = vpop.f32.mrf.mxu0  ;;  %7348 = vmatpush.bf16.msra.mxu1 %v12086_v59 }
 0x2f7   :  { %v14989_v13 = vadd.f32 %v6991_v58, %v6958_v2  ;;  %v6959_v44 = vpop.f32.mrf.mxu1  ;;  %v14994_v9 = vadd.f32 %v14905_v35, %v6900_v36  ;;  %v11519_v35 = vld [vmem:[%s16846_s0 + $0x28c] sm:$0xf] }
 0x2f8   :  { %v6960_v51 = vadd.f32 %v6959_v44, %v14911_v25  ;;  %7284 = vmatpush.bf16.msra.mxu3 %v12066_v3  ;;  %v8565_v43 = vor.u32 %v11519_v35, %v8562_v5  ;;  %v12090_v36 = vld [vmem:[%s16845_s1 + $0xa88] sm:$0xff]  ;;  %v12111_v44 = vld [vmem:[%s16845_s1 + $0xb30] sm:$0xff]  ;;  %v11645_v5 = vld [vmem:[%s16846_s0 + $0x67c] sm:$0xf] }
 0x2f9   :  { %7386 = vmatpush.bf16.msra.mxu2 %v12090_v36  ;;  %7449 = vmatpush.bf16.msrb.mxu0 %v12111_v44  ;;  %v12082_v35 = vld [vmem:[%s16845_s1 + $0xa48] sm:$0xff] }
 0x2fc   :  { %v6901_v0 = vpop.f32.mrf.mxu3  ;;  %7285 = vmatpush.bf16.msra.mxu3 %v12065_v23  ;;  %v11677_v23 = vld [vmem:[%s16846_s0 + $0x778] sm:$0xf0] }
 0x2fd   :  { %v6902_v25 = vadd.f32 %v6901_v0, %v14851_v42  ;;  %v12085_v42 = vld [vmem:[%s16845_s1 + $0xa60] sm:$0xff]  ;;  %v8318_v0 = vld [vmem:[%s16846_s0 + $0x194] sm:$0xf0]  ;;  %7387 = vmatpush.bf16.msra.mxu2 %v12089_v7 }
 0x2fe   :  { %v6993_v29 = vpop.f32.mrf.mxu2  ;;  %v7054_v10 = vpop.f32.mrf.mxu0  ;;  %7349 = vmatpush.bf16.msra.mxu1 %v12085_v42 }
 0x2ff   :  { %v15034_v6 = vadd.f32 %v6993_v29, %v6960_v51  ;;  %v6962_v11 = vpop.f32.mrf.mxu1  ;;  %v6936_v41 = vadd.f32 %v14923_v33, %v6902_v25  ;;  %v8576_v25 = vld [vmem:[%s16846_s0 + $0x298] sm:$0xf]  ;;  %v11552_v29 = vld [vmem:[%s16846_s0 + $0x390] sm:$0xf0] }
 0x300   :  { %v6963_v40 = vadd.f32 %v6962_v11, %v14932_v50  ;;  %7414 = vmatpush.bf16.msrb.mxu3 %v12104_v17  ;;  %v8321_v11 = vor.u32 %v11457_v30, %v8318_v0  ;;  %v12120_v30 = vld [vmem:[%s16845_s1 + $0xb78] sm:$0xff]  ;;  %v12126_v17 = vld [vmem:[%s16845_s1 + $0xba8] sm:$0xff] }
 0x301   :  { %7165 = vmatmul.bf16.gmra.mxu3 %v9061_v19  ;;  %7204 = vmatmul.bf16.gmra.mxu0 %v9317_v20  ;;  %v9066_v19 = vld [vmem:[%s16846_s0 + $0x774] sm:$0xf0]  ;;  %v9072_v20 = vld [vmem:[%s16846_s0 + $0x680] sm:$0xf] }
 0x302   :  { %7223 = vmatmul.bf16.gmra.mxu1 %v8565_v43 }
 0x303   :  { %7257 = vmatmul.bf16.gmra.mxu2 %v8569_v27  ;;  %7350 = vmatpush.bf16.msra.mxu1 %v12084_v8 }
 0x304   :  { %v7015_v39 = vpop.f32.mrf.mxu3 }
 0x305   :  { %v7016_v33 = vadd.f32 %v7015_v39, %v14864_v12  ;;  %v9310_v12 = vld [vmem:[%s16846_s0 + $0x964] sm:$0xf0]  ;;  %v9069_v39 = vor.u32 %v11645_v5, %v9066_v19 }
 0x306   :  { %v6996_v34 = vpop.f32.mrf.mxu2  ;;  %v15047_v16 = vpop.f32.mrf.mxu0  ;;  %v9313_v24 = vor.u32 %v11707_v53, %v9310_v12  ;;  %v12106_v19 = vld [vmem:[%s16845_s1 + $0xb08] sm:$0xff] }
 0x307   :  { %v15045_v50 = vadd.f32 %v6996_v34, %v6963_v40  ;;  %v6964_v54 = vpop.f32.mrf.mxu1  ;;  %v15053_v37 = vadd.f32 %v14970_v45, %v7016_v33  ;;  %v12081_v40 = vld [vmem:[%s16845_s1 + $0xa40] sm:$0xff]  ;;  %v9073_v34 = vor.u32 %v11677_v23, %v9072_v20  ;;  %v11583_v20 = vld [vmem:[%s16846_s0 + $0x48c] sm:$0xf]  ;;  %v8822_v23 = vld [vmem:[%s16846_s0 + $0x584] sm:$0xf0] }
 0x308   :  { %v6965_v31 = vadd.f32 %v6964_v54, %v14973_v60  ;;  %v8325_v60 = vor.u32 %v11489_v26, %v8324_v52  ;;  %v12103_v52 = vld [vmem:[%s16845_s1 + $0xaf0] sm:$0xff] }
 0x309   :  { %7415 = vmatpush.bf16.msrb.mxu3 %v12103_v52 }
 0x30c   :  { %v7017_v45 = vpop.f32.mrf.mxu3 }
 0x30d   :  { %v7018_v46 = vadd.f32 %v7017_v45, %v14903_v28  ;;  %v11520_v45 = vld [vmem:[%s16846_s0 + $0x294] sm:$0xf] }
 0x30e   :  { %v6998_v61 = vpop.f32.mrf.mxu2  ;;  %v15083_v38 = vpop.f32.mrf.mxu0 }
 0x30f   :  { %v15081_v2 = vadd.f32 %v6998_v61, %v6965_v31  ;;  %v6967_v58 = vpop.f32.mrf.mxu1  ;;  %v15092_v55 = vadd.f32 %v14991_v56, %v7018_v46  ;;  %v12083_v56 = vld [vmem:[%s16845_s1 + $0xa50] sm:$0xff]  ;;  %v12109_v31 = vld [vmem:[%s16845_s1 + $0xb20] sm:$0xff] }
 0x310   :  { %v6968_v28 = vadd.f32 %v6967_v58, %v14994_v9  ;;  %7351 = vmatpush.bf16.msra.mxu1 %v12083_v56  ;;  %v8570_v61 = vld [vmem:[%s16846_s0 + $0x38c] sm:$0xf0] }
 0x311   :  { %7170 = vmatmul.bf16.gmra.mxu3 %v9313_v24  ;;  %7320 = vmatmul.bf16.vlgmr.msra.gmra.mxu0 %v8325_v60  ;;  %v8828_v46 = vld [vmem:[%s16846_s0 + $0x490] sm:$0xf]  ;;  %v11615_v24 = vld [vmem:[%s16846_s0 + $0x588] sm:$0xf0]  ;;  %v8573_v58 = vor.u32 %v11520_v45, %v8570_v61 }
 0x312   :  { %7228 = vmatmul.bf16.gmra.mxu1 %v8817_v63  ;;  %v9318_v60 = vld [vmem:[%s16846_s0 + $0x96c] sm:$0xf0]  ;;  %v11740_v63 = vld [vmem:[%s16846_s0 + $0x970] sm:$0xf0] }
 0x313   :  { %7262 = vmatmul.bf16.gmra.mxu2 %v8821_v57  ;;  %v12099_v45 = vld [vmem:[%s16845_s1 + $0xad0] sm:$0xff] }
 0x314   :  { %v7020_v51 = vpop.f32.mrf.mxu3  ;;  %7352 = vmatpush.bf16.msra.mxu1 %v12082_v35 }
 0x315   :  { %v7021_v4 = vadd.f32 %v7020_v51, %v14921_v18  ;;  %v12110_v18 = vld [vmem:[%s16845_s1 + $0xb28] sm:$0xff]  ;;  %v9321_v51 = vor.u32 %v11708_v15, %v9318_v60 }
 0x316   :  { %v7001_v59 = vpop.f32.mrf.mxu2  ;;  %v15104_v3 = vpop.f32.mrf.mxu0  ;;  %7450 = vmatpush.bf16.msrb.mxu0 %v12110_v18 }
 0x317   :  { %v15102_v9 = vadd.f32 %v7001_v59, %v6968_v28  ;;  %v6969_v21 = vpop.f32.mrf.mxu1  ;;  %v15106_v49 = vadd.f32 %v7054_v10, %v7021_v4  ;;  %v12108_v4 = vld [vmem:[%s16845_s1 + $0xb18] sm:$0xff] }
 0x318   :  { %v6970_v14 = vadd.f32 %v6969_v21, %v6936_v41  ;;  %v8577_v41 = vor.u32 %v11552_v29, %v8576_v25  ;;  %7353 = vmatpush.bf16.msra.mxu1 %v12081_v40  ;;  %v12101_v29 = vld [vmem:[%s16845_s1 + $0xae0] sm:$0xff] }
 0x319   :  { %v11490_v40 = vld [vmem:[%s16846_s0 + $0x1a0] sm:$0xf0] }
 0x31a   :  { %7451 = vmatpush.bf16.msrb.mxu0 %v12109_v31 }
 0x31c   :  { %v7022_v10 = vpop.f32.mrf.mxu3  ;;  %7482 = vmatpush.bf16.msrb.mxu1 %v12120_v30 }
 0x31d   :  { %v7023_v27 = vadd.f32 %v7022_v10, %v14968_v1  ;;  %v12128_v1 = vld [vmem:[%s16845_s1 + $0xbb8] sm:$0xff]  ;;  %v9080_v10 = vld [vmem:[%s16846_s0 + $0x688] sm:$0xf] }
 0x31e   :  { %v7003_v43 = vpop.f32.mrf.mxu2  ;;  %v15150_v48 = vpop.f32.mrf.mxu0  ;;  %7516 = vmatpush.bf16.msrb.mxu2 %v12128_v1  ;;  %7452 = vmatpush.bf16.msrb.mxu0 %v12108_v4  ;;  %v11553_v4 = vld [vmem:[%s16846_s0 + $0x398] sm:$0xf0] }
 0x31f   :  { %v15148_v42 = vadd.f32 %v7003_v43, %v6970_v14  ;;  %v7083_v33 = vpop.f32.mrf.mxu1  ;;  %v7057_v32 = vadd.f32 %v15047_v16, %v7023_v27  ;;  %v11678_v43 = vld [vmem:[%s16846_s0 + $0x780] sm:$0xf0] }
 0x320   :  { %v7084_v54 = vadd.f32 %v7083_v33, %v15053_v37  ;;  %v11458_v27 = vld [vmem:[%s16846_s0 + $0xa4] sm:$0xf]  ;;  %v8825_v33 = vor.u32 %v11583_v20, %v8822_v23 }
 0x321   :  { %7286 = vmatmul.bf16.vlgmr.msra.gmra.mxu3 %v8321_v11  ;;  %7325 = vmatmul.bf16.gmra.mxu0 %v8577_v41  ;;  %v8326_v11 = vld [vmem:[%s16846_s0 + $0x19c] sm:$0xf0]  ;;  %v8332_v41 = vld [vmem:[%s16846_s0 + $0xa8] sm:$0xf] }
 0x322   :  { %7233 = vmatmul.bf16.gmra.mxu1 %v9069_v39 }
 0x323   :  { %7267 = vmatmul.bf16.gmra.mxu2 %v9073_v34 }
 0x324   :  { %v7025_v53 = vpop.f32.mrf.mxu3 }
 0x325   :  { %v7026_v16 = vadd.f32 %v7025_v53, %v14989_v13  ;;  %v12127_v13 = vld [vmem:[%s16845_s1 + $0xbb0] sm:$0xff]  ;;  %v8329_v53 = vor.u32 %v11458_v27, %v8326_v11 }
 0x326   :  { %v7117_v12 = vpop.f32.mrf.mxu2  ;;  %v15163_v37 = vpop.f32.mrf.mxu0  ;;  %7517 = vmatpush.bf16.msrb.mxu2 %v12127_v13 }
 0x327   :  { %v15161_v62 = vadd.f32 %v7117_v12, %v7084_v54  ;;  %v7085_v26 = vpop.f32.mrf.mxu1  ;;  %v15169_v22 = vadd.f32 %v15083_v38, %v7026_v16  ;;  %v9324_v38 = vld [vmem:[%s16846_s0 + $0x878] sm:$0xf]  ;;  %v12105_v54 = vld [vmem:[%s16845_s1 + $0xb00] sm:$0xff]  ;;  %v8333_v16 = vor.u32 %v11490_v40, %v8332_v41  ;;  %v11709_v40 = vld [vmem:[%s16846_s0 + $0x87c] sm:$0xf] }
 0x328   :  { %v7086_v47 = vadd.f32 %v7085_v26, %v15092_v55  ;;  %v8829_v55 = vor.u32 %v11615_v24, %v8828_v46  ;;  %v9325_v59 = vor.u32 %v11740_v63, %v9324_v38  ;;  %v12119_v26 = vld [vmem:[%s16845_s1 + $0xb70] sm:$0xff]  ;;  %v12124_v63 = vld [vmem:[%s16845_s1 + $0xb98] sm:$0xff] }
 0x329   :  { %7483 = vmatpush.bf16.msrb.mxu1 %v12119_v26 }
 0x32a   :  { %7518 = vmatpush.bf16.msrb.mxu2 %v12126_v17 }
 0x32c   :  { %v7027_v57 = vpop.f32.mrf.mxu3 }
 0x32d   :  { %v7028_v8 = vadd.f32 %v7027_v57, %v15034_v6  ;;  %v12102_v6 = vld [vmem:[%s16845_s1 + $0xae8] sm:$0xff] }
 0x32e   :  { %v7119_v36 = vpop.f32.mrf.mxu2  ;;  %v15202_v44 = vpop.f32.mrf.mxu0  ;;  %7416 = vmatpush.bf16.msrb.mxu3 %v12102_v6  ;;  %v12098_v57 = vld [vmem:[%s16845_s1 + $0xac8] sm:$0xff] }
 0x32f   :  { %v15200_v28 = vadd.f32 %v7119_v36, %v7086_v47  ;;  %v7088_v56 = vpop.f32.mrf.mxu1  ;;  %v15208_v21 = vadd.f32 %v15104_v3, %v7028_v8  ;;  %v12107_v3 = vld [vmem:[%s16845_s1 + $0xb10] sm:$0xff]  ;;  %v12125_v47 = vld [vmem:[%s16845_s1 + $0xba0] sm:$0xff] }
 0x330   :  { %v7089_v14 = vadd.f32 %v7088_v56, %v15106_v49  ;;  %7453 = vmatpush.bf16.msrb.mxu0 %v12107_v3  ;;  %7519 = vmatpush.bf16.msrb.mxu2 %v12125_v47  ;;  %v11646_v8 = vld [vmem:[%s16846_s0 + $0x684] sm:$0xf]  ;;  %v9074_v36 = vld [vmem:[%s16846_s0 + $0x77c] sm:$0xf0] }
 0x331   :  { %7291 = vmatmul.bf16.gmra.mxu3 %v8573_v58  ;;  %7330 = vmatmul.bf16.gmra.mxu0 %v8829_v55  ;;  %v9332_v58 = vld [vmem:[%s16846_s0 + $0x880] sm:$0xf]  ;;  %v11741_v55 = vld [vmem:[%s16846_s0 + $0x978] sm:$0xf0]  ;;  %v9077_v6 = vor.u32 %v11646_v8, %v9074_v36 }
 0x332   :  { %7238 = vmatmul.bf16.gmra.mxu1 %v9321_v51  ;;  %7417 = vmatpush.bf16.msrb.mxu3 %v12101_v29  ;;  %v8578_v51 = vld [vmem:[%s16846_s0 + $0x394] sm:$0xf0] }
 0x333   :  { %7272 = vmatmul.bf16.gmra.mxu2 %v9325_v59  ;;  %v8584_v59 = vld [vmem:[%s16846_s0 + $0x2a0] sm:$0xf] }
 0x334   :  { %v7030_v7 = vpop.f32.mrf.mxu3  ;;  %7454 = vmatpush.bf16.msrb.mxu0 %v12106_v19  ;;  %7520 = vmatpush.bf16.msrb.mxu2 %v12124_v63  ;;  %v8585_v17 = vor.u32 %v11553_v4, %v8584_v59  ;;  %v12123_v19 = vld [vmem:[%s16845_s1 + $0xb90] sm:$0xff]  ;;  %v11459_v59 = vld [vmem:[%s16846_s0 + $0xac] sm:$0xf]  ;;  %v12136_v4 = vld [vmem:[%s16845_s1 + $0xbf8] sm:$0xff] }
 0x335   :  { %v7031_v18 = vadd.f32 %v7030_v7, %v15045_v50  ;;  %v9333_v7 = vor.u32 %v11741_v55, %v9332_v58  ;;  %v12121_v55 = vld [vmem:[%s16845_s1 + $0xb80] sm:$0xff] }
 0x336   :  { %v7122_v35 = vpop.f32.mrf.mxu2  ;;  %v15220_v49 = vpop.f32.mrf.mxu0 }
 0x337   :  { %v15218_v5 = vadd.f32 %v7122_v35, %v7089_v14  ;;  %v7090_v0 = vpop.f32.mrf.mxu1  ;;  %v15229_v50 = vadd.f32 %v15150_v48, %v7031_v18  ;;  %v12097_v18 = vld [vmem:[%s16845_s1 + $0xac0] sm:$0xff] }
 0x338   :  { %v7091_v25 = vadd.f32 %v7090_v0, %v7057_v32  ;;  %v9081_v32 = vor.u32 %v11678_v43, %v9080_v10  ;;  %7455 = vmatpush.bf16.msrb.mxu0 %v12105_v54  ;;  %7521 = vmatpush.bf16.msrb.mxu2 %v12123_v19  ;;  %v12144_v43 = vld [vmem:[%s16845_s1 + $0xc38] sm:$0xff]  ;;  %v11616_v54 = vld [vmem:[%s16846_s0 + $0x590] sm:$0xf0] }
 0x33c   :  { %v7032_v48 = vpop.f32.mrf.mxu3  ;;  %7584 = vmatpush.bf16.msra.mxu0 %v12144_v43 }
 0x33d   :  { %v7033_v39 = vadd.f32 %v7032_v48, %v15081_v2  ;;  %v11584_v48 = vld [vmem:[%s16846_s0 + $0x494] sm:$0xf] }
 0x33e   :  { %v7124_v34 = vpop.f32.mrf.mxu2  ;;  %v15267_v31 = vpop.f32.mrf.mxu0 }
 0x33f   :  { %v15265_v1 = vadd.f32 %v7124_v34, %v7091_v25  ;;  %v7093_v12 = vpop.f32.mrf.mxu1  ;;  %v15270_v52 = vadd.f32 %v15163_v37, %v7033_v39  ;;  %v12100_v37 = vld [vmem:[%s16845_s1 + $0xad8] sm:$0xff]  ;;  %v8340_v39 = vld [vmem:[%s16846_s0 + $0xb0] sm:$0xf]  ;;  %v11491_v34 = vld [vmem:[%s16846_s0 + $0x1a8] sm:$0xf0] }
 0x340   :  { %v7094_v2 = vadd.f32 %v7093_v12, %v15169_v22  ;;  %7418 = vmatpush.bf16.msrb.mxu3 %v12100_v37 }
 0x341   :  { %7296 = vmatmul.bf16.gmra.mxu3 %v8825_v33  ;;  %7335 = vmatmul.bf16.gmra.mxu0 %v9081_v32  ;;  %v8830_v33 = vld [vmem:[%s16846_s0 + $0x58c] sm:$0xf0]  ;;  %v8836_v32 = vld [vmem:[%s16846_s0 + $0x498] sm:$0xf] }
 0x342   :  { %7354 = vmatmul.bf16.vlgmr.msra.gmra.mxu1 %v8329_v53  ;;  %v8833_v47 = vor.u32 %v11584_v48, %v8830_v33  ;;  %v8837_v37 = vor.u32 %v11616_v54, %v8836_v32  ;;  %v11710_v54 = vld [vmem:[%s16846_s0 + $0x884] sm:$0xf] }
 0x343   :  { %7388 = vmatmul.bf16.vlgmr.msra.gmra.mxu2 %v8333_v16 }
 0x344   :  { %v7035_v13 = vpop.f32.mrf.mxu3  ;;  %7419 = vmatpush.bf16.msrb.mxu3 %v12099_v45 }
 0x345   :  { %v7036_v22 = vadd.f32 %v7035_v13, %v15102_v9  ;;  %v12118_v9 = vld [vmem:[%s16845_s1 + $0xb68] sm:$0xff]  ;;  %v12116_v13 = vld [vmem:[%s16845_s1 + $0xb58] sm:$0xff] }
 0x346   :  { %v7127_v15 = vpop.f32.mrf.mxu2  ;;  %v15288_v46 = vpop.f32.mrf.mxu0  ;;  %7484 = vmatpush.bf16.msrb.mxu1 %v12118_v9 }
 0x347   :  { %v15286_v61 = vadd.f32 %v7127_v15, %v7094_v2  ;;  %v7095_v24 = vpop.f32.mrf.mxu1  ;;  %v15291_v60 = vadd.f32 %v15202_v44, %v7036_v22  ;;  %v11521_v44 = vld [vmem:[%s16846_s0 + $0x29c] sm:$0xf]  ;;  %v12122_v22 = vld [vmem:[%s16845_s1 + $0xb88] sm:$0xff] }
 0x348   :  { %v7096_v38 = vadd.f32 %v7095_v24, %v15208_v21  ;;  %7420 = vmatpush.bf16.msrb.mxu3 %v12098_v57  ;;  %v8581_v30 = vor.u32 %v11521_v44, %v8578_v51  ;;  %7522 = vmatpush.bf16.msrb.mxu2 %v12122_v22  ;;  %v12143_v24 = vld [vmem:[%s16845_s1 + $0xc30] sm:$0xff]  ;;  %v12114_v44 = vld [vmem:[%s16845_s1 + $0xb48] sm:$0xff] }
 0x349   :  { %7585 = vmatpush.bf16.msra.mxu0 %v12143_v24  ;;  %v11647_v51 = vld [vmem:[%s16846_s0 + $0x68c] sm:$0xf] }
 0x34c   :  { %v7037_v56 = vpop.f32.mrf.mxu3  ;;  %7421 = vmatpush.bf16.msrb.mxu3 %v12097_v18  ;;  %7523 = vmatpush.bf16.msrb.mxu2 %v12121_v55  ;;  %v11679_v18 = vld [vmem:[%s16846_s0 + $0x788] sm:$0xf0] }
 0x34d   :  { %v7038_v21 = vadd.f32 %v7037_v56, %v15148_v42  ;;  %v12117_v42 = vld [vmem:[%s16845_s1 + $0xb60] sm:$0xff]  ;;  %v8334_v56 = vld [vmem:[%s16846_s0 + $0x1a4] sm:$0xf0] }
 0x34e   :  { %v7129_v14 = vpop.f32.mrf.mxu2  ;;  %v7190_v3 = vpop.f32.mrf.mxu0  ;;  %7485 = vmatpush.bf16.msrb.mxu1 %v12117_v42 }
 0x34f   :  { %v15331_v35 = vadd.f32 %v7129_v14, %v7096_v38  ;;  %v7098_v0 = vpop.f32.mrf.mxu1  ;;  %v7072_v25 = vadd.f32 %v15220_v49, %v7038_v21  ;;  %v8592_v21 = vld [vmem:[%s16846_s0 + $0x2a8] sm:$0xf]  ;;  %v11554_v14 = vld [vmem:[%s16846_s0 + $0x3a0] sm:$0xf0] }
 0x350   :  { %v7099_v29 = vadd.f32 %v7098_v0, %v15229_v50  ;;  %7550 = vmatpush.bf16.msra.mxu3 %v12136_v4  ;;  %v8337_v0 = vor.u32 %v11459_v59, %v8334_v56  ;;  %v12152_v59 = vld [vmem:[%s16845_s1 + $0xc78] sm:$0xff]  ;;  %v12158_v4 = vld [vmem:[%s16845_s1 + $0xca8] sm:$0xff] }
 0x351   :  { %7301 = vmatmul.bf16.gmra.mxu3 %v9077_v6  ;;  %7340 = vmatmul.bf16.gmra.mxu0 %v9333_v7  ;;  %v9082_v6 = vld [vmem:[%s16846_s0 + $0x784] sm:$0xf0]  ;;  %v9088_v7 = vld [vmem:[%s16846_s0 + $0x690] sm:$0xf] }
 0x352   :  { %7359 = vmatmul.bf16.gmra.mxu1 %v8581_v30 }
 0x353   :  { %7393 = vmatmul.bf16.gmra.mxu2 %v8585_v17  ;;  %7486 = vmatpush.bf16.msrb.mxu1 %v12116_v13 }
 0x354   :  { %v7151_v20 = vpop.f32.mrf.mxu3 }
 0x355   :  { %v7152_v49 = vadd.f32 %v7151_v20, %v15161_v62  ;;  %v9326_v62 = vld [vmem:[%s16846_s0 + $0x974] sm:$0xf0]  ;;  %v9085_v20 = vor.u32 %v11647_v51, %v9082_v6  ;;  %v12138_v6 = vld [vmem:[%s16845_s1 + $0xc08] sm:$0xff] }
 0x356   :  { %v7132_v23 = vpop.f32.mrf.mxu2  ;;  %v15344_v10 = vpop.f32.mrf.mxu0  ;;  %v9329_v12 = vor.u32 %v11709_v40, %v9326_v62 }
 0x357   :  { %v15342_v50 = vadd.f32 %v7132_v23, %v7099_v29  ;;  %v7100_v27 = vpop.f32.mrf.mxu1  ;;  %v15350_v11 = vadd.f32 %v15267_v31, %v7152_v49  ;;  %v12113_v29 = vld [vmem:[%s16845_s1 + $0xb40] sm:$0xff]  ;;  %v9089_v23 = vor.u32 %v11679_v18, %v9088_v7  ;;  %v11585_v7 = vld [vmem:[%s16846_s0 + $0x49c] sm:$0xf]  ;;  %v8838_v18 = vld [vmem:[%s16846_s0 + $0x594] sm:$0xf0] }
 0x358   :  { %v7101_v41 = vadd.f32 %v7100_v27, %v15270_v52  ;;  %v8341_v52 = vor.u32 %v11491_v34, %v8340_v39  ;;  %v12135_v39 = vld [vmem:[%s16845_s1 + $0xbf0] sm:$0xff] }
 0x359   :  { %7551 = vmatpush.bf16.msra.mxu3 %v12135_v39 }
 0x35c   :  { %v7153_v31 = vpop.f32.mrf.mxu3 }
 0x35d   :  { %v7154_v16 = vadd.f32 %v7153_v31, %v15200_v28  ;;  %v11522_v31 = vld [vmem:[%s16846_s0 + $0x2a4] sm:$0xf] }
 0x35e   :  { %v7134_v53 = vpop.f32.mrf.mxu2  ;;  %v15380_v26 = vpop.f32.mrf.mxu0 }
 0x35f   :  { %v15378_v2 = vadd.f32 %v7134_v53, %v7101_v41  ;;  %v7103_v15 = vpop.f32.mrf.mxu1  ;;  %v15389_v45 = vadd.f32 %v15288_v46, %v7154_v16  ;;  %v12115_v46 = vld [vmem:[%s16845_s1 + $0xb50] sm:$0xff]  ;;  %v12141_v41 = vld [vmem:[%s16845_s1 + $0xc20] sm:$0xff] }
 0x360   :  { %v7104_v28 = vadd.f32 %v7103_v15, %v15291_v60  ;;  %7487 = vmatpush.bf16.msrb.mxu1 %v12115_v46  ;;  %v8586_v53 = vld [vmem:[%s16846_s0 + $0x39c] sm:$0xf0] }
 0x361   :  { %7306 = vmatmul.bf16.gmra.mxu3 %v9329_v12  ;;  %7456 = vmatmul.bf16.vlgmr.msrb.gmra.mxu0 %v8341_v52  ;;  %v8844_v16 = vld [vmem:[%s16846_s0 + $0x4a0] sm:$0xf]  ;;  %v11617_v12 = vld [vmem:[%s16846_s0 + $0x598] sm:$0xf0]  ;;  %v8589_v15 = vor.u32 %v11522_v31, %v8586_v53  ;;  %v12131_v31 = vld [vmem:[%s16845_s1 + $0xbd0] sm:$0xff] }
 0x362   :  { %7364 = vmatmul.bf16.gmra.mxu1 %v8833_v47  ;;  %v9334_v52 = vld [vmem:[%s16846_s0 + $0x97c] sm:$0xf0]  ;;  %v11742_v47 = vld [vmem:[%s16846_s0 + $0x980] sm:$0xf0] }
 0x363   :  { %7398 = vmatmul.bf16.gmra.mxu2 %v8837_v37 }
 0x364   :  { %v7156_v38 = vpop.f32.mrf.mxu3  ;;  %7488 = vmatpush.bf16.msrb.mxu1 %v12114_v44 }
 0x365   :  { %v7157_v63 = vadd.f32 %v7156_v38, %v15218_v5  ;;  %v12142_v5 = vld [vmem:[%s16845_s1 + $0xc28] sm:$0xff]  ;;  %v9337_v38 = vor.u32 %v11710_v54, %v9334_v52 }
 0x366   :  { %v7137_v9 = vpop.f32.mrf.mxu2  ;;  %v15401_v57 = vpop.f32.mrf.mxu0  ;;  %7586 = vmatpush.bf16.msra.mxu0 %v12142_v5 }
 0x367   :  { %v15399_v60 = vadd.f32 %v7137_v9, %v7104_v28  ;;  %v7105_v8 = vpop.f32.mrf.mxu1  ;;  %v15403_v36 = vadd.f32 %v7190_v3, %v7157_v63  ;;  %v12140_v63 = vld [vmem:[%s16845_s1 + $0xc18] sm:$0xff] }
 0x368   :  { %v7106_v58 = vadd.f32 %v7105_v8, %v7072_v25  ;;  %v8593_v25 = vor.u32 %v11554_v14, %v8592_v21  ;;  %7489 = vmatpush.bf16.msrb.mxu1 %v12113_v29  ;;  %v12133_v14 = vld [vmem:[%s16845_s1 + $0xbe0] sm:$0xff]  ;;  %v11492_v29 = vld [vmem:[%s16846_s0 + $0x1b0] sm:$0xf0] }
 0x36a   :  { %7587 = vmatpush.bf16.msra.mxu0 %v12141_v41 }
 0x36c   :  { %v7158_v3 = vpop.f32.mrf.mxu3  ;;  %7618 = vmatpush.bf16.msra.mxu1 %v12152_v59 }
 0x36d   :  { %v7159_v17 = vadd.f32 %v7158_v3, %v15265_v1  ;;  %v12160_v1 = vld [vmem:[%s16845_s1 + $0xcb8] sm:$0xff] }
 0x36e   :  { %v7139_v30 = vpop.f32.mrf.mxu2  ;;  %v15447_v19 = vpop.f32.mrf.mxu0  ;;  %7652 = vmatpush.bf16.msra.mxu2 %v12160_v1  ;;  %7588 = vmatpush.bf16.msra.mxu0 %v12140_v63  ;;  %v9096_v3 = vld [vmem:[%s16846_s0 + $0x698] sm:$0xf]  ;;  %v11555_v63 = vld [vmem:[%s16846_s0 + $0x3a8] sm:$0xf0] }
 0x36f   :  { %v15445_v42 = vadd.f32 %v7139_v30, %v7106_v58  ;;  %v7219_v49 = vpop.f32.mrf.mxu1  ;;  %v7193_v43 = vadd.f32 %v15344_v10, %v7159_v17  ;;  %v11680_v30 = vld [vmem:[%s16846_s0 + $0x790] sm:$0xf0] }
 0x370   :  { %v7220_v27 = vadd.f32 %v7219_v49, %v15350_v11  ;;  %v11460_v17 = vld [vmem:[%s16846_s0 + $0xb4] sm:$0xf]  ;;  %v8841_v49 = vor.u32 %v11585_v7, %v8838_v18 }
 0x371   :  { %7422 = vmatmul.bf16.vlgmr.msrb.gmra.mxu3 %v8337_v0  ;;  %7461 = vmatmul.bf16.gmra.mxu0 %v8593_v25  ;;  %v8342_v0 = vld [vmem:[%s16846_s0 + $0x1ac] sm:$0xf0]  ;;  %v8348_v25 = vld [vmem:[%s16846_s0 + $0xb8] sm:$0xf] }
 0x372   :  { %7369 = vmatmul.bf16.gmra.mxu1 %v9085_v20 }
 0x373   :  { %7403 = vmatmul.bf16.gmra.mxu2 %v9089_v23 }
 0x374   :  { %v7161_v40 = vpop.f32.mrf.mxu3 }
 0x375   :  { %v7162_v10 = vadd.f32 %v7161_v40, %v15286_v61  ;;  %v12159_v61 = vld [vmem:[%s16845_s1 + $0xcb0] sm:$0xff]  ;;  %v8345_v40 = vor.u32 %v11460_v17, %v8342_v0 }
 0x376   :  { %v7253_v62 = vpop.f32.mrf.mxu2  ;;  %v15460_v11 = vpop.f32.mrf.mxu0  ;;  %7653 = vmatpush.bf16.msra.mxu2 %v12159_v61 }
 0x377   :  { %v15458_v48 = vadd.f32 %v7253_v62, %v7220_v27  ;;  %v7221_v34 = vpop.f32.mrf.mxu1  ;;  %v15466_v33 = vadd.f32 %v15380_v26, %v7162_v10  ;;  %v9340_v26 = vld [vmem:[%s16846_s0 + $0x888] sm:$0xf]  ;;  %v12137_v27 = vld [vmem:[%s16845_s1 + $0xc00] sm:$0xff]  ;;  %v8349_v10 = vor.u32 %v11492_v29, %v8348_v25  ;;  %v11711_v29 = vld [vmem:[%s16846_s0 + $0x88c] sm:$0xf] }
 0x378   :  { %v7222_v32 = vadd.f32 %v7221_v34, %v15389_v45  ;;  %v8845_v45 = vor.u32 %v11617_v12, %v8844_v16  ;;  %v9341_v9 = vor.u32 %v11742_v47, %v9340_v26  ;;  %v12151_v34 = vld [vmem:[%s16845_s1 + $0xc70] sm:$0xff]  ;;  %v12156_v47 = vld [vmem:[%s16845_s1 + $0xc98] sm:$0xff] }
 0x379   :  { %7619 = vmatpush.bf16.msra.mxu1 %v12151_v34 }
 0x37a   :  { %7654 = vmatpush.bf16.msra.mxu2 %v12158_v4 }
 0x37c   :  { %v7163_v37 = vpop.f32.mrf.mxu3 }
 0x37d   :  { %v7164_v13 = vadd.f32 %v7163_v37, %v15331_v35  ;;  %v12134_v35 = vld [vmem:[%s16845_s1 + $0xbe8] sm:$0xff] }
 0x37e   :  { %v7255_v22 = vpop.f32.mrf.mxu2  ;;  %v15499_v24 = vpop.f32.mrf.mxu0  ;;  %7552 = vmatpush.bf16.msra.mxu3 %v12134_v35  ;;  %v12130_v37 = vld [vmem:[%s16845_s1 + $0xbc8] sm:$0xff] }
 0x37f   :  { %v15497_v28 = vadd.f32 %v7255_v22, %v7222_v32  ;;  %v7224_v46 = vpop.f32.mrf.mxu1  ;;  %v15505_v8 = vadd.f32 %v15401_v57, %v7164_v13  ;;  %v12139_v57 = vld [vmem:[%s16845_s1 + $0xc10] sm:$0xff]  ;;  %v12157_v32 = vld [vmem:[%s16845_s1 + $0xca0] sm:$0xff] }
 0x380   :  { %v7225_v58 = vadd.f32 %v7224_v46, %v15403_v36  ;;  %7589 = vmatpush.bf16.msra.mxu0 %v12139_v57  ;;  %7655 = vmatpush.bf16.msra.mxu2 %v12157_v32  ;;  %v11648_v13 = vld [vmem:[%s16846_s0 + $0x694] sm:$0xf]  ;;  %v9090_v22 = vld [vmem:[%s16846_s0 + $0x78c] sm:$0xf0] }
 0x381   :  { %7427 = vmatmul.bf16.gmra.mxu3 %v8589_v15  ;;  %7466 = vmatmul.bf16.gmra.mxu0 %v8845_v45  ;;  %v9348_v15 = vld [vmem:[%s16846_s0 + $0x890] sm:$0xf]  ;;  %v11743_v45 = vld [vmem:[%s16846_s0 + $0x988] sm:$0xf0]  ;;  %v9093_v35 = vor.u32 %v11648_v13, %v9090_v22 }
 0x382   :  { %7374 = vmatmul.bf16.gmra.mxu1 %v9337_v38  ;;  %7553 = vmatpush.bf16.msra.mxu3 %v12133_v14  ;;  %v8594_v38 = vld [vmem:[%s16846_s0 + $0x3a4] sm:$0xf0] }
 0x383   :  { %7408 = vmatmul.bf16.gmra.mxu2 %v9341_v9  ;;  %v8600_v9 = vld [vmem:[%s16846_s0 + $0x2b0] sm:$0xf] }
 0x384   :  { %v7166_v55 = vpop.f32.mrf.mxu3  ;;  %7590 = vmatpush.bf16.msra.mxu0 %v12138_v6  ;;  %7656 = vmatpush.bf16.msra.mxu2 %v12156_v47  ;;  %v8601_v4 = vor.u32 %v11555_v63, %v8600_v9  ;;  %v12155_v6 = vld [vmem:[%s16845_s1 + $0xc90] sm:$0xff]  ;;  %v11461_v9 = vld [vmem:[%s16846_s0 + $0xbc] sm:$0xf] }
 0x385   :  { %v7167_v5 = vadd.f32 %v7166_v55, %v15342_v50  ;;  %v9349_v55 = vor.u32 %v11743_v45, %v9348_v15  ;;  %v12153_v45 = vld [vmem:[%s16845_s1 + $0xc80] sm:$0xff]  ;;  %v12168_v63 = vld [vmem:[%s16845_s1 + $0xcf8] sm:$0xff] }
 0x386   :  { %v7258_v44 = vpop.f32.mrf.mxu2  ;;  %v15517_v36 = vpop.f32.mrf.mxu0 }
 0x387   :  { %v15515_v51 = vadd.f32 %v7258_v44, %v7225_v58  ;;  %v7226_v56 = vpop.f32.mrf.mxu1  ;;  %v15526_v50 = vadd.f32 %v15447_v19, %v7167_v5  ;;  %v12129_v5 = vld [vmem:[%s16845_s1 + $0xbc0] sm:$0xff] }
 0x388   :  { %v7227_v21 = vadd.f32 %v7226_v56, %v7193_v43  ;;  %v9097_v43 = vor.u32 %v11680_v30, %v9096_v3  ;;  %7591 = vmatpush.bf16.msra.mxu0 %v12137_v27  ;;  %7657 = vmatpush.bf16.msra.mxu2 %v12155_v6  ;;  %v12176_v30 = vld [vmem:[%s16845_s1 + $0xd38] sm:$0xff]  ;;  %v11618_v27 = vld [vmem:[%s16846_s0 + $0x5a0] sm:$0xf0] }
 0x38c   :  { %v7168_v19 = vpop.f32.mrf.mxu3  ;;  %7720 = vmatpush.bf16.msrb.mxu0 %v12176_v30 }
 0x38d   :  { %v7169_v20 = vadd.f32 %v7168_v19, %v15378_v2  ;;  %v11586_v19 = vld [vmem:[%s16846_s0 + $0x4a4] sm:$0xf] }
 0x38e   :  { %v7260_v23 = vpop.f32.mrf.mxu2  ;;  %v15564_v41 = vpop.f32.mrf.mxu0 }
 0x38f   :  { %v15562_v1 = vadd.f32 %v7260_v23, %v7227_v21  ;;  %v7229_v62 = vpop.f32.mrf.mxu1  ;;  %v15567_v39 = vadd.f32 %v15460_v11, %v7169_v20  ;;  %v12132_v11 = vld [vmem:[%s16845_s1 + $0xbd8] sm:$0xff]  ;;  %v8356_v20 = vld [vmem:[%s16846_s0 + $0xc0] sm:$0xf] }
 0x390   :  { %v7230_v2 = vadd.f32 %v7229_v62, %v15466_v33  ;;  %7554 = vmatpush.bf16.msra.mxu3 %v12132_v11  ;;  %v11493_v23 = vld [vmem:[%s16846_s0 + $0x1b8] sm:$0xf0] }
 0x391   :  { %7432 = vmatmul.bf16.gmra.mxu3 %v8841_v49  ;;  %7471 = vmatmul.bf16.gmra.mxu0 %v9097_v43  ;;  %v8846_v49 = vld [vmem:[%s16846_s0 + $0x59c] sm:$0xf0]  ;;  %v8852_v43 = vld [vmem:[%s16846_s0 + $0x4a8] sm:$0xf] }
 0x392   :  { %7490 = vmatmul.bf16.vlgmr.msrb.gmra.mxu1 %v8345_v40  ;;  %v8849_v32 = vor.u32 %v11586_v19, %v8846_v49  ;;  %v8853_v11 = vor.u32 %v11618_v27, %v8852_v43  ;;  %v11712_v27 = vld [vmem:[%s16846_s0 + $0x894] sm:$0xf] }
 0x393   :  { %7524 = vmatmul.bf16.vlgmr.msrb.gmra.mxu2 %v8349_v10 }
 0x394   :  { %v7171_v61 = vpop.f32.mrf.mxu3  ;;  %7555 = vmatpush.bf16.msra.mxu3 %v12131_v31 }
 0x395   :  { %v7172_v33 = vadd.f32 %v7171_v61, %v15399_v60  ;;  %v12150_v60 = vld [vmem:[%s16845_s1 + $0xc68] sm:$0xff]  ;;  %v12148_v61 = vld [vmem:[%s16845_s1 + $0xc58] sm:$0xff] }
 0x396   :  { %v7263_v54 = vpop.f32.mrf.mxu2  ;;  %v15585_v16 = vpop.f32.mrf.mxu0  ;;  %7620 = vmatpush.bf16.msra.mxu1 %v12150_v60 }
 0x397   :  { %v15583_v53 = vadd.f32 %v7263_v54, %v7230_v2  ;;  %v7231_v12 = vpop.f32.mrf.mxu1  ;;  %v15588_v52 = vadd.f32 %v15499_v24, %v7172_v33  ;;  %v11523_v24 = vld [vmem:[%s16846_s0 + $0x2ac] sm:$0xf] }
 0x398   :  { %v7232_v26 = vadd.f32 %v7231_v12, %v15505_v8  ;;  %7556 = vmatpush.bf16.msra.mxu3 %v12130_v37  ;;  %v8597_v59 = vor.u32 %v11523_v24, %v8594_v38  ;;  %v12154_v33 = vld [vmem:[%s16845_s1 + $0xc88] sm:$0xff]  ;;  %v12175_v12 = vld [vmem:[%s16845_s1 + $0xd30] sm:$0xff]  ;;  %v11649_v38 = vld [vmem:[%s16846_s0 + $0x69c] sm:$0xf] }
 0x399   :  { %7658 = vmatpush.bf16.msra.mxu2 %v12154_v33  ;;  %7721 = vmatpush.bf16.msrb.mxu0 %v12175_v12  ;;  %v12146_v24 = vld [vmem:[%s16845_s1 + $0xc48] sm:$0xff] }
 0x39c   :  { %v7173_v46 = vpop.f32.mrf.mxu3  ;;  %7557 = vmatpush.bf16.msra.mxu3 %v12129_v5  ;;  %v11681_v5 = vld [vmem:[%s16846_s0 + $0x798] sm:$0xf0] }
 0x39d   :  { %v7174_v8 = vadd.f32 %v7173_v46, %v15445_v42  ;;  %v12149_v42 = vld [vmem:[%s16845_s1 + $0xc60] sm:$0xff]  ;;  %v8350_v46 = vld [vmem:[%s16846_s0 + $0x1b4] sm:$0xf0]  ;;  %7659 = vmatpush.bf16.msra.mxu2 %v12153_v45 }
 0x39e   :  { %v7265_v58 = vpop.f32.mrf.mxu2  ;;  %v7326_v57 = vpop.f32.mrf.mxu0  ;;  %7621 = vmatpush.bf16.msra.mxu1 %v12149_v42 }
 0x39f   :  { %v15628_v44 = vadd.f32 %v7265_v58, %v7232_v26  ;;  %v7234_v56 = vpop.f32.mrf.mxu1  ;;  %v7208_v21 = vadd.f32 %v15517_v36, %v7174_v8  ;;  %v8608_v8 = vld [vmem:[%s16846_s0 + $0x2b8] sm:$0xf]  ;;  %v11556_v58 = vld [vmem:[%s16846_s0 + $0x3b0] sm:$0xf0] }
 0x3a0   :  { %v7235_v14 = vadd.f32 %v7234_v56, %v15526_v50  ;;  %7686 = vmatpush.bf16.msrb.mxu3 %v12168_v63  ;;  %v8353_v56 = vor.u32 %v11461_v9, %v8350_v46  ;;  %v12184_v9 = vld [vmem:[%s16845_s1 + $0xd78] sm:$0xff]  ;;  %v12190_v63 = vld [vmem:[%s16845_s1 + $0xda8] sm:$0xff] }
 0x3a1   :  { %7437 = vmatmul.bf16.gmra.mxu3 %v9093_v35  ;;  %7476 = vmatmul.bf16.gmra.mxu0 %v9349_v55  ;;  %v9098_v35 = vld [vmem:[%s16846_s0 + $0x794] sm:$0xf0]  ;;  %v9104_v55 = vld [vmem:[%s16846_s0 + $0x6a0] sm:$0xf] }
 0x3a2   :  { %7495 = vmatmul.bf16.gmra.mxu1 %v8597_v59 }
 0x3a3   :  { %7529 = vmatmul.bf16.gmra.mxu2 %v8601_v4  ;;  %7622 = vmatpush.bf16.msra.mxu1 %v12148_v61 }
 0x3a4   :  { %v7287_v7 = vpop.f32.mrf.mxu3 }
 0x3a5   :  { %v7288_v36 = vadd.f32 %v7287_v7, %v15458_v48  ;;  %v9342_v48 = vld [vmem:[%s16846_s0 + $0x984] sm:$0xf0]  ;;  %v9101_v7 = vor.u32 %v11649_v38, %v9098_v35 }
 0x3a6   :  { %v7268_v18 = vpop.f32.mrf.mxu2  ;;  %v15641_v3 = vpop.f32.mrf.mxu0  ;;  %v9345_v62 = vor.u32 %v11711_v29, %v9342_v48  ;;  %v12170_v35 = vld [vmem:[%s16845_s1 + $0xd08] sm:$0xff] }
 0x3a7   :  { %v15639_v50 = vadd.f32 %v7268_v18, %v7235_v14  ;;  %v7236_v17 = vpop.f32.mrf.mxu1  ;;  %v15647_v0 = vadd.f32 %v15564_v41, %v7288_v36  ;;  %v12145_v14 = vld [vmem:[%s16845_s1 + $0xc40] sm:$0xff]  ;;  %v9105_v18 = vor.u32 %v11681_v5, %v9104_v55  ;;  %v11587_v55 = vld [vmem:[%s16846_s0 + $0x4ac] sm:$0xf]  ;;  %v8854_v5 = vld [vmem:[%s16846_s0 + $0x5a4] sm:$0xf0] }
 0x3a8   :  { %v7237_v25 = vadd.f32 %v7236_v17, %v15567_v39  ;;  %v8357_v39 = vor.u32 %v11493_v23, %v8356_v20  ;;  %v12167_v20 = vld [vmem:[%s16845_s1 + $0xcf0] sm:$0xff] }
 0x3a9   :  { %7687 = vmatpush.bf16.msrb.mxu3 %v12167_v20 }
 0x3ac   :  { %v7289_v41 = vpop.f32.mrf.mxu3 }
 0x3ad   :  { %v7290_v10 = vadd.f32 %v7289_v41, %v15497_v28  ;;  %v11524_v41 = vld [vmem:[%s16846_s0 + $0x2b4] sm:$0xf] }
 0x3ae   :  { %v7270_v40 = vpop.f32.mrf.mxu2  ;;  %v15677_v34 = vpop.f32.mrf.mxu0 }
 0x3af   :  { %v15675_v2 = vadd.f32 %v7270_v40, %v7237_v25  ;;  %v7239_v54 = vpop.f32.mrf.mxu1  ;;  %v15686_v31 = vadd.f32 %v15585_v16, %v7290_v10  ;;  %v12147_v16 = vld [vmem:[%s16845_s1 + $0xc50] sm:$0xff]  ;;  %v12173_v25 = vld [vmem:[%s16845_s1 + $0xd20] sm:$0xff] }
 0x3b0   :  { %v7240_v28 = vadd.f32 %v7239_v54, %v15588_v52  ;;  %7623 = vmatpush.bf16.msra.mxu1 %v12147_v16  ;;  %v8602_v40 = vld [vmem:[%s16846_s0 + $0x3ac] sm:$0xf0] }
 0x3b1   :  { %7442 = vmatmul.bf16.gmra.mxu3 %v9345_v62  ;;  %7592 = vmatmul.bf16.vlgmr.msra.gmra.mxu0 %v8357_v39  ;;  %v8860_v10 = vld [vmem:[%s16846_s0 + $0x4b0] sm:$0xf]  ;;  %v11619_v62 = vld [vmem:[%s16846_s0 + $0x5a8] sm:$0xf0]  ;;  %v8605_v54 = vor.u32 %v11524_v41, %v8602_v40 }
 0x3b2   :  { %7500 = vmatmul.bf16.gmra.mxu1 %v8849_v32  ;;  %v9350_v39 = vld [vmem:[%s16846_s0 + $0x98c] sm:$0xf0]  ;;  %v11744_v32 = vld [vmem:[%s16846_s0 + $0x990] sm:$0xf0] }
 0x3b3   :  { %7534 = vmatmul.bf16.gmra.mxu2 %v8853_v11  ;;  %v12163_v41 = vld [vmem:[%s16845_s1 + $0xcd0] sm:$0xff] }
 0x3b4   :  { %v7292_v26 = vpop.f32.mrf.mxu3  ;;  %7624 = vmatpush.bf16.msra.mxu1 %v12146_v24 }
 0x3b5   :  { %v7293_v47 = vadd.f32 %v7292_v26, %v15515_v51  ;;  %v12174_v51 = vld [vmem:[%s16845_s1 + $0xd28] sm:$0xff]  ;;  %v9353_v26 = vor.u32 %v11712_v27, %v9350_v39 }
 0x3b6   :  { %v7273_v60 = vpop.f32.mrf.mxu2  ;;  %v15698_v37 = vpop.f32.mrf.mxu0  ;;  %7722 = vmatpush.bf16.msrb.mxu0 %v12174_v51 }
 0x3b7   :  { %v15696_v52 = vadd.f32 %v7273_v60, %v7240_v28  ;;  %v7241_v13 = vpop.f32.mrf.mxu1  ;;  %v15700_v22 = vadd.f32 %v7326_v57, %v7293_v47  ;;  %v12172_v47 = vld [vmem:[%s16845_s1 + $0xd18] sm:$0xff] }
 0x3b8   :  { %v7242_v15 = vadd.f32 %v7241_v13, %v7208_v21  ;;  %v8609_v21 = vor.u32 %v11556_v58, %v8608_v8  ;;  %7625 = vmatpush.bf16.msra.mxu1 %v12145_v14  ;;  %v12165_v58 = vld [vmem:[%s16845_s1 + $0xce0] sm:$0xff] }
 0x3b9   :  { %v11494_v14 = vld [vmem:[%s16846_s0 + $0x1c0] sm:$0xf0] }
 0x3ba   :  { %7723 = vmatpush.bf16.msrb.mxu0 %v12173_v25 }
 0x3bc   :  { %v7294_v57 = vpop.f32.mrf.mxu3  ;;  %7754 = vmatpush.bf16.msrb.mxu1 %v12184_v9 }
 0x3bd   :  { %v7295_v4 = vadd.f32 %v7294_v57, %v15562_v1  ;;  %v12192_v1 = vld [vmem:[%s16845_s1 + $0xdb8] sm:$0xff]  ;;  %v9112_v57 = vld [vmem:[%s16846_s0 + $0x6a8] sm:$0xf] }
 0x3be   :  { %v7275_v59 = vpop.f32.mrf.mxu2  ;;  %v15744_v6 = vpop.f32.mrf.mxu0  ;;  %7788 = vmatpush.bf16.msrb.mxu2 %v12192_v1  ;;  %7724 = vmatpush.bf16.msrb.mxu0 %v12172_v47  ;;  %v11557_v47 = vld [vmem:[%s16846_s0 + $0x3b8] sm:$0xf0] }
 0x3bf   :  { %v15742_v42 = vadd.f32 %v7275_v59, %v7242_v15  ;;  %v7355_v36 = vpop.f32.mrf.mxu1  ;;  %v7329_v30 = vadd.f32 %v15641_v3, %v7295_v4  ;;  %v11682_v59 = vld [vmem:[%s16846_s0 + $0x7a0] sm:$0xf0] }
 0x3c0   :  { %v7356_v17 = vadd.f32 %v7355_v36, %v15647_v0  ;;  %v11462_v4 = vld [vmem:[%s16846_s0 + $0xc4] sm:$0xf]  ;;  %v8857_v36 = vor.u32 %v11587_v55, %v8854_v5 }
 0x3c1   :  { %7558 = vmatmul.bf16.vlgmr.msra.gmra.mxu3 %v8353_v56  ;;  %7597 = vmatmul.bf16.gmra.mxu0 %v8609_v21  ;;  %v8358_v56 = vld [vmem:[%s16846_s0 + $0x1bc] sm:$0xf0]  ;;  %v8364_v21 = vld [vmem:[%s16846_s0 + $0xc8] sm:$0xf] }
 0x3c2   :  { %7505 = vmatmul.bf16.gmra.mxu1 %v9101_v7 }
 0x3c3   :  { %7539 = vmatmul.bf16.gmra.mxu2 %v9105_v18 }
 0x3c4   :  { %v7297_v29 = vpop.f32.mrf.mxu3 }
 0x3c5   :  { %v7298_v3 = vadd.f32 %v7297_v29, %v15583_v53  ;;  %v12191_v53 = vld [vmem:[%s16845_s1 + $0xdb0] sm:$0xff]  ;;  %v8361_v29 = vor.u32 %v11462_v4, %v8358_v56 }
 0x3c6   :  { %v7389_v48 = vpop.f32.mrf.mxu2  ;;  %v15757_v0 = vpop.f32.mrf.mxu0  ;;  %7789 = vmatpush.bf16.msrb.mxu2 %v12191_v53 }
 0x3c7   :  { %v15755_v19 = vadd.f32 %v7389_v48, %v7356_v17  ;;  %v7357_v23 = vpop.f32.mrf.mxu1  ;;  %v15763_v49 = vadd.f32 %v15677_v34, %v7298_v3  ;;  %v9356_v34 = vld [vmem:[%s16846_s0 + $0x898] sm:$0xf]  ;;  %v12169_v17 = vld [vmem:[%s16845_s1 + $0xd00] sm:$0xff]  ;;  %v8365_v3 = vor.u32 %v11494_v14, %v8364_v21  ;;  %v11713_v14 = vld [vmem:[%s16846_s0 + $0x89c] sm:$0xf] }
 0x3c8   :  { %v7358_v43 = vadd.f32 %v7357_v23, %v15686_v31  ;;  %v8861_v31 = vor.u32 %v11619_v62, %v8860_v10  ;;  %v9357_v60 = vor.u32 %v11744_v32, %v9356_v34  ;;  %v12183_v23 = vld [vmem:[%s16845_s1 + $0xd70] sm:$0xff]  ;;  %v12188_v32 = vld [vmem:[%s16845_s1 + $0xd98] sm:$0xff] }
 0x3c9   :  { %7755 = vmatpush.bf16.msrb.mxu1 %v12183_v23 }
 0x3ca   :  { %7790 = vmatpush.bf16.msrb.mxu2 %v12190_v63 }
 0x3cc   :  { %v7299_v11 = vpop.f32.mrf.mxu3 }
 0x3cd   :  { %v7300_v61 = vadd.f32 %v7299_v11, %v15628_v44  ;;  %v12166_v44 = vld [vmem:[%s16845_s1 + $0xce8] sm:$0xff] }
 0x3ce   :  { %v7391_v33 = vpop.f32.mrf.mxu2  ;;  %v15796_v12 = vpop.f32.mrf.mxu0  ;;  %7688 = vmatpush.bf16.msrb.mxu3 %v12166_v44  ;;  %v12162_v11 = vld [vmem:[%s16845_s1 + $0xcc8] sm:$0xff] }
 0x3cf   :  { %v15794_v28 = vadd.f32 %v7391_v33, %v7358_v43  ;;  %v7360_v16 = vpop.f32.mrf.mxu1  ;;  %v15802_v13 = vadd.f32 %v15698_v37, %v7300_v61  ;;  %v12171_v37 = vld [vmem:[%s16845_s1 + $0xd10] sm:$0xff]  ;;  %v12189_v43 = vld [vmem:[%s16845_s1 + $0xda0] sm:$0xff] }
 0x3d0   :  { %v7361_v15 = vadd.f32 %v7360_v16, %v15700_v22  ;;  %7725 = vmatpush.bf16.msrb.mxu0 %v12171_v37  ;;  %7791 = vmatpush.bf16.msrb.mxu2 %v12189_v43  ;;  %v11650_v61 = vld [vmem:[%s16846_s0 + $0x6a4] sm:$0xf]  ;;  %v9106_v33 = vld [vmem:[%s16846_s0 + $0x79c] sm:$0xf0] }
 0x3d1   :  { %7563 = vmatmul.bf16.gmra.mxu3 %v8605_v54  ;;  %7602 = vmatmul.bf16.gmra.mxu0 %v8861_v31  ;;  %v9364_v54 = vld [vmem:[%s16846_s0 + $0x8a0] sm:$0xf]  ;;  %v11745_v31 = vld [vmem:[%s16846_s0 + $0x998] sm:$0xf0]  ;;  %v9109_v44 = vor.u32 %v11650_v61, %v9106_v33 }
 0x3d2   :  { %7510 = vmatmul.bf16.gmra.mxu1 %v9353_v26  ;;  %7689 = vmatpush.bf16.msrb.mxu3 %v12165_v58  ;;  %v8610_v26 = vld [vmem:[%s16846_s0 + $0x3b4] sm:$0xf0] }
 0x3d3   :  { %7544 = vmatmul.bf16.gmra.mxu2 %v9357_v60  ;;  %v8616_v60 = vld [vmem:[%s16846_s0 + $0x2c0] sm:$0xf] }
 0x3d4   :  { %v7302_v45 = vpop.f32.mrf.mxu3  ;;  %7726 = vmatpush.bf16.msrb.mxu0 %v12170_v35  ;;  %7792 = vmatpush.bf16.msrb.mxu2 %v12188_v32  ;;  %v8617_v63 = vor.u32 %v11557_v47, %v8616_v60  ;;  %v12187_v35 = vld [vmem:[%s16845_s1 + $0xd90] sm:$0xff]  ;;  %v11463_v60 = vld [vmem:[%s16846_s0 + $0xcc] sm:$0xf]  ;;  %v12200_v47 = vld [vmem:[%s16845_s1 + $0xdf8] sm:$0xff] }
 0x3d5   :  { %v7303_v51 = vadd.f32 %v7302_v45, %v15639_v50  ;;  %v9365_v45 = vor.u32 %v11745_v31, %v9364_v54  ;;  %v12185_v31 = vld [vmem:[%s16845_s1 + $0xd80] sm:$0xff] }
 0x3d6   :  { %v7394_v24 = vpop.f32.mrf.mxu2  ;;  %v15814_v22 = vpop.f32.mrf.mxu0 }
 0x3d7   :  { %v15812_v38 = vadd.f32 %v7394_v24, %v7361_v15  ;;  %v7362_v46 = vpop.f32.mrf.mxu1  ;;  %v15823_v50 = vadd.f32 %v15744_v6, %v7303_v51  ;;  %v12161_v51 = vld [vmem:[%s16845_s1 + $0xcc0] sm:$0xff] }
 0x3d8   :  { %v7363_v8 = vadd.f32 %v7362_v46, %v7329_v30  ;;  %v9113_v30 = vor.u32 %v11682_v59, %v9112_v57  ;;  %7727 = vmatpush.bf16.msrb.mxu0 %v12169_v17  ;;  %7793 = vmatpush.bf16.msrb.mxu2 %v12187_v35  ;;  %v12208_v59 = vld [vmem:[%s16845_s1 + $0xe38] sm:$0xff]  ;;  %v11620_v17 = vld [vmem:[%s16846_s0 + $0x5b0] sm:$0xf0] }
 0x3dc   :  { %v7304_v6 = vpop.f32.mrf.mxu3  ;;  %7856 = vmatpush.bf16.msra.mxu0 %v12208_v59 }
 0x3dd   :  { %v7305_v7 = vadd.f32 %v7304_v6, %v15675_v2  ;;  %v11588_v6 = vld [vmem:[%s16846_s0 + $0x4b4] sm:$0xf] }
 0x3de   :  { %v7396_v18 = vpop.f32.mrf.mxu2  ;;  %v15861_v25 = vpop.f32.mrf.mxu0 }
 0x3df   :  { %v15859_v1 = vadd.f32 %v7396_v18, %v7363_v8  ;;  %v7365_v48 = vpop.f32.mrf.mxu1  ;;  %v15864_v20 = vadd.f32 %v15757_v0, %v7305_v7  ;;  %v12164_v0 = vld [vmem:[%s16845_s1 + $0xcd8] sm:$0xff]  ;;  %v8372_v7 = vld [vmem:[%s16846_s0 + $0xd0] sm:$0xf]  ;;  %v11495_v18 = vld [vmem:[%s16846_s0 + $0x1c8] sm:$0xf0] }
 0x3e0   :  { %v7366_v2 = vadd.f32 %v7365_v48, %v15763_v49  ;;  %7690 = vmatpush.bf16.msrb.mxu3 %v12164_v0 }
 0x3e1   :  { %7568 = vmatmul.bf16.gmra.mxu3 %v8857_v36  ;;  %7607 = vmatmul.bf16.gmra.mxu0 %v9113_v30  ;;  %v8862_v36 = vld [vmem:[%s16846_s0 + $0x5ac] sm:$0xf0]  ;;  %v8868_v30 = vld [vmem:[%s16846_s0 + $0x4b8] sm:$0xf] }
 0x3e2   :  { %7626 = vmatmul.bf16.vlgmr.msra.gmra.mxu1 %v8361_v29  ;;  %v8865_v43 = vor.u32 %v11588_v6, %v8862_v36  ;;  %v8869_v0 = vor.u32 %v11620_v17, %v8868_v30  ;;  %v11714_v17 = vld [vmem:[%s16846_s0 + $0x8a4] sm:$0xf] }
 0x3e3   :  { %7660 = vmatmul.bf16.vlgmr.msra.gmra.mxu2 %v8365_v3 }
 0x3e4   :  { %v7307_v53 = vpop.f32.mrf.mxu3  ;;  %7691 = vmatpush.bf16.msrb.mxu3 %v12163_v41 }
 0x3e5   :  { %v7308_v49 = vadd.f32 %v7307_v53, %v15696_v52  ;;  %v12182_v52 = vld [vmem:[%s16845_s1 + $0xd68] sm:$0xff]  ;;  %v12180_v53 = vld [vmem:[%s16845_s1 + $0xd58] sm:$0xff] }
 0x3e6   :  { %v7399_v27 = vpop.f32.mrf.mxu2  ;;  %v15882_v10 = vpop.f32.mrf.mxu0  ;;  %7756 = vmatpush.bf16.msrb.mxu1 %v12182_v52 }
 0x3e7   :  { %v15880_v40 = vadd.f32 %v7399_v27, %v7366_v2  ;;  %v7367_v62 = vpop.f32.mrf.mxu1  ;;  %v15885_v39 = vadd.f32 %v15796_v12, %v7308_v49  ;;  %v11525_v12 = vld [vmem:[%s16846_s0 + $0x2bc] sm:$0xf]  ;;  %v12186_v49 = vld [vmem:[%s16845_s1 + $0xd88] sm:$0xff] }
 0x3e8   :  { %v7368_v34 = vadd.f32 %v7367_v62, %v15802_v13  ;;  %7692 = vmatpush.bf16.msrb.mxu3 %v12162_v11  ;;  %v8613_v9 = vor.u32 %v11525_v12, %v8610_v26  ;;  %7794 = vmatpush.bf16.msrb.mxu2 %v12186_v49  ;;  %v12207_v62 = vld [vmem:[%s16845_s1 + $0xe30] sm:$0xff]  ;;  %v12178_v12 = vld [vmem:[%s16845_s1 + $0xd48] sm:$0xff] }
 0x3e9   :  { %7857 = vmatpush.bf16.msra.mxu0 %v12207_v62  ;;  %v11651_v26 = vld [vmem:[%s16846_s0 + $0x6ac] sm:$0xf] }
 0x3ec   :  { %v7309_v16 = vpop.f32.mrf.mxu3  ;;  %7693 = vmatpush.bf16.msrb.mxu3 %v12161_v51  ;;  %7795 = vmatpush.bf16.msrb.mxu2 %v12185_v31  ;;  %v11683_v51 = vld [vmem:[%s16846_s0 + $0x7a8] sm:$0xf0] }
 0x3ed   :  { %v7310_v13 = vadd.f32 %v7309_v16, %v15742_v42  ;;  %v12181_v42 = vld [vmem:[%s16845_s1 + $0xd60] sm:$0xff]  ;;  %v8366_v16 = vld [vmem:[%s16846_s0 + $0x1c4] sm:$0xf0] }
 0x3ee   :  { %v7401_v15 = vpop.f32.mrf.mxu2  ;;  %v7462_v37 = vpop.f32.mrf.mxu0  ;;  %7757 = vmatpush.bf16.msrb.mxu1 %v12181_v42 }
 0x3ef   :  { %v15925_v24 = vadd.f32 %v7401_v15, %v7368_v34  ;;  %v7370_v46 = vpop.f32.mrf.mxu1  ;;  %v7344_v8 = vadd.f32 %v15814_v22, %v7310_v13  ;;  %v8624_v13 = vld [vmem:[%s16846_s0 + $0x2c8] sm:$0xf]  ;;  %v11558_v15 = vld [vmem:[%s16846_s0 + $0x3c0] sm:$0xf0] }
 0x3f0   :  { %v7371_v58 = vadd.f32 %v7370_v46, %v15823_v50  ;;  %7822 = vmatpush.bf16.msra.mxu3 %v12200_v47  ;;  %v8369_v46 = vor.u32 %v11463_v60, %v8366_v16  ;;  %v12216_v60 = vld [vmem:[%s16845_s1 + $0xe78] sm:$0xff]  ;;  %v12222_v47 = vld [vmem:[%s16845_s1 + $0xea8] sm:$0xff] }
 0x3f1   :  { %7573 = vmatmul.bf16.gmra.mxu3 %v9109_v44  ;;  %7612 = vmatmul.bf16.gmra.mxu0 %v9365_v45  ;;  %v9114_v44 = vld [vmem:[%s16846_s0 + $0x7a4] sm:$0xf0]  ;;  %v9120_v45 = vld [vmem:[%s16846_s0 + $0x6b0] sm:$0xf] }
 0x3f2   :  { %7631 = vmatmul.bf16.gmra.mxu1 %v8613_v9 }
 0x3f3   :  { %7665 = vmatmul.bf16.gmra.mxu2 %v8617_v63  ;;  %7758 = vmatpush.bf16.msrb.mxu1 %v12180_v53 }
 0x3f4   :  { %v7423_v55 = vpop.f32.mrf.mxu3 }
 0x3f5   :  { %v7424_v22 = vadd.f32 %v7423_v55, %v15755_v19  ;;  %v9358_v19 = vld [vmem:[%s16846_s0 + $0x994] sm:$0xf0]  ;;  %v9117_v55 = vor.u32 %v11651_v26, %v9114_v44  ;;  %v12202_v44 = vld [vmem:[%s16845_s1 + $0xe08] sm:$0xff] }
 0x3f6   :  { %v7404_v5 = vpop.f32.mrf.mxu2  ;;  %v15938_v57 = vpop.f32.mrf.mxu0  ;;  %v9361_v48 = vor.u32 %v11713_v14, %v9358_v19 }
 0x3f7   :  { %v15936_v50 = vadd.f32 %v7404_v5, %v7371_v58  ;;  %v7372_v4 = vpop.f32.mrf.mxu1  ;;  %v15944_v56 = vadd.f32 %v15861_v25, %v7424_v22  ;;  %v12177_v58 = vld [vmem:[%s16845_s1 + $0xd40] sm:$0xff]  ;;  %v9121_v5 = vor.u32 %v11683_v51, %v9120_v45  ;;  %v11589_v45 = vld [vmem:[%s16846_s0 + $0x4bc] sm:$0xf]  ;;  %v8870_v51 = vld [vmem:[%s16846_s0 + $0x5b4] sm:$0xf0] }
 0x3f8   :  { %v7373_v21 = vadd.f32 %v7372_v4, %v15864_v20  ;;  %v8373_v20 = vor.u32 %v11495_v18, %v8372_v7  ;;  %v12199_v7 = vld [vmem:[%s16845_s1 + $0xdf0] sm:$0xff] }
 0x3f9   :  { %7823 = vmatpush.bf16.msra.mxu3 %v12199_v7 }
 0x3fc   :  { %v7425_v25 = vpop.f32.mrf.mxu3 }
 0x3fd   :  { %v7426_v3 = vadd.f32 %v7425_v25, %v15794_v28  ;;  %v11526_v25 = vld [vmem:[%s16846_s0 + $0x2c4] sm:$0xf] }
 0x3fe   :  { %v7406_v29 = vpop.f32.mrf.mxu2  ;;  %v15974_v23 = vpop.f32.mrf.mxu0 }
 0x3ff   :  { %v15972_v2 = vadd.f32 %v7406_v29, %v7373_v21  ;;  %v7375_v27 = vpop.f32.mrf.mxu1  ;;  %v15983_v41 = vadd.f32 %v15882_v10, %v7426_v3  ;;  %v12179_v10 = vld [vmem:[%s16845_s1 + $0xd50] sm:$0xff]  ;;  %v12205_v21 = vld [vmem:[%s16845_s1 + $0xe20] sm:$0xff] }
 0x400   :  { %v7376_v28 = vadd.f32 %v7375_v27, %v15885_v39  ;;  %7759 = vmatpush.bf16.msrb.mxu1 %v12179_v10  ;;  %v8618_v29 = vld [vmem:[%s16846_s0 + $0x3bc] sm:$0xf0] }
 0x401   :  { %7578 = vmatmul.bf16.gmra.mxu3 %v9361_v48  ;;  %7728 = vmatmul.bf16.vlgmr.msrb.gmra.mxu0 %v8373_v20  ;;  %v8876_v3 = vld [vmem:[%s16846_s0 + $0x4c0] sm:$0xf]  ;;  %v11621_v48 = vld [vmem:[%s16846_s0 + $0x5b8] sm:$0xf0]  ;;  %v8621_v27 = vor.u32 %v11526_v25, %v8618_v29  ;;  %v12195_v25 = vld [vmem:[%s16845_s1 + $0xdd0] sm:$0xff] }
 0x402   :  { %7636 = vmatmul.bf16.gmra.mxu1 %v8865_v43  ;;  %v9366_v20 = vld [vmem:[%s16846_s0 + $0x99c] sm:$0xf0]  ;;  %v11746_v43 = vld [vmem:[%s16846_s0 + $0x9a0] sm:$0xf0] }
 0x403   :  { %7670 = vmatmul.bf16.gmra.mxu2 %v8869_v0 }
 0x404   :  { %v7428_v34 = vpop.f32.mrf.mxu3  ;;  %7760 = vmatpush.bf16.msrb.mxu1 %v12178_v12 }
 0x405   :  { %v7429_v32 = vadd.f32 %v7428_v34, %v15812_v38  ;;  %v12206_v38 = vld [vmem:[%s16845_s1 + $0xe28] sm:$0xff]  ;;  %v9369_v34 = vor.u32 %v11714_v17, %v9366_v20 }
 0x406   :  { %v7409_v52 = vpop.f32.mrf.mxu2  ;;  %v15995_v11 = vpop.f32.mrf.mxu0  ;;  %7858 = vmatpush.bf16.msra.mxu0 %v12206_v38 }
 0x407   :  { %v15993_v39 = vadd.f32 %v7409_v52, %v7376_v28  ;;  %v7377_v61 = vpop.f32.mrf.mxu1  ;;  %v15997_v33 = vadd.f32 %v7462_v37, %v7429_v32  ;;  %v12204_v32 = vld [vmem:[%s16845_s1 + $0xe18] sm:$0xff] }
 0x408   :  { %v7378_v54 = vadd.f32 %v7377_v61, %v7344_v8  ;;  %v8625_v8 = vor.u32 %v11558_v15, %v8624_v13  ;;  %7761 = vmatpush.bf16.msrb.mxu1 %v12177_v58  ;;  %v12197_v15 = vld [vmem:[%s16845_s1 + $0xde0] sm:$0xff]  ;;  %v11496_v58 = vld [vmem:[%s16846_s0 + $0x1d0] sm:$0xf0] }
 0x40a   :  { %7859 = vmatpush.bf16.msra.mxu0 %v12205_v21 }
 0x40c   :  { %v7430_v37 = vpop.f32.mrf.mxu3  ;;  %7890 = vmatpush.bf16.msra.mxu1 %v12216_v60 }
 0x40d   :  { %v7431_v63 = vadd.f32 %v7430_v37, %v15859_v1  ;;  %v12224_v1 = vld [vmem:[%s16845_s1 + $0xeb8] sm:$0xff] }
 0x40e   :  { %v7411_v9 = vpop.f32.mrf.mxu2  ;;  %v16041_v35 = vpop.f32.mrf.mxu0  ;;  %7924 = vmatpush.bf16.msra.mxu2 %v12224_v1  ;;  %7860 = vmatpush.bf16.msra.mxu0 %v12204_v32  ;;  %v9128_v37 = vld [vmem:[%s16846_s0 + $0x6b8] sm:$0xf]  ;;  %v11559_v32 = vld [vmem:[%s16846_s0 + $0x3c8] sm:$0xf0] }
 0x40f   :  { %v16039_v42 = vadd.f32 %v7411_v9, %v7378_v54  ;;  %v7491_v22 = vpop.f32.mrf.mxu1  ;;  %v7465_v59 = vadd.f32 %v15938_v57, %v7431_v63  ;;  %v11684_v9 = vld [vmem:[%s16846_s0 + $0x7b0] sm:$0xf0] }
 0x410   :  { %v7492_v4 = vadd.f32 %v7491_v22, %v15944_v56  ;;  %v11464_v63 = vld [vmem:[%s16846_s0 + $0xd4] sm:$0xf]  ;;  %v8873_v22 = vor.u32 %v11589_v45, %v8870_v51 }
 0x411   :  { %7694 = vmatmul.bf16.vlgmr.msrb.gmra.mxu3 %v8369_v46  ;;  %7733 = vmatmul.bf16.gmra.mxu0 %v8625_v8  ;;  %v8374_v46 = vld [vmem:[%s16846_s0 + $0x1cc] sm:$0xf0]  ;;  %v8380_v8 = vld [vmem:[%s16846_s0 + $0xd8] sm:$0xf] }
 0x412   :  { %7641 = vmatmul.bf16.gmra.mxu1 %v9117_v55 }
 0x413   :  { %7675 = vmatmul.bf16.gmra.mxu2 %v9121_v5 }
 0x414   :  { %v7433_v14 = vpop.f32.mrf.mxu3 }
 0x415   :  { %v7434_v57 = vadd.f32 %v7433_v14, %v15880_v40  ;;  %v12223_v40 = vld [vmem:[%s16845_s1 + $0xeb0] sm:$0xff]  ;;  %v8377_v14 = vor.u32 %v11464_v63, %v8374_v46 }
 0x416   :  { %v7525_v19 = vpop.f32.mrf.mxu2  ;;  %v16054_v56 = vpop.f32.mrf.mxu0  ;;  %7925 = vmatpush.bf16.msra.mxu2 %v12223_v40 }
 0x417   :  { %v16052_v6 = vadd.f32 %v7525_v19, %v7492_v4  ;;  %v7493_v18 = vpop.f32.mrf.mxu1  ;;  %v16060_v36 = vadd.f32 %v15974_v23, %v7434_v57  ;;  %v9372_v23 = vld [vmem:[%s16846_s0 + $0x8a8] sm:$0xf]  ;;  %v12201_v4 = vld [vmem:[%s16845_s1 + $0xe00] sm:$0xff]  ;;  %v8381_v57 = vor.u32 %v11496_v58, %v8380_v8  ;;  %v11715_v58 = vld [vmem:[%s16846_s0 + $0x8ac] sm:$0xf] }
 0x418   :  { %v7494_v30 = vadd.f32 %v7493_v18, %v15983_v41  ;;  %v8877_v41 = vor.u32 %v11621_v48, %v8876_v3  ;;  %v9373_v52 = vor.u32 %v11746_v43, %v9372_v23  ;;  %v12215_v18 = vld [vmem:[%s16845_s1 + $0xe70] sm:$0xff]  ;;  %v12220_v43 = vld [vmem:[%s16845_s1 + $0xe98] sm:$0xff] }
 0x419   :  { %7891 = vmatpush.bf16.msra.mxu1 %v12215_v18 }
 0x41a   :  { %7926 = vmatpush.bf16.msra.mxu2 %v12222_v47 }
 0x41c   :  { %v7435_v0 = vpop.f32.mrf.mxu3 }
 0x41d   :  { %v7436_v53 = vadd.f32 %v7435_v0, %v15925_v24  ;;  %v12198_v24 = vld [vmem:[%s16845_s1 + $0xde8] sm:$0xff] }
 0x41e   :  { %v7527_v49 = vpop.f32.mrf.mxu2  ;;  %v16093_v62 = vpop.f32.mrf.mxu0  ;;  %7824 = vmatpush.bf16.msra.mxu3 %v12198_v24  ;;  %v12194_v0 = vld [vmem:[%s16845_s1 + $0xdc8] sm:$0xff] }
 0x41f   :  { %v16091_v28 = vadd.f32 %v7527_v49, %v7494_v30  ;;  %v7496_v10 = vpop.f32.mrf.mxu1  ;;  %v16099_v61 = vadd.f32 %v15995_v11, %v7436_v53  ;;  %v12203_v11 = vld [vmem:[%s16845_s1 + $0xe10] sm:$0xff]  ;;  %v12221_v30 = vld [vmem:[%s16845_s1 + $0xea0] sm:$0xff] }
 0x420   :  { %v7497_v54 = vadd.f32 %v7496_v10, %v15997_v33  ;;  %7861 = vmatpush.bf16.msra.mxu0 %v12203_v11  ;;  %7927 = vmatpush.bf16.msra.mxu2 %v12221_v30  ;;  %v11652_v53 = vld [vmem:[%s16846_s0 + $0x6b4] sm:$0xf]  ;;  %v9122_v49 = vld [vmem:[%s16846_s0 + $0x7ac] sm:$0xf0] }
 0x421   :  { %7699 = vmatmul.bf16.gmra.mxu3 %v8621_v27  ;;  %7738 = vmatmul.bf16.gmra.mxu0 %v8877_v41  ;;  %v9380_v27 = vld [vmem:[%s16846_s0 + $0x8b0] sm:$0xf]  ;;  %v11747_v41 = vld [vmem:[%s16846_s0 + $0x9a8] sm:$0xf0]  ;;  %v9125_v24 = vor.u32 %v11652_v53, %v9122_v49 }
 0x422   :  { %7646 = vmatmul.bf16.gmra.mxu1 %v9369_v34  ;;  %7825 = vmatpush.bf16.msra.mxu3 %v12197_v15  ;;  %v8626_v34 = vld [vmem:[%s16846_s0 + $0x3c4] sm:$0xf0] }
 0x423   :  { %7680 = vmatmul.bf16.gmra.mxu2 %v9373_v52  ;;  %v8632_v52 = vld [vmem:[%s16846_s0 + $0x2d0] sm:$0xf] }
 0x424   :  { %v7438_v31 = vpop.f32.mrf.mxu3  ;;  %7862 = vmatpush.bf16.msra.mxu0 %v12202_v44  ;;  %7928 = vmatpush.bf16.msra.mxu2 %v12220_v43  ;;  %v8633_v47 = vor.u32 %v11559_v32, %v8632_v52  ;;  %v12219_v44 = vld [vmem:[%s16845_s1 + $0xe90] sm:$0xff]  ;;  %v11465_v52 = vld [vmem:[%s16846_s0 + $0xdc] sm:$0xf] }
 0x425   :  { %v7439_v38 = vadd.f32 %v7438_v31, %v15936_v50  ;;  %v9381_v31 = vor.u32 %v11747_v41, %v9380_v27  ;;  %v12217_v41 = vld [vmem:[%s16845_s1 + $0xe80] sm:$0xff]  ;;  %v12232_v32 = vld [vmem:[%s16845_s1 + $0xef8] sm:$0xff] }
 0x426   :  { %v7530_v12 = vpop.f32.mrf.mxu2  ;;  %v16111_v33 = vpop.f32.mrf.mxu0 }
 0x427   :  { %v16109_v26 = vadd.f32 %v7530_v12, %v7497_v54  ;;  %v7498_v16 = vpop.f32.mrf.mxu1  ;;  %v16120_v50 = vadd.f32 %v16041_v35, %v7439_v38  ;;  %v12193_v38 = vld [vmem:[%s16845_s1 + $0xdc0] sm:$0xff] }
 0x428   :  { %v7499_v13 = vadd.f32 %v7498_v16, %v7465_v59  ;;  %v9129_v59 = vor.u32 %v11684_v9, %v9128_v37  ;;  %7863 = vmatpush.bf16.msra.mxu0 %v12201_v4  ;;  %7929 = vmatpush.bf16.msra.mxu2 %v12219_v44  ;;  %v12240_v9 = vld [vmem:[%s16845_s1 + $0xf38] sm:$0xff]  ;;  %v11622_v4 = vld [vmem:[%s16846_s0 + $0x5c0] sm:$0xf0] }
 0x42c   :  { %v7440_v35 = vpop.f32.mrf.mxu3  ;;  %7992 = vmatpush.bf16.msrb.mxu0 %v12240_v9 }
 0x42d   :  { %v7441_v55 = vadd.f32 %v7440_v35, %v15972_v2  ;;  %v11590_v35 = vld [vmem:[%s16846_s0 + $0x4c4] sm:$0xf] }
 0x42e   :  { %v7532_v5 = vpop.f32.mrf.mxu2  ;;  %v16158_v21 = vpop.f32.mrf.mxu0 }
 0x42f   :  { %v16156_v1 = vadd.f32 %v7532_v5, %v7499_v13  ;;  %v7501_v19 = vpop.f32.mrf.mxu1  ;;  %v16161_v7 = vadd.f32 %v16054_v56, %v7441_v55  ;;  %v12196_v56 = vld [vmem:[%s16845_s1 + $0xdd8] sm:$0xff]  ;;  %v8388_v55 = vld [vmem:[%s16846_s0 + $0xe0] sm:$0xf] }
 0x430   :  { %v7502_v2 = vadd.f32 %v7501_v19, %v16060_v36  ;;  %7826 = vmatpush.bf16.msra.mxu3 %v12196_v56  ;;  %v11497_v5 = vld [vmem:[%s16846_s0 + $0x1d8] sm:$0xf0] }
 0x431   :  { %7704 = vmatmul.bf16.gmra.mxu3 %v8873_v22  ;;  %7743 = vmatmul.bf16.gmra.mxu0 %v9129_v59  ;;  %v8878_v22 = vld [vmem:[%s16846_s0 + $0x5bc] sm:$0xf0]  ;;  %v8884_v59 = vld [vmem:[%s16846_s0 + $0x4c8] sm:$0xf] }
 0x432   :  { %7762 = vmatmul.bf16.vlgmr.msrb.gmra.mxu1 %v8377_v14  ;;  %v8881_v30 = vor.u32 %v11590_v35, %v8878_v22  ;;  %v8885_v56 = vor.u32 %v11622_v4, %v8884_v59  ;;  %v11716_v4 = vld [vmem:[%s16846_s0 + $0x8b4] sm:$0xf] }
 0x433   :  { %7796 = vmatmul.bf16.vlgmr.msrb.gmra.mxu2 %v8381_v57 }
 0x434   :  { %v7443_v40 = vpop.f32.mrf.mxu3  ;;  %7827 = vmatpush.bf16.msra.mxu3 %v12195_v25 }
 0x435   :  { %v7444_v36 = vadd.f32 %v7443_v40, %v15993_v39  ;;  %v12214_v39 = vld [vmem:[%s16845_s1 + $0xe68] sm:$0xff]  ;;  %v12212_v40 = vld [vmem:[%s16845_s1 + $0xe58] sm:$0xff] }
 0x436   :  { %v7535_v17 = vpop.f32.mrf.mxu2  ;;  %v16179_v3 = vpop.f32.mrf.mxu0  ;;  %7892 = vmatpush.bf16.msra.mxu1 %v12214_v39 }
 0x437   :  { %v16177_v29 = vadd.f32 %v7535_v17, %v7502_v2  ;;  %v7503_v48 = vpop.f32.mrf.mxu1  ;;  %v16182_v20 = vadd.f32 %v16093_v62, %v7444_v36  ;;  %v11527_v62 = vld [vmem:[%s16846_s0 + $0x2cc] sm:$0xf] }
 0x438   :  { %v7504_v23 = vadd.f32 %v7503_v48, %v16099_v61  ;;  %7828 = vmatpush.bf16.msra.mxu3 %v12194_v0  ;;  %v8629_v60 = vor.u32 %v11527_v62, %v8626_v34  ;;  %v12218_v36 = vld [vmem:[%s16845_s1 + $0xe88] sm:$0xff]  ;;  %v12239_v48 = vld [vmem:[%s16845_s1 + $0xf30] sm:$0xff]  ;;  %v11653_v34 = vld [vmem:[%s16846_s0 + $0x6bc] sm:$0xf] }
 0x439   :  { %7930 = vmatpush.bf16.msra.mxu2 %v12218_v36  ;;  %7993 = vmatpush.bf16.msrb.mxu0 %v12239_v48  ;;  %v12210_v62 = vld [vmem:[%s16845_s1 + $0xe48] sm:$0xff] }
 0x43c   :  { %v7445_v10 = vpop.f32.mrf.mxu3  ;;  %7829 = vmatpush.bf16.msra.mxu3 %v12193_v38  ;;  %v11685_v38 = vld [vmem:[%s16846_s0 + $0x7b8] sm:$0xf0] }
 0x43d   :  { %v7446_v61 = vadd.f32 %v7445_v10, %v16039_v42  ;;  %v12213_v42 = vld [vmem:[%s16845_s1 + $0xe60] sm:$0xff]  ;;  %v8382_v10 = vld [vmem:[%s16846_s0 + $0x1d4] sm:$0xf0]  ;;  %7931 = vmatpush.bf16.msra.mxu2 %v12217_v41 }
 0x43e   :  { %v7537_v54 = vpop.f32.mrf.mxu2  ;;  %v7598_v11 = vpop.f32.mrf.mxu0  ;;  %7893 = vmatpush.bf16.msra.mxu1 %v12213_v42 }
 0x43f   :  { %v16222_v12 = vadd.f32 %v7537_v54, %v7504_v23  ;;  %v7506_v16 = vpop.f32.mrf.mxu1  ;;  %v7480_v13 = vadd.f32 %v16111_v33, %v7446_v61  ;;  %v8640_v61 = vld [vmem:[%s16846_s0 + $0x2d8] sm:$0xf]  ;;  %v11560_v54 = vld [vmem:[%s16846_s0 + $0x3d0] sm:$0xf0] }
 0x440   :  { %v7507_v15 = vadd.f32 %v7506_v16, %v16120_v50  ;;  %7958 = vmatpush.bf16.msrb.mxu3 %v12232_v32  ;;  %v8385_v16 = vor.u32 %v11465_v52, %v8382_v10  ;;  %v12248_v52 = vld [vmem:[%s16845_s1 + $0xf78] sm:$0xff]  ;;  %v12254_v32 = vld [vmem:[%s16845_s1 + $0xfa8] sm:$0xff] }
 0x441   :  { %7709 = vmatmul.bf16.gmra.mxu3 %v9125_v24  ;;  %7748 = vmatmul.bf16.gmra.mxu0 %v9381_v31  ;;  %v9130_v24 = vld [vmem:[%s16846_s0 + $0x7b4] sm:$0xf0]  ;;  %v9136_v31 = vld [vmem:[%s16846_s0 + $0x6c0] sm:$0xf] }
 0x442   :  { %7767 = vmatmul.bf16.gmra.mxu1 %v8629_v60 }
 0x443   :  { %7801 = vmatmul.bf16.gmra.mxu2 %v8633_v47  ;;  %7894 = vmatpush.bf16.msra.mxu1 %v12212_v40 }
 0x444   :  { %v7559_v45 = vpop.f32.mrf.mxu3 }
 0x445   :  { %v7560_v33 = vadd.f32 %v7559_v45, %v16052_v6  ;;  %v9374_v6 = vld [vmem:[%s16846_s0 + $0x9a4] sm:$0xf0]  ;;  %v9133_v45 = vor.u32 %v11653_v34, %v9130_v24 }
 0x446   :  { %v7540_v51 = vpop.f32.mrf.mxu2  ;;  %v16235_v37 = vpop.f32.mrf.mxu0  ;;  %v9377_v19 = vor.u32 %v11715_v58, %v9374_v6  ;;  %v12234_v24 = vld [vmem:[%s16845_s1 + $0xf08] sm:$0xff] }
 0x447   :  { %v16233_v50 = vadd.f32 %v7540_v51, %v7507_v15  ;;  %v7508_v63 = vpop.f32.mrf.mxu1  ;;  %v16241_v46 = vadd.f32 %v16158_v21, %v7560_v33  ;;  %v12209_v15 = vld [vmem:[%s16845_s1 + $0xe40] sm:$0xff]  ;;  %v9137_v51 = vor.u32 %v11685_v38, %v9136_v31  ;;  %v11591_v31 = vld [vmem:[%s16846_s0 + $0x4cc] sm:$0xf]  ;;  %v8886_v38 = vld [vmem:[%s16846_s0 + $0x5c4] sm:$0xf0] }
 0x448   :  { %v7509_v8 = vadd.f32 %v7508_v63, %v16161_v7  ;;  %v8389_v7 = vor.u32 %v11497_v5, %v8388_v55  ;;  %v12231_v55 = vld [vmem:[%s16845_s1 + $0xef0] sm:$0xff] }
 0x449   :  { %7959 = vmatpush.bf16.msrb.mxu3 %v12231_v55 }
 0x44c   :  { %v7561_v21 = vpop.f32.mrf.mxu3 }
 0x44d   :  { %v7562_v57 = vadd.f32 %v7561_v21, %v16091_v28  ;;  %v11528_v21 = vld [vmem:[%s16846_s0 + $0x2d4] sm:$0xf] }
 0x44e   :  { %v7542_v14 = vpop.f32.mrf.mxu2  ;;  %v16271_v18 = vpop.f32.mrf.mxu0 }
 0x44f   :  { %v16269_v2 = vadd.f32 %v7542_v14, %v7509_v8  ;;  %v7511_v17 = vpop.f32.mrf.mxu1  ;;  %v16280_v25 = vadd.f32 %v16179_v3, %v7562_v57  ;;  %v12211_v3 = vld [vmem:[%s16845_s1 + $0xe50] sm:$0xff]  ;;  %v12237_v8 = vld [vmem:[%s16845_s1 + $0xf20] sm:$0xff] }
 0x450   :  { %v7512_v28 = vadd.f32 %v7511_v17, %v16182_v20  ;;  %7895 = vmatpush.bf16.msra.mxu1 %v12211_v3  ;;  %v8634_v14 = vld [vmem:[%s16846_s0 + $0x3cc] sm:$0xf0] }
 0x451   :  { %7714 = vmatmul.bf16.gmra.mxu3 %v9377_v19  ;;  %7864 = vmatmul.bf16.vlgmr.msra.gmra.mxu0 %v8389_v7  ;;  %v8892_v57 = vld [vmem:[%s16846_s0 + $0x4d0] sm:$0xf]  ;;  %v11623_v19 = vld [vmem:[%s16846_s0 + $0x5c8] sm:$0xf0]  ;;  %v8637_v17 = vor.u32 %v11528_v21, %v8634_v14 }
 0x452   :  { %7772 = vmatmul.bf16.gmra.mxu1 %v8881_v30  ;;  %v9382_v7 = vld [vmem:[%s16846_s0 + $0x9ac] sm:$0xf0]  ;;  %v11748_v30 = vld [vmem:[%s16846_s0 + $0x9b0] sm:$0xf0] }
 0x453   :  { %7806 = vmatmul.bf16.gmra.mxu2 %v8885_v56  ;;  %v12227_v21 = vld [vmem:[%s16845_s1 + $0xed0] sm:$0xff] }
 0x454   :  { %v7564_v23 = vpop.f32.mrf.mxu3  ;;  %7896 = vmatpush.bf16.msra.mxu1 %v12210_v62 }
 0x455   :  { %v7565_v43 = vadd.f32 %v7564_v23, %v16109_v26  ;;  %v12238_v26 = vld [vmem:[%s16845_s1 + $0xf28] sm:$0xff]  ;;  %v9385_v23 = vor.u32 %v11716_v4, %v9382_v7 }
 0x456   :  { %v7545_v39 = vpop.f32.mrf.mxu2  ;;  %v16292_v0 = vpop.f32.mrf.mxu0  ;;  %7994 = vmatpush.bf16.msrb.mxu0 %v12238_v26 }
 0x457   :  { %v16290_v20 = vadd.f32 %v7545_v39, %v7512_v28  ;;  %v7513_v53 = vpop.f32.mrf.mxu1  ;;  %v16294_v49 = vadd.f32 %v7598_v11, %v7565_v43  ;;  %v12236_v43 = vld [vmem:[%s16845_s1 + $0xf18] sm:$0xff] }
 0x458   :  { %v7514_v27 = vadd.f32 %v7513_v53, %v7480_v13  ;;  %v8641_v13 = vor.u32 %v11560_v54, %v8640_v61  ;;  %7897 = vmatpush.bf16.msra.mxu1 %v12209_v15  ;;  %v12229_v54 = vld [vmem:[%s16845_s1 + $0xee0] sm:$0xff] }
 0x459   :  { %v11498_v15 = vld [vmem:[%s16846_s0 + $0x1e0] sm:$0xf0] }
 0x45a   :  { %7995 = vmatpush.bf16.msrb.mxu0 %v12237_v8 }
 0x45c   :  { %v7566_v11 = vpop.f32.mrf.mxu3  ;;  %12265 = vmatpush.bf16.msrb.mxu1 %v12248_v52 }
 0x45d   :  { %v7567_v47 = vadd.f32 %v7566_v11, %v16156_v1  ;;  %v12256_v1 = vld [vmem:[%s16845_s1 + $0xfb8] sm:$0xff]  ;;  %v9144_v11 = vld [vmem:[%s16846_s0 + $0x6c8] sm:$0xf] }
 0x45e   :  { %v7547_v60 = vpop.f32.mrf.mxu2  ;;  %v16338_v44 = vpop.f32.mrf.mxu0  ;;  %8060 = vmatpush.bf16.msrb.mxu2 %v12256_v1  ;;  %7996 = vmatpush.bf16.msrb.mxu0 %v12236_v43  ;;  %v11561_v43 = vld [vmem:[%s16846_s0 + $0x3d8] sm:$0xf0] }
 0x45f   :  { %v16336_v42 = vadd.f32 %v7547_v60, %v7514_v27  ;;  %v7627_v33 = vpop.f32.mrf.mxu1  ;;  %v7601_v9 = vadd.f32 %v16235_v37, %v7567_v47  ;;  %v11686_v60 = vld [vmem:[%s16846_s0 + $0x7c0] sm:$0xf0] }
 0x460   :  { %v7628_v63 = vadd.f32 %v7627_v33, %v16241_v46  ;;  %v11466_v47 = vld [vmem:[%s16846_s0 + $0xe4] sm:$0xf]  ;;  %v8889_v33 = vor.u32 %v11591_v31, %v8886_v38 }
 0x461   :  { %7830 = vmatmul.bf16.vlgmr.msra.gmra.mxu3 %v8385_v16  ;;  %7869 = vmatmul.bf16.gmra.mxu0 %v8641_v13  ;;  %v8390_v16 = vld [vmem:[%s16846_s0 + $0x1dc] sm:$0xf0]  ;;  %v8396_v13 = vld [vmem:[%s16846_s0 + $0xe8] sm:$0xf] }
 0x462   :  { %7777 = vmatmul.bf16.gmra.mxu1 %v9133_v45 }
 0x463   :  { %7811 = vmatmul.bf16.gmra.mxu2 %v9137_v51 }
 0x464   :  { %v7569_v58 = vpop.f32.mrf.mxu3 }
 0x465   :  { %v7570_v37 = vadd.f32 %v7569_v58, %v16177_v29  ;;  %v12255_v29 = vld [vmem:[%s16845_s1 + $0xfb0] sm:$0xff]  ;;  %v8393_v58 = vor.u32 %v11466_v47, %v8390_v16 }
 0x466   :  { %v7661_v6 = vpop.f32.mrf.mxu2  ;;  %v16351_v46 = vpop.f32.mrf.mxu0  ;;  %8061 = vmatpush.bf16.msrb.mxu2 %v12255_v29 }
 0x467   :  { %v16349_v35 = vadd.f32 %v7661_v6, %v7628_v63  ;;  %v7629_v5 = vpop.f32.mrf.mxu1  ;;  %v16357_v22 = vadd.f32 %v16271_v18, %v7570_v37  ;;  %v9388_v18 = vld [vmem:[%s16846_s0 + $0x8b8] sm:$0xf]  ;;  %v12233_v63 = vld [vmem:[%s16845_s1 + $0xf00] sm:$0xff]  ;;  %v8397_v37 = vor.u32 %v11498_v15, %v8396_v13  ;;  %v11717_v13 = vld [vmem:[%s16846_s0 + $0x8bc] sm:$0xf] }
 0x468   :  { %v7630_v59 = vadd.f32 %v7629_v5, %v16280_v25  ;;  %v8893_v25 = vor.u32 %v11623_v19, %v8892_v57  ;;  %v9389_v39 = vor.u32 %v11748_v30, %v9388_v18  ;;  %v12247_v5 = vld [vmem:[%s16845_s1 + $0xf70] sm:$0xff]  ;;  %v12252_v30 = vld [vmem:[%s16845_s1 + $0xf98] sm:$0xff] }
 0x469   :  { %12266 = vmatpush.bf16.msrb.mxu1 %v12247_v5  ;;  %v9390_v15 = vld [vmem:[%s16846_s0 + $0x9b4] sm:$0xf0] }
 0x46a   :  { %8062 = vmatpush.bf16.msrb.mxu2 %v12254_v32 }
 0x46c   :  { %v7571_v56 = vpop.f32.mrf.mxu3 }
 0x46d   :  { %v7572_v40 = vadd.f32 %v7571_v56, %v16222_v12  ;;  %v12230_v12 = vld [vmem:[%s16845_s1 + $0xee8] sm:$0xff] }
 0x46e   :  { %v7663_v36 = vpop.f32.mrf.mxu2  ;;  %v16390_v48 = vpop.f32.mrf.mxu0  ;;  %7960 = vmatpush.bf16.msrb.mxu3 %v12230_v12  ;;  %v12226_v56 = vld [vmem:[%s16845_s1 + $0xec8] sm:$0xff] }
 0x46f   :  { %v16388_v28 = vadd.f32 %v7663_v36, %v7630_v59  ;;  %v7632_v3 = vpop.f32.mrf.mxu1  ;;  %v16396_v53 = vadd.f32 %v16292_v0, %v7572_v40  ;;  %v12235_v0 = vld [vmem:[%s16845_s1 + $0xf10] sm:$0xff]  ;;  %v12253_v59 = vld [vmem:[%s16845_s1 + $0xfa0] sm:$0xff] }
 0x470   :  { %v7633_v27 = vadd.f32 %v7632_v3, %v16294_v49  ;;  %7997 = vmatpush.bf16.msrb.mxu0 %v12235_v0  ;;  %8063 = vmatpush.bf16.msrb.mxu2 %v12253_v59  ;;  %v11654_v40 = vld [vmem:[%s16846_s0 + $0x6c4] sm:$0xf]  ;;  %v9138_v36 = vld [vmem:[%s16846_s0 + $0x7bc] sm:$0xf0] }
 0x471   :  { %7835 = vmatmul.bf16.gmra.mxu3 %v8637_v17  ;;  %7874 = vmatmul.bf16.gmra.mxu0 %v8893_v25  ;;  %v9396_v17 = vld [vmem:[%s16846_s0 + $0x8c0] sm:$0xf]  ;;  %v11749_v25 = vld [vmem:[%s16846_s0 + $0x9b8] sm:$0xf0]  ;;  %v9141_v12 = vor.u32 %v11654_v40, %v9138_v36 }
 0x472   :  { %7782 = vmatmul.bf16.gmra.mxu1 %v9385_v23  ;;  %7961 = vmatpush.bf16.msrb.mxu3 %v12229_v54  ;;  %v8642_v23 = vld [vmem:[%s16846_s0 + $0x3d4] sm:$0xf0]  ;;  %v12249_v36 = vld [vmem:[%s16845_s1 + $0xf80] sm:$0xff] }
 0x473   :  { %7816 = vmatmul.bf16.gmra.mxu2 %v9389_v39  ;;  %v8648_v39 = vld [vmem:[%s16846_s0 + $0x2e0] sm:$0xf] }
 0x474   :  { %v7574_v41 = vpop.f32.mrf.mxu3  ;;  %7998 = vmatpush.bf16.msrb.mxu0 %v12234_v24  ;;  %8064 = vmatpush.bf16.msrb.mxu2 %v12252_v30  ;;  %v8649_v32 = vor.u32 %v11561_v43, %v8648_v39  ;;  %v12251_v24 = vld [vmem:[%s16845_s1 + $0xf90] sm:$0xff]  ;;  %v11562_v39 = vld [vmem:[%s16846_s0 + $0x3e0] sm:$0xf0]  ;;  %v9146_v43 = vld [vmem:[%s16846_s0 + $0x7c4] sm:$0xf0] }
 0x475   :  { %v7575_v26 = vadd.f32 %v7574_v41, %v16233_v50  ;;  %v9397_v41 = vor.u32 %v11749_v25, %v9396_v17  ;;  %v11655_v17 = vld [vmem:[%s16846_s0 + $0x6cc] sm:$0xf] }
 0x476   :  { %v7666_v62 = vpop.f32.mrf.mxu2  ;;  %v16408_v49 = vpop.f32.mrf.mxu0  ;;  %v11467_v25 = vld [vmem:[%s16846_s0 + $0xec] sm:$0xf] }
 0x477   :  { %v16406_v34 = vadd.f32 %v7666_v62, %v7633_v27  ;;  %v7634_v10 = vpop.f32.mrf.mxu1  ;;  %v16417_v50 = vadd.f32 %v16338_v44, %v7575_v26  ;;  %v12225_v26 = vld [vmem:[%s16845_s1 + $0xec0] sm:$0xff] }
 0x478   :  { %v7635_v61 = vadd.f32 %v7634_v10, %v7601_v9  ;;  %v9145_v9 = vor.u32 %v11686_v60, %v9144_v11  ;;  %7999 = vmatpush.bf16.msrb.mxu0 %v12233_v63  ;;  %8065 = vmatpush.bf16.msrb.mxu2 %v12251_v24 }
 0x47c   :  { %v7576_v44 = vpop.f32.mrf.mxu3  ;;  %8026 = vmatpush.bf16.msra.mxu0 %v12248_v52 }
 0x47d   :  { %v7577_v45 = vadd.f32 %v7576_v44, %v16269_v2  ;;  %v8404_v44 = vld [vmem:[%s16846_s0 + $0xf0] sm:$0xf] }
 0x47e   :  { %v7668_v51 = vpop.f32.mrf.mxu2  ;;  %v16455_v8 = vpop.f32.mrf.mxu0 }
 0x47f   :  { %v16453_v1 = vadd.f32 %v7668_v51, %v7635_v61  ;;  %v7637_v6 = vpop.f32.mrf.mxu1  ;;  %v16458_v55 = vadd.f32 %v16351_v46, %v7577_v45  ;;  %v12228_v46 = vld [vmem:[%s16845_s1 + $0xed8] sm:$0xff]  ;;  %v11499_v45 = vld [vmem:[%s16846_s0 + $0x1e8] sm:$0xf0]  ;;  %v8894_v51 = vld [vmem:[%s16846_s0 + $0x5cc] sm:$0xf0] }
 0x480   :  { %v7638_v2 = vadd.f32 %v7637_v6, %v16357_v22  ;;  %7962 = vmatpush.bf16.msrb.mxu3 %v12228_v46  ;;  %8027 = vmatpush.bf16.msra.mxu0 %v12247_v5  ;;  %v8405_v6 = vor.u32 %v11499_v45, %v8404_v44  ;;  %v12244_v46 = vld [vmem:[%s16845_s1 + $0xf58] sm:$0xff]  ;;  %v8908_v44 = vld [vmem:[%s16846_s0 + $0x4e0] sm:$0xf] }
 0x481   :  { %7840 = vmatmul.bf16.gmra.mxu3 %v8889_v33  ;;  %7879 = vmatmul.bf16.gmra.mxu0 %v9145_v9  ;;  %v8900_v33 = vld [vmem:[%s16846_s0 + $0x4d8] sm:$0xf]  ;;  %v11624_v9 = vld [vmem:[%s16846_s0 + $0x5d0] sm:$0xf0]  ;;  %v11625_v45 = vld [vmem:[%s16846_s0 + $0x5d8] sm:$0xf0] }
 0x482   :  { %7898 = vmatmul.bf16.vlgmr.msra.gmra.mxu1 %v8393_v58  ;;  %v8901_v59 = vor.u32 %v11624_v9, %v8900_v33  ;;  %v9404_v33 = vld [vmem:[%s16846_s0 + $0x8c8] sm:$0xf]  ;;  %v11750_v9 = vld [vmem:[%s16846_s0 + $0x9c0] sm:$0xf0] }
 0x483   :  { %7932 = vmatmul.bf16.vlgmr.msra.gmra.mxu2 %v8397_v37  ;;  %v9393_v37 = vor.u32 %v11717_v13, %v9390_v15 }
 0x484   :  { %v7579_v22 = vpop.f32.mrf.mxu3  ;;  %7963 = vmatpush.bf16.msrb.mxu3 %v12227_v21 }
 0x485   :  { %v7580_v29 = vadd.f32 %v7579_v22, %v16290_v20  ;;  %v12246_v20 = vld [vmem:[%s16845_s1 + $0xf68] sm:$0xff] }
 0x486   :  { %v7671_v4 = vpop.f32.mrf.mxu2  ;;  %v16476_v57 = vpop.f32.mrf.mxu0  ;;  %12267 = vmatpush.bf16.msrb.mxu1 %v12246_v20  ;;  %8028 = vmatpush.bf16.msra.mxu0 %v12246_v20  ;;  %v12250_v22 = vld [vmem:[%s16845_s1 + $0xf88] sm:$0xff]  ;;  %v12243_v20 = vld [vmem:[%s16845_s1 + $0xf50] sm:$0xff] }
 0x487   :  { %v16474_v14 = vadd.f32 %v7671_v4, %v7638_v2  ;;  %v7639_v19 = vpop.f32.mrf.mxu1  ;;  %v16479_v7 = vadd.f32 %v16390_v48, %v7580_v29  ;;  %v11529_v48 = vld [vmem:[%s16846_s0 + $0x2dc] sm:$0xf]  ;;  %8066 = vmatpush.bf16.msrb.mxu2 %v12250_v22 }
 0x488   :  { %v7640_v18 = vadd.f32 %v7639_v19, %v16396_v53  ;;  %7964 = vmatpush.bf16.msrb.mxu3 %v12226_v56  ;;  %v8645_v52 = vor.u32 %v11529_v48, %v8642_v23  ;;  %v8398_v48 = vld [vmem:[%s16846_s0 + $0x1e4] sm:$0xf0] }
 0x489   :  { %v8656_v23 = vld [vmem:[%s16846_s0 + $0x2e8] sm:$0xf] }
 0x48b   :  { %8067 = vmatpush.bf16.msrb.mxu2 %v12249_v36  ;;  %v9160_v36 = vld [vmem:[%s16846_s0 + $0x6d8] sm:$0xf] }
 0x48c   :  { %v7581_v3 = vpop.f32.mrf.mxu3  ;;  %7965 = vmatpush.bf16.msrb.mxu3 %v12225_v26  ;;  %v8401_v26 = vor.u32 %v11467_v25, %v8398_v48  ;;  %v8412_v25 = vld [vmem:[%s16846_s0 + $0xf8] sm:$0xf]  ;;  %v11500_v48 = vld [vmem:[%s16846_s0 + $0x1f0] sm:$0xf0] }
 0x48d   :  { %v7582_v53 = vadd.f32 %v7581_v3, %v16336_v42  ;;  %v12245_v42 = vld [vmem:[%s16845_s1 + $0xf60] sm:$0xff]  ;;  %v9152_v3 = vld [vmem:[%s16846_s0 + $0x6d0] sm:$0xf] }
 0x48e   :  { %v7673_v27 = vpop.f32.mrf.mxu2  ;;  %v7734_v0 = vpop.f32.mrf.mxu0  ;;  %12268 = vmatpush.bf16.msrb.mxu1 %v12245_v42  ;;  %8029 = vmatpush.bf16.msra.mxu0 %v12245_v42 }
 0x48f   :  { %v16519_v62 = vadd.f32 %v7673_v27, %v7640_v18  ;;  %v7642_v10 = vpop.f32.mrf.mxu1  ;;  %v7616_v61 = vadd.f32 %v16408_v49, %v7582_v53  ;;  %v11687_v53 = vld [vmem:[%s16846_s0 + $0x7c8] sm:$0xf0] }
 0x490   :  { %v7643_v54 = vadd.f32 %v7642_v10, %v16417_v50 }
 0x491   :  { %7845 = vmatmul.bf16.gmra.mxu3 %v9141_v12  ;;  %7884 = vmatmul.bf16.gmra.mxu0 %v9397_v41 }
 0x492   :  { %7903 = vmatmul.bf16.gmra.mxu1 %v8645_v52  ;;  %8030 = vmatpush.bf16.msra.mxu0 %v12244_v46  ;;  %v12241_v52 = vld [vmem:[%s16845_s1 + $0xf40] sm:$0xff] }
 0x493   :  { %7937 = vmatmul.bf16.gmra.mxu2 %v8649_v32  ;;  %12269 = vmatpush.bf16.msrb.mxu1 %v12244_v46  ;;  %v9405_v46 = vor.u32 %v11750_v9, %v9404_v33 }
 0x494   :  { %v7695_v31 = vpop.f32.mrf.mxu3 }
 0x495   :  { %v7696_v49 = vadd.f32 %v7695_v31, %v16349_v35  ;;  %v11592_v35 = vld [vmem:[%s16846_s0 + $0x4d4] sm:$0xf] }
 0x496   :  { %v7676_v38 = vpop.f32.mrf.mxu2  ;;  %v16532_v11 = vpop.f32.mrf.mxu0  ;;  %v8897_v5 = vor.u32 %v11592_v35, %v8894_v51  ;;  %8031 = vmatpush.bf16.msra.mxu0 %v12243_v20  ;;  %v9398_v51 = vld [vmem:[%s16846_s0 + $0x9bc] sm:$0xf0] }
 0x497   :  { %v16530_v50 = vadd.f32 %v7676_v38, %v7643_v54  ;;  %v7644_v60 = vpop.f32.mrf.mxu1  ;;  %v16535_v47 = vadd.f32 %v16455_v8, %v7696_v49  ;;  %12270 = vmatpush.bf16.msrb.mxu1 %v12243_v20  ;;  %v9153_v54 = vor.u32 %v11687_v53, %v9152_v3 }
 0x498   :  { %v7645_v16 = vadd.f32 %v7644_v60, %v16458_v55 }
 0x49c   :  { %v7697_v63 = vpop.f32.mrf.mxu3 }
 0x49d   :  { %v7698_v58 = vadd.f32 %v7697_v63, %v16388_v28 }
 0x49e   :  { %v7678_v8 = vpop.f32.mrf.mxu2  ;;  %v16565_v2 = vpop.f32.mrf.mxu0 }
 0x49f   :  { %v16563_v55 = vadd.f32 %v7678_v8, %v7645_v16  ;;  %v7647_v29 = vpop.f32.mrf.mxu1  ;;  %v7732_v4 = vadd.f32 %v16476_v57, %v7698_v58 }
 0x4a0   :  { %v7648_v28 = vadd.f32 %v7647_v29, %v16479_v7 }
 0x4a1   :  { %7850 = vmatmul.bf16.gmra.mxu3 %v9393_v37  ;;  %8000 = vmatmul.bf16.vlgmr.msrb.gmra.mxu0 %v8405_v6  ;;  %v8909_v6 = vor.u32 %v11625_v45, %v8908_v44 }
 0x4a2   :  { %7908 = vmatmul.bf16.gmra.mxu1 %v8897_v5 }
 0x4a3   :  { %7942 = vmatmul.bf16.gmra.mxu2 %v8901_v59 }
 0x4a4   :  { %v7700_v21 = vpop.f32.mrf.mxu3 }
 0x4a5   :  { %v7701_v18 = vadd.f32 %v7700_v21, %v16406_v34  ;;  %v12242_v34 = vld [vmem:[%s16845_s1 + $0xf48] sm:$0xff] }
 0x4a6   :  { %v7681_v19 = vpop.f32.mrf.mxu2  ;;  %v16581_v57 = vpop.f32.mrf.mxu0  ;;  %12271 = vmatpush.bf16.msrb.mxu1 %v12242_v34  ;;  %8032 = vmatpush.bf16.msra.mxu0 %v12242_v34  ;;  %v11531_v34 = vld [vmem:[%s16846_s0 + $0x2ec] sm:$0xf] }
 0x4a7   :  { %v16579_v30 = vadd.f32 %v7681_v19, %v7648_v28  ;;  %v7649_v7 = vpop.f32.mrf.mxu1  ;;  %v16583_v56 = vadd.f32 %v7734_v0, %v7701_v18  ;;  %v8657_v0 = vor.u32 %v11562_v39, %v8656_v23 }
 0x4a8   :  { %v7650_v40 = vadd.f32 %v7649_v7, %v7616_v61  ;;  %v9149_v61 = vor.u32 %v11655_v17, %v9146_v43  ;;  %v8658_v17 = vld [vmem:[%s16846_s0 + $0x3e4] sm:$0xf0] }
 0x4aa   :  { %12272 = vmatpush.bf16.msrb.mxu1 %v12241_v52  ;;  %8033 = vmatpush.bf16.msra.mxu0 %v12241_v52 }
 0x4ac   :  { %v7702_v27 = vpop.f32.mrf.mxu3 }
 0x4ad   :  { %v7703_v41 = vadd.f32 %v7702_v27, %v16453_v1 }
 0x4ae   :  { %v7683_v12 = vpop.f32.mrf.mxu2  ;;  %v7744_v10 = vpop.f32.mrf.mxu0 }
 0x4af   :  { %v16619_v32 = vadd.f32 %v7683_v12, %v7650_v40  ;;  %v7763_v42 = vpop.f32.mrf.mxu1  ;;  %v7737_v24 = vadd.f32 %v16532_v11, %v7703_v41  ;;  %v11718_v11 = vld [vmem:[%s16846_s0 + $0x8c4] sm:$0xf]  ;;  %v8661_v41 = vor.u32 %v11531_v34, %v8658_v17 }
 0x4b0   :  { %v7764_v31 = vadd.f32 %v7763_v42, %v16535_v47  ;;  %v11530_v47 = vld [vmem:[%s16846_s0 + $0x2e4] sm:$0xf]  ;;  %v9401_v59 = vor.u32 %v11718_v11, %v9398_v51  ;;  %v8664_v11 = vld [vmem:[%s16846_s0 + $0x2f0] sm:$0xf] }
 0x4b1   :  { %7966 = vmatmul.bf16.vlgmr.msrb.gmra.mxu3 %v8401_v26  ;;  %8005 = vmatmul.bf16.gmra.mxu0 %v8657_v0  ;;  %v8413_v26 = vor.u32 %v11500_v48, %v8412_v25 }
 0x4b2   :  { %7913 = vmatmul.bf16.gmra.mxu1 %v9149_v61 }
 0x4b3   :  { %7947 = vmatmul.bf16.gmra.mxu2 %v9153_v54 }
 0x4b4   :  { %v7705_v1 = vpop.f32.mrf.mxu3 }
 0x4b5   :  { %v7706_v38 = vadd.f32 %v7705_v1, %v16474_v14  ;;  %v8650_v14 = vld [vmem:[%s16846_s0 + $0x3dc] sm:$0xf0] }
 0x4b6   :  { %v7797_v49 = vpop.f32.mrf.mxu2  ;;  %v7746_v16 = vpop.f32.mrf.mxu0  ;;  %v8653_v37 = vor.u32 %v11530_v47, %v8650_v14  ;;  %v11563_v47 = vld [vmem:[%s16846_s0 + $0x3e8] sm:$0xf0] }
 0x4b7   :  { %v16624_v60 = vadd.f32 %v7797_v49, %v7764_v31  ;;  %v7765_v13 = vpop.f32.mrf.mxu1  ;;  %v7740_v15 = vadd.f32 %v16565_v2, %v7706_v38  ;;  %v11656_v49 = vld [vmem:[%s16846_s0 + $0x6d4] sm:$0xf] }
 0x4b8   :  { %v7766_v35 = vadd.f32 %v7765_v13, %v7732_v4  ;;  %v9412_v13 = vld [vmem:[%s16846_s0 + $0x8d0] sm:$0xf] }
 0x4bc   :  { %v7707_v63 = vpop.f32.mrf.mxu3 }
 0x4bd   :  { %v7708_v8 = vadd.f32 %v7707_v63, %v16519_v62 }
 0x4be   :  { %v7799_v58 = vpop.f32.mrf.mxu2  ;;  %v7749_v5 = vpop.f32.mrf.mxu0 }
 0x4bf   :  { %v16652_v2 = vadd.f32 %v7799_v58, %v7766_v35  ;;  %v7768_v22 = vpop.f32.mrf.mxu1  ;;  %v7742_v29 = vadd.f32 %v16581_v57, %v7708_v8  ;;  %v11593_v57 = vld [vmem:[%s16846_s0 + $0x4dc] sm:$0xf]  ;;  %v8910_v35 = vld [vmem:[%s16846_s0 + $0x5dc] sm:$0xf0]  ;;  %v8665_v58 = vor.u32 %v11563_v47, %v8664_v11 }
 0x4c0   :  { %v7769_v4 = vadd.f32 %v7768_v22, %v16583_v56  ;;  %v8902_v56 = vld [vmem:[%s16846_s0 + $0x5d4] sm:$0xf0] }
 0x4c1   :  { %7971 = vmatmul.bf16.gmra.mxu3 %v8653_v37  ;;  %8010 = vmatmul.bf16.gmra.mxu0 %v8909_v6  ;;  %v8905_v3 = vor.u32 %v11593_v57, %v8902_v56  ;;  %v8916_v57 = vld [vmem:[%s16846_s0 + $0x4e8] sm:$0xf]  ;;  %v11626_v56 = vld [vmem:[%s16846_s0 + $0x5e0] sm:$0xf0] }
 0x4c2   :  { %7918 = vmatmul.bf16.gmra.mxu1 %v9401_v59 }
 0x4c3   :  { %7952 = vmatmul.bf16.gmra.mxu2 %v9405_v46 }
 0x4c4   :  { %v7710_v28 = vpop.f32.mrf.mxu3 }
 0x4c5   :  { %v7711_v62 = vadd.f32 %v7710_v28, %v16530_v50  ;;  %v11688_v50 = vld [vmem:[%s16846_s0 + $0x7d0] sm:$0xf0] }
 0x4c6   :  { %v7802_v21 = vpop.f32.mrf.mxu2  ;;  %v7751_v18 = vpop.f32.mrf.mxu0  ;;  %v9161_v53 = vor.u32 %v11688_v50, %v9160_v36 }
 0x4c7   :  { %v16657_v19 = vadd.f32 %v7802_v21, %v7769_v4  ;;  %v7770_v20 = vpop.f32.mrf.mxu1  ;;  %v7745_v7 = vadd.f32 %v7744_v10, %v7711_v62  ;;  %v11719_v21 = vld [vmem:[%s16846_s0 + $0x8cc] sm:$0xf] }
 0x4c8   :  { %v7771_v40 = vadd.f32 %v7770_v20, %v7737_v24  ;;  %v11468_v20 = vld [vmem:[%s16846_s0 + $0xf4] sm:$0xf] }
 0x4cc   :  { %v7712_v23 = vpop.f32.mrf.mxu3 }
 0x4cd   :  { %v7713_v39 = vadd.f32 %v7712_v23, %v16563_v55 }
 0x4ce   :  { %v7804_v43 = vpop.f32.mrf.mxu2  ;;  %v7865_v12 = vpop.f32.mrf.mxu0 }
 0x4cf   :  { %v16684_v27 = vadd.f32 %v7804_v43, %v7771_v40  ;;  %v7773_v0 = vpop.f32.mrf.mxu1  ;;  %v7747_v52 = vadd.f32 %v7746_v16, %v7713_v39  ;;  %v9154_v16 = vld [vmem:[%s16846_s0 + $0x7cc] sm:$0xf0]  ;;  %v9162_v40 = vld [vmem:[%s16846_s0 + $0x7d4] sm:$0xf0]  ;;  %v8917_v43 = vor.u32 %v11626_v56, %v8916_v57 }
 0x4d0   :  { %v7774_v10 = vadd.f32 %v7773_v0, %v7740_v15  ;;  %v11594_v15 = vld [vmem:[%s16846_s0 + $0x4e4] sm:$0xf]  ;;  %v9157_v51 = vor.u32 %v11656_v49, %v9154_v16 }
 0x4d1   :  { %7976 = vmatmul.bf16.gmra.mxu3 %v8905_v3  ;;  %8015 = vmatmul.bf16.gmra.mxu0 %v9161_v53  ;;  %v8913_v8 = vor.u32 %v11594_v15, %v8910_v35 }
 0x4d2   :  { %8039 = vmatmul.bf16.vlgmr.msrb.gmra.mxu1 %v8661_v41 }
 0x4d3   :  { %8068 = vmatmul.bf16.vlgmr.msrb.gmra.mxu2 %v8413_v26 }
 0x4d4   :  { %v7715_v61 = vpop.f32.mrf.mxu3 }
 0x4d5   :  { %v7716_v54 = vadd.f32 %v7715_v61, %v16579_v30  ;;  %v11751_v30 = vld [vmem:[%s16846_s0 + $0x9c8] sm:$0xf0] }
 0x4d6   :  { %v7807_v42 = vpop.f32.mrf.mxu2  ;;  %v7867_v24 = vpop.f32.mrf.mxu0  ;;  %v9413_v33 = vor.u32 %v11751_v30, %v9412_v13 }
 0x4d7   :  { %v16687_v55 = vadd.f32 %v7807_v42, %v7774_v10  ;;  %v7775_v31 = vpop.f32.mrf.mxu1  ;;  %v7750_v1 = vadd.f32 %v7749_v5, %v7716_v54  ;;  %v11720_v42 = vld [vmem:[%s16846_s0 + $0x8d4] sm:$0xf] }
 0x4d8   :  { %v7776_v38 = vadd.f32 %v7775_v31, %v7742_v29  ;;  %v9168_v31 = vld [vmem:[%s16846_s0 + $0x6e0] sm:$0xf] }
 0x4dc   :  { %v7717_v14 = vpop.f32.mrf.mxu3 }
 0x4dd   :  { %v7718_v44 = vadd.f32 %v7717_v14, %v16619_v32 }
 0x4de   :  { %v7809_v45 = vpop.f32.mrf.mxu2  ;;  %v7870_v63 = vpop.f32.mrf.mxu0 }
 0x4df   :  { %v16714_v9 = vadd.f32 %v7809_v45, %v7776_v38  ;;  %v7778_v37 = vpop.f32.mrf.mxu1  ;;  %v7752_v6 = vadd.f32 %v7751_v18, %v7718_v44  ;;  %v9406_v18 = vld [vmem:[%s16846_s0 + $0x9c4] sm:$0xf0] }
 0x4e0   :  { %v7779_v5 = vadd.f32 %v7778_v37, %v7745_v7  ;;  %v11657_v7 = vld [vmem:[%s16846_s0 + $0x6dc] sm:$0xf]  ;;  %v9409_v17 = vor.u32 %v11719_v21, %v9406_v18  ;;  %v11752_v37 = vld [vmem:[%s16846_s0 + $0x9d0] sm:$0xf0] }
 0x4e1   :  { %7981 = vmatmul.bf16.gmra.mxu3 %v9157_v51  ;;  %8020 = vmatmul.bf16.gmra.mxu0 %v9413_v33  ;;  %v9165_v39 = vor.u32 %v11657_v7, %v9162_v40 }
 0x4e2   :  { %8044 = vmatmul.bf16.gmra.mxu1 %v8913_v8 }
 0x4e3   :  { %8073 = vmatmul.bf16.gmra.mxu2 %v8665_v58 }
 0x4e4   :  { %v7831_v59 = vpop.f32.mrf.mxu3 }
 0x4e5   :  { %v7832_v22 = vadd.f32 %v7831_v59, %v16624_v60  ;;  %v8406_v60 = vld [vmem:[%s16846_s0 + $0x1ec] sm:$0xf0] }
 0x4e6   :  { %v7812_v46 = vpop.f32.mrf.mxu2  ;;  %v7872_v29 = vpop.f32.mrf.mxu0  ;;  %v8409_v25 = vor.u32 %v11468_v20, %v8406_v60 }
 0x4e7   :  { %v16717_v32 = vadd.f32 %v7812_v46, %v7779_v5  ;;  %v7780_v4 = vpop.f32.mrf.mxu1  ;;  %v7866_v28 = vadd.f32 %v7865_v12, %v7832_v22 }
 0x4e8   :  { %v7781_v62 = vadd.f32 %v7780_v4, %v7747_v52 }
 0x4ec   :  { %v7833_v36 = vpop.f32.mrf.mxu3 }
 0x4ed   :  { %v7834_v34 = vadd.f32 %v7833_v36, %v16652_v2 }
 0x4ee   :  { %v7814_v50 = vpop.f32.mrf.mxu2  ;;  %v7875_v23 = vpop.f32.mrf.mxu0 }
 0x4ef   :  { %v16744_v48 = vadd.f32 %v7814_v50, %v7781_v62  ;;  %v7783_v3 = vpop.f32.mrf.mxu1  ;;  %v7868_v53 = vadd.f32 %v7867_v24, %v7834_v34  ;;  %v9414_v24 = vld [vmem:[%s16846_s0 + $0x9cc] sm:$0xf0] }
 0x4f0   :  { %v7784_v12 = vadd.f32 %v7783_v3, %v7750_v1  ;;  %v9417_v30 = vor.u32 %v11720_v42, %v9414_v24 }
 0x4f1   :  { %7986 = vmatmul.bf16.gmra.mxu3 %v9409_v17  ;;  %8034 = vmatmul.bf16.vlgmr.msra.gmra.mxu0 %v8409_v25 }
 0x4f2   :  { %8049 = vmatmul.bf16.gmra.mxu1 %v9165_v39 }
 0x4f3   :  { %8078 = vmatmul.bf16.gmra.mxu2 %v8917_v43 }
 0x4f4   :  { %v7836_v41 = vpop.f32.mrf.mxu3 }
 0x4f5   :  { %v7837_v0 = vadd.f32 %v7836_v41, %v16657_v19  ;;  %v11689_v19 = vld [vmem:[%s16846_s0 + $0x7d8] sm:$0xf0] }
 0x4f6   :  { %v7817_v26 = vpop.f32.mrf.mxu2  ;;  %v7877_v2 = vpop.f32.mrf.mxu0  ;;  %v9169_v15 = vor.u32 %v11689_v19, %v9168_v31 }
 0x4f7   :  { %v7818_v52 = vadd.f32 %v7817_v26, %v7784_v12  ;;  %v7785_v10 = vpop.f32.mrf.mxu1  ;;  %v7871_v61 = vadd.f32 %v7870_v63, %v7837_v0 }
 0x4f8   :  { %v7786_v54 = vadd.f32 %v7785_v10, %v7752_v6 }
 0x4fc   :  { %v7838_v1 = vpop.f32.mrf.mxu3 }
 0x4fd   :  { %v7839_v49 = vadd.f32 %v7838_v1, %v16684_v27  ;;  %v9420_v27 = vld [vmem:[%s16846_s0 + $0x8d8] sm:$0xf] }
 0x4fe   :  { %v7819_v38 = vpop.f32.mrf.mxu2  ;;  %v7880_v13 = vpop.f32.mrf.mxu0  ;;  %v9421_v22 = vor.u32 %v11752_v37, %v9420_v27 }
 0x4ff   :  { %v7820_v16 = vadd.f32 %v7819_v38, %v7786_v54  ;;  %v7899_v35 = vpop.f32.mrf.mxu1  ;;  %v7873_v11 = vadd.f32 %v7872_v29, %v7839_v49 }
 0x500   :  { %v7900_v47 = vadd.f32 %v7899_v35, %v7866_v28 }
 0x502   :  { %8054 = vmatmul.bf16.gmra.mxu1 %v9417_v30 }
 0x503   :  { %8083 = vmatmul.bf16.gmra.mxu2 %v9169_v15 }
 0x504   :  { %v7841_v14 = vpop.f32.mrf.mxu3 }
 0x505   :  { %v7842_v44 = vadd.f32 %v7841_v14, %v16687_v55 }
 0x506   :  { %v7933_v45 = vpop.f32.mrf.mxu2  ;;  %v7882_v33 = vpop.f32.mrf.mxu0 }
 0x507   :  { %v7934_v51 = vadd.f32 %v7933_v45, %v7900_v47  ;;  %v7901_v63 = vpop.f32.mrf.mxu1  ;;  %v7876_v8 = vadd.f32 %v7875_v23, %v7842_v44 }
 0x508   :  { %v7902_v58 = vadd.f32 %v7901_v63, %v7868_v53 }
 0x50c   :  { %v7843_v6 = vpop.f32.mrf.mxu3 }
 0x50d   :  { %v7844_v5 = vadd.f32 %v7843_v6, %v16714_v9 }
 0x50e   :  { %v7935_v59 = vpop.f32.mrf.mxu2  ;;  %v7885_v55 = vpop.f32.mrf.mxu0 }
 0x50f   :  { %v7936_v46 = vadd.f32 %v7935_v59, %v7902_v58  ;;  %v7904_v29 = vpop.f32.mrf.mxu1  ;;  %v7878_v4 = vadd.f32 %v7877_v2, %v7844_v5 }
 0x510   :  { %v7905_v28 = vadd.f32 %v7904_v29, %v7871_v61 }
 0x513   :  { %8088 = vmatmul.bf16.gmra.mxu2 %v9421_v22 }
 0x514   :  { %v7846_v62 = vpop.f32.mrf.mxu3 }
 0x515   :  { %v7847_v21 = vadd.f32 %v7846_v62, %v16717_v32 }
 0x516   :  { %v7938_v18 = vpop.f32.mrf.mxu2  ;;  %v7887_v60 = vpop.f32.mrf.mxu0 }
 0x517   :  { %v7939_v20 = vadd.f32 %v7938_v18, %v7905_v28  ;;  %v7906_v7 = vpop.f32.mrf.mxu1  ;;  %v7881_v40 = vadd.f32 %v7880_v13, %v7847_v21 }
 0x518   :  { %v7907_v57 = vadd.f32 %v7906_v7, %v7873_v11 }
 0x51c   :  { %v7848_v56 = vpop.f32.mrf.mxu3 }
 0x51d   :  { %v7849_v9 = vadd.f32 %v7848_v56, %v16744_v48 }
 0x51e   :  { %v7940_v36 = vpop.f32.mrf.mxu2  ;;  %v8001_v34 = vpop.f32.mrf.mxu0 }
 0x51f   :  { %v7941_v50 = vadd.f32 %v7940_v36, %v7907_v57  ;;  %v7909_v17 = vpop.f32.mrf.mxu1  ;;  %v7883_v25 = vadd.f32 %v7882_v33, %v7849_v9 }
 0x520   :  { %v7910_v23 = vadd.f32 %v7909_v17, %v7876_v8 }
 0x524   :  { %v7851_v39 = vpop.f32.mrf.mxu3 }
 0x525   :  { %v7852_v43 = vadd.f32 %v7851_v39, %v7818_v52 }
 0x526   :  { %v7943_v3 = vpop.f32.mrf.mxu2  ;;  %v8003_v32 = vpop.f32.mrf.mxu0 }
 0x527   :  { %v7944_v53 = vadd.f32 %v7943_v3, %v7910_v23  ;;  %v7911_v12 = vpop.f32.mrf.mxu1  ;;  %v7886_v41 = vadd.f32 %v7885_v55, %v7852_v43 }
 0x528   :  { %v7912_v26 = vadd.f32 %v7911_v12, %v7878_v4 }
 0x52c   :  { %v7853_v0 = vpop.f32.mrf.mxu3 }
 0x52d   :  { %v7854_v2 = vadd.f32 %v7853_v0, %v7820_v16 }
 0x52e   :  { %v7945_v10 = vpop.f32.mrf.mxu2  ;;  %v8006_v48 = vpop.f32.mrf.mxu0 }
 0x52f   :  { %v16770_v61 = vadd.f32 %v7945_v10, %v7912_v26  ;;  %v7914_v54 = vpop.f32.mrf.mxu1  ;;  %v7888_v42 = vadd.f32 %v7887_v60, %v7854_v2 }
 0x530   :  { %v7915_v24 = vadd.f32 %v7914_v54, %v7881_v40 }
 0x534   :  { %v7967_v31 = vpop.f32.mrf.mxu3 }
 0x535   :  { %v7968_v1 = vadd.f32 %v7967_v31, %v7934_v51 }
 0x536   :  { %v7948_v19 = vpop.f32.mrf.mxu2  ;;  %v8008_v52 = vpop.f32.mrf.mxu0 }
 0x537   :  { %v16772_v38 = vadd.f32 %v7948_v19, %v7915_v24  ;;  %v7916_v49 = vpop.f32.mrf.mxu1  ;;  %v8002_v13 = vadd.f32 %v8001_v34, %v7968_v1 }
 0x538   :  { %v7917_v30 = vadd.f32 %v7916_v49, %v7883_v25 }
 0x53c   :  { %v7969_v15 = vpop.f32.mrf.mxu3 }
 0x53d   :  { %v7970_v11 = vadd.f32 %v7969_v15, %v7936_v46 }
 0x53e   :  { %v7950_v35 = vpop.f32.mrf.mxu2  ;;  %v8011_v47 = vpop.f32.mrf.mxu0 }
 0x53f   :  { %v16774_v16 = vadd.f32 %v7950_v35, %v7917_v30  ;;  %v7919_v14 = vpop.f32.mrf.mxu1  ;;  %v8004_v44 = vadd.f32 %v8003_v32, %v7970_v11 }
 0x540   :  { %v7920_v45 = vadd.f32 %v7919_v14, %v7886_v41 }
 0x544   :  { %v7972_v27 = vpop.f32.mrf.mxu3 }
 0x545   :  { %v7973_v28 = vadd.f32 %v7972_v27, %v7939_v20 }
 0x546   :  { %v7953_v33 = vpop.f32.mrf.mxu2  ;;  %v8013_v8 = vpop.f32.mrf.mxu0 }
 0x547   :  { %v16776_v63 = vadd.f32 %v7953_v33, %v7920_v45  ;;  %v7921_v51 = vpop.f32.mrf.mxu1  ;;  %v8007_v18 = vadd.f32 %v8006_v48, %v7973_v28 }
 0x548   :  { %v7922_v58 = vadd.f32 %v7921_v51, %v7888_v42 }
 0x54c   :  { %v7974_v22 = vpop.f32.mrf.mxu3 }
 0x54d   :  { %v7975_v40 = vadd.f32 %v7974_v22, %v7941_v50 }
 0x54e   :  { %v7955_v37 = vpop.f32.mrf.mxu2  ;;  %v16780_v5 = vpop.f32.mrf.mxu0 }
 0x54f   :  { %v16778_v6 = vadd.f32 %v7955_v37, %v7922_v58  ;;  %v8040_v59 = vpop.f32.mrf.mxu1  ;;  %v8009_v36 = vadd.f32 %v8008_v52, %v7975_v40  ;;  %v12274_v52 = vmov 0.0  }
 0x550   :  { %v8041_v60 = vadd.f32 %v8040_v59, %v8007_v18  ;;  %18 = vst [vmem:[%s16848_s3] sm:$0x1] %v12274_v52 }
 0x551   :  { %19 = vst [vmem:[%s16849_s4] sm:$0x1] %v12274_v52 }
 0x554   :  { %v7977_v21 = vpop.f32.mrf.mxu3 }
 0x555   :  { %v7978_v20 = vadd.f32 %v7977_v21, %v7944_v53 }
 0x556   :  { %v8069_v46 = vpop.f32.mrf.mxu2  ;;  %v16782_v55 = vpop.f32.mrf.mxu0 }
 0x557   :  { %v8042_v29 = vpop.f32.mrf.mxu1  ;;  %v8012_v32 = vadd.f32 %v8011_v47, %v7978_v20 }
 0x558   :  { %v8043_v17 = vadd.f32 %v8042_v29, %v8009_v36 }
 0x55c   :  { %v7979_v34 = vpop.f32.mrf.mxu3 }
 0x55d   :  { %v7980_v0 = vadd.f32 %v7979_v34, %v16770_v61 }
 0x55e   :  { %v8071_v4 = vpop.f32.mrf.mxu2  ;;  %v16784_v62 = vpop.f32.mrf.mxu0 }
 0x55f   :  { %v8045_v9 = vpop.f32.mrf.mxu1  ;;  %v8014_v54 = vadd.f32 %v8013_v8, %v7980_v0 }
 0x560   :  { %v8046_v12 = vadd.f32 %v8045_v9, %v8012_v32 }
 0x564   :  { %v7982_v41 = vpop.f32.mrf.mxu3 }
 0x565   :  { %v7983_v15 = vadd.f32 %v7982_v41, %v16772_v38 }
 0x566   :  { %v8074_v7 = vpop.f32.mrf.mxu2  ;;  %v16786_v56 = vpop.f32.mrf.mxu0 }
 0x567   :  { %v8075_v57 = vadd.f32 %v8074_v7, %v8041_v60  ;;  %v8047_v50 = vpop.f32.mrf.mxu1  ;;  %v8017_v51 = vadd.f32 %v16780_v5, %v7983_v15 }
 0x568   :  { %v8048_v1 = vadd.f32 %v8047_v50, %v8014_v54 }
 0x569   :  { %8096 = vst [vmem:[%s16847_s2 + $0x10] sm:$0xff] %v8075_v57  ;;  %v8125_v61 = vmul.f32 %v8075_v57, %v8075_v57 }
 0x56c   :  { %v7984_v11 = vpop.f32.mrf.mxu3 }
 0x56d   :  { %v7985_v29 = vadd.f32 %v7984_v11, %v16774_v16 }
 0x56e   :  { %v8076_v25 = vpop.f32.mrf.mxu2  ;;  %v8035_v39 = vpop.f32.mrf.mxu0 }
 0x56f   :  { %v8077_v23 = vadd.f32 %v8076_v25, %v8043_v17  ;;  %v8036_v43 = vadd.f32 %v8035_v39, %v8002_v13  ;;  %v8050_v24 = vpop.f32.mrf.mxu1  ;;  %v8019_v60 = vadd.f32 %v16782_v55, %v7985_v29 }
 0x570   :  { %v8051_v59 = vadd.f32 %v8050_v24, %v8017_v51 }
 0x571   :  { %8097 = vst [vmem:[%s16847_s2 + $0x18] sm:$0xff] %v8077_v23  ;;  %v8070_v3 = vadd.f32 %v8069_v46, %v8036_v43  ;;  %v8126_v47 = vmul.f32 %v8077_v23, %v8077_v23 }
 0x573   :  { %8094 = vst [vmem:[%s16847_s2] sm:$0xff] %v8070_v3  ;;  %v8123_v42 = vmul.f32 %v8070_v3, %v8070_v3 }
 0x574   :  { %v7987_v18 = vpop.f32.mrf.mxu3 }
 0x576   :  { %v8079_v26 = vpop.f32.mrf.mxu2  ;;  %v8037_v2 = vpop.f32.mrf.mxu0 }
 0x577   :  { %v8080_v53 = vadd.f32 %v8079_v26, %v8046_v12  ;;  %v8038_v10 = vadd.f32 %v8037_v2, %v8004_v44  ;;  %v8052_v46 = vpop.f32.mrf.mxu1 }
 0x578   :  { %v8053_v7 = vadd.f32 %v8052_v46, %v8019_v60 }
 0x579   :  { %8098 = vst [vmem:[%s16847_s2 + $0x20] sm:$0xff] %v8080_v53  ;;  %v8072_v48 = vadd.f32 %v8071_v4, %v8038_v10  ;;  %v8127_v45 = vmul.f32 %v8080_v53, %v8080_v53 }
 0x57b   :  { %8095 = vst [vmem:[%s16847_s2 + $0x8] sm:$0xff] %v8072_v48  ;;  %v8105_v31 = vadd.f32 %v8072_v48, %v8070_v3  ;;  %v8124_v19 = vmul.f32 %v8072_v48, %v8072_v48 }
 0x57c   :  { %v7989_v20 = vpop.f32.mrf.mxu3 }
 0x57d   :  { %v8106_v49 = vadd.f32 %v8105_v31, %v8075_v57  ;;  %v8133_v13 = vadd.f32 %v8124_v19, %v8123_v42  ;;  %v7988_v57 = vadd.f32 %v7987_v18, %v16776_v63  ;;  %v7990_v55 = vadd.f32 %v7989_v20, %v16778_v6 }
 0x57e   :  { %v8081_v30 = vpop.f32.mrf.mxu2 }
 0x57f   :  { %v8082_v35 = vadd.f32 %v8081_v30, %v8048_v1  ;;  %v8134_v14 = vadd.f32 %v8133_v13, %v8125_v61  ;;  %v8107_v44 = vadd.f32 %v8106_v49, %v8077_v23  ;;  %v8055_v36 = vpop.f32.mrf.mxu1  ;;  %v8022_v17 = vadd.f32 %v16784_v62, %v7988_v57  ;;  %v8104_v1 = vld [vmem:[%s16848_s3] sm:$0x1] }
 0x580   :  { %v8024_v32 = vadd.f32 %v16786_v56, %v7990_v55  ;;  %v8122_v49 = vld [vmem:[%s16849_s4] sm:$0x1] }
 0x581   :  { %8099 = vst [vmem:[%s16847_s2 + $0x28] sm:$0xff] %v8082_v35  ;;  %v8108_v33 = vadd.f32 %v8107_v44, %v8080_v53  ;;  %v8135_v8 = vadd.f32 %v8134_v14, %v8126_v47  ;;  %v8128_v27 = vmul.f32 %v8082_v35, %v8082_v35  ;;  %v8056_v23 = vadd.f32 %v8055_v36, %v8022_v17 }
 0x583   :  { %v8109_v58 = vadd.f32 %v8108_v33, %v8082_v35  ;;  %v8136_v37 = vadd.f32 %v8135_v8, %v8127_v45 }
 0x585   :  { %v8137_v38 = vadd.f32 %v8136_v37, %v8128_v27 }
 0x586   :  { %v8084_v22 = vpop.f32.mrf.mxu2 }
 0x587   :  { %v8085_v4 = vadd.f32 %v8084_v22, %v8051_v59  ;;  %v8057_v3 = vpop.f32.mrf.mxu1 }
 0x588   :  { %v8058_v41 = vadd.f32 %v8057_v3, %v8024_v32 }
 0x589   :  { %8100 = vst [vmem:[%s16847_s2 + $0x30] sm:$0xff] %v8085_v4  ;;  %v8110_v28 = vadd.f32 %v8109_v58, %v8085_v4  ;;  %v8129_v21 = vmul.f32 %v8085_v4, %v8085_v4 }
 0x58b   :  { %v8138_v5 = vadd.f32 %v8137_v38, %v8129_v21 }
 0x58e   :  { %v8086_v40 = vpop.f32.mrf.mxu2 }
 0x58f   :  { %v8087_v9 = vadd.f32 %v8086_v40, %v8053_v7 }
 0x591   :  { %8101 = vst [vmem:[%s16847_s2 + $0x38] sm:$0xff] %v8087_v9  ;;  %v8111_v16 = vadd.f32 %v8110_v28, %v8087_v9  ;;  %v8130_v34 = vmul.f32 %v8087_v9, %v8087_v9 }
 0x593   :  { %v8139_v25 = vadd.f32 %v8138_v5, %v8130_v34 }
 0x596   :  { %v8089_v39 = vpop.f32.mrf.mxu2 }
 0x597   :  { %v8090_v43 = vadd.f32 %v8089_v39, %v8056_v23 }
 0x599   :  { %8102 = vst [vmem:[%s16847_s2 + $0x40] sm:$0xff] %v8090_v43  ;;  %v8112_v63 = vadd.f32 %v8111_v16, %v8090_v43  ;;  %v8131_v50 = vmul.f32 %v8090_v43, %v8090_v43 }
 0x59b   :  { %v8140_v12 = vadd.f32 %v8139_v25, %v8131_v50 }
 0x59e   :  { %v8091_v26 = vpop.f32.mrf.mxu2 }
 0x59f   :  { %v8092_v62 = vadd.f32 %v8091_v26, %v8058_v41 }
 0x5a1   :  { %8103 = vst [vmem:[%s16847_s2 + $0x48] sm:$0xff] %v8092_v62  ;;  %v8113_v0 = vadd.f32 %v8112_v63, %v8092_v62  ;;  %v8132_v6 = vmul.f32 %v8092_v62, %v8092_v62 }
 0x5a3   :  { %v8114_v53 = vrot.slane %v8113_v0, 4  ;;  %v8141_v2 = vadd.f32 %v8140_v12, %v8132_v6 }
 0x5a5   :  { %v8115_v10 = vadd.f32 %v8114_v53, %v8113_v0  ;;  %v8142_v48 = vrot.slane %v8141_v2, 4 }
 0x5a7   :  { %v8116_v54 = vrot.slane %v8115_v10, 2  ;;  %v8143_v42 = vadd.f32 %v8142_v48, %v8141_v2 }
 0x5a9   :  { %v8117_v24 = vadd.f32 %v8116_v54, %v8115_v10  ;;  %v8144_v31 = vrot.slane %v8143_v42, 2 }
 0x5ab   :  { %v8118_v19 = vrot.slane %v8117_v24, 1  ;;  %v8145_v56 = vadd.f32 %v8144_v31, %v8143_v42 }
 0x5ad   :  { %v8119_v52 = vadd.f32 %v8118_v19, %v8117_v24  ;;  %v8146_v61 = vrot.slane %v8145_v56, 1 }
 0x5af   :  { %v8120_v13 = vadd.f32 %v8119_v52, %v8104_v1  ;;  %v8147_v30 = vadd.f32 %v8146_v61, %v8145_v56 }
 0x5b1   :  { %8121 = vst [vmem:[%s16848_s3] sm:$0x1] %v8120_v13  ;;  %v8148_v15 = vadd.f32 %v8147_v30, %v8122_v49 }
 0x5b3   :  { %8149 = vst [vmem:[%s16849_s4] sm:$0x1] %v8148_v15 }

</bundles_post_ra>
